<compile_context>
chip_gen: v6e
topology: v6e:2x2x1
jax: 0.10.0
libtpu: 0.0.40
codegen_flags: <defaults>
</compile_context>

<pallas_src>
import functools
import math

import jax
import jax.numpy as jnp
from jax import lax
from jax.experimental import pallas as pl
from jax.experimental.pallas import tpu as pltpu


# ----------------------------- shared forward math ---------------------------

_SQRT_HALF = 1.0 / math.sqrt(2.0)


def _gelu(x):
    # Exact erf-based GELU (matches torch.nn.GELU / F.gelu default).
    return 0.5 * x * (1.0 + lax.erf(x * _SQRT_HALF))


def _act(x, act):
    if act == "gelu":
        return _gelu(x)
    if act == "relu":
        return jnp.maximum(x, 0.0)
    return x


def _linear(x, w, b, act=None):
    y = jnp.dot(x, w, preferred_element_type=jnp.float32) + b
    return _act(y, act)


def _ln(x, g, b, eps=1e-5):
    m = jnp.mean(x, axis=-1, keepdims=True)
    v = jnp.mean((x - m) ** 2, axis=-1, keepdims=True)   # biased variance (torch LN)
    return (x - m) * lax.rsqrt(v + eps) * g + b


def _softmax_lastdim(s, approx):
    m = jnp.max(s, axis=-1, keepdims=True)
    e = jnp.exp(s - m)
    l = jnp.sum(e, axis=-1, keepdims=True)
    if approx:
        return e * pl.reciprocal(l, approx=True)   # EUP vrcp — only inside the kernel
    return e / l


def _attention(q, k, v, nhead, approx):
    """q: (Sq, D), k/v: (Sk, D).  Heads are contiguous dh-wide lane slices."""
    D = q.shape[-1]
    dh = D // nhead
    q = q * (1.0 / math.sqrt(dh))                 # fold scale into q once
    outs = []
    for h in range(nhead):
        sl = slice(h * dh, (h + 1) * dh)
        # q_h @ k_h^T without an explicit transposed copy of k.
        s = lax.dot_general(q[:, sl], k[:, sl], (((1,), (1,)), ((), ())),
                            preferred_element_type=jnp.float32)      # (Sq, Sk)
        probs = _softmax_lastdim(s, approx)
        outs.append(jnp.dot(probs, v[:, sl], preferred_element_type=jnp.float32))
    return jnp.concatenate(outs, axis=-1)         # (Sq, D)


def _mha_self(x, wqkv, bqkv, wo, bo, nhead, approx):
    D = x.shape[-1]
    qkv = _linear(x, wqkv, bqkv)                  # fused QKV projection
    q, k, v = qkv[:, :D], qkv[:, D:2 * D], qkv[:, 2 * D:]
    return _linear(_attention(q, k, v, nhead, approx), wo, bo)


def _mha_cross(xq, k, v, wq, bq, wo, bo, nhead, approx):
    q = _linear(xq, wq, bq)
    return _linear(_attention(q, k, v, nhead, approx), wo, bo)


def _forward_body(p, x, nhead, act, encode_position, n_enc, n_dec, approx):
    """Full forward for ONE batch element.

    `p` is a pytree of either Pallas VMEM Refs (inside the kernel) or plain arrays
    (pure-JAX reference).  Only `leaf[...]` (full read) and `leaf[l]` (static leading
    index) are used, which behave identically for Refs and arrays, so the exact same
    code defines both the kernel math and the reference.
    """
    D = p["query"].shape[-1]

    # input_proj: 4 x (Conv1d(kernel=1) + GELU) == per-position linear + GELU
    x = _linear(x, p["ip0"]["w"][...], p["ip0"]["b"][...], act="gelu")
    for l in range(p["ip"]["w"].shape[0]):
        x = _linear(x, p["ip"]["w"][l], p["ip"]["b"][l], act="gelu")

    if encode_position:
        x = x + p["pos"][...]                     # (W, D) per-position embedding

    # ---- encoder (post-norm layers, nn.Transformer default) ----
    mem = x
    e = p["enc"]
    for l in range(n_enc):
        sa = _mha_self(mem, e["wqkv"][l], e["bqkv"][l], e["wo"][l], e["bo"][l],
                       nhead, approx)
        mem = _ln(mem + sa, e["ln1_g"][l], e["ln1_b"][l])
        f = _linear(_linear(mem, e["ff_w1"][l], e["ff_b1"][l], act=act),
                    e["ff_w2"][l], e["ff_b2"][l])
        mem = _ln(mem + f, e["ln2_g"][l], e["ln2_b"][l])
    mem = _ln(mem, p["enc_norm"]["g"][...], p["enc_norm"]["b"][...])

    # ---- decoder (query embedding is the initial target for every batch element) ----
    t = p["query"][...]
    d = p["dec"]
    for l in range(n_dec):
        sa = _mha_self(t, d["s_wqkv"][l], d["s_bqkv"][l], d["s_wo"][l], d["s_bo"][l],
                       nhead, approx)
        t = _ln(t + sa, d["ln1_g"][l], d["ln1_b"][l])
        kv = _linear(mem, d["c_wkv"][l], d["c_bkv"][l])     # fused K/V projection
        ca = _mha_cross(t, kv[:, :D], kv[:, D:],
                        d["c_wq"][l], d["c_bq"][l], d["c_wo"][l], d["c_bo"][l],
                        nhead, approx)
        t = _ln(t + ca, d["ln2_g"][l], d["ln2_b"][l])
        f = _linear(_linear(t, d["ff_w1"][l], d["ff_b1"][l], act=act),
                    d["ff_w2"][l], d["ff_b2"][l])
        t = _ln(t + f, d["ln3_g"][l], d["ln3_b"][l])
    t = _ln(t, p["dec_norm"]["g"][...], p["dec_norm"]["b"][...])

    # final LayerNorm (self.ln) + imu_head (Conv1d k=1 -> linear, GELU, linear)
    # TODO(synk): imu_head Dropout(0.1) treated as identity (eval-mode forward).
    t = _ln(t, p["ln"]["g"][...], p["ln"]["b"][...])
    t = _linear(t, p["head0"]["w"][...], p["head0"]["b"][...], act="gelu")
    t = _linear(t, p["head1"]["w"][...], p["head1"]["b"][...])
    return t                                       # (W, Din)


# ----------------------------- fused Pallas kernel ----------------------------


def _fused_kernel(treedef, nhead, act, encode_position, W, Din, n_enc, n_dec,
                  src_ref, *refs):
    out_ref = refs[-1]
    p = jax.tree_util.tree_unflatten(treedef, list(refs[:-1]))   # tree of VMEM Refs

    # one batch element per grid step: (1, W, Din) -> (W, Din)
    x = src_ref[...].reshape(W, Din).astype(jnp.float32)
    y = _forward_body(p, x, nhead, act, encode_position, n_enc, n_dec, approx=True)
    out_ref[...] = y.reshape(1, W, Din).astype(out_ref.dtype)


def _const_index_map(rank):
    def im(b):
        return (0,) * rank
    return im


def transformer_forward(src, params, config):
    B, W, Din = src.shape
    leaves, treedef = jax.tree_util.tree_flatten(params)

    kernel = functools.partial(
        _fused_kernel, treedef, config["nhead"],
        config["transformer_activation"], config["encode_position"],
        W, Din, config["num_encoder_layers"], config["num_decoder_layers"])

    in_specs = [pl.BlockSpec((1, W, Din), lambda b: (b, 0, 0))]
    # Every weight block == full array, constant index map -> DMA'd to VMEM once.
    in_specs += [pl.BlockSpec(tuple(leaf.shape), _const_index_map(leaf.ndim))
                 for leaf in leaves]

    return pl.pallas_call(
        kernel,
        grid=(B,),
        out_shape=jax.ShapeDtypeStruct((B, W, Din), src.dtype),
        in_specs=in_specs,
        out_specs=pl.BlockSpec((1, W, Din), lambda b: (b, 0, 0)),
        compiler_params=pltpu.CompilerParams(
            dimension_semantics=("parallel",),   # batch elements independent -> v7x 2-TC
        ),
    )(src, *leaves)


# ----------------------------- pure-JAX reference -----------------------------


def transformer_reference(src, params, config):
    def one(x):
        return _forward_body(
            params, x.astype(jnp.float32), config["nhead"],
            config["transformer_activation"], config["encode_position"],
            config["num_encoder_layers"], config["num_decoder_layers"],
            approx=False)
    return jax.vmap(one)(src).astype(src.dtype)


# --------------------------------- param init ---------------------------------


def _xavier(key, shape):
    fan_in, fan_out = shape
    limit = math.sqrt(6.0 / (fan_in + fan_out))
    return jax.random.uniform(key, shape, jnp.float32, -limit, limit)


def init_params(key, config):
    D = config["transformer_dim"]
    Din = config["input_dim"]
    W = config["window_size"]
    FF = config["dim_feedforward"]
    Le = config["num_encoder_layers"]
    Ld = config["num_decoder_layers"]

    keys = iter(jax.random.split(key, 1024))
    nk = lambda: next(keys)

    def zeros(*s):
        return jnp.zeros(s, jnp.float32)

    def ones(*s):
        return jnp.ones(s, jnp.float32)

    def xstack(n, shape):
        return jnp.stack([_xavier(nk(), shape) for _ in range(n)], axis=0)

    def qkv_stack(n):   # per-layer fused (D, 3D) QKV weights, stacked over layers
        return jnp.stack(
            [jnp.concatenate([_xavier(nk(), (D, D)) for _ in range(3)], axis=1)
             for _ in range(n)], axis=0)

    def kv_stack(n):    # per-layer fused (D, 2D) cross-attn K/V weights
        return jnp.stack(
            [jnp.concatenate([_xavier(nk(), (D, D)) for _ in range(2)], axis=1)
             for _ in range(n)], axis=0)

    p = {
        # input_proj convs (kernel=1) stored as (Cin, Cout); layers 1..3 stacked
        "ip0": {"w": _xavier(nk(), (Din, D)), "b": zeros(1, D)},
        "ip": {"w": xstack(3, (D, D)), "b": zeros(3, 1, D)},
        "query": _xavier(nk(), (W, D)),
        "enc": {
            "wqkv": qkv_stack(Le), "bqkv": zeros(Le, 1, 3 * D),
            "wo": xstack(Le, (D, D)), "bo": zeros(Le, 1, D),
            "ln1_g": ones(Le, 1, D), "ln1_b": zeros(Le, 1, D),
            "ff_w1": xstack(Le, (D, FF)), "ff_b1": zeros(Le, 1, FF),
            "ff_w2": xstack(Le, (FF, D)), "ff_b2": zeros(Le, 1, D),
            "ln2_g": ones(Le, 1, D), "ln2_b": zeros(Le, 1, D),
        },
        "dec": {
            "s_wqkv": qkv_stack(Ld), "s_bqkv": zeros(Ld, 1, 3 * D),
            "s_wo": xstack(Ld, (D, D)), "s_bo": zeros(Ld, 1, D),
            "c_wq": xstack(Ld, (D, D)), "c_bq": zeros(Ld, 1, D),
            "c_wkv": kv_stack(Ld), "c_bkv": zeros(Ld, 1, 2 * D),
            "c_wo": xstack(Ld, (D, D)), "c_bo": zeros(Ld, 1, D),
            "ln1_g": ones(Ld, 1, D), "ln1_b": zeros(Ld, 1, D),
            "ln2_g": ones(Ld, 1, D), "ln2_b": zeros(Ld, 1, D),
            "ln3_g": ones(Ld, 1, D), "ln3_b": zeros(Ld, 1, D),
            "ff_w1": xstack(Ld, (D, FF)), "ff_b1": zeros(Ld, 1, FF),
            "ff_w2": xstack(Ld, (FF, D)), "ff_b2": zeros(Ld, 1, D),
        },
        "enc_norm": {"g": ones(1, D), "b": zeros(1, D)},
        "dec_norm": {"g": ones(1, D), "b": zeros(1, D)},
        "ln": {"g": ones(1, D), "b": zeros(1, D)},
        "head0": {"w": _xavier(nk(), (D, D // 4)), "b": zeros(1, D // 4)},
        "head1": {"w": _xavier(nk(), (D // 4, Din)), "b": zeros(1, Din)},
    }
    if config["encode_position"]:
        p["pos"] = _xavier(nk(), (W, D))
    return p


# ------------------------------------ main -------------------------------------


if __name__ == "__main__":
    config = {
        "input_dim": 6,
        "transformer_dim": 32,
        "window_size": 8,
        "nhead": 4,
        "num_encoder_layers": 2,
        "num_decoder_layers": 2,
        "dim_feedforward": 64,
        "transformer_dropout": 0.0,        # dropout = identity in this deterministic forward
        "transformer_activation": "gelu",
        "encode_position": True,
    }
    B = 2

    key = jax.random.PRNGKey(0)
    kp, kx = jax.random.split(key)
    params = init_params(kp, config)
    src = jax.random.normal(kx, (B, config["window_size"], config["input_dim"]),
                            jnp.float32)

    fwd = jax.jit(lambda s, p: transformer_forward(s, p, config))
    out = fwd(src, params)
    jax.block_until_ready(out)

    assert out.shape == (B, config["window_size"], config["input_dim"]), out.shape
    assert bool(jnp.all(jnp.isfinite(out)))

    # Validate against a pure-JAX reference built from the same _forward_body.
    with jax.default_matmul_precision("highest"):
        ref = jax.jit(lambda s, p: transformer_reference(s, p, config))(src, params)
    jax.block_until_ready(ref)
    err = float(jnp.max(jnp.abs(out - ref)))
    assert err < 1e-1, f"max abs error vs pure-JAX reference: {err}"

    print("KERNEL_OK")
</pallas_src>

<mosaic_0001>
module attributes {stable_mosaic.version = 11 : i64} {
  func.func @_fused_kernel(%arg0: i32, %arg1: memref<1x8x6xf32, #tpu.memory_space<vmem>>, %arg2: memref<2x1x64xf32, #tpu.memory_space<vmem>>, %arg3: memref<2x1x32xf32, #tpu.memory_space<vmem>>, %arg4: memref<2x1x32xf32, #tpu.memory_space<vmem>>, %arg5: memref<2x32x64xf32, #tpu.memory_space<vmem>>, %arg6: memref<2x32x32xf32, #tpu.memory_space<vmem>>, %arg7: memref<2x32x32xf32, #tpu.memory_space<vmem>>, %arg8: memref<2x1x64xf32, #tpu.memory_space<vmem>>, %arg9: memref<2x1x32xf32, #tpu.memory_space<vmem>>, %arg10: memref<2x32x64xf32, #tpu.memory_space<vmem>>, %arg11: memref<2x64x32xf32, #tpu.memory_space<vmem>>, %arg12: memref<2x1x32xf32, #tpu.memory_space<vmem>>, %arg13: memref<2x1x32xf32, #tpu.memory_space<vmem>>, %arg14: memref<2x1x32xf32, #tpu.memory_space<vmem>>, %arg15: memref<2x1x32xf32, #tpu.memory_space<vmem>>, %arg16: memref<2x1x32xf32, #tpu.memory_space<vmem>>, %arg17: memref<2x1x32xf32, #tpu.memory_space<vmem>>, %arg18: memref<2x1x32xf32, #tpu.memory_space<vmem>>, %arg19: memref<2x1x96xf32, #tpu.memory_space<vmem>>, %arg20: memref<2x32x32xf32, #tpu.memory_space<vmem>>, %arg21: memref<2x32x96xf32, #tpu.memory_space<vmem>>, %arg22: memref<1x32xf32, #tpu.memory_space<vmem>>, %arg23: memref<1x32xf32, #tpu.memory_space<vmem>>, %arg24: memref<2x1x32xf32, #tpu.memory_space<vmem>>, %arg25: memref<2x1x96xf32, #tpu.memory_space<vmem>>, %arg26: memref<2x1x64xf32, #tpu.memory_space<vmem>>, %arg27: memref<2x1x32xf32, #tpu.memory_space<vmem>>, %arg28: memref<2x32x64xf32, #tpu.memory_space<vmem>>, %arg29: memref<2x64x32xf32, #tpu.memory_space<vmem>>, %arg30: memref<2x1x32xf32, #tpu.memory_space<vmem>>, %arg31: memref<2x1x32xf32, #tpu.memory_space<vmem>>, %arg32: memref<2x1x32xf32, #tpu.memory_space<vmem>>, %arg33: memref<2x1x32xf32, #tpu.memory_space<vmem>>, %arg34: memref<2x32x32xf32, #tpu.memory_space<vmem>>, %arg35: memref<2x32x96xf32, #tpu.memory_space<vmem>>, %arg36: memref<1x32xf32, #tpu.memory_space<vmem>>, %arg37: memref<1x32xf32, #tpu.memory_space<vmem>>, %arg38: memref<1x8xf32, #tpu.memory_space<vmem>>, %arg39: memref<32x8xf32, #tpu.memory_space<vmem>>, %arg40: memref<1x6xf32, #tpu.memory_space<vmem>>, %arg41: memref<8x6xf32, #tpu.memory_space<vmem>>, %arg42: memref<3x1x32xf32, #tpu.memory_space<vmem>>, %arg43: memref<3x32x32xf32, #tpu.memory_space<vmem>>, %arg44: memref<1x32xf32, #tpu.memory_space<vmem>>, %arg45: memref<6x32xf32, #tpu.memory_space<vmem>>, %arg46: memref<1x32xf32, #tpu.memory_space<vmem>>, %arg47: memref<1x32xf32, #tpu.memory_space<vmem>>, %arg48: memref<8x32xf32, #tpu.memory_space<vmem>>, %arg49: memref<8x32xf32, #tpu.memory_space<vmem>>, %arg50: memref<1x8x6xf32, #tpu.memory_space<vmem>>) attributes {dimension_semantics = [#tpu.dimension_semantics<parallel>], iteration_bounds = array<i64: 2>, scalar_prefetch = 0 : i64, scratch_operands = 0 : i64, tpu.core_type = #tpu.core_type<tc>, window_params = [{transform_indices = @transform_0, window_bounds = array<i64: 1, 8, 6>}, {pipeline_mode = #tpu.pipeline_mode<synchronous>, transform_indices = @transform_1, window_bounds = array<i64: 2, 1, 64>}, {pipeline_mode = #tpu.pipeline_mode<synchronous>, transform_indices = @transform_2, window_bounds = array<i64: 2, 1, 32>}, {pipeline_mode = #tpu.pipeline_mode<synchronous>, transform_indices = @transform_3, window_bounds = array<i64: 2, 1, 32>}, {pipeline_mode = #tpu.pipeline_mode<synchronous>, transform_indices = @transform_4, window_bounds = array<i64: 2, 32, 64>}, {pipeline_mode = #tpu.pipeline_mode<synchronous>, transform_indices = @transform_5, window_bounds = array<i64: 2, 32, 32>}, {pipeline_mode = #tpu.pipeline_mode<synchronous>, transform_indices = @transform_6, window_bounds = array<i64: 2, 32, 32>}, {pipeline_mode = #tpu.pipeline_mode<synchronous>, transform_indices = @transform_7, window_bounds = array<i64: 2, 1, 64>}, {pipeline_mode = #tpu.pipeline_mode<synchronous>, transform_indices = @transform_8, window_bounds = array<i64: 2, 1, 32>}, {pipeline_mode = #tpu.pipeline_mode<synchronous>, transform_indices = @transform_9, window_bounds = array<i64: 2, 32, 64>}, {pipeline_mode = #tpu.pipeline_mode<synchronous>, transform_indices = @transform_10, window_bounds = array<i64: 2, 64, 32>}, {pipeline_mode = #tpu.pipeline_mode<synchronous>, transform_indices = @transform_11, window_bounds = array<i64: 2, 1, 32>}, {pipeline_mode = #tpu.pipeline_mode<synchronous>, transform_indices = @transform_12, window_bounds = array<i64: 2, 1, 32>}, {pipeline_mode = #tpu.pipeline_mode<synchronous>, transform_indices = @transform_13, window_bounds = array<i64: 2, 1, 32>}, {pipeline_mode = #tpu.pipeline_mode<synchronous>, transform_indices = @transform_14, window_bounds = array<i64: 2, 1, 32>}, {pipeline_mode = #tpu.pipeline_mode<synchronous>, transform_indices = @transform_15, window_bounds = array<i64: 2, 1, 32>}, {pipeline_mode = #tpu.pipeline_mode<synchronous>, transform_indices = @transform_16, window_bounds = array<i64: 2, 1, 32>}, {pipeline_mode = #tpu.pipeline_mode<synchronous>, transform_indices = @transform_17, window_bounds = array<i64: 2, 1, 32>}, {pipeline_mode = #tpu.pipeline_mode<synchronous>, transform_indices = @transform_18, window_bounds = array<i64: 2, 1, 96>}, {pipeline_mode = #tpu.pipeline_mode<synchronous>, transform_indices = @transform_19, window_bounds = array<i64: 2, 32, 32>}, {pipeline_mode = #tpu.pipeline_mode<synchronous>, transform_indices = @transform_20, window_bounds = array<i64: 2, 32, 96>}, {pipeline_mode = #tpu.pipeline_mode<synchronous>, transform_indices = @transform_21, window_bounds = array<i64: 1, 32>}, {pipeline_mode = #tpu.pipeline_mode<synchronous>, transform_indices = @transform_22, window_bounds = array<i64: 1, 32>}, {pipeline_mode = #tpu.pipeline_mode<synchronous>, transform_indices = @transform_23, window_bounds = array<i64: 2, 1, 32>}, {pipeline_mode = #tpu.pipeline_mode<synchronous>, transform_indices = @transform_24, window_bounds = array<i64: 2, 1, 96>}, {pipeline_mode = #tpu.pipeline_mode<synchronous>, transform_indices = @transform_25, window_bounds = array<i64: 2, 1, 64>}, {pipeline_mode = #tpu.pipeline_mode<synchronous>, transform_indices = @transform_26, window_bounds = array<i64: 2, 1, 32>}, {pipeline_mode = #tpu.pipeline_mode<synchronous>, transform_indices = @transform_27, window_bounds = array<i64: 2, 32, 64>}, {pipeline_mode = #tpu.pipeline_mode<synchronous>, transform_indices = @transform_28, window_bounds = array<i64: 2, 64, 32>}, {pipeline_mode = #tpu.pipeline_mode<synchronous>, transform_indices = @transform_29, window_bounds = array<i64: 2, 1, 32>}, {pipeline_mode = #tpu.pipeline_mode<synchronous>, transform_indices = @transform_30, window_bounds = array<i64: 2, 1, 32>}, {pipeline_mode = #tpu.pipeline_mode<synchronous>, transform_indices = @transform_31, window_bounds = array<i64: 2, 1, 32>}, {pipeline_mode = #tpu.pipeline_mode<synchronous>, transform_indices = @transform_32, window_bounds = array<i64: 2, 1, 32>}, {pipeline_mode = #tpu.pipeline_mode<synchronous>, transform_indices = @transform_33, window_bounds = array<i64: 2, 32, 32>}, {pipeline_mode = #tpu.pipeline_mode<synchronous>, transform_indices = @transform_34, window_bounds = array<i64: 2, 32, 96>}, {pipeline_mode = #tpu.pipeline_mode<synchronous>, transform_indices = @transform_35, window_bounds = array<i64: 1, 32>}, {pipeline_mode = #tpu.pipeline_mode<synchronous>, transform_indices = @transform_36, window_bounds = array<i64: 1, 32>}, {pipeline_mode = #tpu.pipeline_mode<synchronous>, transform_indices = @transform_37, window_bounds = array<i64: 1, 8>}, {pipeline_mode = #tpu.pipeline_mode<synchronous>, transform_indices = @transform_38, window_bounds = array<i64: 32, 8>}, {pipeline_mode = #tpu.pipeline_mode<synchronous>, transform_indices = @transform_39, window_bounds = array<i64: 1, 6>}, {pipeline_mode = #tpu.pipeline_mode<synchronous>, transform_indices = @transform_40, window_bounds = array<i64: 8, 6>}, {pipeline_mode = #tpu.pipeline_mode<synchronous>, transform_indices = @transform_41, window_bounds = array<i64: 3, 1, 32>}, {pipeline_mode = #tpu.pipeline_mode<synchronous>, transform_indices = @transform_42, window_bounds = array<i64: 3, 32, 32>}, {pipeline_mode = #tpu.pipeline_mode<synchronous>, transform_indices = @transform_43, window_bounds = array<i64: 1, 32>}, {pipeline_mode = #tpu.pipeline_mode<synchronous>, transform_indices = @transform_44, window_bounds = array<i64: 6, 32>}, {pipeline_mode = #tpu.pipeline_mode<synchronous>, transform_indices = @transform_45, window_bounds = array<i64: 1, 32>}, {pipeline_mode = #tpu.pipeline_mode<synchronous>, transform_indices = @transform_46, window_bounds = array<i64: 1, 32>}, {pipeline_mode = #tpu.pipeline_mode<synchronous>, transform_indices = @transform_47, window_bounds = array<i64: 8, 32>}, {pipeline_mode = #tpu.pipeline_mode<synchronous>, transform_indices = @transform_48, window_bounds = array<i64: 8, 32>}, {transform_indices = @transform_49, window_bounds = array<i64: 1, 8, 6>}]} {
    %c0 = arith.constant 0 : index
    %c0_0 = arith.constant 0 : index
    %c0_1 = arith.constant 0 : index
    %0 = vector.load %arg1[%c0, %c0_0, %c0_1] : memref<1x8x6xf32, #tpu.memory_space<vmem>>, vector<1x8x6xf32>
    %1 = vector.shape_cast %0 : vector<1x8x6xf32> to vector<8x6xf32>
    %c0_2 = arith.constant 0 : index
    %c0_3 = arith.constant 0 : index
    %2 = vector.load %arg45[%c0_2, %c0_3] : memref<6x32xf32, #tpu.memory_space<vmem>>, vector<6x32xf32>
    %c0_4 = arith.constant 0 : index
    %c0_5 = arith.constant 0 : index
    %3 = vector.load %arg44[%c0_4, %c0_5] : memref<1x32xf32, #tpu.memory_space<vmem>>, vector<1x32xf32>
    %cst = arith.constant dense<0.000000e+00> : vector<8x32xf32>
    %4 = tpu.matmul %1, %2, %cst {dimension_numbers = #tpu.dot_dimension_numbers<[1], [0], [0], [1], [0, 0, 1, 1], [], []>} : vector<8x6xf32>, vector<6x32xf32>, vector<8x32xf32> -> vector<8x32xf32>
    %5 = vector.broadcast %3 : vector<1x32xf32> to vector<8x32xf32>
    %6 = arith.addf %4, %5 : vector<8x32xf32>
    %cst_6 = arith.constant 5.000000e-01 : f32
    %7 = vector.broadcast %cst_6 : f32 to vector<8x32xf32>
    %8 = arith.mulf %7, %6 : vector<8x32xf32>
    %cst_7 = arith.constant 0.707106769 : f32
    %9 = vector.broadcast %cst_7 : f32 to vector<8x32xf32>
    %10 = arith.mulf %6, %9 : vector<8x32xf32>
    %11 = math.erf %10 : vector<8x32xf32>
    %cst_8 = arith.constant 1.000000e+00 : f32
    %12 = vector.broadcast %cst_8 : f32 to vector<8x32xf32>
    %13 = arith.addf %12, %11 : vector<8x32xf32>
    %14 = arith.mulf %8, %13 : vector<8x32xf32>
    %c0_9 = arith.constant 0 : index
    %c0_10 = arith.constant 0 : index
    %c0_11 = arith.constant 0 : index
    %15 = vector.load %arg43[%c0_9, %c0_10, %c0_11] : memref<3x32x32xf32, #tpu.memory_space<vmem>>, vector<1x32x32xf32>
    %16 = vector.shape_cast %15 : vector<1x32x32xf32> to vector<32x32xf32>
    %c0_12 = arith.constant 0 : index
    %c0_13 = arith.constant 0 : index
    %c0_14 = arith.constant 0 : index
    %17 = vector.load %arg42[%c0_12, %c0_13, %c0_14] : memref<3x1x32xf32, #tpu.memory_space<vmem>>, vector<1x1x32xf32>
    %18 = vector.shape_cast %17 : vector<1x1x32xf32> to vector<1x32xf32>
    %cst_15 = arith.constant dense<0.000000e+00> : vector<8x32xf32>
    %19 = tpu.matmul %14, %16, %cst_15 {dimension_numbers = #tpu.dot_dimension_numbers<[1], [0], [0], [1], [0, 0, 1, 1], [], []>} : vector<8x32xf32>, vector<32x32xf32>, vector<8x32xf32> -> vector<8x32xf32>
    %20 = vector.broadcast %18 : vector<1x32xf32> to vector<8x32xf32>
    %21 = arith.addf %19, %20 : vector<8x32xf32>
    %cst_16 = arith.constant 5.000000e-01 : f32
    %22 = vector.broadcast %cst_16 : f32 to vector<8x32xf32>
    %23 = arith.mulf %22, %21 : vector<8x32xf32>
    %cst_17 = arith.constant 0.707106769 : f32
    %24 = vector.broadcast %cst_17 : f32 to vector<8x32xf32>
    %25 = arith.mulf %21, %24 : vector<8x32xf32>
    %26 = math.erf %25 : vector<8x32xf32>
    %cst_18 = arith.constant 1.000000e+00 : f32
    %27 = vector.broadcast %cst_18 : f32 to vector<8x32xf32>
    %28 = arith.addf %27, %26 : vector<8x32xf32>
    %29 = arith.mulf %23, %28 : vector<8x32xf32>
    %c1 = arith.constant 1 : index
    %c0_19 = arith.constant 0 : index
    %c0_20 = arith.constant 0 : index
    %30 = vector.load %arg43[%c1, %c0_19, %c0_20] : memref<3x32x32xf32, #tpu.memory_space<vmem>>, vector<1x32x32xf32>
    %31 = vector.shape_cast %30 : vector<1x32x32xf32> to vector<32x32xf32>
    %c1_21 = arith.constant 1 : index
    %c0_22 = arith.constant 0 : index
    %c0_23 = arith.constant 0 : index
    %32 = vector.load %arg42[%c1_21, %c0_22, %c0_23] : memref<3x1x32xf32, #tpu.memory_space<vmem>>, vector<1x1x32xf32>
    %33 = vector.shape_cast %32 : vector<1x1x32xf32> to vector<1x32xf32>
    %cst_24 = arith.constant dense<0.000000e+00> : vector<8x32xf32>
    %34 = tpu.matmul %29, %31, %cst_24 {dimension_numbers = #tpu.dot_dimension_numbers<[1], [0], [0], [1], [0, 0, 1, 1], [], []>} : vector<8x32xf32>, vector<32x32xf32>, vector<8x32xf32> -> vector<8x32xf32>
    %35 = vector.broadcast %33 : vector<1x32xf32> to vector<8x32xf32>
    %36 = arith.addf %34, %35 : vector<8x32xf32>
    %cst_25 = arith.constant 5.000000e-01 : f32
    %37 = vector.broadcast %cst_25 : f32 to vector<8x32xf32>
    %38 = arith.mulf %37, %36 : vector<8x32xf32>
    %cst_26 = arith.constant 0.707106769 : f32
    %39 = vector.broadcast %cst_26 : f32 to vector<8x32xf32>
    %40 = arith.mulf %36, %39 : vector<8x32xf32>
    %41 = math.erf %40 : vector<8x32xf32>
    %cst_27 = arith.constant 1.000000e+00 : f32
    %42 = vector.broadcast %cst_27 : f32 to vector<8x32xf32>
    %43 = arith.addf %42, %41 : vector<8x32xf32>
    %44 = arith.mulf %38, %43 : vector<8x32xf32>
    %c2 = arith.constant 2 : index
    %c0_28 = arith.constant 0 : index
    %c0_29 = arith.constant 0 : index
    %45 = vector.load %arg43[%c2, %c0_28, %c0_29] : memref<3x32x32xf32, #tpu.memory_space<vmem>>, vector<1x32x32xf32>
    %46 = vector.shape_cast %45 : vector<1x32x32xf32> to vector<32x32xf32>
    %c2_30 = arith.constant 2 : index
    %c0_31 = arith.constant 0 : index
    %c0_32 = arith.constant 0 : index
    %47 = vector.load %arg42[%c2_30, %c0_31, %c0_32] : memref<3x1x32xf32, #tpu.memory_space<vmem>>, vector<1x1x32xf32>
    %48 = vector.shape_cast %47 : vector<1x1x32xf32> to vector<1x32xf32>
    %cst_33 = arith.constant dense<0.000000e+00> : vector<8x32xf32>
    %49 = tpu.matmul %44, %46, %cst_33 {dimension_numbers = #tpu.dot_dimension_numbers<[1], [0], [0], [1], [0, 0, 1, 1], [], []>} : vector<8x32xf32>, vector<32x32xf32>, vector<8x32xf32> -> vector<8x32xf32>
    %50 = vector.broadcast %48 : vector<1x32xf32> to vector<8x32xf32>
    %51 = arith.addf %49, %50 : vector<8x32xf32>
    %cst_34 = arith.constant 5.000000e-01 : f32
    %52 = vector.broadcast %cst_34 : f32 to vector<8x32xf32>
    %53 = arith.mulf %52, %51 : vector<8x32xf32>
    %cst_35 = arith.constant 0.707106769 : f32
    %54 = vector.broadcast %cst_35 : f32 to vector<8x32xf32>
    %55 = arith.mulf %51, %54 : vector<8x32xf32>
    %56 = math.erf %55 : vector<8x32xf32>
    %cst_36 = arith.constant 1.000000e+00 : f32
    %57 = vector.broadcast %cst_36 : f32 to vector<8x32xf32>
    %58 = arith.addf %57, %56 : vector<8x32xf32>
    %59 = arith.mulf %53, %58 : vector<8x32xf32>
    %c0_37 = arith.constant 0 : index
    %c0_38 = arith.constant 0 : index
    %60 = vector.load %arg48[%c0_37, %c0_38] : memref<8x32xf32, #tpu.memory_space<vmem>>, vector<8x32xf32>
    %61 = arith.addf %59, %60 : vector<8x32xf32>
    %c0_39 = arith.constant 0 : index
    %c0_40 = arith.constant 0 : index
    %c0_41 = arith.constant 0 : index
    %62 = vector.load %arg35[%c0_39, %c0_40, %c0_41] : memref<2x32x96xf32, #tpu.memory_space<vmem>>, vector<1x32x96xf32>
    %63 = vector.shape_cast %62 : vector<1x32x96xf32> to vector<32x96xf32>
    %c0_42 = arith.constant 0 : index
    %c0_43 = arith.constant 0 : index
    %c0_44 = arith.constant 0 : index
    %64 = vector.load %arg25[%c0_42, %c0_43, %c0_44] : memref<2x1x96xf32, #tpu.memory_space<vmem>>, vector<1x1x96xf32>
    %65 = vector.shape_cast %64 : vector<1x1x96xf32> to vector<1x96xf32>
    %c0_45 = arith.constant 0 : index
    %c0_46 = arith.constant 0 : index
    %c0_47 = arith.constant 0 : index
    %66 = vector.load %arg34[%c0_45, %c0_46, %c0_47] : memref<2x32x32xf32, #tpu.memory_space<vmem>>, vector<1x32x32xf32>
    %67 = vector.shape_cast %66 : vector<1x32x32xf32> to vector<32x32xf32>
    %c0_48 = arith.constant 0 : index
    %c0_49 = arith.constant 0 : index
    %c0_50 = arith.constant 0 : index
    %68 = vector.load %arg24[%c0_48, %c0_49, %c0_50] : memref<2x1x32xf32, #tpu.memory_space<vmem>>, vector<1x1x32xf32>
    %69 = vector.shape_cast %68 : vector<1x1x32xf32> to vector<1x32xf32>
    %cst_51 = arith.constant dense<0.000000e+00> : vector<8x96xf32>
    %70 = tpu.matmul %61, %63, %cst_51 {dimension_numbers = #tpu.dot_dimension_numbers<[1], [0], [0], [1], [0, 0, 1, 1], [], []>} : vector<8x32xf32>, vector<32x96xf32>, vector<8x96xf32> -> vector<8x96xf32>
    %71 = vector.broadcast %65 : vector<1x96xf32> to vector<8x96xf32>
    %72 = arith.addf %70, %71 : vector<8x96xf32>
    %73 = vector.extract_strided_slice %72 {offsets = [0, 0], sizes = [8, 32], strides = [1, 1]} : vector<8x96xf32> to vector<8x32xf32>
    %74 = vector.extract_strided_slice %72 {offsets = [0, 32], sizes = [8, 32], strides = [1, 1]} : vector<8x96xf32> to vector<8x32xf32>
    %75 = vector.extract_strided_slice %72 {offsets = [0, 64], sizes = [8, 32], strides = [1, 1]} : vector<8x96xf32> to vector<8x32xf32>
    %cst_52 = arith.constant 0.353553385 : f32
    %76 = vector.broadcast %cst_52 : f32 to vector<8x32xf32>
    %77 = arith.mulf %73, %76 : vector<8x32xf32>
    %78 = vector.extract_strided_slice %77 {offsets = [0, 0], sizes = [8, 8], strides = [1, 1]} : vector<8x32xf32> to vector<8x8xf32>
    %79 = vector.extract_strided_slice %74 {offsets = [0, 0], sizes = [8, 8], strides = [1, 1]} : vector<8x32xf32> to vector<8x8xf32>
    %cst_53 = arith.constant dense<0.000000e+00> : vector<8x8xf32>
    %80 = tpu.matmul %78, %79, %cst_53 {dimension_numbers = #tpu.dot_dimension_numbers<[1], [1], [0], [0], [0, 0, 1, 0], [], []>} : vector<8x8xf32>, vector<8x8xf32>, vector<8x8xf32> -> vector<8x8xf32>
    %cst_54 = arith.constant dense<0xFF800000> : vector<8xf32>
    %81 = vector.multi_reduction <maximumf>, %80, %cst_54 [1] : vector<8x8xf32> to vector<8xf32>
    %82 = vector.shape_cast %81 : vector<8xf32> to vector<8x1xf32>
    %83 = vector.broadcast %82 : vector<8x1xf32> to vector<8x8xf32>
    %84 = arith.subf %80, %83 : vector<8x8xf32>
    %85 = math.exp %84 : vector<8x8xf32>
    %cst_55 = arith.constant dense<0.000000e+00> : vector<8xf32>
    %86 = vector.multi_reduction <add>, %85, %cst_55 [1] : vector<8x8xf32> to vector<8xf32>
    %87 = vector.shape_cast %86 : vector<8xf32> to vector<8x1xf32>
    %88 = tpu.reciprocal %87 {approx = true} : vector<8x1xf32> -> vector<8x1xf32>
    %89 = vector.broadcast %88 : vector<8x1xf32> to vector<8x8xf32>
    %90 = arith.mulf %85, %89 : vector<8x8xf32>
    %91 = vector.extract_strided_slice %75 {offsets = [0, 0], sizes = [8, 8], strides = [1, 1]} : vector<8x32xf32> to vector<8x8xf32>
    %cst_56 = arith.constant dense<0.000000e+00> : vector<8x8xf32>
    %92 = tpu.matmul %90, %91, %cst_56 {dimension_numbers = #tpu.dot_dimension_numbers<[1], [0], [0], [1], [0, 0, 1, 1], [], []>} : vector<8x8xf32>, vector<8x8xf32>, vector<8x8xf32> -> vector<8x8xf32>
    %93 = vector.extract_strided_slice %77 {offsets = [0, 8], sizes = [8, 8], strides = [1, 1]} : vector<8x32xf32> to vector<8x8xf32>
    %94 = vector.extract_strided_slice %74 {offsets = [0, 8], sizes = [8, 8], strides = [1, 1]} : vector<8x32xf32> to vector<8x8xf32>
    %cst_57 = arith.constant dense<0.000000e+00> : vector<8x8xf32>
    %95 = tpu.matmul %93, %94, %cst_57 {dimension_numbers = #tpu.dot_dimension_numbers<[1], [1], [0], [0], [0, 0, 1, 0], [], []>} : vector<8x8xf32>, vector<8x8xf32>, vector<8x8xf32> -> vector<8x8xf32>
    %cst_58 = arith.constant dense<0xFF800000> : vector<8xf32>
    %96 = vector.multi_reduction <maximumf>, %95, %cst_58 [1] : vector<8x8xf32> to vector<8xf32>
    %97 = vector.shape_cast %96 : vector<8xf32> to vector<8x1xf32>
    %98 = vector.broadcast %97 : vector<8x1xf32> to vector<8x8xf32>
    %99 = arith.subf %95, %98 : vector<8x8xf32>
    %100 = math.exp %99 : vector<8x8xf32>
    %cst_59 = arith.constant dense<0.000000e+00> : vector<8xf32>
    %101 = vector.multi_reduction <add>, %100, %cst_59 [1] : vector<8x8xf32> to vector<8xf32>
    %102 = vector.shape_cast %101 : vector<8xf32> to vector<8x1xf32>
    %103 = tpu.reciprocal %102 {approx = true} : vector<8x1xf32> -> vector<8x1xf32>
    %104 = vector.broadcast %103 : vector<8x1xf32> to vector<8x8xf32>
    %105 = arith.mulf %100, %104 : vector<8x8xf32>
    %106 = vector.extract_strided_slice %75 {offsets = [0, 8], sizes = [8, 8], strides = [1, 1]} : vector<8x32xf32> to vector<8x8xf32>
    %cst_60 = arith.constant dense<0.000000e+00> : vector<8x8xf32>
    %107 = tpu.matmul %105, %106, %cst_60 {dimension_numbers = #tpu.dot_dimension_numbers<[1], [0], [0], [1], [0, 0, 1, 1], [], []>} : vector<8x8xf32>, vector<8x8xf32>, vector<8x8xf32> -> vector<8x8xf32>
    %108 = vector.extract_strided_slice %77 {offsets = [0, 16], sizes = [8, 8], strides = [1, 1]} : vector<8x32xf32> to vector<8x8xf32>
    %109 = vector.extract_strided_slice %74 {offsets = [0, 16], sizes = [8, 8], strides = [1, 1]} : vector<8x32xf32> to vector<8x8xf32>
    %cst_61 = arith.constant dense<0.000000e+00> : vector<8x8xf32>
    %110 = tpu.matmul %108, %109, %cst_61 {dimension_numbers = #tpu.dot_dimension_numbers<[1], [1], [0], [0], [0, 0, 1, 0], [], []>} : vector<8x8xf32>, vector<8x8xf32>, vector<8x8xf32> -> vector<8x8xf32>
    %cst_62 = arith.constant dense<0xFF800000> : vector<8xf32>
    %111 = vector.multi_reduction <maximumf>, %110, %cst_62 [1] : vector<8x8xf32> to vector<8xf32>
    %112 = vector.shape_cast %111 : vector<8xf32> to vector<8x1xf32>
    %113 = vector.broadcast %112 : vector<8x1xf32> to vector<8x8xf32>
    %114 = arith.subf %110, %113 : vector<8x8xf32>
    %115 = math.exp %114 : vector<8x8xf32>
    %cst_63 = arith.constant dense<0.000000e+00> : vector<8xf32>
    %116 = vector.multi_reduction <add>, %115, %cst_63 [1] : vector<8x8xf32> to vector<8xf32>
    %117 = vector.shape_cast %116 : vector<8xf32> to vector<8x1xf32>
    %118 = tpu.reciprocal %117 {approx = true} : vector<8x1xf32> -> vector<8x1xf32>
    %119 = vector.broadcast %118 : vector<8x1xf32> to vector<8x8xf32>
    %120 = arith.mulf %115, %119 : vector<8x8xf32>
    %121 = vector.extract_strided_slice %75 {offsets = [0, 16], sizes = [8, 8], strides = [1, 1]} : vector<8x32xf32> to vector<8x8xf32>
    %cst_64 = arith.constant dense<0.000000e+00> : vector<8x8xf32>
    %122 = tpu.matmul %120, %121, %cst_64 {dimension_numbers = #tpu.dot_dimension_numbers<[1], [0], [0], [1], [0, 0, 1, 1], [], []>} : vector<8x8xf32>, vector<8x8xf32>, vector<8x8xf32> -> vector<8x8xf32>
    %123 = vector.extract_strided_slice %77 {offsets = [0, 24], sizes = [8, 8], strides = [1, 1]} : vector<8x32xf32> to vector<8x8xf32>
    %124 = vector.extract_strided_slice %74 {offsets = [0, 24], sizes = [8, 8], strides = [1, 1]} : vector<8x32xf32> to vector<8x8xf32>
    %cst_65 = arith.constant dense<0.000000e+00> : vector<8x8xf32>
    %125 = tpu.matmul %123, %124, %cst_65 {dimension_numbers = #tpu.dot_dimension_numbers<[1], [1], [0], [0], [0, 0, 1, 0], [], []>} : vector<8x8xf32>, vector<8x8xf32>, vector<8x8xf32> -> vector<8x8xf32>
    %cst_66 = arith.constant dense<0xFF800000> : vector<8xf32>
    %126 = vector.multi_reduction <maximumf>, %125, %cst_66 [1] : vector<8x8xf32> to vector<8xf32>
    %127 = vector.shape_cast %126 : vector<8xf32> to vector<8x1xf32>
    %128 = vector.broadcast %127 : vector<8x1xf32> to vector<8x8xf32>
    %129 = arith.subf %125, %128 : vector<8x8xf32>
    %130 = math.exp %129 : vector<8x8xf32>
    %cst_67 = arith.constant dense<0.000000e+00> : vector<8xf32>
    %131 = vector.multi_reduction <add>, %130, %cst_67 [1] : vector<8x8xf32> to vector<8xf32>
    %132 = vector.shape_cast %131 : vector<8xf32> to vector<8x1xf32>
    %133 = tpu.reciprocal %132 {approx = true} : vector<8x1xf32> -> vector<8x1xf32>
    %134 = vector.broadcast %133 : vector<8x1xf32> to vector<8x8xf32>
    %135 = arith.mulf %130, %134 : vector<8x8xf32>
    %136 = vector.extract_strided_slice %75 {offsets = [0, 24], sizes = [8, 8], strides = [1, 1]} : vector<8x32xf32> to vector<8x8xf32>
    %cst_68 = arith.constant dense<0.000000e+00> : vector<8x8xf32>
    %137 = tpu.matmul %135, %136, %cst_68 {dimension_numbers = #tpu.dot_dimension_numbers<[1], [0], [0], [1], [0, 0, 1, 1], [], []>} : vector<8x8xf32>, vector<8x8xf32>, vector<8x8xf32> -> vector<8x8xf32>
    %138 = tpu.concatenate %92, %107, %122, %137 in 1 : vector<8x8xf32>, vector<8x8xf32>, vector<8x8xf32>, vector<8x8xf32> -> vector<8x32xf32>
    %cst_69 = arith.constant dense<0.000000e+00> : vector<8x32xf32>
    %139 = tpu.matmul %138, %67, %cst_69 {dimension_numbers = #tpu.dot_dimension_numbers<[1], [0], [0], [1], [0, 0, 1, 1], [], []>} : vector<8x32xf32>, vector<32x32xf32>, vector<8x32xf32> -> vector<8x32xf32>
    %140 = vector.broadcast %69 : vector<1x32xf32> to vector<8x32xf32>
    %141 = arith.addf %139, %140 : vector<8x32xf32>
    %142 = arith.addf %61, %141 : vector<8x32xf32>
    %c0_70 = arith.constant 0 : index
    %c0_71 = arith.constant 0 : index
    %c0_72 = arith.constant 0 : index
    %143 = vector.load %arg31[%c0_70, %c0_71, %c0_72] : memref<2x1x32xf32, #tpu.memory_space<vmem>>, vector<1x1x32xf32>
    %144 = vector.shape_cast %143 : vector<1x1x32xf32> to vector<1x32xf32>
    %c0_73 = arith.constant 0 : index
    %c0_74 = arith.constant 0 : index
    %c0_75 = arith.constant 0 : index
    %145 = vector.load %arg30[%c0_73, %c0_74, %c0_75] : memref<2x1x32xf32, #tpu.memory_space<vmem>>, vector<1x1x32xf32>
    %146 = vector.shape_cast %145 : vector<1x1x32xf32> to vector<1x32xf32>
    %cst_76 = arith.constant dense<0.000000e+00> : vector<8xf32>
    %147 = vector.multi_reduction <add>, %142, %cst_76 [1] : vector<8x32xf32> to vector<8xf32>
    %148 = vector.shape_cast %147 : vector<8xf32> to vector<8x1xf32>
    %cst_77 = arith.constant 3.200000e+01 : f32
    %149 = vector.broadcast %cst_77 : f32 to vector<8x1xf32>
    %150 = arith.divf %148, %149 : vector<8x1xf32>
    %151 = vector.broadcast %150 : vector<8x1xf32> to vector<8x32xf32>
    %152 = arith.subf %142, %151 : vector<8x32xf32>
    %153 = arith.mulf %152, %152 : vector<8x32xf32>
    %cst_78 = arith.constant dense<0.000000e+00> : vector<8xf32>
    %154 = vector.multi_reduction <add>, %153, %cst_78 [1] : vector<8x32xf32> to vector<8xf32>
    %155 = vector.shape_cast %154 : vector<8xf32> to vector<8x1xf32>
    %cst_79 = arith.constant 3.200000e+01 : f32
    %156 = vector.broadcast %cst_79 : f32 to vector<8x1xf32>
    %157 = arith.divf %155, %156 : vector<8x1xf32>
    %158 = vector.broadcast %150 : vector<8x1xf32> to vector<8x32xf32>
    %159 = arith.subf %142, %158 : vector<8x32xf32>
    %cst_80 = arith.constant 9.99999974E-6 : f32
    %160 = vector.broadcast %cst_80 : f32 to vector<8x1xf32>
    %161 = arith.addf %157, %160 : vector<8x1xf32>
    %162 = math.rsqrt %161 : vector<8x1xf32>
    %163 = vector.broadcast %162 : vector<8x1xf32> to vector<8x32xf32>
    %164 = arith.mulf %159, %163 : vector<8x32xf32>
    %165 = vector.broadcast %144 : vector<1x32xf32> to vector<8x32xf32>
    %166 = arith.mulf %164, %165 : vector<8x32xf32>
    %167 = vector.broadcast %146 : vector<1x32xf32> to vector<8x32xf32>
    %168 = arith.addf %166, %167 : vector<8x32xf32>
    %c0_81 = arith.constant 0 : index
    %c0_82 = arith.constant 0 : index
    %c0_83 = arith.constant 0 : index
    %169 = vector.load %arg28[%c0_81, %c0_82, %c0_83] : memref<2x32x64xf32, #tpu.memory_space<vmem>>, vector<1x32x64xf32>
    %170 = vector.shape_cast %169 : vector<1x32x64xf32> to vector<32x64xf32>
    %c0_84 = arith.constant 0 : index
    %c0_85 = arith.constant 0 : index
    %c0_86 = arith.constant 0 : index
    %171 = vector.load %arg26[%c0_84, %c0_85, %c0_86] : memref<2x1x64xf32, #tpu.memory_space<vmem>>, vector<1x1x64xf32>
    %172 = vector.shape_cast %171 : vector<1x1x64xf32> to vector<1x64xf32>
    %cst_87 = arith.constant dense<0.000000e+00> : vector<8x64xf32>
    %173 = tpu.matmul %168, %170, %cst_87 {dimension_numbers = #tpu.dot_dimension_numbers<[1], [0], [0], [1], [0, 0, 1, 1], [], []>} : vector<8x32xf32>, vector<32x64xf32>, vector<8x64xf32> -> vector<8x64xf32>
    %174 = vector.broadcast %172 : vector<1x64xf32> to vector<8x64xf32>
    %175 = arith.addf %173, %174 : vector<8x64xf32>
    %cst_88 = arith.constant 5.000000e-01 : f32
    %176 = vector.broadcast %cst_88 : f32 to vector<8x64xf32>
    %177 = arith.mulf %176, %175 : vector<8x64xf32>
    %cst_89 = arith.constant 0.707106769 : f32
    %178 = vector.broadcast %cst_89 : f32 to vector<8x64xf32>
    %179 = arith.mulf %175, %178 : vector<8x64xf32>
    %180 = math.erf %179 : vector<8x64xf32>
    %cst_90 = arith.constant 1.000000e+00 : f32
    %181 = vector.broadcast %cst_90 : f32 to vector<8x64xf32>
    %182 = arith.addf %181, %180 : vector<8x64xf32>
    %183 = arith.mulf %177, %182 : vector<8x64xf32>
    %c0_91 = arith.constant 0 : index
    %c0_92 = arith.constant 0 : index
    %c0_93 = arith.constant 0 : index
    %184 = vector.load %arg29[%c0_91, %c0_92, %c0_93] : memref<2x64x32xf32, #tpu.memory_space<vmem>>, vector<1x64x32xf32>
    %185 = vector.shape_cast %184 : vector<1x64x32xf32> to vector<64x32xf32>
    %c0_94 = arith.constant 0 : index
    %c0_95 = arith.constant 0 : index
    %c0_96 = arith.constant 0 : index
    %186 = vector.load %arg27[%c0_94, %c0_95, %c0_96] : memref<2x1x32xf32, #tpu.memory_space<vmem>>, vector<1x1x32xf32>
    %187 = vector.shape_cast %186 : vector<1x1x32xf32> to vector<1x32xf32>
    %cst_97 = arith.constant dense<0.000000e+00> : vector<8x32xf32>
    %188 = tpu.matmul %183, %185, %cst_97 {dimension_numbers = #tpu.dot_dimension_numbers<[1], [0], [0], [1], [0, 0, 1, 1], [], []>} : vector<8x64xf32>, vector<64x32xf32>, vector<8x32xf32> -> vector<8x32xf32>
    %189 = vector.broadcast %187 : vector<1x32xf32> to vector<8x32xf32>
    %190 = arith.addf %188, %189 : vector<8x32xf32>
    %191 = arith.addf %168, %190 : vector<8x32xf32>
    %c0_98 = arith.constant 0 : index
    %c0_99 = arith.constant 0 : index
    %c0_100 = arith.constant 0 : index
    %192 = vector.load %arg33[%c0_98, %c0_99, %c0_100] : memref<2x1x32xf32, #tpu.memory_space<vmem>>, vector<1x1x32xf32>
    %193 = vector.shape_cast %192 : vector<1x1x32xf32> to vector<1x32xf32>
    %c0_101 = arith.constant 0 : index
    %c0_102 = arith.constant 0 : index
    %c0_103 = arith.constant 0 : index
    %194 = vector.load %arg32[%c0_101, %c0_102, %c0_103] : memref<2x1x32xf32, #tpu.memory_space<vmem>>, vector<1x1x32xf32>
    %195 = vector.shape_cast %194 : vector<1x1x32xf32> to vector<1x32xf32>
    %cst_104 = arith.constant dense<0.000000e+00> : vector<8xf32>
    %196 = vector.multi_reduction <add>, %191, %cst_104 [1] : vector<8x32xf32> to vector<8xf32>
    %197 = vector.shape_cast %196 : vector<8xf32> to vector<8x1xf32>
    %cst_105 = arith.constant 3.200000e+01 : f32
    %198 = vector.broadcast %cst_105 : f32 to vector<8x1xf32>
    %199 = arith.divf %197, %198 : vector<8x1xf32>
    %200 = vector.broadcast %199 : vector<8x1xf32> to vector<8x32xf32>
    %201 = arith.subf %191, %200 : vector<8x32xf32>
    %202 = arith.mulf %201, %201 : vector<8x32xf32>
    %cst_106 = arith.constant dense<0.000000e+00> : vector<8xf32>
    %203 = vector.multi_reduction <add>, %202, %cst_106 [1] : vector<8x32xf32> to vector<8xf32>
    %204 = vector.shape_cast %203 : vector<8xf32> to vector<8x1xf32>
    %cst_107 = arith.constant 3.200000e+01 : f32
    %205 = vector.broadcast %cst_107 : f32 to vector<8x1xf32>
    %206 = arith.divf %204, %205 : vector<8x1xf32>
    %207 = vector.broadcast %199 : vector<8x1xf32> to vector<8x32xf32>
    %208 = arith.subf %191, %207 : vector<8x32xf32>
    %cst_108 = arith.constant 9.99999974E-6 : f32
    %209 = vector.broadcast %cst_108 : f32 to vector<8x1xf32>
    %210 = arith.addf %206, %209 : vector<8x1xf32>
    %211 = math.rsqrt %210 : vector<8x1xf32>
    %212 = vector.broadcast %211 : vector<8x1xf32> to vector<8x32xf32>
    %213 = arith.mulf %208, %212 : vector<8x32xf32>
    %214 = vector.broadcast %193 : vector<1x32xf32> to vector<8x32xf32>
    %215 = arith.mulf %213, %214 : vector<8x32xf32>
    %216 = vector.broadcast %195 : vector<1x32xf32> to vector<8x32xf32>
    %217 = arith.addf %215, %216 : vector<8x32xf32>
    %c1_109 = arith.constant 1 : index
    %c0_110 = arith.constant 0 : index
    %c0_111 = arith.constant 0 : index
    %218 = vector.load %arg35[%c1_109, %c0_110, %c0_111] : memref<2x32x96xf32, #tpu.memory_space<vmem>>, vector<1x32x96xf32>
    %219 = vector.shape_cast %218 : vector<1x32x96xf32> to vector<32x96xf32>
    %c1_112 = arith.constant 1 : index
    %c0_113 = arith.constant 0 : index
    %c0_114 = arith.constant 0 : index
    %220 = vector.load %arg25[%c1_112, %c0_113, %c0_114] : memref<2x1x96xf32, #tpu.memory_space<vmem>>, vector<1x1x96xf32>
    %221 = vector.shape_cast %220 : vector<1x1x96xf32> to vector<1x96xf32>
    %c1_115 = arith.constant 1 : index
    %c0_116 = arith.constant 0 : index
    %c0_117 = arith.constant 0 : index
    %222 = vector.load %arg34[%c1_115, %c0_116, %c0_117] : memref<2x32x32xf32, #tpu.memory_space<vmem>>, vector<1x32x32xf32>
    %223 = vector.shape_cast %222 : vector<1x32x32xf32> to vector<32x32xf32>
    %c1_118 = arith.constant 1 : index
    %c0_119 = arith.constant 0 : index
    %c0_120 = arith.constant 0 : index
    %224 = vector.load %arg24[%c1_118, %c0_119, %c0_120] : memref<2x1x32xf32, #tpu.memory_space<vmem>>, vector<1x1x32xf32>
    %225 = vector.shape_cast %224 : vector<1x1x32xf32> to vector<1x32xf32>
    %cst_121 = arith.constant dense<0.000000e+00> : vector<8x96xf32>
    %226 = tpu.matmul %217, %219, %cst_121 {dimension_numbers = #tpu.dot_dimension_numbers<[1], [0], [0], [1], [0, 0, 1, 1], [], []>} : vector<8x32xf32>, vector<32x96xf32>, vector<8x96xf32> -> vector<8x96xf32>
    %227 = vector.broadcast %221 : vector<1x96xf32> to vector<8x96xf32>
    %228 = arith.addf %226, %227 : vector<8x96xf32>
    %229 = vector.extract_strided_slice %228 {offsets = [0, 0], sizes = [8, 32], strides = [1, 1]} : vector<8x96xf32> to vector<8x32xf32>
    %230 = vector.extract_strided_slice %228 {offsets = [0, 32], sizes = [8, 32], strides = [1, 1]} : vector<8x96xf32> to vector<8x32xf32>
    %231 = vector.extract_strided_slice %228 {offsets = [0, 64], sizes = [8, 32], strides = [1, 1]} : vector<8x96xf32> to vector<8x32xf32>
    %cst_122 = arith.constant 0.353553385 : f32
    %232 = vector.broadcast %cst_122 : f32 to vector<8x32xf32>
    %233 = arith.mulf %229, %232 : vector<8x32xf32>
    %234 = vector.extract_strided_slice %233 {offsets = [0, 0], sizes = [8, 8], strides = [1, 1]} : vector<8x32xf32> to vector<8x8xf32>
    %235 = vector.extract_strided_slice %230 {offsets = [0, 0], sizes = [8, 8], strides = [1, 1]} : vector<8x32xf32> to vector<8x8xf32>
    %cst_123 = arith.constant dense<0.000000e+00> : vector<8x8xf32>
    %236 = tpu.matmul %234, %235, %cst_123 {dimension_numbers = #tpu.dot_dimension_numbers<[1], [1], [0], [0], [0, 0, 1, 0], [], []>} : vector<8x8xf32>, vector<8x8xf32>, vector<8x8xf32> -> vector<8x8xf32>
    %cst_124 = arith.constant dense<0xFF800000> : vector<8xf32>
    %237 = vector.multi_reduction <maximumf>, %236, %cst_124 [1] : vector<8x8xf32> to vector<8xf32>
    %238 = vector.shape_cast %237 : vector<8xf32> to vector<8x1xf32>
    %239 = vector.broadcast %238 : vector<8x1xf32> to vector<8x8xf32>
    %240 = arith.subf %236, %239 : vector<8x8xf32>
    %241 = math.exp %240 : vector<8x8xf32>
    %cst_125 = arith.constant dense<0.000000e+00> : vector<8xf32>
    %242 = vector.multi_reduction <add>, %241, %cst_125 [1] : vector<8x8xf32> to vector<8xf32>
    %243 = vector.shape_cast %242 : vector<8xf32> to vector<8x1xf32>
    %244 = tpu.reciprocal %243 {approx = true} : vector<8x1xf32> -> vector<8x1xf32>
    %245 = vector.broadcast %244 : vector<8x1xf32> to vector<8x8xf32>
    %246 = arith.mulf %241, %245 : vector<8x8xf32>
    %247 = vector.extract_strided_slice %231 {offsets = [0, 0], sizes = [8, 8], strides = [1, 1]} : vector<8x32xf32> to vector<8x8xf32>
    %cst_126 = arith.constant dense<0.000000e+00> : vector<8x8xf32>
    %248 = tpu.matmul %246, %247, %cst_126 {dimension_numbers = #tpu.dot_dimension_numbers<[1], [0], [0], [1], [0, 0, 1, 1], [], []>} : vector<8x8xf32>, vector<8x8xf32>, vector<8x8xf32> -> vector<8x8xf32>
    %249 = vector.extract_strided_slice %233 {offsets = [0, 8], sizes = [8, 8], strides = [1, 1]} : vector<8x32xf32> to vector<8x8xf32>
    %250 = vector.extract_strided_slice %230 {offsets = [0, 8], sizes = [8, 8], strides = [1, 1]} : vector<8x32xf32> to vector<8x8xf32>
    %cst_127 = arith.constant dense<0.000000e+00> : vector<8x8xf32>
    %251 = tpu.matmul %249, %250, %cst_127 {dimension_numbers = #tpu.dot_dimension_numbers<[1], [1], [0], [0], [0, 0, 1, 0], [], []>} : vector<8x8xf32>, vector<8x8xf32>, vector<8x8xf32> -> vector<8x8xf32>
    %cst_128 = arith.constant dense<0xFF800000> : vector<8xf32>
    %252 = vector.multi_reduction <maximumf>, %251, %cst_128 [1] : vector<8x8xf32> to vector<8xf32>
    %253 = vector.shape_cast %252 : vector<8xf32> to vector<8x1xf32>
    %254 = vector.broadcast %253 : vector<8x1xf32> to vector<8x8xf32>
    %255 = arith.subf %251, %254 : vector<8x8xf32>
    %256 = math.exp %255 : vector<8x8xf32>
    %cst_129 = arith.constant dense<0.000000e+00> : vector<8xf32>
    %257 = vector.multi_reduction <add>, %256, %cst_129 [1] : vector<8x8xf32> to vector<8xf32>
    %258 = vector.shape_cast %257 : vector<8xf32> to vector<8x1xf32>
    %259 = tpu.reciprocal %258 {approx = true} : vector<8x1xf32> -> vector<8x1xf32>
    %260 = vector.broadcast %259 : vector<8x1xf32> to vector<8x8xf32>
    %261 = arith.mulf %256, %260 : vector<8x8xf32>
    %262 = vector.extract_strided_slice %231 {offsets = [0, 8], sizes = [8, 8], strides = [1, 1]} : vector<8x32xf32> to vector<8x8xf32>
    %cst_130 = arith.constant dense<0.000000e+00> : vector<8x8xf32>
    %263 = tpu.matmul %261, %262, %cst_130 {dimension_numbers = #tpu.dot_dimension_numbers<[1], [0], [0], [1], [0, 0, 1, 1], [], []>} : vector<8x8xf32>, vector<8x8xf32>, vector<8x8xf32> -> vector<8x8xf32>
    %264 = vector.extract_strided_slice %233 {offsets = [0, 16], sizes = [8, 8], strides = [1, 1]} : vector<8x32xf32> to vector<8x8xf32>
    %265 = vector.extract_strided_slice %230 {offsets = [0, 16], sizes = [8, 8], strides = [1, 1]} : vector<8x32xf32> to vector<8x8xf32>
    %cst_131 = arith.constant dense<0.000000e+00> : vector<8x8xf32>
    %266 = tpu.matmul %264, %265, %cst_131 {dimension_numbers = #tpu.dot_dimension_numbers<[1], [1], [0], [0], [0, 0, 1, 0], [], []>} : vector<8x8xf32>, vector<8x8xf32>, vector<8x8xf32> -> vector<8x8xf32>
    %cst_132 = arith.constant dense<0xFF800000> : vector<8xf32>
    %267 = vector.multi_reduction <maximumf>, %266, %cst_132 [1] : vector<8x8xf32> to vector<8xf32>
    %268 = vector.shape_cast %267 : vector<8xf32> to vector<8x1xf32>
    %269 = vector.broadcast %268 : vector<8x1xf32> to vector<8x8xf32>
    %270 = arith.subf %266, %269 : vector<8x8xf32>
    %271 = math.exp %270 : vector<8x8xf32>
    %cst_133 = arith.constant dense<0.000000e+00> : vector<8xf32>
    %272 = vector.multi_reduction <add>, %271, %cst_133 [1] : vector<8x8xf32> to vector<8xf32>
    %273 = vector.shape_cast %272 : vector<8xf32> to vector<8x1xf32>
    %274 = tpu.reciprocal %273 {approx = true} : vector<8x1xf32> -> vector<8x1xf32>
    %275 = vector.broadcast %274 : vector<8x1xf32> to vector<8x8xf32>
    %276 = arith.mulf %271, %275 : vector<8x8xf32>
    %277 = vector.extract_strided_slice %231 {offsets = [0, 16], sizes = [8, 8], strides = [1, 1]} : vector<8x32xf32> to vector<8x8xf32>
    %cst_134 = arith.constant dense<0.000000e+00> : vector<8x8xf32>
    %278 = tpu.matmul %276, %277, %cst_134 {dimension_numbers = #tpu.dot_dimension_numbers<[1], [0], [0], [1], [0, 0, 1, 1], [], []>} : vector<8x8xf32>, vector<8x8xf32>, vector<8x8xf32> -> vector<8x8xf32>
    %279 = vector.extract_strided_slice %233 {offsets = [0, 24], sizes = [8, 8], strides = [1, 1]} : vector<8x32xf32> to vector<8x8xf32>
    %280 = vector.extract_strided_slice %230 {offsets = [0, 24], sizes = [8, 8], strides = [1, 1]} : vector<8x32xf32> to vector<8x8xf32>
    %cst_135 = arith.constant dense<0.000000e+00> : vector<8x8xf32>
    %281 = tpu.matmul %279, %280, %cst_135 {dimension_numbers = #tpu.dot_dimension_numbers<[1], [1], [0], [0], [0, 0, 1, 0], [], []>} : vector<8x8xf32>, vector<8x8xf32>, vector<8x8xf32> -> vector<8x8xf32>
    %cst_136 = arith.constant dense<0xFF800000> : vector<8xf32>
    %282 = vector.multi_reduction <maximumf>, %281, %cst_136 [1] : vector<8x8xf32> to vector<8xf32>
    %283 = vector.shape_cast %282 : vector<8xf32> to vector<8x1xf32>
    %284 = vector.broadcast %283 : vector<8x1xf32> to vector<8x8xf32>
    %285 = arith.subf %281, %284 : vector<8x8xf32>
    %286 = math.exp %285 : vector<8x8xf32>
    %cst_137 = arith.constant dense<0.000000e+00> : vector<8xf32>
    %287 = vector.multi_reduction <add>, %286, %cst_137 [1] : vector<8x8xf32> to vector<8xf32>
    %288 = vector.shape_cast %287 : vector<8xf32> to vector<8x1xf32>
    %289 = tpu.reciprocal %288 {approx = true} : vector<8x1xf32> -> vector<8x1xf32>
    %290 = vector.broadcast %289 : vector<8x1xf32> to vector<8x8xf32>
    %291 = arith.mulf %286, %290 : vector<8x8xf32>
    %292 = vector.extract_strided_slice %231 {offsets = [0, 24], sizes = [8, 8], strides = [1, 1]} : vector<8x32xf32> to vector<8x8xf32>
    %cst_138 = arith.constant dense<0.000000e+00> : vector<8x8xf32>
    %293 = tpu.matmul %291, %292, %cst_138 {dimension_numbers = #tpu.dot_dimension_numbers<[1], [0], [0], [1], [0, 0, 1, 1], [], []>} : vector<8x8xf32>, vector<8x8xf32>, vector<8x8xf32> -> vector<8x8xf32>
    %294 = tpu.concatenate %248, %263, %278, %293 in 1 : vector<8x8xf32>, vector<8x8xf32>, vector<8x8xf32>, vector<8x8xf32> -> vector<8x32xf32>
    %cst_139 = arith.constant dense<0.000000e+00> : vector<8x32xf32>
    %295 = tpu.matmul %294, %223, %cst_139 {dimension_numbers = #tpu.dot_dimension_numbers<[1], [0], [0], [1], [0, 0, 1, 1], [], []>} : vector<8x32xf32>, vector<32x32xf32>, vector<8x32xf32> -> vector<8x32xf32>
    %296 = vector.broadcast %225 : vector<1x32xf32> to vector<8x32xf32>
    %297 = arith.addf %295, %296 : vector<8x32xf32>
    %298 = arith.addf %217, %297 : vector<8x32xf32>
    %c1_140 = arith.constant 1 : index
    %c0_141 = arith.constant 0 : index
    %c0_142 = arith.constant 0 : index
    %299 = vector.load %arg31[%c1_140, %c0_141, %c0_142] : memref<2x1x32xf32, #tpu.memory_space<vmem>>, vector<1x1x32xf32>
    %300 = vector.shape_cast %299 : vector<1x1x32xf32> to vector<1x32xf32>
    %c1_143 = arith.constant 1 : index
    %c0_144 = arith.constant 0 : index
    %c0_145 = arith.constant 0 : index
    %301 = vector.load %arg30[%c1_143, %c0_144, %c0_145] : memref<2x1x32xf32, #tpu.memory_space<vmem>>, vector<1x1x32xf32>
    %302 = vector.shape_cast %301 : vector<1x1x32xf32> to vector<1x32xf32>
    %cst_146 = arith.constant dense<0.000000e+00> : vector<8xf32>
    %303 = vector.multi_reduction <add>, %298, %cst_146 [1] : vector<8x32xf32> to vector<8xf32>
    %304 = vector.shape_cast %303 : vector<8xf32> to vector<8x1xf32>
    %cst_147 = arith.constant 3.200000e+01 : f32
    %305 = vector.broadcast %cst_147 : f32 to vector<8x1xf32>
    %306 = arith.divf %304, %305 : vector<8x1xf32>
    %307 = vector.broadcast %306 : vector<8x1xf32> to vector<8x32xf32>
    %308 = arith.subf %298, %307 : vector<8x32xf32>
    %309 = arith.mulf %308, %308 : vector<8x32xf32>
    %cst_148 = arith.constant dense<0.000000e+00> : vector<8xf32>
    %310 = vector.multi_reduction <add>, %309, %cst_148 [1] : vector<8x32xf32> to vector<8xf32>
    %311 = vector.shape_cast %310 : vector<8xf32> to vector<8x1xf32>
    %cst_149 = arith.constant 3.200000e+01 : f32
    %312 = vector.broadcast %cst_149 : f32 to vector<8x1xf32>
    %313 = arith.divf %311, %312 : vector<8x1xf32>
    %314 = vector.broadcast %306 : vector<8x1xf32> to vector<8x32xf32>
    %315 = arith.subf %298, %314 : vector<8x32xf32>
    %cst_150 = arith.constant 9.99999974E-6 : f32
    %316 = vector.broadcast %cst_150 : f32 to vector<8x1xf32>
    %317 = arith.addf %313, %316 : vector<8x1xf32>
    %318 = math.rsqrt %317 : vector<8x1xf32>
    %319 = vector.broadcast %318 : vector<8x1xf32> to vector<8x32xf32>
    %320 = arith.mulf %315, %319 : vector<8x32xf32>
    %321 = vector.broadcast %300 : vector<1x32xf32> to vector<8x32xf32>
    %322 = arith.mulf %320, %321 : vector<8x32xf32>
    %323 = vector.broadcast %302 : vector<1x32xf32> to vector<8x32xf32>
    %324 = arith.addf %322, %323 : vector<8x32xf32>
    %c1_151 = arith.constant 1 : index
    %c0_152 = arith.constant 0 : index
    %c0_153 = arith.constant 0 : index
    %325 = vector.load %arg28[%c1_151, %c0_152, %c0_153] : memref<2x32x64xf32, #tpu.memory_space<vmem>>, vector<1x32x64xf32>
    %326 = vector.shape_cast %325 : vector<1x32x64xf32> to vector<32x64xf32>
    %c1_154 = arith.constant 1 : index
    %c0_155 = arith.constant 0 : index
    %c0_156 = arith.constant 0 : index
    %327 = vector.load %arg26[%c1_154, %c0_155, %c0_156] : memref<2x1x64xf32, #tpu.memory_space<vmem>>, vector<1x1x64xf32>
    %328 = vector.shape_cast %327 : vector<1x1x64xf32> to vector<1x64xf32>
    %cst_157 = arith.constant dense<0.000000e+00> : vector<8x64xf32>
    %329 = tpu.matmul %324, %326, %cst_157 {dimension_numbers = #tpu.dot_dimension_numbers<[1], [0], [0], [1], [0, 0, 1, 1], [], []>} : vector<8x32xf32>, vector<32x64xf32>, vector<8x64xf32> -> vector<8x64xf32>
    %330 = vector.broadcast %328 : vector<1x64xf32> to vector<8x64xf32>
    %331 = arith.addf %329, %330 : vector<8x64xf32>
    %cst_158 = arith.constant 5.000000e-01 : f32
    %332 = vector.broadcast %cst_158 : f32 to vector<8x64xf32>
    %333 = arith.mulf %332, %331 : vector<8x64xf32>
    %cst_159 = arith.constant 0.707106769 : f32
    %334 = vector.broadcast %cst_159 : f32 to vector<8x64xf32>
    %335 = arith.mulf %331, %334 : vector<8x64xf32>
    %336 = math.erf %335 : vector<8x64xf32>
    %cst_160 = arith.constant 1.000000e+00 : f32
    %337 = vector.broadcast %cst_160 : f32 to vector<8x64xf32>
    %338 = arith.addf %337, %336 : vector<8x64xf32>
    %339 = arith.mulf %333, %338 : vector<8x64xf32>
    %c1_161 = arith.constant 1 : index
    %c0_162 = arith.constant 0 : index
    %c0_163 = arith.constant 0 : index
    %340 = vector.load %arg29[%c1_161, %c0_162, %c0_163] : memref<2x64x32xf32, #tpu.memory_space<vmem>>, vector<1x64x32xf32>
    %341 = vector.shape_cast %340 : vector<1x64x32xf32> to vector<64x32xf32>
    %c1_164 = arith.constant 1 : index
    %c0_165 = arith.constant 0 : index
    %c0_166 = arith.constant 0 : index
    %342 = vector.load %arg27[%c1_164, %c0_165, %c0_166] : memref<2x1x32xf32, #tpu.memory_space<vmem>>, vector<1x1x32xf32>
    %343 = vector.shape_cast %342 : vector<1x1x32xf32> to vector<1x32xf32>
    %cst_167 = arith.constant dense<0.000000e+00> : vector<8x32xf32>
    %344 = tpu.matmul %339, %341, %cst_167 {dimension_numbers = #tpu.dot_dimension_numbers<[1], [0], [0], [1], [0, 0, 1, 1], [], []>} : vector<8x64xf32>, vector<64x32xf32>, vector<8x32xf32> -> vector<8x32xf32>
    %345 = vector.broadcast %343 : vector<1x32xf32> to vector<8x32xf32>
    %346 = arith.addf %344, %345 : vector<8x32xf32>
    %347 = arith.addf %324, %346 : vector<8x32xf32>
    %c1_168 = arith.constant 1 : index
    %c0_169 = arith.constant 0 : index
    %c0_170 = arith.constant 0 : index
    %348 = vector.load %arg33[%c1_168, %c0_169, %c0_170] : memref<2x1x32xf32, #tpu.memory_space<vmem>>, vector<1x1x32xf32>
    %349 = vector.shape_cast %348 : vector<1x1x32xf32> to vector<1x32xf32>
    %c1_171 = arith.constant 1 : index
    %c0_172 = arith.constant 0 : index
    %c0_173 = arith.constant 0 : index
    %350 = vector.load %arg32[%c1_171, %c0_172, %c0_173] : memref<2x1x32xf32, #tpu.memory_space<vmem>>, vector<1x1x32xf32>
    %351 = vector.shape_cast %350 : vector<1x1x32xf32> to vector<1x32xf32>
    %cst_174 = arith.constant dense<0.000000e+00> : vector<8xf32>
    %352 = vector.multi_reduction <add>, %347, %cst_174 [1] : vector<8x32xf32> to vector<8xf32>
    %353 = vector.shape_cast %352 : vector<8xf32> to vector<8x1xf32>
    %cst_175 = arith.constant 3.200000e+01 : f32
    %354 = vector.broadcast %cst_175 : f32 to vector<8x1xf32>
    %355 = arith.divf %353, %354 : vector<8x1xf32>
    %356 = vector.broadcast %355 : vector<8x1xf32> to vector<8x32xf32>
    %357 = arith.subf %347, %356 : vector<8x32xf32>
    %358 = arith.mulf %357, %357 : vector<8x32xf32>
    %cst_176 = arith.constant dense<0.000000e+00> : vector<8xf32>
    %359 = vector.multi_reduction <add>, %358, %cst_176 [1] : vector<8x32xf32> to vector<8xf32>
    %360 = vector.shape_cast %359 : vector<8xf32> to vector<8x1xf32>
    %cst_177 = arith.constant 3.200000e+01 : f32
    %361 = vector.broadcast %cst_177 : f32 to vector<8x1xf32>
    %362 = arith.divf %360, %361 : vector<8x1xf32>
    %363 = vector.broadcast %355 : vector<8x1xf32> to vector<8x32xf32>
    %364 = arith.subf %347, %363 : vector<8x32xf32>
    %cst_178 = arith.constant 9.99999974E-6 : f32
    %365 = vector.broadcast %cst_178 : f32 to vector<8x1xf32>
    %366 = arith.addf %362, %365 : vector<8x1xf32>
    %367 = math.rsqrt %366 : vector<8x1xf32>
    %368 = vector.broadcast %367 : vector<8x1xf32> to vector<8x32xf32>
    %369 = arith.mulf %364, %368 : vector<8x32xf32>
    %370 = vector.broadcast %349 : vector<1x32xf32> to vector<8x32xf32>
    %371 = arith.mulf %369, %370 : vector<8x32xf32>
    %372 = vector.broadcast %351 : vector<1x32xf32> to vector<8x32xf32>
    %373 = arith.addf %371, %372 : vector<8x32xf32>
    %c0_179 = arith.constant 0 : index
    %c0_180 = arith.constant 0 : index
    %374 = vector.load %arg37[%c0_179, %c0_180] : memref<1x32xf32, #tpu.memory_space<vmem>>, vector<1x32xf32>
    %c0_181 = arith.constant 0 : index
    %c0_182 = arith.constant 0 : index
    %375 = vector.load %arg36[%c0_181, %c0_182] : memref<1x32xf32, #tpu.memory_space<vmem>>, vector<1x32xf32>
    %cst_183 = arith.constant dense<0.000000e+00> : vector<8xf32>
    %376 = vector.multi_reduction <add>, %373, %cst_183 [1] : vector<8x32xf32> to vector<8xf32>
    %377 = vector.shape_cast %376 : vector<8xf32> to vector<8x1xf32>
    %cst_184 = arith.constant 3.200000e+01 : f32
    %378 = vector.broadcast %cst_184 : f32 to vector<8x1xf32>
    %379 = arith.divf %377, %378 : vector<8x1xf32>
    %380 = vector.broadcast %379 : vector<8x1xf32> to vector<8x32xf32>
    %381 = arith.subf %373, %380 : vector<8x32xf32>
    %382 = arith.mulf %381, %381 : vector<8x32xf32>
    %cst_185 = arith.constant dense<0.000000e+00> : vector<8xf32>
    %383 = vector.multi_reduction <add>, %382, %cst_185 [1] : vector<8x32xf32> to vector<8xf32>
    %384 = vector.shape_cast %383 : vector<8xf32> to vector<8x1xf32>
    %cst_186 = arith.constant 3.200000e+01 : f32
    %385 = vector.broadcast %cst_186 : f32 to vector<8x1xf32>
    %386 = arith.divf %384, %385 : vector<8x1xf32>
    %387 = vector.broadcast %379 : vector<8x1xf32> to vector<8x32xf32>
    %388 = arith.subf %373, %387 : vector<8x32xf32>
    %cst_187 = arith.constant 9.99999974E-6 : f32
    %389 = vector.broadcast %cst_187 : f32 to vector<8x1xf32>
    %390 = arith.addf %386, %389 : vector<8x1xf32>
    %391 = math.rsqrt %390 : vector<8x1xf32>
    %392 = vector.broadcast %391 : vector<8x1xf32> to vector<8x32xf32>
    %393 = arith.mulf %388, %392 : vector<8x32xf32>
    %394 = vector.broadcast %374 : vector<1x32xf32> to vector<8x32xf32>
    %395 = arith.mulf %393, %394 : vector<8x32xf32>
    %396 = vector.broadcast %375 : vector<1x32xf32> to vector<8x32xf32>
    %397 = arith.addf %395, %396 : vector<8x32xf32>
    %c0_188 = arith.constant 0 : index
    %c0_189 = arith.constant 0 : index
    %398 = vector.load %arg49[%c0_188, %c0_189] : memref<8x32xf32, #tpu.memory_space<vmem>>, vector<8x32xf32>
    %c0_190 = arith.constant 0 : index
    %c0_191 = arith.constant 0 : index
    %c0_192 = arith.constant 0 : index
    %399 = vector.load %arg21[%c0_190, %c0_191, %c0_192] : memref<2x32x96xf32, #tpu.memory_space<vmem>>, vector<1x32x96xf32>
    %400 = vector.shape_cast %399 : vector<1x32x96xf32> to vector<32x96xf32>
    %c0_193 = arith.constant 0 : index
    %c0_194 = arith.constant 0 : index
    %c0_195 = arith.constant 0 : index
    %401 = vector.load %arg19[%c0_193, %c0_194, %c0_195] : memref<2x1x96xf32, #tpu.memory_space<vmem>>, vector<1x1x96xf32>
    %402 = vector.shape_cast %401 : vector<1x1x96xf32> to vector<1x96xf32>
    %c0_196 = arith.constant 0 : index
    %c0_197 = arith.constant 0 : index
    %c0_198 = arith.constant 0 : index
    %403 = vector.load %arg20[%c0_196, %c0_197, %c0_198] : memref<2x32x32xf32, #tpu.memory_space<vmem>>, vector<1x32x32xf32>
    %404 = vector.shape_cast %403 : vector<1x32x32xf32> to vector<32x32xf32>
    %c0_199 = arith.constant 0 : index
    %c0_200 = arith.constant 0 : index
    %c0_201 = arith.constant 0 : index
    %405 = vector.load %arg18[%c0_199, %c0_200, %c0_201] : memref<2x1x32xf32, #tpu.memory_space<vmem>>, vector<1x1x32xf32>
    %406 = vector.shape_cast %405 : vector<1x1x32xf32> to vector<1x32xf32>
    %cst_202 = arith.constant dense<0.000000e+00> : vector<8x96xf32>
    %407 = tpu.matmul %398, %400, %cst_202 {dimension_numbers = #tpu.dot_dimension_numbers<[1], [0], [0], [1], [0, 0, 1, 1], [], []>} : vector<8x32xf32>, vector<32x96xf32>, vector<8x96xf32> -> vector<8x96xf32>
    %408 = vector.broadcast %402 : vector<1x96xf32> to vector<8x96xf32>
    %409 = arith.addf %407, %408 : vector<8x96xf32>
    %410 = vector.extract_strided_slice %409 {offsets = [0, 0], sizes = [8, 32], strides = [1, 1]} : vector<8x96xf32> to vector<8x32xf32>
    %411 = vector.extract_strided_slice %409 {offsets = [0, 32], sizes = [8, 32], strides = [1, 1]} : vector<8x96xf32> to vector<8x32xf32>
    %412 = vector.extract_strided_slice %409 {offsets = [0, 64], sizes = [8, 32], strides = [1, 1]} : vector<8x96xf32> to vector<8x32xf32>
    %cst_203 = arith.constant 0.353553385 : f32
    %413 = vector.broadcast %cst_203 : f32 to vector<8x32xf32>
    %414 = arith.mulf %410, %413 : vector<8x32xf32>
    %415 = vector.extract_strided_slice %414 {offsets = [0, 0], sizes = [8, 8], strides = [1, 1]} : vector<8x32xf32> to vector<8x8xf32>
    %416 = vector.extract_strided_slice %411 {offsets = [0, 0], sizes = [8, 8], strides = [1, 1]} : vector<8x32xf32> to vector<8x8xf32>
    %cst_204 = arith.constant dense<0.000000e+00> : vector<8x8xf32>
    %417 = tpu.matmul %415, %416, %cst_204 {dimension_numbers = #tpu.dot_dimension_numbers<[1], [1], [0], [0], [0, 0, 1, 0], [], []>} : vector<8x8xf32>, vector<8x8xf32>, vector<8x8xf32> -> vector<8x8xf32>
    %cst_205 = arith.constant dense<0xFF800000> : vector<8xf32>
    %418 = vector.multi_reduction <maximumf>, %417, %cst_205 [1] : vector<8x8xf32> to vector<8xf32>
    %419 = vector.shape_cast %418 : vector<8xf32> to vector<8x1xf32>
    %420 = vector.broadcast %419 : vector<8x1xf32> to vector<8x8xf32>
    %421 = arith.subf %417, %420 : vector<8x8xf32>
    %422 = math.exp %421 : vector<8x8xf32>
    %cst_206 = arith.constant dense<0.000000e+00> : vector<8xf32>
    %423 = vector.multi_reduction <add>, %422, %cst_206 [1] : vector<8x8xf32> to vector<8xf32>
    %424 = vector.shape_cast %423 : vector<8xf32> to vector<8x1xf32>
    %425 = tpu.reciprocal %424 {approx = true} : vector<8x1xf32> -> vector<8x1xf32>
    %426 = vector.broadcast %425 : vector<8x1xf32> to vector<8x8xf32>
    %427 = arith.mulf %422, %426 : vector<8x8xf32>
    %428 = vector.extract_strided_slice %412 {offsets = [0, 0], sizes = [8, 8], strides = [1, 1]} : vector<8x32xf32> to vector<8x8xf32>
    %cst_207 = arith.constant dense<0.000000e+00> : vector<8x8xf32>
    %429 = tpu.matmul %427, %428, %cst_207 {dimension_numbers = #tpu.dot_dimension_numbers<[1], [0], [0], [1], [0, 0, 1, 1], [], []>} : vector<8x8xf32>, vector<8x8xf32>, vector<8x8xf32> -> vector<8x8xf32>
    %430 = vector.extract_strided_slice %414 {offsets = [0, 8], sizes = [8, 8], strides = [1, 1]} : vector<8x32xf32> to vector<8x8xf32>
    %431 = vector.extract_strided_slice %411 {offsets = [0, 8], sizes = [8, 8], strides = [1, 1]} : vector<8x32xf32> to vector<8x8xf32>
    %cst_208 = arith.constant dense<0.000000e+00> : vector<8x8xf32>
    %432 = tpu.matmul %430, %431, %cst_208 {dimension_numbers = #tpu.dot_dimension_numbers<[1], [1], [0], [0], [0, 0, 1, 0], [], []>} : vector<8x8xf32>, vector<8x8xf32>, vector<8x8xf32> -> vector<8x8xf32>
    %cst_209 = arith.constant dense<0xFF800000> : vector<8xf32>
    %433 = vector.multi_reduction <maximumf>, %432, %cst_209 [1] : vector<8x8xf32> to vector<8xf32>
    %434 = vector.shape_cast %433 : vector<8xf32> to vector<8x1xf32>
    %435 = vector.broadcast %434 : vector<8x1xf32> to vector<8x8xf32>
    %436 = arith.subf %432, %435 : vector<8x8xf32>
    %437 = math.exp %436 : vector<8x8xf32>
    %cst_210 = arith.constant dense<0.000000e+00> : vector<8xf32>
    %438 = vector.multi_reduction <add>, %437, %cst_210 [1] : vector<8x8xf32> to vector<8xf32>
    %439 = vector.shape_cast %438 : vector<8xf32> to vector<8x1xf32>
    %440 = tpu.reciprocal %439 {approx = true} : vector<8x1xf32> -> vector<8x1xf32>
    %441 = vector.broadcast %440 : vector<8x1xf32> to vector<8x8xf32>
    %442 = arith.mulf %437, %441 : vector<8x8xf32>
    %443 = vector.extract_strided_slice %412 {offsets = [0, 8], sizes = [8, 8], strides = [1, 1]} : vector<8x32xf32> to vector<8x8xf32>
    %cst_211 = arith.constant dense<0.000000e+00> : vector<8x8xf32>
    %444 = tpu.matmul %442, %443, %cst_211 {dimension_numbers = #tpu.dot_dimension_numbers<[1], [0], [0], [1], [0, 0, 1, 1], [], []>} : vector<8x8xf32>, vector<8x8xf32>, vector<8x8xf32> -> vector<8x8xf32>
    %445 = vector.extract_strided_slice %414 {offsets = [0, 16], sizes = [8, 8], strides = [1, 1]} : vector<8x32xf32> to vector<8x8xf32>
    %446 = vector.extract_strided_slice %411 {offsets = [0, 16], sizes = [8, 8], strides = [1, 1]} : vector<8x32xf32> to vector<8x8xf32>
    %cst_212 = arith.constant dense<0.000000e+00> : vector<8x8xf32>
    %447 = tpu.matmul %445, %446, %cst_212 {dimension_numbers = #tpu.dot_dimension_numbers<[1], [1], [0], [0], [0, 0, 1, 0], [], []>} : vector<8x8xf32>, vector<8x8xf32>, vector<8x8xf32> -> vector<8x8xf32>
    %cst_213 = arith.constant dense<0xFF800000> : vector<8xf32>
    %448 = vector.multi_reduction <maximumf>, %447, %cst_213 [1] : vector<8x8xf32> to vector<8xf32>
    %449 = vector.shape_cast %448 : vector<8xf32> to vector<8x1xf32>
    %450 = vector.broadcast %449 : vector<8x1xf32> to vector<8x8xf32>
    %451 = arith.subf %447, %450 : vector<8x8xf32>
    %452 = math.exp %451 : vector<8x8xf32>
    %cst_214 = arith.constant dense<0.000000e+00> : vector<8xf32>
    %453 = vector.multi_reduction <add>, %452, %cst_214 [1] : vector<8x8xf32> to vector<8xf32>
    %454 = vector.shape_cast %453 : vector<8xf32> to vector<8x1xf32>
    %455 = tpu.reciprocal %454 {approx = true} : vector<8x1xf32> -> vector<8x1xf32>
    %456 = vector.broadcast %455 : vector<8x1xf32> to vector<8x8xf32>
    %457 = arith.mulf %452, %456 : vector<8x8xf32>
    %458 = vector.extract_strided_slice %412 {offsets = [0, 16], sizes = [8, 8], strides = [1, 1]} : vector<8x32xf32> to vector<8x8xf32>
    %cst_215 = arith.constant dense<0.000000e+00> : vector<8x8xf32>
    %459 = tpu.matmul %457, %458, %cst_215 {dimension_numbers = #tpu.dot_dimension_numbers<[1], [0], [0], [1], [0, 0, 1, 1], [], []>} : vector<8x8xf32>, vector<8x8xf32>, vector<8x8xf32> -> vector<8x8xf32>
    %460 = vector.extract_strided_slice %414 {offsets = [0, 24], sizes = [8, 8], strides = [1, 1]} : vector<8x32xf32> to vector<8x8xf32>
    %461 = vector.extract_strided_slice %411 {offsets = [0, 24], sizes = [8, 8], strides = [1, 1]} : vector<8x32xf32> to vector<8x8xf32>
    %cst_216 = arith.constant dense<0.000000e+00> : vector<8x8xf32>
    %462 = tpu.matmul %460, %461, %cst_216 {dimension_numbers = #tpu.dot_dimension_numbers<[1], [1], [0], [0], [0, 0, 1, 0], [], []>} : vector<8x8xf32>, vector<8x8xf32>, vector<8x8xf32> -> vector<8x8xf32>
    %cst_217 = arith.constant dense<0xFF800000> : vector<8xf32>
    %463 = vector.multi_reduction <maximumf>, %462, %cst_217 [1] : vector<8x8xf32> to vector<8xf32>
    %464 = vector.shape_cast %463 : vector<8xf32> to vector<8x1xf32>
    %465 = vector.broadcast %464 : vector<8x1xf32> to vector<8x8xf32>
    %466 = arith.subf %462, %465 : vector<8x8xf32>
    %467 = math.exp %466 : vector<8x8xf32>
    %cst_218 = arith.constant dense<0.000000e+00> : vector<8xf32>
    %468 = vector.multi_reduction <add>, %467, %cst_218 [1] : vector<8x8xf32> to vector<8xf32>
    %469 = vector.shape_cast %468 : vector<8xf32> to vector<8x1xf32>
    %470 = tpu.reciprocal %469 {approx = true} : vector<8x1xf32> -> vector<8x1xf32>
    %471 = vector.broadcast %470 : vector<8x1xf32> to vector<8x8xf32>
    %472 = arith.mulf %467, %471 : vector<8x8xf32>
    %473 = vector.extract_strided_slice %412 {offsets = [0, 24], sizes = [8, 8], strides = [1, 1]} : vector<8x32xf32> to vector<8x8xf32>
    %cst_219 = arith.constant dense<0.000000e+00> : vector<8x8xf32>
    %474 = tpu.matmul %472, %473, %cst_219 {dimension_numbers = #tpu.dot_dimension_numbers<[1], [0], [0], [1], [0, 0, 1, 1], [], []>} : vector<8x8xf32>, vector<8x8xf32>, vector<8x8xf32> -> vector<8x8xf32>
    %475 = tpu.concatenate %429, %444, %459, %474 in 1 : vector<8x8xf32>, vector<8x8xf32>, vector<8x8xf32>, vector<8x8xf32> -> vector<8x32xf32>
    %cst_220 = arith.constant dense<0.000000e+00> : vector<8x32xf32>
    %476 = tpu.matmul %475, %404, %cst_220 {dimension_numbers = #tpu.dot_dimension_numbers<[1], [0], [0], [1], [0, 0, 1, 1], [], []>} : vector<8x32xf32>, vector<32x32xf32>, vector<8x32xf32> -> vector<8x32xf32>
    %477 = vector.broadcast %406 : vector<1x32xf32> to vector<8x32xf32>
    %478 = arith.addf %476, %477 : vector<8x32xf32>
    %479 = arith.addf %398, %478 : vector<8x32xf32>
    %c0_221 = arith.constant 0 : index
    %c0_222 = arith.constant 0 : index
    %c0_223 = arith.constant 0 : index
    %480 = vector.load %arg13[%c0_221, %c0_222, %c0_223] : memref<2x1x32xf32, #tpu.memory_space<vmem>>, vector<1x1x32xf32>
    %481 = vector.shape_cast %480 : vector<1x1x32xf32> to vector<1x32xf32>
    %c0_224 = arith.constant 0 : index
    %c0_225 = arith.constant 0 : index
    %c0_226 = arith.constant 0 : index
    %482 = vector.load %arg12[%c0_224, %c0_225, %c0_226] : memref<2x1x32xf32, #tpu.memory_space<vmem>>, vector<1x1x32xf32>
    %483 = vector.shape_cast %482 : vector<1x1x32xf32> to vector<1x32xf32>
    %cst_227 = arith.constant dense<0.000000e+00> : vector<8xf32>
    %484 = vector.multi_reduction <add>, %479, %cst_227 [1] : vector<8x32xf32> to vector<8xf32>
    %485 = vector.shape_cast %484 : vector<8xf32> to vector<8x1xf32>
    %cst_228 = arith.constant 3.200000e+01 : f32
    %486 = vector.broadcast %cst_228 : f32 to vector<8x1xf32>
    %487 = arith.divf %485, %486 : vector<8x1xf32>
    %488 = vector.broadcast %487 : vector<8x1xf32> to vector<8x32xf32>
    %489 = arith.subf %479, %488 : vector<8x32xf32>
    %490 = arith.mulf %489, %489 : vector<8x32xf32>
    %cst_229 = arith.constant dense<0.000000e+00> : vector<8xf32>
    %491 = vector.multi_reduction <add>, %490, %cst_229 [1] : vector<8x32xf32> to vector<8xf32>
    %492 = vector.shape_cast %491 : vector<8xf32> to vector<8x1xf32>
    %cst_230 = arith.constant 3.200000e+01 : f32
    %493 = vector.broadcast %cst_230 : f32 to vector<8x1xf32>
    %494 = arith.divf %492, %493 : vector<8x1xf32>
    %495 = vector.broadcast %487 : vector<8x1xf32> to vector<8x32xf32>
    %496 = arith.subf %479, %495 : vector<8x32xf32>
    %cst_231 = arith.constant 9.99999974E-6 : f32
    %497 = vector.broadcast %cst_231 : f32 to vector<8x1xf32>
    %498 = arith.addf %494, %497 : vector<8x1xf32>
    %499 = math.rsqrt %498 : vector<8x1xf32>
    %500 = vector.broadcast %499 : vector<8x1xf32> to vector<8x32xf32>
    %501 = arith.mulf %496, %500 : vector<8x32xf32>
    %502 = vector.broadcast %481 : vector<1x32xf32> to vector<8x32xf32>
    %503 = arith.mulf %501, %502 : vector<8x32xf32>
    %504 = vector.broadcast %483 : vector<1x32xf32> to vector<8x32xf32>
    %505 = arith.addf %503, %504 : vector<8x32xf32>
    %c0_232 = arith.constant 0 : index
    %c0_233 = arith.constant 0 : index
    %c0_234 = arith.constant 0 : index
    %506 = vector.load %arg5[%c0_232, %c0_233, %c0_234] : memref<2x32x64xf32, #tpu.memory_space<vmem>>, vector<1x32x64xf32>
    %507 = vector.shape_cast %506 : vector<1x32x64xf32> to vector<32x64xf32>
    %c0_235 = arith.constant 0 : index
    %c0_236 = arith.constant 0 : index
    %c0_237 = arith.constant 0 : index
    %508 = vector.load %arg2[%c0_235, %c0_236, %c0_237] : memref<2x1x64xf32, #tpu.memory_space<vmem>>, vector<1x1x64xf32>
    %509 = vector.shape_cast %508 : vector<1x1x64xf32> to vector<1x64xf32>
    %cst_238 = arith.constant dense<0.000000e+00> : vector<8x64xf32>
    %510 = tpu.matmul %397, %507, %cst_238 {dimension_numbers = #tpu.dot_dimension_numbers<[1], [0], [0], [1], [0, 0, 1, 1], [], []>} : vector<8x32xf32>, vector<32x64xf32>, vector<8x64xf32> -> vector<8x64xf32>
    %511 = vector.broadcast %509 : vector<1x64xf32> to vector<8x64xf32>
    %512 = arith.addf %510, %511 : vector<8x64xf32>
    %513 = vector.extract_strided_slice %512 {offsets = [0, 0], sizes = [8, 32], strides = [1, 1]} : vector<8x64xf32> to vector<8x32xf32>
    %514 = vector.extract_strided_slice %512 {offsets = [0, 32], sizes = [8, 32], strides = [1, 1]} : vector<8x64xf32> to vector<8x32xf32>
    %c0_239 = arith.constant 0 : index
    %c0_240 = arith.constant 0 : index
    %c0_241 = arith.constant 0 : index
    %515 = vector.load %arg7[%c0_239, %c0_240, %c0_241] : memref<2x32x32xf32, #tpu.memory_space<vmem>>, vector<1x32x32xf32>
    %516 = vector.shape_cast %515 : vector<1x32x32xf32> to vector<32x32xf32>
    %c0_242 = arith.constant 0 : index
    %c0_243 = arith.constant 0 : index
    %c0_244 = arith.constant 0 : index
    %517 = vector.load %arg4[%c0_242, %c0_243, %c0_244] : memref<2x1x32xf32, #tpu.memory_space<vmem>>, vector<1x1x32xf32>
    %518 = vector.shape_cast %517 : vector<1x1x32xf32> to vector<1x32xf32>
    %c0_245 = arith.constant 0 : index
    %c0_246 = arith.constant 0 : index
    %c0_247 = arith.constant 0 : index
    %519 = vector.load %arg6[%c0_245, %c0_246, %c0_247] : memref<2x32x32xf32, #tpu.memory_space<vmem>>, vector<1x32x32xf32>
    %520 = vector.shape_cast %519 : vector<1x32x32xf32> to vector<32x32xf32>
    %c0_248 = arith.constant 0 : index
    %c0_249 = arith.constant 0 : index
    %c0_250 = arith.constant 0 : index
    %521 = vector.load %arg3[%c0_248, %c0_249, %c0_250] : memref<2x1x32xf32, #tpu.memory_space<vmem>>, vector<1x1x32xf32>
    %522 = vector.shape_cast %521 : vector<1x1x32xf32> to vector<1x32xf32>
    %cst_251 = arith.constant dense<0.000000e+00> : vector<8x32xf32>
    %523 = tpu.matmul %505, %516, %cst_251 {dimension_numbers = #tpu.dot_dimension_numbers<[1], [0], [0], [1], [0, 0, 1, 1], [], []>} : vector<8x32xf32>, vector<32x32xf32>, vector<8x32xf32> -> vector<8x32xf32>
    %524 = vector.broadcast %518 : vector<1x32xf32> to vector<8x32xf32>
    %525 = arith.addf %523, %524 : vector<8x32xf32>
    %cst_252 = arith.constant 0.353553385 : f32
    %526 = vector.broadcast %cst_252 : f32 to vector<8x32xf32>
    %527 = arith.mulf %525, %526 : vector<8x32xf32>
    %528 = vector.extract_strided_slice %527 {offsets = [0, 0], sizes = [8, 8], strides = [1, 1]} : vector<8x32xf32> to vector<8x8xf32>
    %529 = vector.extract_strided_slice %513 {offsets = [0, 0], sizes = [8, 8], strides = [1, 1]} : vector<8x32xf32> to vector<8x8xf32>
    %cst_253 = arith.constant dense<0.000000e+00> : vector<8x8xf32>
    %530 = tpu.matmul %528, %529, %cst_253 {dimension_numbers = #tpu.dot_dimension_numbers<[1], [1], [0], [0], [0, 0, 1, 0], [], []>} : vector<8x8xf32>, vector<8x8xf32>, vector<8x8xf32> -> vector<8x8xf32>
    %cst_254 = arith.constant dense<0xFF800000> : vector<8xf32>
    %531 = vector.multi_reduction <maximumf>, %530, %cst_254 [1] : vector<8x8xf32> to vector<8xf32>
    %532 = vector.shape_cast %531 : vector<8xf32> to vector<8x1xf32>
    %533 = vector.broadcast %532 : vector<8x1xf32> to vector<8x8xf32>
    %534 = arith.subf %530, %533 : vector<8x8xf32>
    %535 = math.exp %534 : vector<8x8xf32>
    %cst_255 = arith.constant dense<0.000000e+00> : vector<8xf32>
    %536 = vector.multi_reduction <add>, %535, %cst_255 [1] : vector<8x8xf32> to vector<8xf32>
    %537 = vector.shape_cast %536 : vector<8xf32> to vector<8x1xf32>
    %538 = tpu.reciprocal %537 {approx = true} : vector<8x1xf32> -> vector<8x1xf32>
    %539 = vector.broadcast %538 : vector<8x1xf32> to vector<8x8xf32>
    %540 = arith.mulf %535, %539 : vector<8x8xf32>
    %541 = vector.extract_strided_slice %514 {offsets = [0, 0], sizes = [8, 8], strides = [1, 1]} : vector<8x32xf32> to vector<8x8xf32>
    %cst_256 = arith.constant dense<0.000000e+00> : vector<8x8xf32>
    %542 = tpu.matmul %540, %541, %cst_256 {dimension_numbers = #tpu.dot_dimension_numbers<[1], [0], [0], [1], [0, 0, 1, 1], [], []>} : vector<8x8xf32>, vector<8x8xf32>, vector<8x8xf32> -> vector<8x8xf32>
    %543 = vector.extract_strided_slice %527 {offsets = [0, 8], sizes = [8, 8], strides = [1, 1]} : vector<8x32xf32> to vector<8x8xf32>
    %544 = vector.extract_strided_slice %513 {offsets = [0, 8], sizes = [8, 8], strides = [1, 1]} : vector<8x32xf32> to vector<8x8xf32>
    %cst_257 = arith.constant dense<0.000000e+00> : vector<8x8xf32>
    %545 = tpu.matmul %543, %544, %cst_257 {dimension_numbers = #tpu.dot_dimension_numbers<[1], [1], [0], [0], [0, 0, 1, 0], [], []>} : vector<8x8xf32>, vector<8x8xf32>, vector<8x8xf32> -> vector<8x8xf32>
    %cst_258 = arith.constant dense<0xFF800000> : vector<8xf32>
    %546 = vector.multi_reduction <maximumf>, %545, %cst_258 [1] : vector<8x8xf32> to vector<8xf32>
    %547 = vector.shape_cast %546 : vector<8xf32> to vector<8x1xf32>
    %548 = vector.broadcast %547 : vector<8x1xf32> to vector<8x8xf32>
    %549 = arith.subf %545, %548 : vector<8x8xf32>
    %550 = math.exp %549 : vector<8x8xf32>
    %cst_259 = arith.constant dense<0.000000e+00> : vector<8xf32>
    %551 = vector.multi_reduction <add>, %550, %cst_259 [1] : vector<8x8xf32> to vector<8xf32>
    %552 = vector.shape_cast %551 : vector<8xf32> to vector<8x1xf32>
    %553 = tpu.reciprocal %552 {approx = true} : vector<8x1xf32> -> vector<8x1xf32>
    %554 = vector.broadcast %553 : vector<8x1xf32> to vector<8x8xf32>
    %555 = arith.mulf %550, %554 : vector<8x8xf32>
    %556 = vector.extract_strided_slice %514 {offsets = [0, 8], sizes = [8, 8], strides = [1, 1]} : vector<8x32xf32> to vector<8x8xf32>
    %cst_260 = arith.constant dense<0.000000e+00> : vector<8x8xf32>
    %557 = tpu.matmul %555, %556, %cst_260 {dimension_numbers = #tpu.dot_dimension_numbers<[1], [0], [0], [1], [0, 0, 1, 1], [], []>} : vector<8x8xf32>, vector<8x8xf32>, vector<8x8xf32> -> vector<8x8xf32>
    %558 = vector.extract_strided_slice %527 {offsets = [0, 16], sizes = [8, 8], strides = [1, 1]} : vector<8x32xf32> to vector<8x8xf32>
    %559 = vector.extract_strided_slice %513 {offsets = [0, 16], sizes = [8, 8], strides = [1, 1]} : vector<8x32xf32> to vector<8x8xf32>
    %cst_261 = arith.constant dense<0.000000e+00> : vector<8x8xf32>
    %560 = tpu.matmul %558, %559, %cst_261 {dimension_numbers = #tpu.dot_dimension_numbers<[1], [1], [0], [0], [0, 0, 1, 0], [], []>} : vector<8x8xf32>, vector<8x8xf32>, vector<8x8xf32> -> vector<8x8xf32>
    %cst_262 = arith.constant dense<0xFF800000> : vector<8xf32>
    %561 = vector.multi_reduction <maximumf>, %560, %cst_262 [1] : vector<8x8xf32> to vector<8xf32>
    %562 = vector.shape_cast %561 : vector<8xf32> to vector<8x1xf32>
    %563 = vector.broadcast %562 : vector<8x1xf32> to vector<8x8xf32>
    %564 = arith.subf %560, %563 : vector<8x8xf32>
    %565 = math.exp %564 : vector<8x8xf32>
    %cst_263 = arith.constant dense<0.000000e+00> : vector<8xf32>
    %566 = vector.multi_reduction <add>, %565, %cst_263 [1] : vector<8x8xf32> to vector<8xf32>
    %567 = vector.shape_cast %566 : vector<8xf32> to vector<8x1xf32>
    %568 = tpu.reciprocal %567 {approx = true} : vector<8x1xf32> -> vector<8x1xf32>
    %569 = vector.broadcast %568 : vector<8x1xf32> to vector<8x8xf32>
    %570 = arith.mulf %565, %569 : vector<8x8xf32>
    %571 = vector.extract_strided_slice %514 {offsets = [0, 16], sizes = [8, 8], strides = [1, 1]} : vector<8x32xf32> to vector<8x8xf32>
    %cst_264 = arith.constant dense<0.000000e+00> : vector<8x8xf32>
    %572 = tpu.matmul %570, %571, %cst_264 {dimension_numbers = #tpu.dot_dimension_numbers<[1], [0], [0], [1], [0, 0, 1, 1], [], []>} : vector<8x8xf32>, vector<8x8xf32>, vector<8x8xf32> -> vector<8x8xf32>
    %573 = vector.extract_strided_slice %527 {offsets = [0, 24], sizes = [8, 8], strides = [1, 1]} : vector<8x32xf32> to vector<8x8xf32>
    %574 = vector.extract_strided_slice %513 {offsets = [0, 24], sizes = [8, 8], strides = [1, 1]} : vector<8x32xf32> to vector<8x8xf32>
    %cst_265 = arith.constant dense<0.000000e+00> : vector<8x8xf32>
    %575 = tpu.matmul %573, %574, %cst_265 {dimension_numbers = #tpu.dot_dimension_numbers<[1], [1], [0], [0], [0, 0, 1, 0], [], []>} : vector<8x8xf32>, vector<8x8xf32>, vector<8x8xf32> -> vector<8x8xf32>
    %cst_266 = arith.constant dense<0xFF800000> : vector<8xf32>
    %576 = vector.multi_reduction <maximumf>, %575, %cst_266 [1] : vector<8x8xf32> to vector<8xf32>
    %577 = vector.shape_cast %576 : vector<8xf32> to vector<8x1xf32>
    %578 = vector.broadcast %577 : vector<8x1xf32> to vector<8x8xf32>
    %579 = arith.subf %575, %578 : vector<8x8xf32>
    %580 = math.exp %579 : vector<8x8xf32>
    %cst_267 = arith.constant dense<0.000000e+00> : vector<8xf32>
    %581 = vector.multi_reduction <add>, %580, %cst_267 [1] : vector<8x8xf32> to vector<8xf32>
    %582 = vector.shape_cast %581 : vector<8xf32> to vector<8x1xf32>
    %583 = tpu.reciprocal %582 {approx = true} : vector<8x1xf32> -> vector<8x1xf32>
    %584 = vector.broadcast %583 : vector<8x1xf32> to vector<8x8xf32>
    %585 = arith.mulf %580, %584 : vector<8x8xf32>
    %586 = vector.extract_strided_slice %514 {offsets = [0, 24], sizes = [8, 8], strides = [1, 1]} : vector<8x32xf32> to vector<8x8xf32>
    %cst_268 = arith.constant dense<0.000000e+00> : vector<8x8xf32>
    %587 = tpu.matmul %585, %586, %cst_268 {dimension_numbers = #tpu.dot_dimension_numbers<[1], [0], [0], [1], [0, 0, 1, 1], [], []>} : vector<8x8xf32>, vector<8x8xf32>, vector<8x8xf32> -> vector<8x8xf32>
    %588 = tpu.concatenate %542, %557, %572, %587 in 1 : vector<8x8xf32>, vector<8x8xf32>, vector<8x8xf32>, vector<8x8xf32> -> vector<8x32xf32>
    %cst_269 = arith.constant dense<0.000000e+00> : vector<8x32xf32>
    %589 = tpu.matmul %588, %520, %cst_269 {dimension_numbers = #tpu.dot_dimension_numbers<[1], [0], [0], [1], [0, 0, 1, 1], [], []>} : vector<8x32xf32>, vector<32x32xf32>, vector<8x32xf32> -> vector<8x32xf32>
    %590 = vector.broadcast %522 : vector<1x32xf32> to vector<8x32xf32>
    %591 = arith.addf %589, %590 : vector<8x32xf32>
    %592 = arith.addf %505, %591 : vector<8x32xf32>
    %c0_270 = arith.constant 0 : index
    %c0_271 = arith.constant 0 : index
    %c0_272 = arith.constant 0 : index
    %593 = vector.load %arg15[%c0_270, %c0_271, %c0_272] : memref<2x1x32xf32, #tpu.memory_space<vmem>>, vector<1x1x32xf32>
    %594 = vector.shape_cast %593 : vector<1x1x32xf32> to vector<1x32xf32>
    %c0_273 = arith.constant 0 : index
    %c0_274 = arith.constant 0 : index
    %c0_275 = arith.constant 0 : index
    %595 = vector.load %arg14[%c0_273, %c0_274, %c0_275] : memref<2x1x32xf32, #tpu.memory_space<vmem>>, vector<1x1x32xf32>
    %596 = vector.shape_cast %595 : vector<1x1x32xf32> to vector<1x32xf32>
    %cst_276 = arith.constant dense<0.000000e+00> : vector<8xf32>
    %597 = vector.multi_reduction <add>, %592, %cst_276 [1] : vector<8x32xf32> to vector<8xf32>
    %598 = vector.shape_cast %597 : vector<8xf32> to vector<8x1xf32>
    %cst_277 = arith.constant 3.200000e+01 : f32
    %599 = vector.broadcast %cst_277 : f32 to vector<8x1xf32>
    %600 = arith.divf %598, %599 : vector<8x1xf32>
    %601 = vector.broadcast %600 : vector<8x1xf32> to vector<8x32xf32>
    %602 = arith.subf %592, %601 : vector<8x32xf32>
    %603 = arith.mulf %602, %602 : vector<8x32xf32>
    %cst_278 = arith.constant dense<0.000000e+00> : vector<8xf32>
    %604 = vector.multi_reduction <add>, %603, %cst_278 [1] : vector<8x32xf32> to vector<8xf32>
    %605 = vector.shape_cast %604 : vector<8xf32> to vector<8x1xf32>
    %cst_279 = arith.constant 3.200000e+01 : f32
    %606 = vector.broadcast %cst_279 : f32 to vector<8x1xf32>
    %607 = arith.divf %605, %606 : vector<8x1xf32>
    %608 = vector.broadcast %600 : vector<8x1xf32> to vector<8x32xf32>
    %609 = arith.subf %592, %608 : vector<8x32xf32>
    %cst_280 = arith.constant 9.99999974E-6 : f32
    %610 = vector.broadcast %cst_280 : f32 to vector<8x1xf32>
    %611 = arith.addf %607, %610 : vector<8x1xf32>
    %612 = math.rsqrt %611 : vector<8x1xf32>
    %613 = vector.broadcast %612 : vector<8x1xf32> to vector<8x32xf32>
    %614 = arith.mulf %609, %613 : vector<8x32xf32>
    %615 = vector.broadcast %594 : vector<1x32xf32> to vector<8x32xf32>
    %616 = arith.mulf %614, %615 : vector<8x32xf32>
    %617 = vector.broadcast %596 : vector<1x32xf32> to vector<8x32xf32>
    %618 = arith.addf %616, %617 : vector<8x32xf32>
    %c0_281 = arith.constant 0 : index
    %c0_282 = arith.constant 0 : index
    %c0_283 = arith.constant 0 : index
    %619 = vector.load %arg10[%c0_281, %c0_282, %c0_283] : memref<2x32x64xf32, #tpu.memory_space<vmem>>, vector<1x32x64xf32>
    %620 = vector.shape_cast %619 : vector<1x32x64xf32> to vector<32x64xf32>
    %c0_284 = arith.constant 0 : index
    %c0_285 = arith.constant 0 : index
    %c0_286 = arith.constant 0 : index
    %621 = vector.load %arg8[%c0_284, %c0_285, %c0_286] : memref<2x1x64xf32, #tpu.memory_space<vmem>>, vector<1x1x64xf32>
    %622 = vector.shape_cast %621 : vector<1x1x64xf32> to vector<1x64xf32>
    %cst_287 = arith.constant dense<0.000000e+00> : vector<8x64xf32>
    %623 = tpu.matmul %618, %620, %cst_287 {dimension_numbers = #tpu.dot_dimension_numbers<[1], [0], [0], [1], [0, 0, 1, 1], [], []>} : vector<8x32xf32>, vector<32x64xf32>, vector<8x64xf32> -> vector<8x64xf32>
    %624 = vector.broadcast %622 : vector<1x64xf32> to vector<8x64xf32>
    %625 = arith.addf %623, %624 : vector<8x64xf32>
    %cst_288 = arith.constant 5.000000e-01 : f32
    %626 = vector.broadcast %cst_288 : f32 to vector<8x64xf32>
    %627 = arith.mulf %626, %625 : vector<8x64xf32>
    %cst_289 = arith.constant 0.707106769 : f32
    %628 = vector.broadcast %cst_289 : f32 to vector<8x64xf32>
    %629 = arith.mulf %625, %628 : vector<8x64xf32>
    %630 = math.erf %629 : vector<8x64xf32>
    %cst_290 = arith.constant 1.000000e+00 : f32
    %631 = vector.broadcast %cst_290 : f32 to vector<8x64xf32>
    %632 = arith.addf %631, %630 : vector<8x64xf32>
    %633 = arith.mulf %627, %632 : vector<8x64xf32>
    %c0_291 = arith.constant 0 : index
    %c0_292 = arith.constant 0 : index
    %c0_293 = arith.constant 0 : index
    %634 = vector.load %arg11[%c0_291, %c0_292, %c0_293] : memref<2x64x32xf32, #tpu.memory_space<vmem>>, vector<1x64x32xf32>
    %635 = vector.shape_cast %634 : vector<1x64x32xf32> to vector<64x32xf32>
    %c0_294 = arith.constant 0 : index
    %c0_295 = arith.constant 0 : index
    %c0_296 = arith.constant 0 : index
    %636 = vector.load %arg9[%c0_294, %c0_295, %c0_296] : memref<2x1x32xf32, #tpu.memory_space<vmem>>, vector<1x1x32xf32>
    %637 = vector.shape_cast %636 : vector<1x1x32xf32> to vector<1x32xf32>
    %cst_297 = arith.constant dense<0.000000e+00> : vector<8x32xf32>
    %638 = tpu.matmul %633, %635, %cst_297 {dimension_numbers = #tpu.dot_dimension_numbers<[1], [0], [0], [1], [0, 0, 1, 1], [], []>} : vector<8x64xf32>, vector<64x32xf32>, vector<8x32xf32> -> vector<8x32xf32>
    %639 = vector.broadcast %637 : vector<1x32xf32> to vector<8x32xf32>
    %640 = arith.addf %638, %639 : vector<8x32xf32>
    %641 = arith.addf %618, %640 : vector<8x32xf32>
    %c0_298 = arith.constant 0 : index
    %c0_299 = arith.constant 0 : index
    %c0_300 = arith.constant 0 : index
    %642 = vector.load %arg17[%c0_298, %c0_299, %c0_300] : memref<2x1x32xf32, #tpu.memory_space<vmem>>, vector<1x1x32xf32>
    %643 = vector.shape_cast %642 : vector<1x1x32xf32> to vector<1x32xf32>
    %c0_301 = arith.constant 0 : index
    %c0_302 = arith.constant 0 : index
    %c0_303 = arith.constant 0 : index
    %644 = vector.load %arg16[%c0_301, %c0_302, %c0_303] : memref<2x1x32xf32, #tpu.memory_space<vmem>>, vector<1x1x32xf32>
    %645 = vector.shape_cast %644 : vector<1x1x32xf32> to vector<1x32xf32>
    %cst_304 = arith.constant dense<0.000000e+00> : vector<8xf32>
    %646 = vector.multi_reduction <add>, %641, %cst_304 [1] : vector<8x32xf32> to vector<8xf32>
    %647 = vector.shape_cast %646 : vector<8xf32> to vector<8x1xf32>
    %cst_305 = arith.constant 3.200000e+01 : f32
    %648 = vector.broadcast %cst_305 : f32 to vector<8x1xf32>
    %649 = arith.divf %647, %648 : vector<8x1xf32>
    %650 = vector.broadcast %649 : vector<8x1xf32> to vector<8x32xf32>
    %651 = arith.subf %641, %650 : vector<8x32xf32>
    %652 = arith.mulf %651, %651 : vector<8x32xf32>
    %cst_306 = arith.constant dense<0.000000e+00> : vector<8xf32>
    %653 = vector.multi_reduction <add>, %652, %cst_306 [1] : vector<8x32xf32> to vector<8xf32>
    %654 = vector.shape_cast %653 : vector<8xf32> to vector<8x1xf32>
    %cst_307 = arith.constant 3.200000e+01 : f32
    %655 = vector.broadcast %cst_307 : f32 to vector<8x1xf32>
    %656 = arith.divf %654, %655 : vector<8x1xf32>
    %657 = vector.broadcast %649 : vector<8x1xf32> to vector<8x32xf32>
    %658 = arith.subf %641, %657 : vector<8x32xf32>
    %cst_308 = arith.constant 9.99999974E-6 : f32
    %659 = vector.broadcast %cst_308 : f32 to vector<8x1xf32>
    %660 = arith.addf %656, %659 : vector<8x1xf32>
    %661 = math.rsqrt %660 : vector<8x1xf32>
    %662 = vector.broadcast %661 : vector<8x1xf32> to vector<8x32xf32>
    %663 = arith.mulf %658, %662 : vector<8x32xf32>
    %664 = vector.broadcast %643 : vector<1x32xf32> to vector<8x32xf32>
    %665 = arith.mulf %663, %664 : vector<8x32xf32>
    %666 = vector.broadcast %645 : vector<1x32xf32> to vector<8x32xf32>
    %667 = arith.addf %665, %666 : vector<8x32xf32>
    %c1_309 = arith.constant 1 : index
    %c0_310 = arith.constant 0 : index
    %c0_311 = arith.constant 0 : index
    %668 = vector.load %arg21[%c1_309, %c0_310, %c0_311] : memref<2x32x96xf32, #tpu.memory_space<vmem>>, vector<1x32x96xf32>
    %669 = vector.shape_cast %668 : vector<1x32x96xf32> to vector<32x96xf32>
    %c1_312 = arith.constant 1 : index
    %c0_313 = arith.constant 0 : index
    %c0_314 = arith.constant 0 : index
    %670 = vector.load %arg19[%c1_312, %c0_313, %c0_314] : memref<2x1x96xf32, #tpu.memory_space<vmem>>, vector<1x1x96xf32>
    %671 = vector.shape_cast %670 : vector<1x1x96xf32> to vector<1x96xf32>
    %c1_315 = arith.constant 1 : index
    %c0_316 = arith.constant 0 : index
    %c0_317 = arith.constant 0 : index
    %672 = vector.load %arg20[%c1_315, %c0_316, %c0_317] : memref<2x32x32xf32, #tpu.memory_space<vmem>>, vector<1x32x32xf32>
    %673 = vector.shape_cast %672 : vector<1x32x32xf32> to vector<32x32xf32>
    %c1_318 = arith.constant 1 : index
    %c0_319 = arith.constant 0 : index
    %c0_320 = arith.constant 0 : index
    %674 = vector.load %arg18[%c1_318, %c0_319, %c0_320] : memref<2x1x32xf32, #tpu.memory_space<vmem>>, vector<1x1x32xf32>
    %675 = vector.shape_cast %674 : vector<1x1x32xf32> to vector<1x32xf32>
    %cst_321 = arith.constant dense<0.000000e+00> : vector<8x96xf32>
    %676 = tpu.matmul %667, %669, %cst_321 {dimension_numbers = #tpu.dot_dimension_numbers<[1], [0], [0], [1], [0, 0, 1, 1], [], []>} : vector<8x32xf32>, vector<32x96xf32>, vector<8x96xf32> -> vector<8x96xf32>
    %677 = vector.broadcast %671 : vector<1x96xf32> to vector<8x96xf32>
    %678 = arith.addf %676, %677 : vector<8x96xf32>
    %679 = vector.extract_strided_slice %678 {offsets = [0, 0], sizes = [8, 32], strides = [1, 1]} : vector<8x96xf32> to vector<8x32xf32>
    %680 = vector.extract_strided_slice %678 {offsets = [0, 32], sizes = [8, 32], strides = [1, 1]} : vector<8x96xf32> to vector<8x32xf32>
    %681 = vector.extract_strided_slice %678 {offsets = [0, 64], sizes = [8, 32], strides = [1, 1]} : vector<8x96xf32> to vector<8x32xf32>
    %cst_322 = arith.constant 0.353553385 : f32
    %682 = vector.broadcast %cst_322 : f32 to vector<8x32xf32>
    %683 = arith.mulf %679, %682 : vector<8x32xf32>
    %684 = vector.extract_strided_slice %683 {offsets = [0, 0], sizes = [8, 8], strides = [1, 1]} : vector<8x32xf32> to vector<8x8xf32>
    %685 = vector.extract_strided_slice %680 {offsets = [0, 0], sizes = [8, 8], strides = [1, 1]} : vector<8x32xf32> to vector<8x8xf32>
    %cst_323 = arith.constant dense<0.000000e+00> : vector<8x8xf32>
    %686 = tpu.matmul %684, %685, %cst_323 {dimension_numbers = #tpu.dot_dimension_numbers<[1], [1], [0], [0], [0, 0, 1, 0], [], []>} : vector<8x8xf32>, vector<8x8xf32>, vector<8x8xf32> -> vector<8x8xf32>
    %cst_324 = arith.constant dense<0xFF800000> : vector<8xf32>
    %687 = vector.multi_reduction <maximumf>, %686, %cst_324 [1] : vector<8x8xf32> to vector<8xf32>
    %688 = vector.shape_cast %687 : vector<8xf32> to vector<8x1xf32>
    %689 = vector.broadcast %688 : vector<8x1xf32> to vector<8x8xf32>
    %690 = arith.subf %686, %689 : vector<8x8xf32>
    %691 = math.exp %690 : vector<8x8xf32>
    %cst_325 = arith.constant dense<0.000000e+00> : vector<8xf32>
    %692 = vector.multi_reduction <add>, %691, %cst_325 [1] : vector<8x8xf32> to vector<8xf32>
    %693 = vector.shape_cast %692 : vector<8xf32> to vector<8x1xf32>
    %694 = tpu.reciprocal %693 {approx = true} : vector<8x1xf32> -> vector<8x1xf32>
    %695 = vector.broadcast %694 : vector<8x1xf32> to vector<8x8xf32>
    %696 = arith.mulf %691, %695 : vector<8x8xf32>
    %697 = vector.extract_strided_slice %681 {offsets = [0, 0], sizes = [8, 8], strides = [1, 1]} : vector<8x32xf32> to vector<8x8xf32>
    %cst_326 = arith.constant dense<0.000000e+00> : vector<8x8xf32>
    %698 = tpu.matmul %696, %697, %cst_326 {dimension_numbers = #tpu.dot_dimension_numbers<[1], [0], [0], [1], [0, 0, 1, 1], [], []>} : vector<8x8xf32>, vector<8x8xf32>, vector<8x8xf32> -> vector<8x8xf32>
    %699 = vector.extract_strided_slice %683 {offsets = [0, 8], sizes = [8, 8], strides = [1, 1]} : vector<8x32xf32> to vector<8x8xf32>
    %700 = vector.extract_strided_slice %680 {offsets = [0, 8], sizes = [8, 8], strides = [1, 1]} : vector<8x32xf32> to vector<8x8xf32>
    %cst_327 = arith.constant dense<0.000000e+00> : vector<8x8xf32>
    %701 = tpu.matmul %699, %700, %cst_327 {dimension_numbers = #tpu.dot_dimension_numbers<[1], [1], [0], [0], [0, 0, 1, 0], [], []>} : vector<8x8xf32>, vector<8x8xf32>, vector<8x8xf32> -> vector<8x8xf32>
    %cst_328 = arith.constant dense<0xFF800000> : vector<8xf32>
    %702 = vector.multi_reduction <maximumf>, %701, %cst_328 [1] : vector<8x8xf32> to vector<8xf32>
    %703 = vector.shape_cast %702 : vector<8xf32> to vector<8x1xf32>
    %704 = vector.broadcast %703 : vector<8x1xf32> to vector<8x8xf32>
    %705 = arith.subf %701, %704 : vector<8x8xf32>
    %706 = math.exp %705 : vector<8x8xf32>
    %cst_329 = arith.constant dense<0.000000e+00> : vector<8xf32>
    %707 = vector.multi_reduction <add>, %706, %cst_329 [1] : vector<8x8xf32> to vector<8xf32>
    %708 = vector.shape_cast %707 : vector<8xf32> to vector<8x1xf32>
    %709 = tpu.reciprocal %708 {approx = true} : vector<8x1xf32> -> vector<8x1xf32>
    %710 = vector.broadcast %709 : vector<8x1xf32> to vector<8x8xf32>
    %711 = arith.mulf %706, %710 : vector<8x8xf32>
    %712 = vector.extract_strided_slice %681 {offsets = [0, 8], sizes = [8, 8], strides = [1, 1]} : vector<8x32xf32> to vector<8x8xf32>
    %cst_330 = arith.constant dense<0.000000e+00> : vector<8x8xf32>
    %713 = tpu.matmul %711, %712, %cst_330 {dimension_numbers = #tpu.dot_dimension_numbers<[1], [0], [0], [1], [0, 0, 1, 1], [], []>} : vector<8x8xf32>, vector<8x8xf32>, vector<8x8xf32> -> vector<8x8xf32>
    %714 = vector.extract_strided_slice %683 {offsets = [0, 16], sizes = [8, 8], strides = [1, 1]} : vector<8x32xf32> to vector<8x8xf32>
    %715 = vector.extract_strided_slice %680 {offsets = [0, 16], sizes = [8, 8], strides = [1, 1]} : vector<8x32xf32> to vector<8x8xf32>
    %cst_331 = arith.constant dense<0.000000e+00> : vector<8x8xf32>
    %716 = tpu.matmul %714, %715, %cst_331 {dimension_numbers = #tpu.dot_dimension_numbers<[1], [1], [0], [0], [0, 0, 1, 0], [], []>} : vector<8x8xf32>, vector<8x8xf32>, vector<8x8xf32> -> vector<8x8xf32>
    %cst_332 = arith.constant dense<0xFF800000> : vector<8xf32>
    %717 = vector.multi_reduction <maximumf>, %716, %cst_332 [1] : vector<8x8xf32> to vector<8xf32>
    %718 = vector.shape_cast %717 : vector<8xf32> to vector<8x1xf32>
    %719 = vector.broadcast %718 : vector<8x1xf32> to vector<8x8xf32>
    %720 = arith.subf %716, %719 : vector<8x8xf32>
    %721 = math.exp %720 : vector<8x8xf32>
    %cst_333 = arith.constant dense<0.000000e+00> : vector<8xf32>
    %722 = vector.multi_reduction <add>, %721, %cst_333 [1] : vector<8x8xf32> to vector<8xf32>
    %723 = vector.shape_cast %722 : vector<8xf32> to vector<8x1xf32>
    %724 = tpu.reciprocal %723 {approx = true} : vector<8x1xf32> -> vector<8x1xf32>
    %725 = vector.broadcast %724 : vector<8x1xf32> to vector<8x8xf32>
    %726 = arith.mulf %721, %725 : vector<8x8xf32>
    %727 = vector.extract_strided_slice %681 {offsets = [0, 16], sizes = [8, 8], strides = [1, 1]} : vector<8x32xf32> to vector<8x8xf32>
    %cst_334 = arith.constant dense<0.000000e+00> : vector<8x8xf32>
    %728 = tpu.matmul %726, %727, %cst_334 {dimension_numbers = #tpu.dot_dimension_numbers<[1], [0], [0], [1], [0, 0, 1, 1], [], []>} : vector<8x8xf32>, vector<8x8xf32>, vector<8x8xf32> -> vector<8x8xf32>
    %729 = vector.extract_strided_slice %683 {offsets = [0, 24], sizes = [8, 8], strides = [1, 1]} : vector<8x32xf32> to vector<8x8xf32>
    %730 = vector.extract_strided_slice %680 {offsets = [0, 24], sizes = [8, 8], strides = [1, 1]} : vector<8x32xf32> to vector<8x8xf32>
    %cst_335 = arith.constant dense<0.000000e+00> : vector<8x8xf32>
    %731 = tpu.matmul %729, %730, %cst_335 {dimension_numbers = #tpu.dot_dimension_numbers<[1], [1], [0], [0], [0, 0, 1, 0], [], []>} : vector<8x8xf32>, vector<8x8xf32>, vector<8x8xf32> -> vector<8x8xf32>
    %cst_336 = arith.constant dense<0xFF800000> : vector<8xf32>
    %732 = vector.multi_reduction <maximumf>, %731, %cst_336 [1] : vector<8x8xf32> to vector<8xf32>
    %733 = vector.shape_cast %732 : vector<8xf32> to vector<8x1xf32>
    %734 = vector.broadcast %733 : vector<8x1xf32> to vector<8x8xf32>
    %735 = arith.subf %731, %734 : vector<8x8xf32>
    %736 = math.exp %735 : vector<8x8xf32>
    %cst_337 = arith.constant dense<0.000000e+00> : vector<8xf32>
    %737 = vector.multi_reduction <add>, %736, %cst_337 [1] : vector<8x8xf32> to vector<8xf32>
    %738 = vector.shape_cast %737 : vector<8xf32> to vector<8x1xf32>
    %739 = tpu.reciprocal %738 {approx = true} : vector<8x1xf32> -> vector<8x1xf32>
    %740 = vector.broadcast %739 : vector<8x1xf32> to vector<8x8xf32>
    %741 = arith.mulf %736, %740 : vector<8x8xf32>
    %742 = vector.extract_strided_slice %681 {offsets = [0, 24], sizes = [8, 8], strides = [1, 1]} : vector<8x32xf32> to vector<8x8xf32>
    %cst_338 = arith.constant dense<0.000000e+00> : vector<8x8xf32>
    %743 = tpu.matmul %741, %742, %cst_338 {dimension_numbers = #tpu.dot_dimension_numbers<[1], [0], [0], [1], [0, 0, 1, 1], [], []>} : vector<8x8xf32>, vector<8x8xf32>, vector<8x8xf32> -> vector<8x8xf32>
    %744 = tpu.concatenate %698, %713, %728, %743 in 1 : vector<8x8xf32>, vector<8x8xf32>, vector<8x8xf32>, vector<8x8xf32> -> vector<8x32xf32>
    %cst_339 = arith.constant dense<0.000000e+00> : vector<8x32xf32>
    %745 = tpu.matmul %744, %673, %cst_339 {dimension_numbers = #tpu.dot_dimension_numbers<[1], [0], [0], [1], [0, 0, 1, 1], [], []>} : vector<8x32xf32>, vector<32x32xf32>, vector<8x32xf32> -> vector<8x32xf32>
    %746 = vector.broadcast %675 : vector<1x32xf32> to vector<8x32xf32>
    %747 = arith.addf %745, %746 : vector<8x32xf32>
    %748 = arith.addf %667, %747 : vector<8x32xf32>
    %c1_340 = arith.constant 1 : index
    %c0_341 = arith.constant 0 : index
    %c0_342 = arith.constant 0 : index
    %749 = vector.load %arg13[%c1_340, %c0_341, %c0_342] : memref<2x1x32xf32, #tpu.memory_space<vmem>>, vector<1x1x32xf32>
    %750 = vector.shape_cast %749 : vector<1x1x32xf32> to vector<1x32xf32>
    %c1_343 = arith.constant 1 : index
    %c0_344 = arith.constant 0 : index
    %c0_345 = arith.constant 0 : index
    %751 = vector.load %arg12[%c1_343, %c0_344, %c0_345] : memref<2x1x32xf32, #tpu.memory_space<vmem>>, vector<1x1x32xf32>
    %752 = vector.shape_cast %751 : vector<1x1x32xf32> to vector<1x32xf32>
    %cst_346 = arith.constant dense<0.000000e+00> : vector<8xf32>
    %753 = vector.multi_reduction <add>, %748, %cst_346 [1] : vector<8x32xf32> to vector<8xf32>
    %754 = vector.shape_cast %753 : vector<8xf32> to vector<8x1xf32>
    %cst_347 = arith.constant 3.200000e+01 : f32
    %755 = vector.broadcast %cst_347 : f32 to vector<8x1xf32>
    %756 = arith.divf %754, %755 : vector<8x1xf32>
    %757 = vector.broadcast %756 : vector<8x1xf32> to vector<8x32xf32>
    %758 = arith.subf %748, %757 : vector<8x32xf32>
    %759 = arith.mulf %758, %758 : vector<8x32xf32>
    %cst_348 = arith.constant dense<0.000000e+00> : vector<8xf32>
    %760 = vector.multi_reduction <add>, %759, %cst_348 [1] : vector<8x32xf32> to vector<8xf32>
    %761 = vector.shape_cast %760 : vector<8xf32> to vector<8x1xf32>
    %cst_349 = arith.constant 3.200000e+01 : f32
    %762 = vector.broadcast %cst_349 : f32 to vector<8x1xf32>
    %763 = arith.divf %761, %762 : vector<8x1xf32>
    %764 = vector.broadcast %756 : vector<8x1xf32> to vector<8x32xf32>
    %765 = arith.subf %748, %764 : vector<8x32xf32>
    %cst_350 = arith.constant 9.99999974E-6 : f32
    %766 = vector.broadcast %cst_350 : f32 to vector<8x1xf32>
    %767 = arith.addf %763, %766 : vector<8x1xf32>
    %768 = math.rsqrt %767 : vector<8x1xf32>
    %769 = vector.broadcast %768 : vector<8x1xf32> to vector<8x32xf32>
    %770 = arith.mulf %765, %769 : vector<8x32xf32>
    %771 = vector.broadcast %750 : vector<1x32xf32> to vector<8x32xf32>
    %772 = arith.mulf %770, %771 : vector<8x32xf32>
    %773 = vector.broadcast %752 : vector<1x32xf32> to vector<8x32xf32>
    %774 = arith.addf %772, %773 : vector<8x32xf32>
    %c1_351 = arith.constant 1 : index
    %c0_352 = arith.constant 0 : index
    %c0_353 = arith.constant 0 : index
    %775 = vector.load %arg5[%c1_351, %c0_352, %c0_353] : memref<2x32x64xf32, #tpu.memory_space<vmem>>, vector<1x32x64xf32>
    %776 = vector.shape_cast %775 : vector<1x32x64xf32> to vector<32x64xf32>
    %c1_354 = arith.constant 1 : index
    %c0_355 = arith.constant 0 : index
    %c0_356 = arith.constant 0 : index
    %777 = vector.load %arg2[%c1_354, %c0_355, %c0_356] : memref<2x1x64xf32, #tpu.memory_space<vmem>>, vector<1x1x64xf32>
    %778 = vector.shape_cast %777 : vector<1x1x64xf32> to vector<1x64xf32>
    %cst_357 = arith.constant dense<0.000000e+00> : vector<8x64xf32>
    %779 = tpu.matmul %397, %776, %cst_357 {dimension_numbers = #tpu.dot_dimension_numbers<[1], [0], [0], [1], [0, 0, 1, 1], [], []>} : vector<8x32xf32>, vector<32x64xf32>, vector<8x64xf32> -> vector<8x64xf32>
    %780 = vector.broadcast %778 : vector<1x64xf32> to vector<8x64xf32>
    %781 = arith.addf %779, %780 : vector<8x64xf32>
    %782 = vector.extract_strided_slice %781 {offsets = [0, 0], sizes = [8, 32], strides = [1, 1]} : vector<8x64xf32> to vector<8x32xf32>
    %783 = vector.extract_strided_slice %781 {offsets = [0, 32], sizes = [8, 32], strides = [1, 1]} : vector<8x64xf32> to vector<8x32xf32>
    %c1_358 = arith.constant 1 : index
    %c0_359 = arith.constant 0 : index
    %c0_360 = arith.constant 0 : index
    %784 = vector.load %arg7[%c1_358, %c0_359, %c0_360] : memref<2x32x32xf32, #tpu.memory_space<vmem>>, vector<1x32x32xf32>
    %785 = vector.shape_cast %784 : vector<1x32x32xf32> to vector<32x32xf32>
    %c1_361 = arith.constant 1 : index
    %c0_362 = arith.constant 0 : index
    %c0_363 = arith.constant 0 : index
    %786 = vector.load %arg4[%c1_361, %c0_362, %c0_363] : memref<2x1x32xf32, #tpu.memory_space<vmem>>, vector<1x1x32xf32>
    %787 = vector.shape_cast %786 : vector<1x1x32xf32> to vector<1x32xf32>
    %c1_364 = arith.constant 1 : index
    %c0_365 = arith.constant 0 : index
    %c0_366 = arith.constant 0 : index
    %788 = vector.load %arg6[%c1_364, %c0_365, %c0_366] : memref<2x32x32xf32, #tpu.memory_space<vmem>>, vector<1x32x32xf32>
    %789 = vector.shape_cast %788 : vector<1x32x32xf32> to vector<32x32xf32>
    %c1_367 = arith.constant 1 : index
    %c0_368 = arith.constant 0 : index
    %c0_369 = arith.constant 0 : index
    %790 = vector.load %arg3[%c1_367, %c0_368, %c0_369] : memref<2x1x32xf32, #tpu.memory_space<vmem>>, vector<1x1x32xf32>
    %791 = vector.shape_cast %790 : vector<1x1x32xf32> to vector<1x32xf32>
    %cst_370 = arith.constant dense<0.000000e+00> : vector<8x32xf32>
    %792 = tpu.matmul %774, %785, %cst_370 {dimension_numbers = #tpu.dot_dimension_numbers<[1], [0], [0], [1], [0, 0, 1, 1], [], []>} : vector<8x32xf32>, vector<32x32xf32>, vector<8x32xf32> -> vector<8x32xf32>
    %793 = vector.broadcast %787 : vector<1x32xf32> to vector<8x32xf32>
    %794 = arith.addf %792, %793 : vector<8x32xf32>
    %cst_371 = arith.constant 0.353553385 : f32
    %795 = vector.broadcast %cst_371 : f32 to vector<8x32xf32>
    %796 = arith.mulf %794, %795 : vector<8x32xf32>
    %797 = vector.extract_strided_slice %796 {offsets = [0, 0], sizes = [8, 8], strides = [1, 1]} : vector<8x32xf32> to vector<8x8xf32>
    %798 = vector.extract_strided_slice %782 {offsets = [0, 0], sizes = [8, 8], strides = [1, 1]} : vector<8x32xf32> to vector<8x8xf32>
    %cst_372 = arith.constant dense<0.000000e+00> : vector<8x8xf32>
    %799 = tpu.matmul %797, %798, %cst_372 {dimension_numbers = #tpu.dot_dimension_numbers<[1], [1], [0], [0], [0, 0, 1, 0], [], []>} : vector<8x8xf32>, vector<8x8xf32>, vector<8x8xf32> -> vector<8x8xf32>
    %cst_373 = arith.constant dense<0xFF800000> : vector<8xf32>
    %800 = vector.multi_reduction <maximumf>, %799, %cst_373 [1] : vector<8x8xf32> to vector<8xf32>
    %801 = vector.shape_cast %800 : vector<8xf32> to vector<8x1xf32>
    %802 = vector.broadcast %801 : vector<8x1xf32> to vector<8x8xf32>
    %803 = arith.subf %799, %802 : vector<8x8xf32>
    %804 = math.exp %803 : vector<8x8xf32>
    %cst_374 = arith.constant dense<0.000000e+00> : vector<8xf32>
    %805 = vector.multi_reduction <add>, %804, %cst_374 [1] : vector<8x8xf32> to vector<8xf32>
    %806 = vector.shape_cast %805 : vector<8xf32> to vector<8x1xf32>
    %807 = tpu.reciprocal %806 {approx = true} : vector<8x1xf32> -> vector<8x1xf32>
    %808 = vector.broadcast %807 : vector<8x1xf32> to vector<8x8xf32>
    %809 = arith.mulf %804, %808 : vector<8x8xf32>
    %810 = vector.extract_strided_slice %783 {offsets = [0, 0], sizes = [8, 8], strides = [1, 1]} : vector<8x32xf32> to vector<8x8xf32>
    %cst_375 = arith.constant dense<0.000000e+00> : vector<8x8xf32>
    %811 = tpu.matmul %809, %810, %cst_375 {dimension_numbers = #tpu.dot_dimension_numbers<[1], [0], [0], [1], [0, 0, 1, 1], [], []>} : vector<8x8xf32>, vector<8x8xf32>, vector<8x8xf32> -> vector<8x8xf32>
    %812 = vector.extract_strided_slice %796 {offsets = [0, 8], sizes = [8, 8], strides = [1, 1]} : vector<8x32xf32> to vector<8x8xf32>
    %813 = vector.extract_strided_slice %782 {offsets = [0, 8], sizes = [8, 8], strides = [1, 1]} : vector<8x32xf32> to vector<8x8xf32>
    %cst_376 = arith.constant dense<0.000000e+00> : vector<8x8xf32>
    %814 = tpu.matmul %812, %813, %cst_376 {dimension_numbers = #tpu.dot_dimension_numbers<[1], [1], [0], [0], [0, 0, 1, 0], [], []>} : vector<8x8xf32>, vector<8x8xf32>, vector<8x8xf32> -> vector<8x8xf32>
    %cst_377 = arith.constant dense<0xFF800000> : vector<8xf32>
    %815 = vector.multi_reduction <maximumf>, %814, %cst_377 [1] : vector<8x8xf32> to vector<8xf32>
    %816 = vector.shape_cast %815 : vector<8xf32> to vector<8x1xf32>
    %817 = vector.broadcast %816 : vector<8x1xf32> to vector<8x8xf32>
    %818 = arith.subf %814, %817 : vector<8x8xf32>
    %819 = math.exp %818 : vector<8x8xf32>
    %cst_378 = arith.constant dense<0.000000e+00> : vector<8xf32>
    %820 = vector.multi_reduction <add>, %819, %cst_378 [1] : vector<8x8xf32> to vector<8xf32>
    %821 = vector.shape_cast %820 : vector<8xf32> to vector<8x1xf32>
    %822 = tpu.reciprocal %821 {approx = true} : vector<8x1xf32> -> vector<8x1xf32>
    %823 = vector.broadcast %822 : vector<8x1xf32> to vector<8x8xf32>
    %824 = arith.mulf %819, %823 : vector<8x8xf32>
    %825 = vector.extract_strided_slice %783 {offsets = [0, 8], sizes = [8, 8], strides = [1, 1]} : vector<8x32xf32> to vector<8x8xf32>
    %cst_379 = arith.constant dense<0.000000e+00> : vector<8x8xf32>
    %826 = tpu.matmul %824, %825, %cst_379 {dimension_numbers = #tpu.dot_dimension_numbers<[1], [0], [0], [1], [0, 0, 1, 1], [], []>} : vector<8x8xf32>, vector<8x8xf32>, vector<8x8xf32> -> vector<8x8xf32>
    %827 = vector.extract_strided_slice %796 {offsets = [0, 16], sizes = [8, 8], strides = [1, 1]} : vector<8x32xf32> to vector<8x8xf32>
    %828 = vector.extract_strided_slice %782 {offsets = [0, 16], sizes = [8, 8], strides = [1, 1]} : vector<8x32xf32> to vector<8x8xf32>
    %cst_380 = arith.constant dense<0.000000e+00> : vector<8x8xf32>
    %829 = tpu.matmul %827, %828, %cst_380 {dimension_numbers = #tpu.dot_dimension_numbers<[1], [1], [0], [0], [0, 0, 1, 0], [], []>} : vector<8x8xf32>, vector<8x8xf32>, vector<8x8xf32> -> vector<8x8xf32>
    %cst_381 = arith.constant dense<0xFF800000> : vector<8xf32>
    %830 = vector.multi_reduction <maximumf>, %829, %cst_381 [1] : vector<8x8xf32> to vector<8xf32>
    %831 = vector.shape_cast %830 : vector<8xf32> to vector<8x1xf32>
    %832 = vector.broadcast %831 : vector<8x1xf32> to vector<8x8xf32>
    %833 = arith.subf %829, %832 : vector<8x8xf32>
    %834 = math.exp %833 : vector<8x8xf32>
    %cst_382 = arith.constant dense<0.000000e+00> : vector<8xf32>
    %835 = vector.multi_reduction <add>, %834, %cst_382 [1] : vector<8x8xf32> to vector<8xf32>
    %836 = vector.shape_cast %835 : vector<8xf32> to vector<8x1xf32>
    %837 = tpu.reciprocal %836 {approx = true} : vector<8x1xf32> -> vector<8x1xf32>
    %838 = vector.broadcast %837 : vector<8x1xf32> to vector<8x8xf32>
    %839 = arith.mulf %834, %838 : vector<8x8xf32>
    %840 = vector.extract_strided_slice %783 {offsets = [0, 16], sizes = [8, 8], strides = [1, 1]} : vector<8x32xf32> to vector<8x8xf32>
    %cst_383 = arith.constant dense<0.000000e+00> : vector<8x8xf32>
    %841 = tpu.matmul %839, %840, %cst_383 {dimension_numbers = #tpu.dot_dimension_numbers<[1], [0], [0], [1], [0, 0, 1, 1], [], []>} : vector<8x8xf32>, vector<8x8xf32>, vector<8x8xf32> -> vector<8x8xf32>
    %842 = vector.extract_strided_slice %796 {offsets = [0, 24], sizes = [8, 8], strides = [1, 1]} : vector<8x32xf32> to vector<8x8xf32>
    %843 = vector.extract_strided_slice %782 {offsets = [0, 24], sizes = [8, 8], strides = [1, 1]} : vector<8x32xf32> to vector<8x8xf32>
    %cst_384 = arith.constant dense<0.000000e+00> : vector<8x8xf32>
    %844 = tpu.matmul %842, %843, %cst_384 {dimension_numbers = #tpu.dot_dimension_numbers<[1], [1], [0], [0], [0, 0, 1, 0], [], []>} : vector<8x8xf32>, vector<8x8xf32>, vector<8x8xf32> -> vector<8x8xf32>
    %cst_385 = arith.constant dense<0xFF800000> : vector<8xf32>
    %845 = vector.multi_reduction <maximumf>, %844, %cst_385 [1] : vector<8x8xf32> to vector<8xf32>
    %846 = vector.shape_cast %845 : vector<8xf32> to vector<8x1xf32>
    %847 = vector.broadcast %846 : vector<8x1xf32> to vector<8x8xf32>
    %848 = arith.subf %844, %847 : vector<8x8xf32>
    %849 = math.exp %848 : vector<8x8xf32>
    %cst_386 = arith.constant dense<0.000000e+00> : vector<8xf32>
    %850 = vector.multi_reduction <add>, %849, %cst_386 [1] : vector<8x8xf32> to vector<8xf32>
    %851 = vector.shape_cast %850 : vector<8xf32> to vector<8x1xf32>
    %852 = tpu.reciprocal %851 {approx = true} : vector<8x1xf32> -> vector<8x1xf32>
    %853 = vector.broadcast %852 : vector<8x1xf32> to vector<8x8xf32>
    %854 = arith.mulf %849, %853 : vector<8x8xf32>
    %855 = vector.extract_strided_slice %783 {offsets = [0, 24], sizes = [8, 8], strides = [1, 1]} : vector<8x32xf32> to vector<8x8xf32>
    %cst_387 = arith.constant dense<0.000000e+00> : vector<8x8xf32>
    %856 = tpu.matmul %854, %855, %cst_387 {dimension_numbers = #tpu.dot_dimension_numbers<[1], [0], [0], [1], [0, 0, 1, 1], [], []>} : vector<8x8xf32>, vector<8x8xf32>, vector<8x8xf32> -> vector<8x8xf32>
    %857 = tpu.concatenate %811, %826, %841, %856 in 1 : vector<8x8xf32>, vector<8x8xf32>, vector<8x8xf32>, vector<8x8xf32> -> vector<8x32xf32>
    %cst_388 = arith.constant dense<0.000000e+00> : vector<8x32xf32>
    %858 = tpu.matmul %857, %789, %cst_388 {dimension_numbers = #tpu.dot_dimension_numbers<[1], [0], [0], [1], [0, 0, 1, 1], [], []>} : vector<8x32xf32>, vector<32x32xf32>, vector<8x32xf32> -> vector<8x32xf32>
    %859 = vector.broadcast %791 : vector<1x32xf32> to vector<8x32xf32>
    %860 = arith.addf %858, %859 : vector<8x32xf32>
    %861 = arith.addf %774, %860 : vector<8x32xf32>
    %c1_389 = arith.constant 1 : index
    %c0_390 = arith.constant 0 : index
    %c0_391 = arith.constant 0 : index
    %862 = vector.load %arg15[%c1_389, %c0_390, %c0_391] : memref<2x1x32xf32, #tpu.memory_space<vmem>>, vector<1x1x32xf32>
    %863 = vector.shape_cast %862 : vector<1x1x32xf32> to vector<1x32xf32>
    %c1_392 = arith.constant 1 : index
    %c0_393 = arith.constant 0 : index
    %c0_394 = arith.constant 0 : index
    %864 = vector.load %arg14[%c1_392, %c0_393, %c0_394] : memref<2x1x32xf32, #tpu.memory_space<vmem>>, vector<1x1x32xf32>
    %865 = vector.shape_cast %864 : vector<1x1x32xf32> to vector<1x32xf32>
    %cst_395 = arith.constant dense<0.000000e+00> : vector<8xf32>
    %866 = vector.multi_reduction <add>, %861, %cst_395 [1] : vector<8x32xf32> to vector<8xf32>
    %867 = vector.shape_cast %866 : vector<8xf32> to vector<8x1xf32>
    %cst_396 = arith.constant 3.200000e+01 : f32
    %868 = vector.broadcast %cst_396 : f32 to vector<8x1xf32>
    %869 = arith.divf %867, %868 : vector<8x1xf32>
    %870 = vector.broadcast %869 : vector<8x1xf32> to vector<8x32xf32>
    %871 = arith.subf %861, %870 : vector<8x32xf32>
    %872 = arith.mulf %871, %871 : vector<8x32xf32>
    %cst_397 = arith.constant dense<0.000000e+00> : vector<8xf32>
    %873 = vector.multi_reduction <add>, %872, %cst_397 [1] : vector<8x32xf32> to vector<8xf32>
    %874 = vector.shape_cast %873 : vector<8xf32> to vector<8x1xf32>
    %cst_398 = arith.constant 3.200000e+01 : f32
    %875 = vector.broadcast %cst_398 : f32 to vector<8x1xf32>
    %876 = arith.divf %874, %875 : vector<8x1xf32>
    %877 = vector.broadcast %869 : vector<8x1xf32> to vector<8x32xf32>
    %878 = arith.subf %861, %877 : vector<8x32xf32>
    %cst_399 = arith.constant 9.99999974E-6 : f32
    %879 = vector.broadcast %cst_399 : f32 to vector<8x1xf32>
    %880 = arith.addf %876, %879 : vector<8x1xf32>
    %881 = math.rsqrt %880 : vector<8x1xf32>
    %882 = vector.broadcast %881 : vector<8x1xf32> to vector<8x32xf32>
    %883 = arith.mulf %878, %882 : vector<8x32xf32>
    %884 = vector.broadcast %863 : vector<1x32xf32> to vector<8x32xf32>
    %885 = arith.mulf %883, %884 : vector<8x32xf32>
    %886 = vector.broadcast %865 : vector<1x32xf32> to vector<8x32xf32>
    %887 = arith.addf %885, %886 : vector<8x32xf32>
    %c1_400 = arith.constant 1 : index
    %c0_401 = arith.constant 0 : index
    %c0_402 = arith.constant 0 : index
    %888 = vector.load %arg10[%c1_400, %c0_401, %c0_402] : memref<2x32x64xf32, #tpu.memory_space<vmem>>, vector<1x32x64xf32>
    %889 = vector.shape_cast %888 : vector<1x32x64xf32> to vector<32x64xf32>
    %c1_403 = arith.constant 1 : index
    %c0_404 = arith.constant 0 : index
    %c0_405 = arith.constant 0 : index
    %890 = vector.load %arg8[%c1_403, %c0_404, %c0_405] : memref<2x1x64xf32, #tpu.memory_space<vmem>>, vector<1x1x64xf32>
    %891 = vector.shape_cast %890 : vector<1x1x64xf32> to vector<1x64xf32>
    %cst_406 = arith.constant dense<0.000000e+00> : vector<8x64xf32>
    %892 = tpu.matmul %887, %889, %cst_406 {dimension_numbers = #tpu.dot_dimension_numbers<[1], [0], [0], [1], [0, 0, 1, 1], [], []>} : vector<8x32xf32>, vector<32x64xf32>, vector<8x64xf32> -> vector<8x64xf32>
    %893 = vector.broadcast %891 : vector<1x64xf32> to vector<8x64xf32>
    %894 = arith.addf %892, %893 : vector<8x64xf32>
    %cst_407 = arith.constant 5.000000e-01 : f32
    %895 = vector.broadcast %cst_407 : f32 to vector<8x64xf32>
    %896 = arith.mulf %895, %894 : vector<8x64xf32>
    %cst_408 = arith.constant 0.707106769 : f32
    %897 = vector.broadcast %cst_408 : f32 to vector<8x64xf32>
    %898 = arith.mulf %894, %897 : vector<8x64xf32>
    %899 = math.erf %898 : vector<8x64xf32>
    %cst_409 = arith.constant 1.000000e+00 : f32
    %900 = vector.broadcast %cst_409 : f32 to vector<8x64xf32>
    %901 = arith.addf %900, %899 : vector<8x64xf32>
    %902 = arith.mulf %896, %901 : vector<8x64xf32>
    %c1_410 = arith.constant 1 : index
    %c0_411 = arith.constant 0 : index
    %c0_412 = arith.constant 0 : index
    %903 = vector.load %arg11[%c1_410, %c0_411, %c0_412] : memref<2x64x32xf32, #tpu.memory_space<vmem>>, vector<1x64x32xf32>
    %904 = vector.shape_cast %903 : vector<1x64x32xf32> to vector<64x32xf32>
    %c1_413 = arith.constant 1 : index
    %c0_414 = arith.constant 0 : index
    %c0_415 = arith.constant 0 : index
    %905 = vector.load %arg9[%c1_413, %c0_414, %c0_415] : memref<2x1x32xf32, #tpu.memory_space<vmem>>, vector<1x1x32xf32>
    %906 = vector.shape_cast %905 : vector<1x1x32xf32> to vector<1x32xf32>
    %cst_416 = arith.constant dense<0.000000e+00> : vector<8x32xf32>
    %907 = tpu.matmul %902, %904, %cst_416 {dimension_numbers = #tpu.dot_dimension_numbers<[1], [0], [0], [1], [0, 0, 1, 1], [], []>} : vector<8x64xf32>, vector<64x32xf32>, vector<8x32xf32> -> vector<8x32xf32>
    %908 = vector.broadcast %906 : vector<1x32xf32> to vector<8x32xf32>
    %909 = arith.addf %907, %908 : vector<8x32xf32>
    %910 = arith.addf %887, %909 : vector<8x32xf32>
    %c1_417 = arith.constant 1 : index
    %c0_418 = arith.constant 0 : index
    %c0_419 = arith.constant 0 : index
    %911 = vector.load %arg17[%c1_417, %c0_418, %c0_419] : memref<2x1x32xf32, #tpu.memory_space<vmem>>, vector<1x1x32xf32>
    %912 = vector.shape_cast %911 : vector<1x1x32xf32> to vector<1x32xf32>
    %c1_420 = arith.constant 1 : index
    %c0_421 = arith.constant 0 : index
    %c0_422 = arith.constant 0 : index
    %913 = vector.load %arg16[%c1_420, %c0_421, %c0_422] : memref<2x1x32xf32, #tpu.memory_space<vmem>>, vector<1x1x32xf32>
    %914 = vector.shape_cast %913 : vector<1x1x32xf32> to vector<1x32xf32>
    %cst_423 = arith.constant dense<0.000000e+00> : vector<8xf32>
    %915 = vector.multi_reduction <add>, %910, %cst_423 [1] : vector<8x32xf32> to vector<8xf32>
    %916 = vector.shape_cast %915 : vector<8xf32> to vector<8x1xf32>
    %cst_424 = arith.constant 3.200000e+01 : f32
    %917 = vector.broadcast %cst_424 : f32 to vector<8x1xf32>
    %918 = arith.divf %916, %917 : vector<8x1xf32>
    %919 = vector.broadcast %918 : vector<8x1xf32> to vector<8x32xf32>
    %920 = arith.subf %910, %919 : vector<8x32xf32>
    %921 = arith.mulf %920, %920 : vector<8x32xf32>
    %cst_425 = arith.constant dense<0.000000e+00> : vector<8xf32>
    %922 = vector.multi_reduction <add>, %921, %cst_425 [1] : vector<8x32xf32> to vector<8xf32>
    %923 = vector.shape_cast %922 : vector<8xf32> to vector<8x1xf32>
    %cst_426 = arith.constant 3.200000e+01 : f32
    %924 = vector.broadcast %cst_426 : f32 to vector<8x1xf32>
    %925 = arith.divf %923, %924 : vector<8x1xf32>
    %926 = vector.broadcast %918 : vector<8x1xf32> to vector<8x32xf32>
    %927 = arith.subf %910, %926 : vector<8x32xf32>
    %cst_427 = arith.constant 9.99999974E-6 : f32
    %928 = vector.broadcast %cst_427 : f32 to vector<8x1xf32>
    %929 = arith.addf %925, %928 : vector<8x1xf32>
    %930 = math.rsqrt %929 : vector<8x1xf32>
    %931 = vector.broadcast %930 : vector<8x1xf32> to vector<8x32xf32>
    %932 = arith.mulf %927, %931 : vector<8x32xf32>
    %933 = vector.broadcast %912 : vector<1x32xf32> to vector<8x32xf32>
    %934 = arith.mulf %932, %933 : vector<8x32xf32>
    %935 = vector.broadcast %914 : vector<1x32xf32> to vector<8x32xf32>
    %936 = arith.addf %934, %935 : vector<8x32xf32>
    %c0_428 = arith.constant 0 : index
    %c0_429 = arith.constant 0 : index
    %937 = vector.load %arg23[%c0_428, %c0_429] : memref<1x32xf32, #tpu.memory_space<vmem>>, vector<1x32xf32>
    %c0_430 = arith.constant 0 : index
    %c0_431 = arith.constant 0 : index
    %938 = vector.load %arg22[%c0_430, %c0_431] : memref<1x32xf32, #tpu.memory_space<vmem>>, vector<1x32xf32>
    %cst_432 = arith.constant dense<0.000000e+00> : vector<8xf32>
    %939 = vector.multi_reduction <add>, %936, %cst_432 [1] : vector<8x32xf32> to vector<8xf32>
    %940 = vector.shape_cast %939 : vector<8xf32> to vector<8x1xf32>
    %cst_433 = arith.constant 3.200000e+01 : f32
    %941 = vector.broadcast %cst_433 : f32 to vector<8x1xf32>
    %942 = arith.divf %940, %941 : vector<8x1xf32>
    %943 = vector.broadcast %942 : vector<8x1xf32> to vector<8x32xf32>
    %944 = arith.subf %936, %943 : vector<8x32xf32>
    %945 = arith.mulf %944, %944 : vector<8x32xf32>
    %cst_434 = arith.constant dense<0.000000e+00> : vector<8xf32>
    %946 = vector.multi_reduction <add>, %945, %cst_434 [1] : vector<8x32xf32> to vector<8xf32>
    %947 = vector.shape_cast %946 : vector<8xf32> to vector<8x1xf32>
    %cst_435 = arith.constant 3.200000e+01 : f32
    %948 = vector.broadcast %cst_435 : f32 to vector<8x1xf32>
    %949 = arith.divf %947, %948 : vector<8x1xf32>
    %950 = vector.broadcast %942 : vector<8x1xf32> to vector<8x32xf32>
    %951 = arith.subf %936, %950 : vector<8x32xf32>
    %cst_436 = arith.constant 9.99999974E-6 : f32
    %952 = vector.broadcast %cst_436 : f32 to vector<8x1xf32>
    %953 = arith.addf %949, %952 : vector<8x1xf32>
    %954 = math.rsqrt %953 : vector<8x1xf32>
    %955 = vector.broadcast %954 : vector<8x1xf32> to vector<8x32xf32>
    %956 = arith.mulf %951, %955 : vector<8x32xf32>
    %957 = vector.broadcast %937 : vector<1x32xf32> to vector<8x32xf32>
    %958 = arith.mulf %956, %957 : vector<8x32xf32>
    %959 = vector.broadcast %938 : vector<1x32xf32> to vector<8x32xf32>
    %960 = arith.addf %958, %959 : vector<8x32xf32>
    %c0_437 = arith.constant 0 : index
    %c0_438 = arith.constant 0 : index
    %961 = vector.load %arg47[%c0_437, %c0_438] : memref<1x32xf32, #tpu.memory_space<vmem>>, vector<1x32xf32>
    %c0_439 = arith.constant 0 : index
    %c0_440 = arith.constant 0 : index
    %962 = vector.load %arg46[%c0_439, %c0_440] : memref<1x32xf32, #tpu.memory_space<vmem>>, vector<1x32xf32>
    %cst_441 = arith.constant dense<0.000000e+00> : vector<8xf32>
    %963 = vector.multi_reduction <add>, %960, %cst_441 [1] : vector<8x32xf32> to vector<8xf32>
    %964 = vector.shape_cast %963 : vector<8xf32> to vector<8x1xf32>
    %cst_442 = arith.constant 3.200000e+01 : f32
    %965 = vector.broadcast %cst_442 : f32 to vector<8x1xf32>
    %966 = arith.divf %964, %965 : vector<8x1xf32>
    %967 = vector.broadcast %966 : vector<8x1xf32> to vector<8x32xf32>
    %968 = arith.subf %960, %967 : vector<8x32xf32>
    %969 = arith.mulf %968, %968 : vector<8x32xf32>
    %cst_443 = arith.constant dense<0.000000e+00> : vector<8xf32>
    %970 = vector.multi_reduction <add>, %969, %cst_443 [1] : vector<8x32xf32> to vector<8xf32>
    %971 = vector.shape_cast %970 : vector<8xf32> to vector<8x1xf32>
    %cst_444 = arith.constant 3.200000e+01 : f32
    %972 = vector.broadcast %cst_444 : f32 to vector<8x1xf32>
    %973 = arith.divf %971, %972 : vector<8x1xf32>
    %974 = vector.broadcast %966 : vector<8x1xf32> to vector<8x32xf32>
    %975 = arith.subf %960, %974 : vector<8x32xf32>
    %cst_445 = arith.constant 9.99999974E-6 : f32
    %976 = vector.broadcast %cst_445 : f32 to vector<8x1xf32>
    %977 = arith.addf %973, %976 : vector<8x1xf32>
    %978 = math.rsqrt %977 : vector<8x1xf32>
    %979 = vector.broadcast %978 : vector<8x1xf32> to vector<8x32xf32>
    %980 = arith.mulf %975, %979 : vector<8x32xf32>
    %981 = vector.broadcast %961 : vector<1x32xf32> to vector<8x32xf32>
    %982 = arith.mulf %980, %981 : vector<8x32xf32>
    %983 = vector.broadcast %962 : vector<1x32xf32> to vector<8x32xf32>
    %984 = arith.addf %982, %983 : vector<8x32xf32>
    %c0_446 = arith.constant 0 : index
    %c0_447 = arith.constant 0 : index
    %985 = vector.load %arg39[%c0_446, %c0_447] : memref<32x8xf32, #tpu.memory_space<vmem>>, vector<32x8xf32>
    %c0_448 = arith.constant 0 : index
    %c0_449 = arith.constant 0 : index
    %986 = vector.load %arg38[%c0_448, %c0_449] : memref<1x8xf32, #tpu.memory_space<vmem>>, vector<1x8xf32>
    %cst_450 = arith.constant dense<0.000000e+00> : vector<8x8xf32>
    %987 = tpu.matmul %984, %985, %cst_450 {dimension_numbers = #tpu.dot_dimension_numbers<[1], [0], [0], [1], [0, 0, 1, 1], [], []>} : vector<8x32xf32>, vector<32x8xf32>, vector<8x8xf32> -> vector<8x8xf32>
    %988 = vector.broadcast %986 : vector<1x8xf32> to vector<8x8xf32>
    %989 = arith.addf %987, %988 : vector<8x8xf32>
    %cst_451 = arith.constant 5.000000e-01 : f32
    %990 = vector.broadcast %cst_451 : f32 to vector<8x8xf32>
    %991 = arith.mulf %990, %989 : vector<8x8xf32>
    %cst_452 = arith.constant 0.707106769 : f32
    %992 = vector.broadcast %cst_452 : f32 to vector<8x8xf32>
    %993 = arith.mulf %989, %992 : vector<8x8xf32>
    %994 = math.erf %993 : vector<8x8xf32>
    %cst_453 = arith.constant 1.000000e+00 : f32
    %995 = vector.broadcast %cst_453 : f32 to vector<8x8xf32>
    %996 = arith.addf %995, %994 : vector<8x8xf32>
    %997 = arith.mulf %991, %996 : vector<8x8xf32>
    %c0_454 = arith.constant 0 : index
    %c0_455 = arith.constant 0 : index
    %998 = vector.load %arg41[%c0_454, %c0_455] : memref<8x6xf32, #tpu.memory_space<vmem>>, vector<8x6xf32>
    %c0_456 = arith.constant 0 : index
    %c0_457 = arith.constant 0 : index
    %999 = vector.load %arg40[%c0_456, %c0_457] : memref<1x6xf32, #tpu.memory_space<vmem>>, vector<1x6xf32>
    %cst_458 = arith.constant dense<0.000000e+00> : vector<8x6xf32>
    %1000 = tpu.matmul %997, %998, %cst_458 {dimension_numbers = #tpu.dot_dimension_numbers<[1], [0], [0], [1], [0, 0, 1, 1], [], []>} : vector<8x8xf32>, vector<8x6xf32>, vector<8x6xf32> -> vector<8x6xf32>
    %1001 = vector.broadcast %999 : vector<1x6xf32> to vector<8x6xf32>
    %1002 = arith.addf %1000, %1001 : vector<8x6xf32>
    %1003 = vector.shape_cast %1002 : vector<8x6xf32> to vector<1x8x6xf32>
    %c0_459 = arith.constant 0 : index
    %c0_460 = arith.constant 0 : index
    %c0_461 = arith.constant 0 : index
    %1004 = vector.load %arg50[%c0_459, %c0_460, %c0_461] : memref<1x8x6xf32, #tpu.memory_space<vmem>>, vector<1x8x6xf32>
    tpu.vector_store %arg50[%c0_459, %c0_460, %c0_461], %1003 {strides = array<i32>} : memref<1x8x6xf32, #tpu.memory_space<vmem>>, vector<1x8x6xf32>,
    return
  }
  func.func @transform_0(%arg0: i32) -> (i32, i32, i32) {
    %c0_i32 = arith.constant 0 : i32
    %c0_i32_0 = arith.constant 0 : i32
    %c0_i32_1 = arith.constant 0 : i32
    return %arg0, %c0_i32, %c0_i32_0 : i32, i32, i32
  }
  func.func @transform_1(%arg0: i32) -> (i32, i32, i32) {
    %c0_i32 = arith.constant 0 : i32
    %c0_i32_0 = arith.constant 0 : i32
    %c0_i32_1 = arith.constant 0 : i32
    %c0_i32_2 = arith.constant 0 : i32
    return %c0_i32, %c0_i32_0, %c0_i32_1 : i32, i32, i32
  }
  func.func @transform_2(%arg0: i32) -> (i32, i32, i32) {
    %c0_i32 = arith.constant 0 : i32
    %c0_i32_0 = arith.constant 0 : i32
    %c0_i32_1 = arith.constant 0 : i32
    %c0_i32_2 = arith.constant 0 : i32
    return %c0_i32, %c0_i32_0, %c0_i32_1 : i32, i32, i32
  }
  func.func @transform_3(%arg0: i32) -> (i32, i32, i32) {
    %c0_i32 = arith.constant 0 : i32
    %c0_i32_0 = arith.constant 0 : i32
    %c0_i32_1 = arith.constant 0 : i32
    %c0_i32_2 = arith.constant 0 : i32
    return %c0_i32, %c0_i32_0, %c0_i32_1 : i32, i32, i32
  }
  func.func @transform_4(%arg0: i32) -> (i32, i32, i32) {
    %c0_i32 = arith.constant 0 : i32
    %c0_i32_0 = arith.constant 0 : i32
    %c0_i32_1 = arith.constant 0 : i32
    %c0_i32_2 = arith.constant 0 : i32
    return %c0_i32, %c0_i32_0, %c0_i32_1 : i32, i32, i32
  }
  func.func @transform_5(%arg0: i32) -> (i32, i32, i32) {
    %c0_i32 = arith.constant 0 : i32
    %c0_i32_0 = arith.constant 0 : i32
    %c0_i32_1 = arith.constant 0 : i32
    %c0_i32_2 = arith.constant 0 : i32
    return %c0_i32, %c0_i32_0, %c0_i32_1 : i32, i32, i32
  }
  func.func @transform_6(%arg0: i32) -> (i32, i32, i32) {
    %c0_i32 = arith.constant 0 : i32
    %c0_i32_0 = arith.constant 0 : i32
    %c0_i32_1 = arith.constant 0 : i32
    %c0_i32_2 = arith.constant 0 : i32
    return %c0_i32, %c0_i32_0, %c0_i32_1 : i32, i32, i32
  }
  func.func @transform_7(%arg0: i32) -> (i32, i32, i32) {
    %c0_i32 = arith.constant 0 : i32
    %c0_i32_0 = arith.constant 0 : i32
    %c0_i32_1 = arith.constant 0 : i32
    %c0_i32_2 = arith.constant 0 : i32
    return %c0_i32, %c0_i32_0, %c0_i32_1 : i32, i32, i32
  }
  func.func @transform_8(%arg0: i32) -> (i32, i32, i32) {
    %c0_i32 = arith.constant 0 : i32
    %c0_i32_0 = arith.constant 0 : i32
    %c0_i32_1 = arith.constant 0 : i32
    %c0_i32_2 = arith.constant 0 : i32
    return %c0_i32, %c0_i32_0, %c0_i32_1 : i32, i32, i32
  }
  func.func @transform_9(%arg0: i32) -> (i32, i32, i32) {
    %c0_i32 = arith.constant 0 : i32
    %c0_i32_0 = arith.constant 0 : i32
    %c0_i32_1 = arith.constant 0 : i32
    %c0_i32_2 = arith.constant 0 : i32
    return %c0_i32, %c0_i32_0, %c0_i32_1 : i32, i32, i32
  }
  func.func @transform_10(%arg0: i32) -> (i32, i32, i32) {
    %c0_i32 = arith.constant 0 : i32
    %c0_i32_0 = arith.constant 0 : i32
    %c0_i32_1 = arith.constant 0 : i32
    %c0_i32_2 = arith.constant 0 : i32
    return %c0_i32, %c0_i32_0, %c0_i32_1 : i32, i32, i32
  }
  func.func @transform_11(%arg0: i32) -> (i32, i32, i32) {
    %c0_i32 = arith.constant 0 : i32
    %c0_i32_0 = arith.constant 0 : i32
    %c0_i32_1 = arith.constant 0 : i32
    %c0_i32_2 = arith.constant 0 : i32
    return %c0_i32, %c0_i32_0, %c0_i32_1 : i32, i32, i32
  }
  func.func @transform_12(%arg0: i32) -> (i32, i32, i32) {
    %c0_i32 = arith.constant 0 : i32
    %c0_i32_0 = arith.constant 0 : i32
    %c0_i32_1 = arith.constant 0 : i32
    %c0_i32_2 = arith.constant 0 : i32
    return %c0_i32, %c0_i32_0, %c0_i32_1 : i32, i32, i32
  }
  func.func @transform_13(%arg0: i32) -> (i32, i32, i32) {
    %c0_i32 = arith.constant 0 : i32
    %c0_i32_0 = arith.constant 0 : i32
    %c0_i32_1 = arith.constant 0 : i32
    %c0_i32_2 = arith.constant 0 : i32
    return %c0_i32, %c0_i32_0, %c0_i32_1 : i32, i32, i32
  }
  func.func @transform_14(%arg0: i32) -> (i32, i32, i32) {
    %c0_i32 = arith.constant 0 : i32
    %c0_i32_0 = arith.constant 0 : i32
    %c0_i32_1 = arith.constant 0 : i32
    %c0_i32_2 = arith.constant 0 : i32
    return %c0_i32, %c0_i32_0, %c0_i32_1 : i32, i32, i32
  }
  func.func @transform_15(%arg0: i32) -> (i32, i32, i32) {
    %c0_i32 = arith.constant 0 : i32
    %c0_i32_0 = arith.constant 0 : i32
    %c0_i32_1 = arith.constant 0 : i32
    %c0_i32_2 = arith.constant 0 : i32
    return %c0_i32, %c0_i32_0, %c0_i32_1 : i32, i32, i32
  }
  func.func @transform_16(%arg0: i32) -> (i32, i32, i32) {
    %c0_i32 = arith.constant 0 : i32
    %c0_i32_0 = arith.constant 0 : i32
    %c0_i32_1 = arith.constant 0 : i32
    %c0_i32_2 = arith.constant 0 : i32
    return %c0_i32, %c0_i32_0, %c0_i32_1 : i32, i32, i32
  }
  func.func @transform_17(%arg0: i32) -> (i32, i32, i32) {
    %c0_i32 = arith.constant 0 : i32
    %c0_i32_0 = arith.constant 0 : i32
    %c0_i32_1 = arith.constant 0 : i32
    %c0_i32_2 = arith.constant 0 : i32
    return %c0_i32, %c0_i32_0, %c0_i32_1 : i32, i32, i32
  }
  func.func @transform_18(%arg0: i32) -> (i32, i32, i32) {
    %c0_i32 = arith.constant 0 : i32
    %c0_i32_0 = arith.constant 0 : i32
    %c0_i32_1 = arith.constant 0 : i32
    %c0_i32_2 = arith.constant 0 : i32
    return %c0_i32, %c0_i32_0, %c0_i32_1 : i32, i32, i32
  }
  func.func @transform_19(%arg0: i32) -> (i32, i32, i32) {
    %c0_i32 = arith.constant 0 : i32
    %c0_i32_0 = arith.constant 0 : i32
    %c0_i32_1 = arith.constant 0 : i32
    %c0_i32_2 = arith.constant 0 : i32
    return %c0_i32, %c0_i32_0, %c0_i32_1 : i32, i32, i32
  }
  func.func @transform_20(%arg0: i32) -> (i32, i32, i32) {
    %c0_i32 = arith.constant 0 : i32
    %c0_i32_0 = arith.constant 0 : i32
    %c0_i32_1 = arith.constant 0 : i32
    %c0_i32_2 = arith.constant 0 : i32
    return %c0_i32, %c0_i32_0, %c0_i32_1 : i32, i32, i32
  }
  func.func @transform_21(%arg0: i32) -> (i32, i32) {
    %c0_i32 = arith.constant 0 : i32
    %c0_i32_0 = arith.constant 0 : i32
    %c0_i32_1 = arith.constant 0 : i32
    return %c0_i32, %c0_i32_0 : i32, i32
  }
  func.func @transform_22(%arg0: i32) -> (i32, i32) {
    %c0_i32 = arith.constant 0 : i32
    %c0_i32_0 = arith.constant 0 : i32
    %c0_i32_1 = arith.constant 0 : i32
    return %c0_i32, %c0_i32_0 : i32, i32
  }
  func.func @transform_23(%arg0: i32) -> (i32, i32, i32) {
    %c0_i32 = arith.constant 0 : i32
    %c0_i32_0 = arith.constant 0 : i32
    %c0_i32_1 = arith.constant 0 : i32
    %c0_i32_2 = arith.constant 0 : i32
    return %c0_i32, %c0_i32_0, %c0_i32_1 : i32, i32, i32
  }
  func.func @transform_24(%arg0: i32) -> (i32, i32, i32) {
    %c0_i32 = arith.constant 0 : i32
    %c0_i32_0 = arith.constant 0 : i32
    %c0_i32_1 = arith.constant 0 : i32
    %c0_i32_2 = arith.constant 0 : i32
    return %c0_i32, %c0_i32_0, %c0_i32_1 : i32, i32, i32
  }
  func.func @transform_25(%arg0: i32) -> (i32, i32, i32) {
    %c0_i32 = arith.constant 0 : i32
    %c0_i32_0 = arith.constant 0 : i32
    %c0_i32_1 = arith.constant 0 : i32
    %c0_i32_2 = arith.constant 0 : i32
    return %c0_i32, %c0_i32_0, %c0_i32_1 : i32, i32, i32
  }
  func.func @transform_26(%arg0: i32) -> (i32, i32, i32) {
    %c0_i32 = arith.constant 0 : i32
    %c0_i32_0 = arith.constant 0 : i32
    %c0_i32_1 = arith.constant 0 : i32
    %c0_i32_2 = arith.constant 0 : i32
    return %c0_i32, %c0_i32_0, %c0_i32_1 : i32, i32, i32
  }
  func.func @transform_27(%arg0: i32) -> (i32, i32, i32) {
    %c0_i32 = arith.constant 0 : i32
    %c0_i32_0 = arith.constant 0 : i32
    %c0_i32_1 = arith.constant 0 : i32
    %c0_i32_2 = arith.constant 0 : i32
    return %c0_i32, %c0_i32_0, %c0_i32_1 : i32, i32, i32
  }
  func.func @transform_28(%arg0: i32) -> (i32, i32, i32) {
    %c0_i32 = arith.constant 0 : i32
    %c0_i32_0 = arith.constant 0 : i32
    %c0_i32_1 = arith.constant 0 : i32
    %c0_i32_2 = arith.constant 0 : i32
    return %c0_i32, %c0_i32_0, %c0_i32_1 : i32, i32, i32
  }
  func.func @transform_29(%arg0: i32) -> (i32, i32, i32) {
    %c0_i32 = arith.constant 0 : i32
    %c0_i32_0 = arith.constant 0 : i32
    %c0_i32_1 = arith.constant 0 : i32
    %c0_i32_2 = arith.constant 0 : i32
    return %c0_i32, %c0_i32_0, %c0_i32_1 : i32, i32, i32
  }
  func.func @transform_30(%arg0: i32) -> (i32, i32, i32) {
    %c0_i32 = arith.constant 0 : i32
    %c0_i32_0 = arith.constant 0 : i32
    %c0_i32_1 = arith.constant 0 : i32
    %c0_i32_2 = arith.constant 0 : i32
    return %c0_i32, %c0_i32_0, %c0_i32_1 : i32, i32, i32
  }
  func.func @transform_31(%arg0: i32) -> (i32, i32, i32) {
    %c0_i32 = arith.constant 0 : i32
    %c0_i32_0 = arith.constant 0 : i32
    %c0_i32_1 = arith.constant 0 : i32
    %c0_i32_2 = arith.constant 0 : i32
    return %c0_i32, %c0_i32_0, %c0_i32_1 : i32, i32, i32
  }
  func.func @transform_32(%arg0: i32) -> (i32, i32, i32) {
    %c0_i32 = arith.constant 0 : i32
    %c0_i32_0 = arith.constant 0 : i32
    %c0_i32_1 = arith.constant 0 : i32
    %c0_i32_2 = arith.constant 0 : i32
    return %c0_i32, %c0_i32_0, %c0_i32_1 : i32, i32, i32
  }
  func.func @transform_33(%arg0: i32) -> (i32, i32, i32) {
    %c0_i32 = arith.constant 0 : i32
    %c0_i32_0 = arith.constant 0 : i32
    %c0_i32_1 = arith.constant 0 : i32
    %c0_i32_2 = arith.constant 0 : i32
    return %c0_i32, %c0_i32_0, %c0_i32_1 : i32, i32, i32
  }
  func.func @transform_34(%arg0: i32) -> (i32, i32, i32) {
    %c0_i32 = arith.constant 0 : i32
    %c0_i32_0 = arith.constant 0 : i32
    %c0_i32_1 = arith.constant 0 : i32
    %c0_i32_2 = arith.constant 0 : i32
    return %c0_i32, %c0_i32_0, %c0_i32_1 : i32, i32, i32
  }
  func.func @transform_35(%arg0: i32) -> (i32, i32) {
    %c0_i32 = arith.constant 0 : i32
    %c0_i32_0 = arith.constant 0 : i32
    %c0_i32_1 = arith.constant 0 : i32
    return %c0_i32, %c0_i32_0 : i32, i32
  }
  func.func @transform_36(%arg0: i32) -> (i32, i32) {
    %c0_i32 = arith.constant 0 : i32
    %c0_i32_0 = arith.constant 0 : i32
    %c0_i32_1 = arith.constant 0 : i32
    return %c0_i32, %c0_i32_0 : i32, i32
  }
  func.func @transform_37(%arg0: i32) -> (i32, i32) {
    %c0_i32 = arith.constant 0 : i32
    %c0_i32_0 = arith.constant 0 : i32
    %c0_i32_1 = arith.constant 0 : i32
    return %c0_i32, %c0_i32_0 : i32, i32
  }
  func.func @transform_38(%arg0: i32) -> (i32, i32) {
    %c0_i32 = arith.constant 0 : i32
    %c0_i32_0 = arith.constant 0 : i32
    %c0_i32_1 = arith.constant 0 : i32
    return %c0_i32, %c0_i32_0 : i32, i32
  }
  func.func @transform_39(%arg0: i32) -> (i32, i32) {
    %c0_i32 = arith.constant 0 : i32
    %c0_i32_0 = arith.constant 0 : i32
    %c0_i32_1 = arith.constant 0 : i32
    return %c0_i32, %c0_i32_0 : i32, i32
  }
  func.func @transform_40(%arg0: i32) -> (i32, i32) {
    %c0_i32 = arith.constant 0 : i32
    %c0_i32_0 = arith.constant 0 : i32
    %c0_i32_1 = arith.constant 0 : i32
    return %c0_i32, %c0_i32_0 : i32, i32
  }
  func.func @transform_41(%arg0: i32) -> (i32, i32, i32) {
    %c0_i32 = arith.constant 0 : i32
    %c0_i32_0 = arith.constant 0 : i32
    %c0_i32_1 = arith.constant 0 : i32
    %c0_i32_2 = arith.constant 0 : i32
    return %c0_i32, %c0_i32_0, %c0_i32_1 : i32, i32, i32
  }
  func.func @transform_42(%arg0: i32) -> (i32, i32, i32) {
    %c0_i32 = arith.constant 0 : i32
    %c0_i32_0 = arith.constant 0 : i32
    %c0_i32_1 = arith.constant 0 : i32
    %c0_i32_2 = arith.constant 0 : i32
    return %c0_i32, %c0_i32_0, %c0_i32_1 : i32, i32, i32
  }
  func.func @transform_43(%arg0: i32) -> (i32, i32) {
    %c0_i32 = arith.constant 0 : i32
    %c0_i32_0 = arith.constant 0 : i32
    %c0_i32_1 = arith.constant 0 : i32
    return %c0_i32, %c0_i32_0 : i32, i32
  }
  func.func @transform_44(%arg0: i32) -> (i32, i32) {
    %c0_i32 = arith.constant 0 : i32
    %c0_i32_0 = arith.constant 0 : i32
    %c0_i32_1 = arith.constant 0 : i32
    return %c0_i32, %c0_i32_0 : i32, i32
  }
  func.func @transform_45(%arg0: i32) -> (i32, i32) {
    %c0_i32 = arith.constant 0 : i32
    %c0_i32_0 = arith.constant 0 : i32
    %c0_i32_1 = arith.constant 0 : i32
    return %c0_i32, %c0_i32_0 : i32, i32
  }
  func.func @transform_46(%arg0: i32) -> (i32, i32) {
    %c0_i32 = arith.constant 0 : i32
    %c0_i32_0 = arith.constant 0 : i32
    %c0_i32_1 = arith.constant 0 : i32
    return %c0_i32, %c0_i32_0 : i32, i32
  }
  func.func @transform_47(%arg0: i32) -> (i32, i32) {
    %c0_i32 = arith.constant 0 : i32
    %c0_i32_0 = arith.constant 0 : i32
    %c0_i32_1 = arith.constant 0 : i32
    return %c0_i32, %c0_i32_0 : i32, i32
  }
  func.func @transform_48(%arg0: i32) -> (i32, i32) {
    %c0_i32 = arith.constant 0 : i32
    %c0_i32_0 = arith.constant 0 : i32
    %c0_i32_1 = arith.constant 0 : i32
    return %c0_i32, %c0_i32_0 : i32, i32
  }
  func.func @transform_49(%arg0: i32) -> (i32, i32, i32) {
    %c0_i32 = arith.constant 0 : i32
    %c0_i32_0 = arith.constant 0 : i32
    %c0_i32_1 = arith.constant 0 : i32
    return %arg0, %c0_i32, %c0_i32_0 : i32, i32, i32
  }
}

</mosaic_0001>

<bundles_post_ra>
// kernel: _lambda_.1
= control target key start
LH: loop header
LB: loop body
LE: loop exit
PB: predicated region body
PF: predicated region fallthrough
CT: control target
= control target key end

     0   :  { %s11584_s6 = smov 1   ;;  %s11585_s10 = smov 2   ;;  %s13066_s0 = inlined_call_operand.smem [shape: u32[50], index: -1, kind: input, shape index: {}] }
   0x1   :  { %s11693_s5 = sld [smem:[%s13066_s0]]   ;;  %s11586_s14 = smov 3  }
   0x2   :  { %s11698_s9 = sld [smem:[%s13066_s0 + %s11584_s6]]   ;;  %s11587_s18 = smov 4  }
   0x3   :  { %s11703_s13 = sld [smem:[%s13066_s0 + %s11585_s10]]   ;;  %s11588_s22 = smov 5  }
   0x4   :  { %s11708_s17 = sld [smem:[%s13066_s0 + %s11586_s14]]   ;;  %s11589_s26 = smov 6  }
   0x5   :  { %s11713_s21 = sld [smem:[%s13066_s0 + %s11587_s18]]   ;;  %s11590_s30 = smov 7  }
   0x6   :  { %s11718_s25 = sld [smem:[%s13066_s0 + %s11588_s22]]   ;;  %s11591_s4 = smov 8  }
   0x7   :  { %13116 = sst [smem:[#allocation68_spill]] %s11693_s5  ;;  %s11592_s10 = smov 9  }
   0x8   :  { %13117 = sst [smem:[#allocation69_spill]] %s11698_s9  ;;  %s11593_s15 = smov 10  }
   0x9   :  { %13118 = sst [smem:[#allocation70_spill]] %s11703_s13  ;;  %s11594_s20 = smov 11  }
   0xa   :  { %13119 = sst [smem:[#allocation71_spill]] %s11708_s17  ;;  %s11596_s1 = smov 13  }
   0xb   :  { %13120 = sst [smem:[#allocation72_spill]] %s11713_s21  ;;  %s11597_s7 = smov 14  }
   0xc   :  { %13121 = sst [smem:[#allocation73_spill]] %s11718_s25  ;;  %s11599_s22 = smov 16  }
   0xd   :  { %s11723_s29 = sld [smem:[%s13066_s0 + %s11589_s26]]   ;;  %s11595_s26 = smov 12  }
   0xe   :  { %s11728_s3 = sld [smem:[%s13066_s0 + %s11590_s30]]   ;;  %s11600_s28 = smov 17  }
   0xf   :  { %s11733_s8 = sld [smem:[%s13066_s0 + %s11591_s4]]  }
  0x10   :  { %s11738_s14 = sld [smem:[%s13066_s0 + %s11592_s10]]  }
  0x11   :  { %s11743_s19 = sld [smem:[%s13066_s0 + %s11593_s15]]   ;;  %s11598_s15 = smov 15  }
  0x12   :  { %s11748_s24 = sld [smem:[%s13066_s0 + %s11594_s20]]  }
  0x13   :  { %13122 = sst [smem:[#allocation74_spill]] %s11723_s29 }
  0x14   :  { %13123 = sst [smem:[#allocation75_spill]] %s11728_s3 }
  0x15   :  { %13124 = sst [smem:[#allocation76_spill]] %s11733_s8 }
  0x16   :  { %13125 = sst [smem:[#allocation77_spill]] %s11738_s14 }
  0x17   :  { %13126 = sst [smem:[#allocation78_spill]] %s11743_s19 }
  0x18   :  { %13127 = sst [smem:[#allocation79_spill]] %s11748_s24 }
  0x19   :  { %s11753_s30 = sld [smem:[%s13066_s0 + %s11595_s26]]  }
  0x1a   :  { %s11758_s6 = sld [smem:[%s13066_s0 + %s11596_s1]]  }
  0x1b   :  { %s11763_s12 = sld [smem:[%s13066_s0 + %s11597_s7]]   ;;  %s11601_s7 = smov 18  }
  0x1c   :  { %s11768_s20 = sld [smem:[%s13066_s0 + %s11598_s15]]   ;;  %s11602_s15 = smov 19  }
  0x1d   :  { %s11773_s27 = sld [smem:[%s13066_s0 + %s11599_s22]]   ;;  %s11603_s22 = smov 20  }
  0x1e   :  { %s11778_s4 = sld [smem:[%s13066_s0 + %s11600_s28]]   ;;  %s11604_s28 = smov 21  }
  0x1f   :  { %s11783_s19 = sld [smem:[%s13066_s0 + %s11601_s7]]   ;;  %s11605_s7 = smov 22  }
  0x20   :  { %13128 = sst [smem:[#allocation80_spill]] %s11758_s6 }
  0x21   :  { %13129 = sst [smem:[#allocation81_spill]] %s11763_s12 }
  0x22   :  { %13130 = sst [smem:[#allocation82_spill]] %s11768_s20 }
  0x23   :  { %s11788_s25 = sld [smem:[%s13066_s0 + %s11602_s15]]   ;;  %s11606_s15 = smov 23  }
  0x24   :  { %13131 = sst [smem:[#allocation83_spill]] %s11778_s4 }
  0x25   :  { %s11793_s29 = sld [smem:[%s13066_s0 + %s11603_s22]]   ;;  %s11607_s22 = smov 24  }
  0x26   :  { %s11798_s21 = sld [smem:[%s13066_s0 + %s11604_s28]]   ;;  %s11608_s28 = smov 25  }
  0x27   :  { %s11803_s5 = sld [smem:[%s13066_s0 + %s11605_s7]]   ;;  %s11609_s7 = smov 26  }
  0x28   :  { %s11813_s4 = sld [smem:[%s13066_s0 + %s11607_s22]]   ;;  %s11611_s22 = smov 28  }
  0x29   :  { %13132 = sst [smem:[#allocation84_spill]] %s11788_s25 }
  0x2a   :  { %s11808_s25 = sld [smem:[%s13066_s0 + %s11606_s15]]   ;;  %s11610_s15 = smov 27  }
  0x2b   :  { %s11823_s20 = sld [smem:[%s13066_s0 + %s11609_s7]]   ;;  %s11613_s7 = smov 30  }
  0x2c   :  { %13133 = sst [smem:[#allocation85_spill]] %s11798_s21 }
  0x2d   :  { %13134 = sst [smem:[#allocation86_spill]] %s11803_s5 }
  0x2e   :  { %13136 = sst [smem:[#allocation88_spill]] %s11813_s4 }
  0x2f   :  { %s11818_s21 = sld [smem:[%s13066_s0 + %s11608_s28]]   ;;  %s11612_s28 = smov 29  }
  0x30   :  { %13135 = sst [smem:[#allocation87_spill]] %s11808_s25 }
  0x31   :  { %s11828_s25 = sld [smem:[%s13066_s0 + %s11610_s15]]   ;;  %s11614_s15 = smov 31  }
  0x32   :  { %s11833_s6 = sld [smem:[%s13066_s0 + %s11611_s22]]   ;;  %s11615_s22 = smov 32  }
  0x33   :  { %s11843_s24 = sld [smem:[%s13066_s0 + %s11613_s7]]   ;;  %s11617_s7 = smov 34  }
  0x35   :  { %13137 = sst [smem:[#allocation89_spill]] %s11818_s21 }
  0x36   :  { %s11838_s21 = sld [smem:[%s13066_s0 + %s11612_s28]]   ;;  %s11616_s28 = smov 33  }
  0x37   :  { %13138 = sst [smem:[#allocation90_spill]] %s11828_s25 }
  0x38   :  { %13139 = sst [smem:[#allocation91_spill]] %s11833_s6 }
  0x39   :  { %13140 = sst [smem:[#allocation92_spill]] %s11843_s24 }
  0x3a   :  { %s11848_s25 = sld [smem:[%s13066_s0 + %s11614_s15]]   ;;  %s11618_s15 = smov 35  }
  0x3b   :  { %s11853_s6 = sld [smem:[%s13066_s0 + %s11615_s22]]   ;;  %s11619_s22 = smov 36  }
  0x3c   :  { %s11858_s8 = sld [smem:[%s13066_s0 + %s11616_s28]]   ;;  %s11620_s28 = smov 37  }
  0x3d   :  { %s11863_s24 = sld [smem:[%s13066_s0 + %s11617_s7]]   ;;  %s11621_s7 = smov 38  }
  0x3e   :  { %s11868_s17 = sld [smem:[%s13066_s0 + %s11618_s15]]   ;;  %s11622_s15 = smov 39  }
  0x3f   :  { %s11883_s9 = sld [smem:[%s13066_s0 + %s11621_s7]]   ;;  %s11625_s7 = smov 42  }
  0x41   :  { %13141 = sst [smem:[#allocation93_spill]] %s11853_s6 }
  0x42   :  { %13142 = sst [smem:[#allocation94_spill]] %s11858_s8 }
  0x43   :  { %s11873_s6 = sld [smem:[%s13066_s0 + %s11619_s22]]   ;;  %s11623_s22 = smov 40  }
  0x44   :  { %13143 = sst [smem:[#allocation95_spill]] %s11868_s17 }
  0x45   :  { %s11878_s8 = sld [smem:[%s13066_s0 + %s11620_s28]]   ;;  %s11624_s28 = smov 41  }
  0x46   :  { %13146 = sst [smem:[#allocation98_spill]] %s11883_s9 }
  0x47   :  { %s11888_s17 = sld [smem:[%s13066_s0 + %s11622_s15]]   ;;  %s11626_s15 = smov 43  }
  0x48   :  { %s11903_s9 = sld [smem:[%s13066_s0 + %s11625_s7]]   ;;  %s11629_s7 = smov 46  }
  0x49   :  { %13144 = sst [smem:[#allocation96_spill]] %s11873_s6 }
  0x4a   :  { %s11893_s6 = sld [smem:[%s13066_s0 + %s11623_s22]]   ;;  %s11627_s22 = smov 44  }
  0x4b   :  { %13145 = sst [smem:[#allocation97_spill]] %s11878_s8 }
  0x4c   :  { %s11898_s8 = sld [smem:[%s13066_s0 + %s11624_s28]]   ;;  %s11628_s28 = smov 45  }
  0x4d   :  { %13147 = sst [smem:[#allocation99_spill]] %s11888_s17 }
  0x4e   :  { %13150 = sst [smem:[#allocation102_spill]] %s11903_s9 }
  0x4f   :  { %s11908_s17 = sld [smem:[%s13066_s0 + %s11626_s15]]   ;;  %s11630_s15 = smov 47  }
  0x50   :  { %13148 = sst [smem:[#allocation100_spill]] %s11893_s6 }
  0x51   :  { %s11913_s6 = sld [smem:[%s13066_s0 + %s11627_s22]]   ;;  %s11631_s22 = smov 48  }
  0x52   :  { %13149 = sst [smem:[#allocation101_spill]] %s11898_s8 }
  0x53   :  { %s11918_s8 = sld [smem:[%s13066_s0 + %s11628_s28]]   ;;  %s11632_s28 = smov 49  }
  0x54   :  { %s11923_s9 = sld [smem:[%s13066_s0 + %s11629_s7]]  }
  0x55   :  { %13151 = sst [smem:[#allocation103_spill]] %s11908_s17 }
  0x56   :  { %s11928_s17 = sld [smem:[%s13066_s0 + %s11630_s15]]  }
  0x57   :  { %13152 = sst [smem:[#allocation104_spill]] %s11913_s6 }
  0x58   :  { %s11933_s6 = sld [smem:[%s13066_s0 + %s11631_s22]]  }
  0x59   :  { %13153 = sst [smem:[#allocation105_spill]] %s11918_s8 }
  0x5a   :  { %s11938_s8 = sld [smem:[%s13066_s0 + %s11632_s28]]  }
  0x5c   :  { %13154 = sst [smem:[#allocation106_spill]] %s11928_s17 }
  0x5e   :  { %13155 = sst [smem:[#allocation107_spill]] %s11933_s6 }
  0x5f   :  { %104 = vsyncpa [#allocation3], 0 }
  0x60   :  { %105 = vsyncpa [#allocation5], 0 }
  0x61   :  { %106 = vsyncpa [#allocation8], 0 }
  0x62   :  { %107 = vsyncpa [#allocation11], 0 }
  0x63   :  { %108 = vsyncpa [#allocation14], 0 }
  0x64   :  { %109 = vsyncpa [#allocation17], 0 }
  0x65   :  { %110 = vsyncpa [#allocation20], 0 }
  0x66   :  { %111 = vsyncpa [#allocation23], 0 }
  0x67   :  { %112 = vsyncpa [#allocation26], 0 }
  0x68   :  { %113 = vsyncpa [#allocation29], 0 }
  0x69   :  { %114 = vsyncpa [#allocation32], 0 }
  0x6a   :  { %115 = vsyncpa [#allocation35], 0 }
  0x6b   :  { %116 = vsyncpa [#allocation38], 0 }
  0x6c   :  { %117 = vsyncpa [#allocation41], 0 }
  0x6d   :  { %118 = vsyncpa [#allocation44], 0 }
  0x6e   :  { %119 = vsyncpa [#allocation47], 0 }
  0x6f   :  { %120 = vsyncpa [#allocation50], 0  ;;  %s11940_s7 = smov 0  }
  0x70 LB: > { %s11946_s0 = sadd.s32 4294967295, %s11582_s7   ;;  %p9217_p0 = scmp.ge.s32.totalorder %s11582_s7, 1  ;;  %s11582_s7 = sphi %s11940_s7, %s126_s7  }
  0x71   : > { %p1191_p1 = scmp.lt.s32.totalorder %s11582_s7, 3 }
  0x73   : > { %p11950_p2 = pnand %p9217_p0, %p1191_p1 }
  0x74   : > { %p10427_p3 = scmp.eq.s32.totalorder (!%p11950_p2), %s11946_s0, 0  ;;  %s11633_s11 = smov (!%p11950_p2), [#allocation4]  }
  0x75   : > { %1195 = sbr.rel (%p11950_p2) target bundleno = 493 (0x1ed), region = 12  ;;  %s1216_s15 = sshll.u32 (!%p11950_p2), %s11633_s11, 4  ;;  %s1217_s15 = int_to_ptr.vmem [resolvable:$true] %s1216_s15 }
  0x76   : > { %s11634_s16 = smov (!%p11950_p2), [#allocation7]   ;;  %s10750_s22 = scalar_lea.vmem (!%p11950_p2), %s1217_s15, 32 }
  0x77   : > { %s1251_s18 = sshll.u32 (!%p11950_p2), %s11634_s16, 4  ;;  %p10751_p4 = scmp.ne.s32.totalorder (!%p11950_p2), %s1217_s15, %s10750_s22  ;;  %s1252_s18 = int_to_ptr.vmem [resolvable:$true] %s1251_s18 }
  0x78   : > { %p10757_p7 = scmp.lt.s32.totalorder (!%p11950_p2), %s1217_s15, %s1217_s15  ;;  %p10758_p8 = scmp.lt.s32.totalorder (!%p11950_p2), %s10750_s22, %s10750_s22 }
  0x79   : > { %p10752_p5 = pnand (!%p11950_p2), %p10751_p4, %p10427_p3 }
  0x7a   : > { %p10759_p9 = por %p10758_p8, %p10757_p7 }
  0x7b   : > { %p10753_p6 = pneg %p10752_p5 }
  0x7d   : > { %p10760_p10 = pnand %p10759_p9, %p10753_p6 }
  0x7f   : > { %10763 = shalt.err (!%p10760_p10)
}
  0x80   : > { %s13078_s23 = smov 16   ;;  %s13157_s13 = sld [smem:[#allocation70_spill]] }
  0x81   : > { %s13082_s26 = smov 1   ;;  %s10774_s28 = scalar_lea.vmem %s1252_s18, 32 }
  0x82   : > { %p10775_p11 = scmp.ne.s32.totalorder %s1252_s18, %s10774_s28  ;;  %p10781_p0 = scmp.lt.s32.totalorder %s1252_s18, %s1252_s18 }
  0x83   : > { %p10782_p1 = scmp.lt.s32.totalorder %s10774_s28, %s10774_s28 }
  0x84   : > { %p10776_p12 = pnand %p10775_p11, %p10427_p3 }
  0x85   : > { %p10783_p4 = por %p10782_p1, %p10781_p0 }
  0x86   : > { %10302 = dma.hbm_to_vmem [thread:$0]  (%p10427_p3), %s13157_s13, 32, %s1217_s15, [#allocation5], %s13078_s23, %s13078_s23, %s13082_s26  }
  0x87   : > { %p10777_p13 = pneg %p10776_p12 }
  0x89   : > { %p10784_p5 = pnand %p10783_p4, %p10777_p13 }
  0x8b   : > { %10787 = shalt.err (!%p10784_p5)
}
  0x8c   : > { %s13158_s3 = sld [smem:[#allocation75_spill]]  ;;  %s11637_s1 = smov [#allocation10]  }
  0x8d   : > { %s1277_s2 = sshll.u32 %s11637_s1, 4  ;;  %s1278_s2 = int_to_ptr.vmem [resolvable:$true] %s1277_s2 }
  0x8e   : > { %s10798_s11 = scalar_lea.vmem %s1278_s2, 1024  ;;  %p10805_p9 = scmp.lt.s32.totalorder %s1278_s2, %s1278_s2 }
  0x8f   : > { %p10799_p6 = scmp.ne.s32.totalorder %s1278_s2, %s10798_s11  ;;  %p10806_p10 = scmp.lt.s32.totalorder %s10798_s11, %s10798_s11 }
  0x91   : > { %p10800_p7 = pnand %p10799_p6, %p10427_p3  ;;  %p10807_p11 = por %p10806_p10, %p10805_p9 }
  0x92   : > { %10306 = dma.hbm_to_vmem [thread:$0]  (%p10427_p3), %s13158_s3, 32, %s1252_s18, [#allocation8], %s13078_s23, %s13078_s23, %s13082_s26  }
  0x93   : > { %p10801_p8 = pneg %p10800_p7 }
  0x95   : > { %p10808_p12 = pnand %p10807_p11, %p10801_p8 }
  0x97   : > { %10811 = shalt.err (!%p10808_p12)
}
  0x98   : > { %s13076_s15 = smov 128   ;;  %s13159_s14 = sld [smem:[#allocation77_spill]] }
  0x99   : > { %s13080_s16 = smov 8   ;;  %s11640_s18 = smov [#allocation13]  }
  0x9a   : > { %s1306_s22 = sshll.u32 %s11640_s18, 4  ;;  %s11641_s28 = smov [#allocation16]   ;;  %s1307_s22 = int_to_ptr.vmem [resolvable:$true] %s1306_s22 }
  0x9b   : > { %s1332_s1 = sshll.u32 %s11641_s28, 4  ;;  %s10822_s11 = scalar_lea.vmem %s1307_s22, 32  ;;  %s1333_s1 = int_to_ptr.vmem [resolvable:$true] %s1332_s1 }
  0x9c   : > { %p10823_p13 = scmp.ne.s32.totalorder %s1307_s22, %s10822_s11  ;;  %p10829_p4 = scmp.lt.s32.totalorder %s1307_s22, %s1307_s22 }
  0x9d   : > { %p10830_p5 = scmp.lt.s32.totalorder %s10822_s11, %s10822_s11 }
  0x9e   : > { %10310 = dma.hbm_to_vmem [thread:$0]  (%p10427_p3), %s13159_s14, 1024, %s1278_s2, [#allocation11], %s13076_s15, %s13076_s15, %s13080_s16  }
  0x9f   : > { %p10824_p0 = pnand %p10823_p13, %p10427_p3  ;;  %p10831_p6 = por %p10830_p5, %p10829_p4 }
  0xa1   : > { %p10825_p1 = pneg %p10824_p0 }
  0xa3   : > { %p10832_p7 = pnand %p10831_p6, %p10825_p1 }
  0xa5   : > { %10835 = shalt.err (!%p10832_p7)
}
  0xa6   : > { %10314 = dma.hbm_to_vmem [thread:$0]  (%p10427_p3), %s11753_s30, 32, %s1307_s22, [#allocation14], %s13078_s23, %s13078_s23, %s13082_s26  }
  0xa7   : > { %s10846_s2 = scalar_lea.vmem %s1333_s1, 32  ;;  %p10853_p11 = scmp.lt.s32.totalorder %s1333_s1, %s1333_s1 }
  0xa8   : > { %p10847_p8 = scmp.ne.s32.totalorder %s1333_s1, %s10846_s2  ;;  %p10854_p12 = scmp.lt.s32.totalorder %s10846_s2, %s10846_s2 }
  0xaa   : > { %p10848_p9 = pnand %p10847_p8, %p10427_p3  ;;  %p10855_p13 = por %p10854_p12, %p10853_p11 }
  0xac   : > { %p10849_p10 = pneg %p10848_p9 }
  0xae   : > { %p10856_p0 = pnand %p10855_p13, %p10849_p10 }
  0xb0   : > { %10859 = shalt.err (!%p10856_p0)
}
  0xb1   : > { %s13160_s12 = sld [smem:[#allocation81_spill]]  ;;  %s11642_s18 = smov [#allocation19]  }
  0xb2   : > { %s1358_s22 = sshll.u32 %s11642_s18, 4  ;;  %s11643_s28 = smov [#allocation22]   ;;  %s1359_s22 = int_to_ptr.vmem [resolvable:$true] %s1358_s22 }
  0xb3   : > { %s1384_s11 = sshll.u32 %s11643_s28, 4  ;;  %s10870_s15 = scalar_lea.vmem %s1359_s22, 32  ;;  %s1385_s11 = int_to_ptr.vmem [resolvable:$true] %s1384_s11 }
  0xb4   : > { %p10871_p1 = scmp.ne.s32.totalorder %s1359_s22, %s10870_s15  ;;  %p10877_p6 = scmp.lt.s32.totalorder %s1359_s22, %s1359_s22 }
  0xb5   : > { %p10878_p7 = scmp.lt.s32.totalorder %s10870_s15, %s10870_s15 }
  0xb6   : > { %p10872_p4 = pnand %p10871_p1, %p10427_p3 }
  0xb7   : > { %10318 = dma.hbm_to_vmem [thread:$0]  (%p10427_p3), %s13160_s12, 32, %s1333_s1, [#allocation17], %s13078_s23, %s13078_s23, %s13082_s26  }
  0xb8   : > { %p10873_p5 = pneg %p10872_p4  ;;  %p10879_p8 = por %p10878_p7, %p10877_p6 }
  0xba   : > { %p10880_p9 = pnand %p10879_p8, %p10873_p5 }
  0xbc   : > { %10883 = shalt.err (!%p10880_p9)
}
  0xbd   : > { %10322 = dma.hbm_to_vmem [thread:$0]  (%p10427_p3), %s11773_s27, 32, %s1359_s22, [#allocation20], %s13078_s23, %s13078_s23, %s13082_s26  }
  0xbe   : > { %s10894_s1 = scalar_lea.vmem %s1385_s11, 32  ;;  %p10901_p13 = scmp.lt.s32.totalorder %s1385_s11, %s1385_s11 }
  0xbf   : > { %p10895_p10 = scmp.ne.s32.totalorder %s1385_s11, %s10894_s1  ;;  %p10902_p0 = scmp.lt.s32.totalorder %s10894_s1, %s10894_s1 }
  0xc1   : > { %p10896_p11 = pnand %p10895_p10, %p10427_p3  ;;  %p10903_p1 = por %p10902_p0, %p10901_p13 }
  0xc3   : > { %p10897_p12 = pneg %p10896_p11 }
  0xc5   : > { %p10904_p4 = pnand %p10903_p1, %p10897_p12 }
  0xc7   : > { %10907 = shalt.err (!%p10904_p4)
}
  0xc8   : > { %10326 = dma.hbm_to_vmem [thread:$0]  (%p10427_p3), %s11783_s19, 32, %s1385_s11, [#allocation23], %s13078_s23, %s13078_s23, %s13082_s26  }
  0xc9   : > { %s11644_s15 = smov [#allocation25]   ;;  %s11645_s18 = smov [#allocation28]  }
  0xca   : > { %s1410_s2 = sshll.u32 %s11644_s15, 4  ;;  %s1435_s22 = sshll.u32 %s11645_s18, 4  ;;  %s1411_s2 = int_to_ptr.vmem [resolvable:$true] %s1410_s2  ;;  %s1436_s22 = int_to_ptr.vmem [resolvable:$true] %s1435_s22 }
  0xcb   : > { %s10918_s28 = scalar_lea.vmem %s1411_s2, 1024  ;;  %p10925_p8 = scmp.lt.s32.totalorder %s1411_s2, %s1411_s2 }
  0xcc   : > { %p10919_p5 = scmp.ne.s32.totalorder %s1411_s2, %s10918_s28  ;;  %p10926_p9 = scmp.lt.s32.totalorder %s10918_s28, %s10918_s28 }
  0xce   : > { %p10920_p6 = pnand %p10919_p5, %p10427_p3  ;;  %p10927_p10 = por %p10926_p9, %p10925_p8 }
  0xd0   : > { %p10921_p7 = pneg %p10920_p6 }
  0xd2   : > { %p10928_p11 = pnand %p10927_p10, %p10921_p7 }
  0xd4   : > { %10931 = shalt.err (!%p10928_p11)
}
  0xd5   : > { %s13161_s11 = smov 128   ;;  %s10942_s1 = scalar_lea.vmem %s1436_s22, 16 }
  0xd6   : > { %10330 = dma.hbm_to_vmem [thread:$0]  (%p10427_p3), %s11793_s29, 1024, %s1411_s2, [#allocation26], %s13161_s11, %s13161_s11, %s13080_s16  }
  0xd7   : > { %p10943_p12 = scmp.ne.s32.totalorder %s1436_s22, %s10942_s1  ;;  %s10948_s15 = scalar_lea.vmem %s1436_s22, 32 }
  0xd8   : > { %p10949_p1 = scmp.lt.s32.totalorder %s1436_s22, %s1436_s22  ;;  %p10950_p4 = scmp.lt.s32.totalorder %s10948_s15, %s10942_s1 }
  0xd9   : > { %p10944_p13 = pnand %p10943_p12, %p10427_p3 }
  0xda   : > { %p10951_p5 = por %p10950_p4, %p10949_p1 }
  0xdb   : > { %p10945_p0 = pneg %p10944_p13 }
  0xdd   : > { %p10952_p6 = pnand %p10951_p5, %p10945_p0 }
  0xdf   : > { %10955 = shalt.err (!%p10952_p6)
}
  0xe0   : > { %s13162_s5 = sld [smem:[#allocation86_spill]]  ;;  %s11646_s18 = smov [#allocation31]  }
  0xe1   : > { %s1458_s28 = sshll.u32 %s11646_s18, 4  ;;  %s11647_s23 = smov [#allocation34]   ;;  %s1459_s28 = int_to_ptr.vmem [resolvable:$true] %s1458_s28 }
  0xe2   : > { %s1484_s2 = sshll.u32 %s11647_s23, 4  ;;  %s10966_s16 = scalar_lea.vmem %s1459_s28, 32  ;;  %s1485_s2 = int_to_ptr.vmem [resolvable:$true] %s1484_s2 }
  0xe3   : > { %p10967_p7 = scmp.ne.s32.totalorder %s1459_s28, %s10966_s16  ;;  %p10973_p10 = scmp.lt.s32.totalorder %s1459_s28, %s1459_s28 }
  0xe4   : > { %p10974_p11 = scmp.lt.s32.totalorder %s10966_s16, %s10966_s16 }
  0xe5   : > { %p10968_p8 = pnand %p10967_p7, %p10427_p3 }
  0xe6   : > { %10334 = dma.hbm_to_vmem [thread:$0]  (%p10427_p3), %s13162_s5, 16, %s1436_s22, [#allocation29]  }
  0xe7   : > { %p10969_p9 = pneg %p10968_p8  ;;  %p10975_p12 = por %p10974_p11, %p10973_p10 }
  0xe9   : > { %p10976_p13 = pnand %p10975_p12, %p10969_p9 }
  0xeb   : > { %10979 = shalt.err (!%p10976_p13)
}
  0xec   : > { %s13163_s22 = smov 16   ;;  %s13164_s4 = sld [smem:[#allocation88_spill]] }
  0xed   : > { %s10990_s23 = scalar_lea.vmem %s1485_s2, 32  ;;  %p10997_p5 = scmp.lt.s32.totalorder %s1485_s2, %s1485_s2 }
  0xee   : > { %p10991_p0 = scmp.ne.s32.totalorder %s1485_s2, %s10990_s23  ;;  %p10998_p6 = scmp.lt.s32.totalorder %s10990_s23, %s10990_s23 }
  0xf0   : > { %p10992_p1 = pnand %p10991_p0, %p10427_p3  ;;  %p10999_p7 = por %p10998_p6, %p10997_p5 }
  0xf2   : > { %10338 = dma.hbm_to_vmem [thread:$0]  (%p10427_p3), %s13164_s4, 32, %s1459_s28, [#allocation32], %s13163_s22, %s13163_s22, %s13082_s26  }
  0xf3   : > { %p10993_p4 = pneg %p10992_p1 }
  0xf5   : > { %p11000_p8 = pnand %p10999_p7, %p10993_p4 }
  0xf7   : > { %11003 = shalt.err (!%p11000_p8)
}
  0xf8   : > { %10342 = dma.hbm_to_vmem [thread:$0]  (%p10427_p3), %s11823_s20, 32, %s1485_s2, [#allocation35], %s13163_s22, %s13163_s22, %s13082_s26  }
  0xf9   : > { %s11648_s16 = smov [#allocation37]   ;;  %s11649_s15 = smov [#allocation40]  }
  0xfa   : > { %s1513_s1 = sshll.u32 %s11648_s16, 4  ;;  %s1539_s18 = sshll.u32 %s11649_s15, 4  ;;  %s1514_s1 = int_to_ptr.vmem [resolvable:$true] %s1513_s1  ;;  %s1540_s18 = int_to_ptr.vmem [resolvable:$true] %s1539_s18 }
  0xfb   : > { %s11014_s28 = scalar_lea.vmem %s1514_s1, 32  ;;  %p11021_p12 = scmp.lt.s32.totalorder %s1514_s1, %s1514_s1 }
  0xfc   : > { %p11015_p9 = scmp.ne.s32.totalorder %s1514_s1, %s11014_s28  ;;  %p11022_p13 = scmp.lt.s32.totalorder %s11014_s28, %s11014_s28 }
  0xfe   : > { %p11016_p10 = pnand %p11015_p9, %p10427_p3  ;;  %p11023_p0 = por %p11022_p13, %p11021_p12 }
 0x100   : > { %p11017_p11 = pneg %p11016_p10 }
 0x102   : > { %p11024_p1 = pnand %p11023_p0, %p11017_p11 }
 0x104   : > { %11027 = shalt.err (!%p11024_p1)
}
 0x105   : > { %10346 = dma.hbm_to_vmem [thread:$0]  (%p10427_p3), %s11838_s21, 32, %s1514_s1, [#allocation38], %s13163_s22, %s13163_s22, %s13082_s26  }
 0x106   : > { %s11038_s2 = scalar_lea.vmem %s1540_s18, 32  ;;  %p11045_p7 = scmp.lt.s32.totalorder %s1540_s18, %s1540_s18 }
 0x107   : > { %p11039_p4 = scmp.ne.s32.totalorder %s1540_s18, %s11038_s2  ;;  %p11046_p8 = scmp.lt.s32.totalorder %s11038_s2, %s11038_s2 }
 0x109   : > { %p11040_p5 = pnand %p11039_p4, %p10427_p3  ;;  %p11047_p9 = por %p11046_p8, %p11045_p7 }
 0x10b   : > { %p11041_p6 = pneg %p11040_p5 }
 0x10d   : > { %p11048_p10 = pnand %p11047_p9, %p11041_p6 }
 0x10f   : > { %11051 = shalt.err (!%p11048_p10)
}
 0x110   : > { %10350 = dma.hbm_to_vmem [thread:$0]  (%p10427_p3), %s11848_s25, 32, %s1540_s18, [#allocation41], %s13163_s22, %s13163_s22, %s13082_s26  }
 0x111   : > { %s11650_s23 = smov [#allocation43]   ;;  %s11651_s1 = smov [#allocation46]  }
 0x112   : > { %s1568_s16 = sshll.u32 %s11650_s23, 4  ;;  %s1593_s15 = sshll.u32 %s11651_s1, 4  ;;  %s1569_s16 = int_to_ptr.vmem [resolvable:$true] %s1568_s16  ;;  %s1594_s15 = int_to_ptr.vmem [resolvable:$true] %s1593_s15 }
 0x113   : > { %s11062_s28 = scalar_lea.vmem %s1569_s16, 1024  ;;  %p11069_p0 = scmp.lt.s32.totalorder %s1569_s16, %s1569_s16 }
 0x114   : > { %p11063_p11 = scmp.ne.s32.totalorder %s1569_s16, %s11062_s28  ;;  %p11070_p1 = scmp.lt.s32.totalorder %s11062_s28, %s11062_s28 }
 0x116   : > { %p11064_p12 = pnand %p11063_p11, %p10427_p3  ;;  %p11071_p4 = por %p11070_p1, %p11069_p0 }
 0x118   : > { %p11065_p13 = pneg %p11064_p12 }
 0x11a   : > { %p11072_p5 = pnand %p11071_p4, %p11065_p13 }
 0x11c   : > { %11075 = shalt.err (!%p11072_p5)
}
 0x11d   : > { %s13165_s2 = smov 8   ;;  %s11086_s18 = scalar_lea.vmem %s1594_s15, 16 }
 0x11e   : > { %10354 = dma.hbm_to_vmem [thread:$0]  (%p10427_p3), %s11863_s24, 1024, %s1569_s16, [#allocation44], %s13161_s11, %s13161_s11, %s13165_s2  }
 0x11f   : > { %p11087_p6 = scmp.ne.s32.totalorder %s1594_s15, %s11086_s18  ;;  %s11092_s23 = scalar_lea.vmem %s1594_s15, 32 }
 0x120   : > { %p11093_p9 = scmp.lt.s32.totalorder %s1594_s15, %s1594_s15  ;;  %p11094_p10 = scmp.lt.s32.totalorder %s11092_s23, %s11086_s18 }
 0x121   : > { %p11088_p7 = pnand %p11087_p6, %p10427_p3 }
 0x122   : > { %p11095_p11 = por %p11094_p10, %p11093_p9 }
 0x123   : > { %p11089_p8 = pneg %p11088_p7 }
 0x125   : > { %p11096_p12 = pnand %p11095_p11, %p11089_p8 }
 0x127   : > { %11099 = shalt.err (!%p11096_p12)
}
 0x128   : > { %s13166_s1 = sld [smem:[#allocation96_spill]]  ;;  %s11652_s28 = smov [#allocation2]  }
 0x129   : > { %s1203_s26 = sshll.u32 %s11652_s28, 4  ;;  %s11653_s16 = smov [#allocation6]   ;;  %s1204_s26 = int_to_ptr.vmem [resolvable:$true] %s1203_s26 }
 0x12a   : > { %s1229_s3 = sshll.u32 %s11653_s16, 4  ;;  %s11110_s4 = scalar_lea.vmem %s1204_s26, 32  ;;  %s1230_s3 = int_to_ptr.vmem [resolvable:$true] %s1229_s3 }
 0x12b   : > { %p11111_p13 = scmp.ne.s32.totalorder %s1204_s26, %s11110_s4  ;;  %p11117_p4 = scmp.lt.s32.totalorder %s1204_s26, %s1204_s26 }
 0x12c   : > { %p11118_p5 = scmp.lt.s32.totalorder %s11110_s4, %s11110_s4 }
 0x12d   : > { %p11112_p0 = pnand %p11111_p13, %p10427_p3 }
 0x12e   : > { %10358 = dma.hbm_to_vmem [thread:$0]  (%p10427_p3), %s13166_s1, 16, %s1594_s15, [#allocation47]  }
 0x12f   : > { %p11113_p1 = pneg %p11112_p0  ;;  %p11119_p6 = por %p11118_p5, %p11117_p4 }
 0x131   : > { %p11120_p7 = pnand %p11119_p6, %p11113_p1 }
 0x133   : > { %11123 = shalt.err (!%p11120_p7)
}
 0x134   : > { %s13167_s18 = smov 1   ;;  %s13168_s15 = sld [smem:[#allocation69_spill]] }
 0x135   : > { %s11134_s23 = scalar_lea.vmem %s1230_s3, 32  ;;  %p11141_p11 = scmp.lt.s32.totalorder %s1230_s3, %s1230_s3 }
 0x136   : > { %p11135_p8 = scmp.ne.s32.totalorder %s1230_s3, %s11134_s23  ;;  %p11142_p12 = scmp.lt.s32.totalorder %s11134_s23, %s11134_s23 }
 0x138   : > { %p11136_p9 = pnand %p11135_p8, %p10427_p3  ;;  %p11143_p13 = por %p11142_p12, %p11141_p11 }
 0x13a   : > { %10300 = dma.hbm_to_vmem [thread:$0]  (%p10427_p3), %s13168_s15, 32, %s1204_s26, [#allocation3], %s13163_s22, %s13163_s22, %s13167_s18  }
 0x13b   : > { %p11137_p10 = pneg %p11136_p9 }
 0x13d   : > { %p11144_p0 = pnand %p11143_p13, %p11137_p10 }
 0x13f   : > { %11147 = shalt.err (!%p11144_p0)
}
 0x140   : > { %s13169_s4 = sld [smem:[#allocation71_spill]]  ;;  %s11654_s26 = smov [#allocation9]  }
 0x141   : > { %s1264_s1 = sshll.u32 %s11654_s26, 4  ;;  %s11655_s28 = smov [#allocation12]   ;;  %s1265_s1 = int_to_ptr.vmem [resolvable:$true] %s1264_s1 }
 0x142   : > { %s1293_s16 = sshll.u32 %s11655_s28, 4  ;;  %s11158_s15 = scalar_lea.vmem %s1265_s1, 32  ;;  %s1294_s16 = int_to_ptr.vmem [resolvable:$true] %s1293_s16 }
 0x143   : > { %p11159_p1 = scmp.ne.s32.totalorder %s1265_s1, %s11158_s15  ;;  %p11165_p6 = scmp.lt.s32.totalorder %s1265_s1, %s1265_s1 }
 0x144   : > { %p11166_p7 = scmp.lt.s32.totalorder %s11158_s15, %s11158_s15 }
 0x145   : > { %p11160_p4 = pnand %p11159_p1, %p10427_p3 }
 0x146   : > { %10304 = dma.hbm_to_vmem [thread:$0]  (%p10427_p3), %s13169_s4, 32, %s1230_s3, [#allocation5], %s13163_s22, %s13163_s22, %s13167_s18  }
 0x147   : > { %p11161_p5 = pneg %p11160_p4  ;;  %p11167_p8 = por %p11166_p7, %p11165_p6 }
 0x149   : > { %p11168_p9 = pnand %p11167_p8, %p11161_p5 }
 0x14b   : > { %11171 = shalt.err (!%p11168_p9)
}
 0x14c   : > { %s13170_s3 = sld [smem:[#allocation76_spill]]  ;;  %s11182_s23 = scalar_lea.vmem %s1294_s16, 32 }
 0x14d   : > { %p11183_p10 = scmp.ne.s32.totalorder %s1294_s16, %s11182_s23  ;;  %p11189_p13 = scmp.lt.s32.totalorder %s1294_s16, %s1294_s16 }
 0x14e   : > { %p11190_p0 = scmp.lt.s32.totalorder %s11182_s23, %s11182_s23 }
 0x14f   : > { %p11184_p11 = pnand %p11183_p10, %p10427_p3 }
 0x150   : > { %p11191_p1 = por %p11190_p0, %p11189_p13 }
 0x151   : > { %p11185_p12 = pneg %p11184_p11 }
 0x152   : > { %10308 = dma.hbm_to_vmem [thread:$0]  (%p10427_p3), %s13170_s3, 32, %s1265_s1, [#allocation8], %s13163_s22, %s13163_s22, %s13167_s18  }
 0x153   : > { %p11192_p4 = pnand %p11191_p1, %p11185_p12 }
 0x155   : > { %11195 = shalt.err (!%p11192_p4)
}
 0x156   : > { %s13171_s4 = sld [smem:[#allocation79_spill]]  ;;  %s11656_s26 = smov [#allocation15]  }
 0x157   : > { %s1319_s1 = sshll.u32 %s11656_s26, 4  ;;  %s11657_s28 = smov [#allocation18]   ;;  %s1320_s1 = int_to_ptr.vmem [resolvable:$true] %s1319_s1 }
 0x158   : > { %s1345_s15 = sshll.u32 %s11657_s28, 4  ;;  %s11206_s3 = scalar_lea.vmem %s1320_s1, 32  ;;  %s1346_s15 = int_to_ptr.vmem [resolvable:$true] %s1345_s15 }
 0x159   : > { %p11207_p5 = scmp.ne.s32.totalorder %s1320_s1, %s11206_s3  ;;  %p11213_p8 = scmp.lt.s32.totalorder %s1320_s1, %s1320_s1 }
 0x15a   : > { %p11214_p9 = scmp.lt.s32.totalorder %s11206_s3, %s11206_s3 }
 0x15b   : > { %p11208_p6 = pnand %p11207_p5, %p10427_p3 }
 0x15c   : > { %10312 = dma.hbm_to_vmem [thread:$0]  (%p10427_p3), %s13171_s4, 32, %s1294_s16, [#allocation11], %s13163_s22, %s13163_s22, %s13167_s18  }
 0x15d   : > { %p11209_p7 = pneg %p11208_p6  ;;  %p11215_p10 = por %p11214_p9, %p11213_p8 }
 0x15f   : > { %p11216_p11 = pnand %p11215_p10, %p11209_p7 }
 0x161   : > { %11219 = shalt.err (!%p11216_p11)
}
 0x162   : > { %s13172_s16 = sld [smem:[#allocation80_spill]]  ;;  %s11230_s23 = scalar_lea.vmem %s1346_s15, 32 }
 0x163   : > { %p11231_p12 = scmp.ne.s32.totalorder %s1346_s15, %s11230_s23  ;;  %p11237_p1 = scmp.lt.s32.totalorder %s1346_s15, %s1346_s15 }
 0x164   : > { %p11238_p4 = scmp.lt.s32.totalorder %s11230_s23, %s11230_s23 }
 0x165   : > { %p11232_p13 = pnand %p11231_p12, %p10427_p3 }
 0x166   : > { %p11239_p5 = por %p11238_p4, %p11237_p1 }
 0x167   : > { %p11233_p0 = pneg %p11232_p13 }
 0x168   : > { %10316 = dma.hbm_to_vmem [thread:$0]  (%p10427_p3), %s13172_s16, 32, %s1320_s1, [#allocation14], %s13163_s22, %s13163_s22, %s13167_s18  }
 0x169   : > { %p11240_p6 = pnand %p11239_p5, %p11233_p0 }
 0x16b   : > { %11243 = shalt.err (!%p11240_p6)
}
 0x16c   : > { %s13173_s4 = sld [smem:[#allocation82_spill]]  ;;  %s11658_s26 = smov [#allocation21]  }
 0x16d   : > { %s1371_s1 = sshll.u32 %s11658_s26, 4  ;;  %s11659_s28 = smov [#allocation24]   ;;  %s1372_s1 = int_to_ptr.vmem [resolvable:$true] %s1371_s1 }
 0x16e   : > { %s1397_s3 = sshll.u32 %s11659_s28, 4  ;;  %s11254_s16 = scalar_lea.vmem %s1372_s1, 32  ;;  %s1398_s3 = int_to_ptr.vmem [resolvable:$true] %s1397_s3 }
 0x16f   : > { %p11255_p7 = scmp.ne.s32.totalorder %s1372_s1, %s11254_s16  ;;  %p11261_p10 = scmp.lt.s32.totalorder %s1372_s1, %s1372_s1 }
 0x170   : > { %p11262_p11 = scmp.lt.s32.totalorder %s11254_s16, %s11254_s16 }
 0x171   : > { %p11256_p8 = pnand %p11255_p7, %p10427_p3 }
 0x172   : > { %10320 = dma.hbm_to_vmem [thread:$0]  (%p10427_p3), %s13173_s4, 32, %s1346_s15, [#allocation17], %s13163_s22, %s13163_s22, %s13167_s18  }
 0x173   : > { %p11257_p9 = pneg %p11256_p8  ;;  %p11263_p12 = por %p11262_p11, %p11261_p10 }
 0x175   : > { %p11264_p13 = pnand %p11263_p12, %p11257_p9 }
 0x177   : > { %11267 = shalt.err (!%p11264_p13)
}
 0x178   : > { %s13174_s15 = sld [smem:[#allocation83_spill]]  ;;  %s11278_s23 = scalar_lea.vmem %s1398_s3, 1024 }
 0x179   : > { %p11279_p0 = scmp.ne.s32.totalorder %s1398_s3, %s11278_s23  ;;  %p11285_p5 = scmp.lt.s32.totalorder %s1398_s3, %s1398_s3 }
 0x17a   : > { %p11286_p6 = scmp.lt.s32.totalorder %s11278_s23, %s11278_s23 }
 0x17b   : > { %p11280_p1 = pnand %p11279_p0, %p10427_p3 }
 0x17c   : > { %p11287_p7 = por %p11286_p6, %p11285_p5 }
 0x17d   : > { %p11281_p4 = pneg %p11280_p1 }
 0x17e   : > { %10324 = dma.hbm_to_vmem [thread:$0]  (%p10427_p3), %s13174_s15, 32, %s1372_s1, [#allocation20], %s13163_s22, %s13163_s22, %s13167_s18  }
 0x17f   : > { %p11288_p8 = pnand %p11287_p7, %p11281_p4 }
 0x181   : > { %11291 = shalt.err (!%p11288_p8)
}
 0x182   : > { %s13175_s4 = sld [smem:[#allocation84_spill]]  ;;  %s11660_s26 = smov [#allocation27]  }
 0x183   : > { %s1424_s1 = sshll.u32 %s11660_s26, 4  ;;  %s11661_s28 = smov [#allocation30]   ;;  %s1425_s1 = int_to_ptr.vmem [resolvable:$true] %s1424_s1 }
 0x184   : > { %s1445_s16 = sshll.u32 %s11661_s28, 4  ;;  %s11302_s15 = scalar_lea.vmem %s1425_s1, 16  ;;  %s1446_s16 = int_to_ptr.vmem [resolvable:$true] %s1445_s16 }
 0x185   : > { %p11303_p9 = scmp.ne.s32.totalorder %s1425_s1, %s11302_s15  ;;  %s11308_s23 = scalar_lea.vmem %s1425_s1, 32 }
 0x186   : > { %p11309_p12 = scmp.lt.s32.totalorder %s1425_s1, %s1425_s1  ;;  %p11310_p13 = scmp.lt.s32.totalorder %s11308_s23, %s11302_s15 }
 0x187   : > { %p11304_p10 = pnand %p11303_p9, %p10427_p3 }
 0x188   : > { %10328 = dma.hbm_to_vmem [thread:$0]  (%p10427_p3), %s13175_s4, 1024, %s1398_s3, [#allocation23], %s13161_s11, %s13161_s11, %s13165_s2  }
 0x189   : > { %p11305_p11 = pneg %p11304_p10  ;;  %p11311_p0 = por %p11310_p13, %p11309_p12 }
 0x18b   : > { %p11312_p1 = pnand %p11311_p0, %p11305_p11 }
 0x18d   : > { %11315 = shalt.err (!%p11312_p1)
}
 0x18e   : > { %s13176_s5 = sld [smem:[#allocation85_spill]]  ;;  %s11326_s3 = scalar_lea.vmem %s1446_s16, 32 }
 0x18f   : > { %p11327_p4 = scmp.ne.s32.totalorder %s1446_s16, %s11326_s3  ;;  %p11333_p7 = scmp.lt.s32.totalorder %s1446_s16, %s1446_s16 }
 0x190   : > { %p11334_p8 = scmp.lt.s32.totalorder %s11326_s3, %s11326_s3 }
 0x191   : > { %p11328_p5 = pnand %p11327_p4, %p10427_p3 }
 0x192   : > { %p11335_p9 = por %p11334_p8, %p11333_p7 }
 0x193   : > { %p11329_p6 = pneg %p11328_p5 }
 0x194   : > { %10332 = dma.hbm_to_vmem [thread:$0]  (%p10427_p3), %s13176_s5, 16, %s1425_s1, [#allocation26]  }
 0x195   : > { %p11336_p10 = pnand %p11335_p9, %p11329_p6 }
 0x197   : > { %11339 = shalt.err (!%p11336_p10)
}
 0x198   : > { %s13177_s4 = sld [smem:[#allocation87_spill]]  ;;  %s11662_s5 = smov [#allocation33]  }
 0x199   : > { %s1471_s26 = sshll.u32 %s11662_s5, 4  ;;  %s11663_s1 = smov [#allocation36]   ;;  %s1472_s26 = int_to_ptr.vmem [resolvable:$true] %s1471_s26 }
 0x19a   : > { %s1497_s28 = sshll.u32 %s11663_s1, 4  ;;  %s11350_s15 = scalar_lea.vmem %s1472_s26, 32  ;;  %s1498_s28 = int_to_ptr.vmem [resolvable:$true] %s1497_s28 }
 0x19b   : > { %p11351_p11 = scmp.ne.s32.totalorder %s1472_s26, %s11350_s15  ;;  %p11357_p0 = scmp.lt.s32.totalorder %s1472_s26, %s1472_s26 }
 0x19c   : > { %p11358_p1 = scmp.lt.s32.totalorder %s11350_s15, %s11350_s15 }
 0x19d   : > { %p11352_p12 = pnand %p11351_p11, %p10427_p3 }
 0x19e   : > { %10336 = dma.hbm_to_vmem [thread:$0]  (%p10427_p3), %s13177_s4, 32, %s1446_s16, [#allocation29], %s13163_s22, %s13163_s22, %s13167_s18  }
 0x19f   : > { %p11353_p13 = pneg %p11352_p12  ;;  %p11359_p4 = por %p11358_p1, %p11357_p0 }
 0x1a1   : > { %p11360_p5 = pnand %p11359_p4, %p11353_p13 }
 0x1a3   : > { %11363 = shalt.err (!%p11360_p5)
}
 0x1a4   : > { %s13178_s16 = sld [smem:[#allocation89_spill]]  ;;  %s11374_s23 = scalar_lea.vmem %s1498_s28, 1024 }
 0x1a5   : > { %p11375_p6 = scmp.ne.s32.totalorder %s1498_s28, %s11374_s23  ;;  %p11381_p9 = scmp.lt.s32.totalorder %s1498_s28, %s1498_s28 }
 0x1a6   : > { %p11382_p10 = scmp.lt.s32.totalorder %s11374_s23, %s11374_s23 }
 0x1a7   : > { %p11376_p7 = pnand %p11375_p6, %p10427_p3 }
 0x1a8   : > { %p11383_p11 = por %p11382_p10, %p11381_p9 }
 0x1a9   : > { %p11377_p8 = pneg %p11376_p7 }
 0x1aa   : > { %10340 = dma.hbm_to_vmem [thread:$0]  (%p10427_p3), %s13178_s16, 32, %s1472_s26, [#allocation32], %s13163_s22, %s13163_s22, %s13167_s18  }
 0x1ab   : > { %p11384_p12 = pnand %p11383_p11, %p11377_p8 }
 0x1ad   : > { %11387 = shalt.err (!%p11384_p12)
}
 0x1ae   : > { %s13179_s3 = sld [smem:[#allocation90_spill]]  ;;  %s11664_s4 = smov [#allocation39]  }
 0x1af   : > { %s1526_s5 = sshll.u32 %s11664_s4, 4  ;;  %s11665_s26 = smov [#allocation42]   ;;  %s1527_s5 = int_to_ptr.vmem [resolvable:$true] %s1526_s5 }
 0x1b0   : > { %s1552_s1 = sshll.u32 %s11665_s26, 4  ;;  %s11398_s15 = scalar_lea.vmem %s1527_s5, 32  ;;  %s1553_s1 = int_to_ptr.vmem [resolvable:$true] %s1552_s1 }
 0x1b1   : > { %p11399_p13 = scmp.ne.s32.totalorder %s1527_s5, %s11398_s15  ;;  %p11405_p4 = scmp.lt.s32.totalorder %s1527_s5, %s1527_s5 }
 0x1b2   : > { %p11406_p5 = scmp.lt.s32.totalorder %s11398_s15, %s11398_s15 }
 0x1b3   : > { %p11400_p0 = pnand %p11399_p13, %p10427_p3 }
 0x1b4   : > { %10344 = dma.hbm_to_vmem [thread:$0]  (%p10427_p3), %s13179_s3, 1024, %s1498_s28, [#allocation35], %s13161_s11, %s13161_s11, %s13165_s2  }
 0x1b5   : > { %p11401_p1 = pneg %p11400_p0  ;;  %p11407_p6 = por %p11406_p5, %p11405_p4 }
 0x1b7   : > { %p11408_p7 = pnand %p11407_p6, %p11401_p1 }
 0x1b9   : > { %11411 = shalt.err (!%p11408_p7)
}
 0x1ba   : > { %s13180_s11 = sld [smem:[#allocation92_spill]]  ;;  %s11422_s2 = scalar_lea.vmem %s1553_s1, 32 }
 0x1bb   : > { %p11423_p8 = scmp.ne.s32.totalorder %s1553_s1, %s11422_s2  ;;  %p11429_p11 = scmp.lt.s32.totalorder %s1553_s1, %s1553_s1 }
 0x1bc   : > { %p11430_p12 = scmp.lt.s32.totalorder %s11422_s2, %s11422_s2 }
 0x1bd   : > { %p11424_p9 = pnand %p11423_p8, %p10427_p3 }
 0x1be   : > { %p11431_p13 = por %p11430_p12, %p11429_p11 }
 0x1bf   : > { %p11425_p10 = pneg %p11424_p9 }
 0x1c0   : > { %10348 = dma.hbm_to_vmem [thread:$0]  (%p10427_p3), %s13180_s11, 32, %s1527_s5, [#allocation38], %s13163_s22, %s13163_s22, %s13167_s18  }
 0x1c1   : > { %p11432_p0 = pnand %p11431_p13, %p11425_p10 }
 0x1c3   : > { %11435 = shalt.err (!%p11432_p0)
}
 0x1c4   : > { %s13181_s28 = sld [smem:[#allocation93_spill]]  ;;  %s11666_s16 = smov [#allocation45]  }
 0x1c5   : > { %s1582_s23 = sshll.u32 %s11666_s16, 4  ;;  %s11667_s3 = smov [#allocation48]   ;;  %s1583_s23 = int_to_ptr.vmem [resolvable:$true] %s1582_s23 }
 0x1c6   : > { %s1604_s4 = sshll.u32 %s11667_s3, 4  ;;  %s11446_s5 = scalar_lea.vmem %s1583_s23, 16  ;;  %s1605_s4 = int_to_ptr.vmem [resolvable:$true] %s1604_s4 }
 0x1c7   : > { %p11447_p1 = scmp.ne.s32.totalorder %s1583_s23, %s11446_s5  ;;  %s11452_s26 = scalar_lea.vmem %s1583_s23, 32 }
 0x1c8   : > { %p11453_p6 = scmp.lt.s32.totalorder %s1583_s23, %s1583_s23  ;;  %p11454_p7 = scmp.lt.s32.totalorder %s11452_s26, %s11446_s5 }
 0x1c9   : > { %p11448_p4 = pnand %p11447_p1, %p10427_p3 }
 0x1ca   : > { %10352 = dma.hbm_to_vmem [thread:$0]  (%p10427_p3), %s13181_s28, 32, %s1553_s1, [#allocation41], %s13163_s22, %s13163_s22, %s13167_s18  }
 0x1cb   : > { %p11449_p5 = pneg %p11448_p4  ;;  %p11455_p8 = por %p11454_p7, %p11453_p6 }
 0x1cd   : > { %p11456_p9 = pnand %p11455_p8, %p11449_p5 }
 0x1cf   : > { %11459 = shalt.err (!%p11456_p9)
}
 0x1d0   : > { %s13182_s15 = sld [smem:[#allocation95_spill]]  ;;  %s11470_s22 = scalar_lea.vmem %s1605_s4, 16 }
 0x1d1   : > { %p11471_p10 = scmp.ne.s32.totalorder %s1605_s4, %s11470_s22  ;;  %s11476_s18 = scalar_lea.vmem %s1605_s4, 32 }
 0x1d2   : > { %p11477_p13 = scmp.lt.s32.totalorder %s1605_s4, %s1605_s4  ;;  %p11478_p0 = scmp.lt.s32.totalorder %s11476_s18, %s11470_s22 }
 0x1d3   : > { %p11472_p11 = pnand %p11471_p10, %p10427_p3 }
 0x1d4   : > { %p11479_p1 = por %p11478_p0, %p11477_p13 }
 0x1d5   : > { %p11473_p12 = pneg %p11472_p11 }
 0x1d6   : > { %10356 = dma.hbm_to_vmem [thread:$0]  (%p10427_p3), %s13182_s15, 16, %s1583_s23, [#allocation44]  }
 0x1d7   : > { %p11480_p4 = pnand %p11479_p1, %p11473_p12 }
 0x1d9   : > { %11483 = shalt.err (!%p11480_p4)
}
 0x1da   : > { %s13183_s1 = sld [smem:[#allocation97_spill]]  ;;  %s11668_s11 = smov [#allocation49]  }
 0x1db   : > { %s1618_s2 = sshll.u32 %s11668_s11, 4  ;;  %s1619_s2 = int_to_ptr.vmem [resolvable:$true] %s1618_s2 }
 0x1dc   : > { %s11494_s28 = scalar_lea.vmem %s1619_s2, 16  ;;  %s11500_s16 = scalar_lea.vmem %s1619_s2, 32 }
 0x1dd   : > { %p11495_p5 = scmp.ne.s32.totalorder %s1619_s2, %s11494_s28  ;;  %p11501_p8 = scmp.lt.s32.totalorder %s1619_s2, %s1619_s2 }
 0x1de   : > { %p11502_p9 = scmp.lt.s32.totalorder %s11500_s16, %s11494_s28 }
 0x1df   : > { %p11496_p6 = pnand %p11495_p5, %p10427_p3 }
 0x1e0   : > { %10360 = dma.hbm_to_vmem [thread:$0]  (%p10427_p3), %s13183_s1, 16, %s1605_s4, [#allocation47]  }
 0x1e1   : > { %p11497_p7 = pneg %p11496_p6  ;;  %p11503_p10 = por %p11502_p9, %p11501_p8 }
 0x1e3   : > { %p11504_p11 = pnand %p11503_p10, %p11497_p7 }
 0x1e5   : > { %11507 = shalt.err (!%p11504_p11)
}
 0x1e6   : > { %s13184_s23 = sld [smem:[#allocation99_spill]] }
 0x1ec   : > { %10362 = dma.hbm_to_vmem [thread:$0]  (%p10427_p3), %s13184_s23, 16, %s1619_s2, [#allocation50]  }
 0x1ed PF: > { %1665 = sbr.rel (%p11950_p2) target bundleno = 14614 (0x3916), region = 216  ;;  %p10459_p12 = scmp.eq.s32.totalorder (!%p11950_p2), %s11946_s0, 0 }
 0x1f2   : > { %11513 = dma.done.wait (%p10459_p12), [#allocation3], 32  }
 0x1f3   : > { %11515 = vsyncadd (%p10459_p12), [#allocation3], 4294967264 }
 0x1f4   : > { %11517 = dma.done.wait (%p10459_p12), [#allocation5], 64  }
 0x1f5   : > { %11519 = vsyncadd (%p10459_p12), [#allocation5], 4294967232 }
 0x1f6   : > { %11521 = dma.done.wait (%p10459_p12), [#allocation8], 64  }
 0x1f7   : > { %11523 = vsyncadd (%p10459_p12), [#allocation8], 4294967232 }
 0x1f8   : > { %11525 = dma.done.wait (%p10459_p12), [#allocation11], 1056  }
 0x1f9   : > { %11527 = vsyncadd (%p10459_p12), [#allocation11], 4294966240 }
 0x1fa   : > { %11529 = dma.done.wait (%p10459_p12), [#allocation14], 64  }
 0x1fb   : > { %11531 = vsyncadd (%p10459_p12), [#allocation14], 4294967232 }
 0x1fc   : > { %11533 = dma.done.wait (%p10459_p12), [#allocation17], 64  }
 0x1fd   : > { %11535 = vsyncadd (%p10459_p12), [#allocation17], 4294967232 }
 0x1fe   : > { %11537 = dma.done.wait (%p10459_p12), [#allocation20], 64  }
 0x1ff   : > { %11539 = vsyncadd (%p10459_p12), [#allocation20], 4294967232 }
 0x200   : > { %11541 = dma.done.wait (%p10459_p12), [#allocation23], 1056  }
 0x201   : > { %11543 = vsyncadd (%p10459_p12), [#allocation23], 4294966240 }
 0x202   : > { %11545 = dma.done.wait (%p10459_p12), [#allocation26], 1040  }
 0x203   : > { %11547 = vsyncadd (%p10459_p12), [#allocation26], 4294966256 }
 0x204   : > { %11549 = dma.done.wait (%p10459_p12), [#allocation29], 48  }
 0x205   : > { %11551 = vsyncadd (%p10459_p12), [#allocation29], 4294967248 }
 0x206   : > { %11553 = dma.done.wait (%p10459_p12), [#allocation32], 64  }
 0x207   : > { %11555 = vsyncadd (%p10459_p12), [#allocation32], 4294967232 }
 0x208   : > { %11557 = dma.done.wait (%p10459_p12), [#allocation35], 1056  }
 0x209   : > { %11559 = vsyncadd (%p10459_p12), [#allocation35], 4294966240 }
 0x20a   : > { %11561 = dma.done.wait (%p10459_p12), [#allocation38], 64  }
 0x20b   : > { %11563 = vsyncadd (%p10459_p12), [#allocation38], 4294967232 }
 0x20c   : > { %11565 = dma.done.wait (%p10459_p12), [#allocation41], 64  }
 0x20d   : > { %11567 = vsyncadd (%p10459_p12), [#allocation41], 4294967232 }
 0x20e   : > { %11569 = dma.done.wait (%p10459_p12), [#allocation44], 1040  }
 0x20f   : > { %11571 = vsyncadd (%p10459_p12), [#allocation44], 4294966256 }
 0x210   : > { %11573 = dma.done.wait (%p10459_p12), [#allocation47], 32  }
 0x211   : > { %11575 = vsyncadd (%p10459_p12), [#allocation47], 4294967264 }
 0x212   : > { %11577 = dma.done.wait (%p10459_p12), [#allocation50], 16  }
 0x213   : > { %11579 = vsyncadd (%p10459_p12), [#allocation50], 4294967280  ;;  %s13185_s10 = sld [smem:[#allocation68_spill]]  ;;  %p1903_p2 = scmp.lt.s32.totalorder %s11946_s0, 1  ;;  %v11669_v0 = vmov 0.0   ;;  %vm11670_vm0 = vmmov 0  }
 0x214   : > { %s13186_s3 = sld [smem:[#allocation104_spill]]  ;;  %9731 = vmatprep.subr.mxu0 %v11669_v0  ;;  %9733 = vmatprep.mubr.msk.f32.mxu0 %vm11670_vm0, %v11669_v0  ;;  %vm1924_vm1 = vcmask 1045504   ;;  %vm1920_vm2 = vcmask 48128   ;;  %vm2014_vm3 = vcmask 261120   ;;  %v2280_v42 = vld [vmem:[#allocation43 + $0x18] sm:$0xff]  ;;  %v2279_v43 = vld [vmem:[#allocation43 + $0x10] sm:$0xff] }
 0x215   : > { %s13187_s4 = sld [smem:[#allocation102_spill]]  ;;  %s13217_s0 = smov (!%p1903_p2, %s11946_s0), 1  ;;  %9736 = vmatprep.subr.mxu1 %v11669_v0  ;;  %9744 = vmatprep.mubr.msk.f32.mxu1 %vm11670_vm0, %v11669_v0  ;;  %v2278_v44 = vld [vmem:[#allocation43 + $0x8] sm:$0xff]  ;;  %v2277_v45 = vld [vmem:[#allocation43] sm:$0xff]  ;;  %v9305_v57 = vld [vmem:[#allocation31] ss:$0 sm:$0xff] }
 0x216   : > { %s13084_s5 = sshll.u32 %s13217_s0, 3  ;;  %s13188_s15 = sld [smem:[#allocation103_spill]]  ;;  %vm2370_vm4 = vcmask 64512   ;;  %vm3041_vm5 = vcmask 130048   ;;  %vm3043_vm6 = vcmask 195584   ;;  %vm3259_vm7 = vcmask 523264  }
 0x217   : > { %s13189_s22 = sld [smem:[#allocation101_spill]]  ;;  %s13109_s18 = smov 96  }
 0x218   : > { %s13190_s17 = sld [smem:[#allocation106_spill]]  ;;  %s13111_s1 = smov 120  }
 0x219   : > { %s1906_s26 = scalar_lea.vmem %s13185_s10, %s13084_s5  ;;  %s13103_s11 = smov 88  }
 0x21a   : > { %v1912_v1 = vld [vmem:[%s13186_s3] sm:$0x3f]  ;;  %s13107_s2 = smov 80   ;;  %s13099_s28 = smov 112  }
 0x21b   : > { %v1911_v2 = vld [vmem:[%s1906_s26] sm:$0xff]  ;;  %9732 = vmatpush3.msk.msra.mxu0 %vm1924_vm1, %v1912_v1  ;;  %v2006_v3 = vld [vmem:[%s13187_s4 + $0x18] sm:$0xff]  ;;  %v2005_v4 = vld [vmem:[%s13187_s4 + $0x10] sm:$0xff]  ;;  %s13105_s16 = smov 72   ;;  %s13095_s23 = smov 104  }
 0x21c   : > { %9734 = vmatmul.mubr.msk.f32.vlgmr.msra.gmra.mxu0 %vm1920_vm2, %v1911_v2  ;;  %9747 = vmatprep.subr.mxu0 %v11669_v0  ;;  %v2004_v5 = vld [vmem:[%s13187_s4 + $0x8] sm:$0xff]  ;;  %v2003_v6 = vld [vmem:[%s13187_s4] sm:$0xff]  ;;  %v9294_v16 = vld [vmem:[%s13187_s4 + $0x38] sm:$0xff]  ;;  %s13093_s10 = smov 56   ;;  %s13097_s3 = smov 64  }
 0x21d   : > { %9755 = vmatprep.mubr.msk.f32.mxu0 %vm11670_vm0, %v11669_v0  ;;  %9737 = vmatpush3.msra.mxu1 %v2006_v3  ;;  %v9286_v7 = vld [vmem:[%s13188_s15] ss:$0 sm:$0xff]  ;;  %v9293_v17 = vld [vmem:[%s13187_s4 + $0x30] sm:$0xff]  ;;  %v9292_v18 = vld [vmem:[%s13187_s4 + $0x28] sm:$0xff]  ;;  %s13087_s26 = smov 48   ;;  %s13085_s15 = smov 40  }
 0x21e   : > { %9738 = vmatprep.subr.mxu1 %v11669_v0  ;;  %9748 = vmatpush3.msra.mxu0 %v9294_v16  ;;  %v9291_v19 = vld [vmem:[%s13187_s4 + $0x20] sm:$0xff]  ;;  %v9301_v29 = vld [vmem:[%s13187_s4 + $0x58] sm:$0xff]  ;;  %v9300_v30 = vld [vmem:[%s13187_s4 + $0x50] sm:$0xff]  ;;  %s13191_s5 = sld [smem:[#allocation94_spill]]  ;;  %s13207_s12 = smov 80  }
 0x21f   : > { %9739 = vmatpush3.msra.mxu1 %v2005_v4  ;;  %9749 = vmatprep.subr.mxu0 %v11669_v0  ;;  %v9289_v20 = vld [vmem:[%s13189_s22] ss:$0 sm:$0xff]  ;;  %v9299_v31 = vld [vmem:[%s13187_s4 + $0x48] sm:$0xff]  ;;  %v9296_v33 = vld [vmem:[%s13189_s22 + $0x1] ss:$0 sm:$0xff]  ;;  %s13197_s6 = sld [smem:[#allocation107_spill]] }
 0x220   : > { %9740 = vmatprep.subr.mxu1 %v11669_v0  ;;  %9750 = vmatpush3.msra.mxu0 %v9293_v17  ;;  %v9298_v32 = vld [vmem:[%s13187_s4 + $0x40] sm:$0xff]  ;;  %s13204_s4 = sld [smem:[#allocation74_spill]]  ;;  %s13208_s13 = smov 72  }
 0x221   : > { %9741 = vmatpush3.msra.mxu1 %v2004_v5  ;;  %9751 = vmatprep.subr.mxu0 %v11669_v0  ;;  %v9303_v46 = vld [vmem:[%s13189_s22 + $0x2] ss:$0 sm:$0xff]  ;;  %s13209_s14 = smov 88  }
 0x222   : > { %9742 = vmatprep.subr.mxu1 %v11669_v0  ;;  %9752 = vmatpush3.msra.mxu0 %v9292_v18  ;;  %v2275_v54 = vld [vmem:[%s13190_s17] sm:$0xff]  ;;  %s13211_s17 = sld [smem:[#allocation78_spill]] }
 0x223   : > { %9743 = vmatpush3.msra.mxu1 %v2003_v6  ;;  %9753 = vmatprep.subr.mxu0 %v11669_v0 }
 0x224   : > { %9758 = vmatprep.subr.mxu1 %v11669_v0  ;;  %9754 = vmatpush3.msra.mxu0 %v9291_v19 }
 0x225   : > { %9769 = vmatprep.subr.mxu0 %v11669_v0 }
 0x2dc   : > { %v1994_v8 = vpop.f32.mrf.mxu0 }
 0x2dd   : > { %v1995_v9 = vadd.f32 %v9286_v7, %v1994_v8 }
 0x2de   : > { %v9735_v10 = vpop.f32.mrf.mxu0 }
 0x2df   : > { %v1999_v11 = vmul.f32 0.70710677, %v1995_v9  ;;  %v1998_v13 = vmul.f32 0.5, %v1995_v9 }
 0x2e1   : > { %10600 = verf.f32 %v1999_v11 }
 0x2ee   : > { %v10601_v12 = vpop.eup %10600 }
 0x2ef   : > { %v2001_v14 = vadd.f32 1.0, %v10601_v12 }
 0x2f1   : > { %v2002_v15 = vmul.f32 %v2001_v14, %v1998_v13 }
 0x2f3   : > { %9745 = vmatmul.mubr.msk.f32.vlgmr.msra.gmra.mxu1 %vm2014_vm3, %v2002_v15 }
 0x2f4   : > { %9766 = vmatprep.mubr.msk.f32.mxu1 %vm11670_vm0, %v11669_v0  ;;  %9759 = vmatpush3.msra.mxu1 %v9301_v29 }
 0x2f5   : > { %9760 = vmatprep.subr.mxu1 %v11669_v0 }
 0x2f6   : > { %9761 = vmatpush3.msra.mxu1 %v9300_v30 }
 0x2f7   : > { %9762 = vmatprep.subr.mxu1 %v11669_v0 }
 0x2f8   : > { %9763 = vmatpush3.msra.mxu1 %v9299_v31 }
 0x2f9   : > { %9764 = vmatprep.subr.mxu1 %v11669_v0 }
 0x2fa   : > { %9765 = vmatpush3.msra.mxu1 %v9298_v32 }
 0x2fb   : > { %9780 = vmatprep.subr.mxu1 %v11669_v0 }
 0x3b3   : > { %v2084_v21 = vpop.f32.mrf.mxu1 }
 0x3b4   : > { %v2085_v22 = vadd.f32 %v9289_v20, %v2084_v21 }
 0x3b5   : > { %v9746_v23 = vpop.f32.mrf.mxu1 }
 0x3b6   : > { %v2089_v24 = vmul.f32 0.70710677, %v2085_v22  ;;  %v2088_v26 = vmul.f32 0.5, %v2085_v22 }
 0x3b8   : > { %10602 = verf.f32 %v2089_v24 }
 0x3c5   : > { %v10603_v25 = vpop.eup %10602 }
 0x3c6   : > { %v2091_v27 = vadd.f32 1.0, %v10603_v25 }
 0x3c8   : > { %v2092_v28 = vmul.f32 %v2091_v27, %v2088_v26 }
 0x3ca   : > { %9756 = vmatmul.mubr.msk.f32.vlgmr.msra.gmra.mxu0 %vm2014_vm3, %v2092_v28 }
 0x3cb   : > { %9777 = vmatprep.mubr.msk.f32.mxu0 %vm11670_vm0, %v11669_v0  ;;  %9770 = vmatpush3.msra.mxu0 %v2280_v42 }
 0x3cc   : > { %9771 = vmatprep.subr.mxu0 %v11669_v0 }
 0x3cd   : > { %9772 = vmatpush3.msra.mxu0 %v2279_v43 }
 0x3ce   : > { %9773 = vmatprep.subr.mxu0 %v11669_v0 }
 0x3cf   : > { %9774 = vmatpush3.msra.mxu0 %v2278_v44 }
 0x3d0   : > { %9775 = vmatprep.subr.mxu0 %v11669_v0 }
 0x3d1   : > { %9776 = vmatpush3.msra.mxu0 %v2277_v45 }
 0x3d2   : > { %9785 = vmatprep.subr.mxu0 %v11669_v0 }
 0x48a   : > { %v2175_v34 = vpop.f32.mrf.mxu0 }
 0x48b   : > { %v2176_v35 = vadd.f32 %v9296_v33, %v2175_v34 }
 0x48c   : > { %v9757_v36 = vpop.f32.mrf.mxu0 }
 0x48d   : > { %v2180_v37 = vmul.f32 0.70710677, %v2176_v35  ;;  %v2179_v39 = vmul.f32 0.5, %v2176_v35 }
 0x48f   : > { %10604 = verf.f32 %v2180_v37 }
 0x49c   : > { %v10605_v38 = vpop.eup %10604 }
 0x49d   : > { %v2182_v40 = vadd.f32 1.0, %v10605_v38 }
 0x49f   : > { %v2183_v41 = vmul.f32 %v2182_v40, %v2179_v39 }
 0x4a1   : > { %9767 = vmatmul.mubr.msk.f32.vlgmr.msra.gmra.mxu1 %vm2014_vm3, %v2183_v41 }
 0x4a2   : > { %9782 = vmatprep.mubr.msk.f32.mxu1 %vm11670_vm0, %v11669_v0 }
 0x561   : > { %v2266_v47 = vpop.f32.mrf.mxu1 }
 0x562   : > { %v2267_v48 = vadd.f32 %v9303_v46, %v2266_v47 }
 0x563   : > { %v9768_v49 = vpop.f32.mrf.mxu1 }
 0x564   : > { %v2271_v50 = vmul.f32 0.70710677, %v2267_v48  ;;  %v2270_v52 = vmul.f32 0.5, %v2267_v48 }
 0x566   : > { %10606 = verf.f32 %v2271_v50 }
 0x573   : > { %v10607_v51 = vpop.eup %10606 }
 0x574   : > { %v2273_v53 = vadd.f32 1.0, %v10607_v51 }
 0x576   : > { %v2274_v55 = vmul.f32 %v2273_v53, %v2270_v52 }
 0x578   : > { %v12327_v56 = vadd.f32 %v2275_v54, %v2274_v55  ;;  %v2285_v54 = vld [vmem:[%s13191_s5 + $0x18] sm:$0xff] }
 0x57a   : > { %9778 = vmatmul.mubr.msk.f32.vlgmr.msra.gmra.mxu0 %vm2014_vm3, %v12327_v56 }
 0x57b   : > { %9787 = vmatprep.mubr.msk.f32.mxu0 %vm11670_vm0, %v11669_v0 }
 0x63a   : > { %v2362_v58 = vpop.f32.mrf.mxu0 }
 0x63b   : > { %v12333_v59 = vadd.f32 %v9305_v57, %v2362_v58 }
 0x63c   : > { %v9779_v60 = vpop.f32.mrf.mxu0 }
 0x63d   : > { %2368 = vrot.lane.b32.xlu0 %v12333_v59, %s13109_s18  ;;  %v2366_v61 = vmul.f32 0.35355338, %v12333_v59  ;;  %v2284_v60 = vld [vmem:[%s13191_s5 + $0x10] sm:$0xff] }
 0x63f   : > { %2533 = vrot.lane.b32.xlu1 %v2366_v61, %s13111_s1 }
 0x641   : > { %2535 = vrot.lane.b32.xlu0 %v12333_v59, %s13103_s11 }
 0x643   : > { %2700 = vrot.lane.b32.xlu1 %v12333_v59, %s13107_s2 }
 0x645   : > { %2698 = vrot.lane.b32.xlu0 %v2366_v61, %s13099_s28 }
 0x647   : > { %2865 = vrot.lane.b32.xlu1 %v12333_v59, %s13105_s16 }
 0x649   : > { %2863 = vrot.lane.b32.xlu0 %v2366_v61, %s13095_s23 }
 0x6af   : > { %v2369_v62 = vpop.permute.xlu0 %2368 }
 0x6b0   : > { %9781 = vmatpush3.xpose.msk.msra.mxu1 %vm2370_vm4, %v2369_v62  ;;  %v2282_v62 = vld [vmem:[%s13191_s5] sm:$0xff] }
 0x6b1   : > { %v2534_v63 = vpop.permute.xlu1 %2533  ;;  %9790 = vmatprep.subr.mxu1 %v11669_v0 }
 0x6b3   : > { %v2536_v1 = vpop.permute.xlu0 %2535  ;;  %9783 = vmatmul.mubr.msk.f32.vlgmr.msra.gmra.mxu1 %vm2370_vm4, %v2366_v61  ;;  %v2283_v61 = vld [vmem:[%s13191_s5 + $0x8] sm:$0xff] }
 0x6b4   : > { %9791 = vmatpush3.xpose.msk.msra.mxu1 %vm2370_vm4, %v2536_v1  ;;  %9792 = vmatprep.mubr.msk.f32.mxu1 %vm11670_vm0, %v11669_v0 }
 0x6b5   : > { %v2701_v2 = vpop.permute.xlu1 %2700  ;;  %9800 = vmatprep.subr.mxu1 %v11669_v0 }
 0x6b7   : > { %9793 = vmatmul.mubr.msk.f32.vlgmr.msra.gmra.mxu1 %vm2370_vm4, %v2534_v63  ;;  %v2699_v3 = vpop.permute.xlu0 %2698 }
 0x6b8   : > { %9801 = vmatpush3.xpose.msk.msra.mxu1 %vm2370_vm4, %v2701_v2  ;;  %9802 = vmatprep.mubr.msk.f32.mxu1 %vm11670_vm0, %v11669_v0 }
 0x6b9   : > { %9810 = vmatprep.subr.mxu1 %v11669_v0  ;;  %v2866_v4 = vpop.permute.xlu1 %2865 }
 0x6bb   : > { %9803 = vmatmul.mubr.msk.f32.vlgmr.msra.gmra.mxu1 %vm2370_vm4, %v2699_v3  ;;  %v2864_v5 = vpop.permute.xlu0 %2863 }
 0x6bc   : > { %9811 = vmatpush3.xpose.msk.msra.mxu1 %vm2370_vm4, %v2866_v4  ;;  %9812 = vmatprep.mubr.msk.f32.mxu1 %vm11670_vm0, %v11669_v0 }
 0x6bd   : > { %9820 = vmatprep.subr.mxu1 %v11669_v0 }
 0x6bf   : > { %9813 = vmatmul.mubr.msk.f32.vlgmr.msra.gmra.mxu1 %vm2370_vm4, %v2864_v5 }
 0x6c0   : > { %9828 = vmatprep.mubr.msk.f32.mxu1 %vm11670_vm0, %v11669_v0  ;;  %9821 = vmatpush3.msra.mxu1 %v2285_v54 }
 0x6c1   : > { %9822 = vmatprep.subr.mxu1 %v11669_v0 }
 0x6c2   : > { %9823 = vmatpush3.msra.mxu1 %v2284_v60 }
 0x6c3   : > { %9824 = vmatprep.subr.mxu1 %v11669_v0 }
 0x6c4   : > { %9825 = vmatpush3.msra.mxu1 %v2283_v61 }
 0x6c5   : > { %9826 = vmatprep.subr.mxu1 %v11669_v0 }
 0x6c6   : > { %9827 = vmatpush3.msra.mxu1 %v2282_v62  ;;  %v3367_v62 = vld [vmem:[#allocation43 + $0x38] sm:$0xff] }
 0x6c7   : > { %9842 = vmatprep.subr.mxu1 %v11669_v0 }
 0x773   : > { %v2442_v6 = vpop.f32.mrf.mxu1 }
 0x774   : > { %v2446_v7 = vsel %vm2370_vm4, %v2442_v6, -inf }
 0x775   : > { %2447 = vmax.xlane.f32.xlu1 %v2446_v7  ;;  %v9784_v8 = vpop.f32.mrf.mxu1 }
 0x777   : > { %v2607_v9 = vpop.f32.mrf.mxu1 }
 0x778   : > { %v2611_v10 = vsel %vm2370_vm4, %v2607_v9, -inf }
 0x779   : > { %2612 = vmax.xlane.f32.xlu0 %v2611_v10  ;;  %v9794_v11 = vpop.f32.mrf.mxu1  ;;  %v9319_v10 = vld [vmem:[#allocation30] ss:$0 sm:$0xff] }
 0x77b   : > { %v2772_v12 = vpop.f32.mrf.mxu1 }
 0x77c   : > { %v2776_v13 = vsel %vm2370_vm4, %v2772_v12, -inf }
 0x77d   : > { %2777 = vmax.xlane.f32.xlu0 %v2776_v13  ;;  %v9804_v14 = vpop.f32.mrf.mxu1 }
 0x77f   : > { %v2937_v15 = vpop.f32.mrf.mxu1 }
 0x780   : > { %v2941_v16 = vsel %vm2370_vm4, %v2937_v15, -inf }
 0x781   : > { %2942 = vmax.xlane.f32.xlu1 %v2941_v16  ;;  %v9814_v17 = vpop.f32.mrf.mxu1 }
 0x792   : > { %2622 = vrot.lane.b32.xlu1 %v12333_v59, %s13093_s10 }
 0x7fe   : > { %v2448_v18 = vpop.xlane.xlu1 %2447 }
 0x7ff   : > { %v2449_v19 = vsub.f32 %v2442_v6, %v2448_v18 }
 0x801   : > { %v2450_v20 = vmul.f32 1.442695, %v2449_v19 }
 0x802   : > { %v2613_v21 = vpop.xlane.xlu0 %2612 }
 0x803   : > { %10608 = vpow2.f32 %v2450_v20  ;;  %v2614_v22 = vsub.f32 %v2607_v9, %v2613_v21  ;;  %v3158_v21 = vld [vmem:[#allocation36 + $0x18] sm:$0xff] }
 0x805   : > { %v2615_v23 = vmul.f32 1.442695, %v2614_v22  ;;  %v3157_v22 = vld [vmem:[#allocation36 + $0x10] sm:$0xff] }
 0x806   : > { %v2778_v33 = vpop.xlane.xlu0 %2777 }
 0x807   : > { %10610 = vpow2.f32 %v2615_v23  ;;  %v2779_v34 = vsub.f32 %v2772_v12, %v2778_v33  ;;  %v3156_v23 = vld [vmem:[#allocation36 + $0x8] sm:$0xff] }
 0x809   : > { %v2780_v35 = vmul.f32 1.442695, %v2779_v34 }
 0x80a   : > { %v2943_v24 = vpop.xlane.xlu1 %2942 }
 0x80b   : > { %v2944_v25 = vsub.f32 %v2937_v15, %v2943_v24 }
 0x80d   : > { %v2945_v26 = vmul.f32 1.442695, %v2944_v25 }
 0x80e   : > { %v2623_v38 = vpop.permute.xlu1 %2622 }
 0x80f   : > { %10612 = vpow2.f32 %v2945_v26 }
 0x810   : > { %v10609_v27 = vpop.eup %10608  ;;  %10614 = vpow2.f32 %v2780_v35 }
 0x811   : > { %v2452_v28 = vsel %vm2370_vm4, %v10609_v27, 0.0 }
 0x812   : > { %2453 = vadd.xlane.f32.xlu0 %v2452_v28  ;;  %v9321_v28 = vld [vmem:[#allocation39] ss:$0 sm:$0xff] }
 0x814   : > { %v10611_v29 = vpop.eup %10610 }
 0x815   : > { %v2617_v30 = vsel %vm2370_vm4, %v10611_v29, 0.0 }
 0x816   : > { %2618 = vadd.xlane.f32.xlu1 %v2617_v30  ;;  %v9322_v30 = vld [vmem:[#allocation37] ss:$0 sm:$0xff] }
 0x81c   : > { %v10613_v31 = vpop.eup %10612 }
 0x81d   : > { %v2947_v32 = vsel %vm2370_vm4, %v10613_v31, 0.0  ;;  %v10615_v36 = vpop.eup %10614 }
 0x81e   : > { %2948 = vadd.xlane.f32.xlu1 %v2947_v32  ;;  %v2782_v37 = vsel %vm2370_vm4, %v10615_v36, 0.0 }
 0x828   : > { %2457 = vrot.lane.b32.xlu0 %v12333_v59, %s13097_s3 }
 0x82f   : > { %2787 = vrot.lane.b32.xlu1 %v12333_v59, %s13087_s26  ;;  %s13101_s26 = smov 16  }
 0x847   : > { %2783 = vadd.xlane.f32.xlu0 %v2782_v37 }
 0x85d   : > { %2952 = vrot.lane.b32.xlu0 %v12333_v59, %s13085_s15  ;;  %s13089_s15 = smov 8  }
 0x89b   : > { %v2454_v39 = vpop.xlane.xlu0 %2453 }
 0x89c   : > { %10616 = vrcp.f32 %v2454_v39 }
 0x89f   : > { %v2458_v40 = vpop.permute.xlu0 %2457  ;;  %v2619_v41 = vpop.xlane.xlu1 %2618 }
 0x8a0   : > { %10618 = vrcp.f32 %v2619_v41  ;;  %9786 = vmatpush3.msra.mxu0 %v2458_v40  ;;  %v9323_v41 = vld [vmem:[#allocation33] ss:$0 sm:$0xff] }
 0x8a1   : > { %9795 = vmatprep.subr.mxu0 %v11669_v0 }
 0x8a7   : > { %v2949_v43 = vpop.xlane.xlu1 %2948 }
 0x8a9   : > { %v10617_v42 = vpop.eup %10616 }
 0x8aa   : > { %v2456_v44 = vmul.f32 %v10617_v42, %v10609_v27 }
 0x8ab   : > { %v2788_v47 = vpop.permute.xlu1 %2787 }
 0x8ac   : > { %9788 = vmatmul.mubr.msk.f32.vlgmr.msra.gmra.mxu0 %vm2370_vm4, %v2456_v44 }
 0x8ad   : > { %v10619_v45 = vpop.eup %10618  ;;  %9796 = vmatpush3.msra.mxu0 %v2623_v38  ;;  %9797 = vmatprep.mubr.msk.f32.mxu0 %vm11670_vm0, %v11669_v0 }
 0x8ae   : > { %9805 = vmatprep.subr.mxu0 %v11669_v0  ;;  %v2621_v46 = vmul.f32 %v10619_v45, %v10611_v29 }
 0x8b0   : > { %9798 = vmatmul.mubr.msk.f32.vlgmr.msra.gmra.mxu0 %vm2370_vm4, %v2621_v46 }
 0x8b1   : > { %9806 = vmatpush3.msra.mxu0 %v2788_v47  ;;  %9807 = vmatprep.mubr.msk.f32.mxu0 %vm11670_vm0, %v11669_v0 }
 0x8b2   : > { %9815 = vmatprep.subr.mxu0 %v11669_v0 }
 0x8d0   : > { %v2784_v48 = vpop.xlane.xlu0 %2783 }
 0x8d1   : > { %10620 = vrcp.f32 %v2784_v48 }
 0x8d2   : > { %10622 = vrcp.f32 %v2949_v43 }
 0x8d4   : > { %v2953_v52 = vpop.permute.xlu0 %2952 }
 0x8de   : > { %v10621_v49 = vpop.eup %10620 }
 0x8df   : > { %v2786_v50 = vmul.f32 %v10621_v49, %v10615_v36  ;;  %v10623_v51 = vpop.eup %10622 }
 0x8e0   : > { %v2951_v53 = vmul.f32 %v10623_v51, %v10613_v31 }
 0x8e1   : > { %9808 = vmatmul.mubr.msk.f32.vlgmr.msra.gmra.mxu0 %vm2370_vm4, %v2786_v50  ;;  %v9325_v50 = vld [vmem:[#allocation34] ss:$0 sm:$0xff] }
 0x8e2   : > { %9816 = vmatpush3.msra.mxu0 %v2953_v52  ;;  %9817 = vmatprep.mubr.msk.f32.mxu0 %vm11670_vm0, %v11669_v0 }
 0x8e3   : > { %9831 = vmatprep.subr.mxu0 %v11669_v0 }
 0x8e5   : > { %9818 = vmatmul.mubr.msk.f32.vlgmr.msra.gmra.mxu0 %vm2370_vm4, %v2951_v53 }
 0x8e6   : > { %9839 = vmatprep.mubr.msk.f32.mxu0 %vm11670_vm0, %v11669_v0  ;;  %9832 = vmatpush3.msra.mxu0 %v3158_v21 }
 0x8e7   : > { %9833 = vmatprep.subr.mxu0 %v11669_v0 }
 0x8e8   : > { %9834 = vmatpush3.msra.mxu0 %v3157_v22 }
 0x8e9   : > { %9835 = vmatprep.subr.mxu0 %v11669_v0 }
 0x8ea   : > { %9836 = vmatpush3.msra.mxu0 %v3156_v23 }
 0x8eb   : > { %9837 = vmatprep.subr.mxu0 %v11669_v0 }
 0x96c   : > { %v2529_v55 = vpop.f32.mrf.mxu0 }
 0x96e   : > { %v9789_v57 = vpop.f32.mrf.mxu0 }
 0x970   : > { %v2694_v58 = vpop.f32.mrf.mxu0 }
 0x971   : > { %3029 = vrot.lane.b32.xlu1 %v2694_v58, %s13089_s15  ;;  %s13091_s15 = smov 24  }
 0x972   : > { %v9799_v59 = vpop.f32.mrf.mxu0 }
 0x9a1   : > { %v2859_v63 = vpop.f32.mrf.mxu0 }
 0x9a2   : > { %3033 = vrot.lane.b32.xlu0 %v2859_v63, %s13101_s26  ;;  %v3366_v63 = vld [vmem:[#allocation43 + $0x30] sm:$0xff] }
 0x9a3   : > { %v9809_v1 = vpop.f32.mrf.mxu0 }
 0x9a4   : > { %v3365_v1 = vld [vmem:[#allocation43 + $0x28] sm:$0xff] }
 0x9a5   : > { %v3024_v2 = vpop.f32.mrf.mxu0 }
 0x9a6   : > { %3037 = vrot.lane.b32.xlu1 %v3024_v2, %s13091_s15  ;;  %s13192_s15 = sld [smem:[#allocation91_spill]]  ;;  %v3364_v2 = vld [vmem:[#allocation43 + $0x20] sm:$0xff] }
 0x9a7   : > { %v9819_v3 = vpop.f32.mrf.mxu0 }
 0x9ac   : > { %v3251_v33 = vld [vmem:[%s13192_s15 + $0x38] sm:$0xff]  ;;  %v3250_v34 = vld [vmem:[%s13192_s15 + $0x30] sm:$0xff]  ;;  %v3249_v35 = vld [vmem:[%s13192_s15 + $0x28] sm:$0xff] }
 0x9ad   : > { %v3248_v36 = vld [vmem:[%s13192_s15 + $0x20] sm:$0xff]  ;;  %v3247_v37 = vld [vmem:[%s13192_s15 + $0x18] sm:$0xff]  ;;  %v3246_v38 = vld [vmem:[%s13192_s15 + $0x10] sm:$0xff] }
 0x9ae   : > { %v3245_v39 = vld [vmem:[%s13192_s15 + $0x8] sm:$0xff]  ;;  %v3244_v40 = vld [vmem:[%s13192_s15] sm:$0xff] }
 0x9e3   : > { %v3030_v4 = vpop.permute.xlu1 %3029 }
 0x9e4   : > { %v3040_v6 = vsel %vm2370_vm4, %v2529_v55, %v3030_v4 }
 0xa14   : > { %v3034_v5 = vpop.permute.xlu0 %3033 }
 0xa15   : > { %v3042_v7 = vsel %vm3041_vm5, %v3040_v6, %v3034_v5 }
 0xa18   : > { %v3038_v8 = vpop.permute.xlu1 %3037 }
 0xa19   : > { %v3044_v9 = vsel %vm3043_vm6, %v3042_v7, %v3038_v8  ;;  %v9327_v7 = vld [vmem:[#allocation42] ss:$0 sm:$0xff] }
 0xa1a   : > { %9829 = vmatmul.mubr.msk.f32.vlgmr.msra.gmra.mxu1 %vm2014_vm3, %v3044_v9  ;;  %v9328_v9 = vld [vmem:[#allocation40] ss:$0 sm:$0xff] }
 0xa1b   : > { %9858 = vmatprep.mubr.msk.f32.mxu1 %vm11670_vm0, %v11669_v0  ;;  %9843 = vmatpush3.msra.mxu1 %v3251_v33 }
 0xa1c   : > { %9844 = vmatprep.subr.mxu1 %v11669_v0 }
 0xa1d   : > { %9845 = vmatpush3.msra.mxu1 %v3250_v34 }
 0xa1e   : > { %9846 = vmatprep.subr.mxu1 %v11669_v0 }
 0xa1f   : > { %9847 = vmatpush3.msra.mxu1 %v3249_v35 }
 0xa20   : > { %9848 = vmatprep.subr.mxu1 %v11669_v0 }
 0xa21   : > { %9849 = vmatpush3.msra.mxu1 %v3248_v36 }
 0xa22   : > { %9850 = vmatprep.subr.mxu1 %v11669_v0 }
 0xa23   : > { %9851 = vmatpush3.msra.mxu1 %v3247_v37 }
 0xa24   : > { %9852 = vmatprep.subr.mxu1 %v11669_v0 }
 0xa25   : > { %9853 = vmatpush3.msra.mxu1 %v3246_v38 }
 0xa26   : > { %9854 = vmatprep.subr.mxu1 %v11669_v0 }
 0xa27   : > { %9855 = vmatpush3.msra.mxu1 %v3245_v39 }
 0xa28   : > { %9856 = vmatprep.subr.mxu1 %v11669_v0 }
 0xa29   : > { %9857 = vmatpush3.msra.mxu1 %v3244_v40 }
 0xa2a   : > { %9882 = vmatprep.subr.mxu1 %v11669_v0 }
 0xada   : > { %v3120_v11 = vpop.f32.mrf.mxu1 }
 0xadb   : > { %v3121_v12 = vadd.f32 %v9319_v10, %v3120_v11 }
 0xadc   : > { %v9830_v13 = vpop.f32.mrf.mxu1 }
 0xadd   : > { %v3124_v14 = vadd.f32 %v3121_v12, %v12327_v56  ;;  %v3155_v56 = vld [vmem:[#allocation36] sm:$0xff]  ;;  %v9333_v12 = vld [vmem:[#allocation31 + $0x1] ss:$0 sm:$0xff] }
 0xade   : > { %9838 = vmatpush3.msra.mxu0 %v3155_v56 }
 0xadf   : > { %v3127_v15 = vsel %vm2014_vm3, %v3124_v14, 0.0  ;;  %9861 = vmatprep.subr.mxu0 %v11669_v0 }
 0xae0   : > { %3128 = vadd.xlane.f32.xlu0 %v3127_v15 }
 0xb69   : > { %v3129_v16 = vpop.xlane.xlu0 %3128 }
 0xb6a   : > { %v3131_v17 = vmul.f32 0.03125, %v3129_v16 }
 0xb6c   : > { %v3132_v18 = vsub.f32 %v3124_v14, %v3131_v17 }
 0xb6e   : > { %v3133_v19 = vmul.f32 %v3132_v18, %v3132_v18 }
 0xb70   : > { %v3134_v20 = vsel %vm2014_vm3, %v3133_v19, 0.0 }
 0xb71   : > { %3135 = vadd.xlane.f32.xlu1 %v3134_v20 }
 0xbfa   : > { %v3136_v24 = vpop.xlane.xlu1 %3135 }
 0xbfb   : > { %v3137_v25 = vmul.f32 0.03125, %v3136_v24 }
 0xbfd   : > { %v3138_v26 = vadd.f32 1e-05, %v3137_v25 }
 0xbff   : > { %10624 = vrsqrt.f32 %v3138_v26 }
 0xc0c   : > { %v10625_v27 = vpop.eup %10624 }
 0xc0d   : > { %v3140_v29 = vmul.f32 %v10625_v27, %v3132_v18 }
 0xc0f   : > { %v3147_v31 = vmul.f32 %v9321_v28, %v3140_v29 }
 0xc11   : > { %v3154_v32 = vadd.f32 %v9322_v30, %v3147_v31 }
 0xc13   : > { %9840 = vmatmul.mubr.msk.f32.vlgmr.msra.gmra.mxu0 %vm2014_vm3, %v3154_v32 }
 0xc14   : > { %9869 = vmatprep.mubr.msk.f32.mxu0 %vm11670_vm0, %v11669_v0  ;;  %9862 = vmatpush3.msra.mxu0 %v3367_v62 }
 0xc15   : > { %9863 = vmatprep.subr.mxu0 %v11669_v0 }
 0xc16   : > { %9864 = vmatpush3.msra.mxu0 %v3366_v63 }
 0xc17   : > { %9865 = vmatprep.subr.mxu0 %v11669_v0 }
 0xc18   : > { %9866 = vmatpush3.msra.mxu0 %v3365_v1 }
 0xc19   : > { %9867 = vmatprep.subr.mxu0 %v11669_v0 }
 0xc1a   : > { %9868 = vmatpush3.msra.mxu0 %v3364_v2 }
 0xc1b   : > { %9872 = vmatprep.subr.mxu0 %v11669_v0 }
 0xcd3   : > { %v3235_v42 = vpop.f32.mrf.mxu0 }
 0xcd4   : > { %v3236_v43 = vadd.f32 %v9323_v41, %v3235_v42 }
 0xcd5   : > { %v9841_v44 = vpop.f32.mrf.mxu0 }
 0xcd6   : > { %v3240_v45 = vmul.f32 0.70710677, %v3236_v43  ;;  %v3239_v47 = vmul.f32 0.5, %v3236_v43 }
 0xcd8   : > { %10626 = verf.f32 %v3240_v45 }
 0xce5   : > { %v10627_v46 = vpop.eup %10626 }
 0xce6   : > { %v3242_v48 = vadd.f32 1.0, %v10627_v46 }
 0xce8   : > { %v3243_v49 = vmul.f32 %v3242_v48, %v3239_v47 }
 0xcea   : > { %9859 = vmatmul.mubr.msk.f32.vlgmr.msra.gmra.mxu1 %vm3259_vm7, %v3243_v49 }
 0xceb   : > { %9884 = vmatprep.mubr.msk.f32.mxu1 %vm11670_vm0, %v11669_v0 }
 0xdaa   : > { %v3329_v51 = vpop.f32.mrf.mxu1 }
 0xdab   : > { %v3330_v52 = vadd.f32 %v9325_v50, %v3329_v51 }
 0xdac   : > { %v9860_v53 = vpop.f32.mrf.mxu1 }
 0xdad   : > { %v3333_v54 = vadd.f32 %v3330_v52, %v3154_v32 }
 0xdaf   : > { %v3336_v55 = vsel %vm2014_vm3, %v3333_v54, 0.0 }
 0xdb0   : > { %3337 = vadd.xlane.f32.xlu0 %v3336_v55 }
 0xe39   : > { %v3338_v57 = vpop.xlane.xlu0 %3337 }
 0xe3a   : > { %v3339_v58 = vmul.f32 0.03125, %v3338_v57 }
 0xe3c   : > { %v3340_v59 = vsub.f32 %v3333_v54, %v3339_v58 }
 0xe3e   : > { %v3341_v60 = vmul.f32 %v3340_v59, %v3340_v59 }
 0xe40   : > { %v3342_v61 = vsel %vm2014_vm3, %v3341_v60, 0.0 }
 0xe41   : > { %3343 = vadd.xlane.f32.xlu0 %v3342_v61 }
 0xeca   : > { %v3344_v3 = vpop.xlane.xlu0 %3343 }
 0xecb   : > { %v3345_v4 = vmul.f32 0.03125, %v3344_v3 }
 0xecd   : > { %v3346_v5 = vadd.f32 1e-05, %v3345_v4 }
 0xecf   : > { %10628 = vrsqrt.f32 %v3346_v5 }
 0xedc   : > { %v10629_v6 = vpop.eup %10628 }
 0xedd   : > { %v3348_v8 = vmul.f32 %v10629_v6, %v3340_v59 }
 0xedf   : > { %v3355_v10 = vmul.f32 %v9327_v7, %v3348_v8 }
 0xee1   : > { %v12451_v11 = vadd.f32 %v9328_v9, %v3355_v10  ;;  %v9332_v9 = vld [vmem:[%s13191_s5 + $0x38] sm:$0xff] }
 0xee3   : > { %9870 = vmatmul.mubr.msk.f32.vlgmr.msra.gmra.mxu0 %vm2014_vm3, %v12451_v11 }
 0xee4   : > { %9874 = vmatprep.mubr.msk.f32.mxu0 %vm11670_vm0, %v11669_v0 }
 0xfa3   : > { %v3452_v13 = vpop.f32.mrf.mxu0 }
 0xfa4   : > { %v12457_v14 = vadd.f32 %v9333_v12, %v3452_v13 }
 0xfa5   : > { %v9871_v15 = vpop.f32.mrf.mxu0 }
 0xfa6   : > { %3624 = vrot.lane.b32.xlu0 %v12457_v14, %s13103_s11  ;;  %3458 = vrot.lane.b32.xlu1 %v12457_v14, %s13109_s18  ;;  %v3456_v16 = vmul.f32 0.35355338, %v12457_v14  ;;  %v9331_v15 = vld [vmem:[%s13191_s5 + $0x30] sm:$0xff] }
 0xfaa   : > { %3787 = vrot.lane.b32.xlu0 %v3456_v16, %s13099_s28  ;;  %3622 = vrot.lane.b32.xlu1 %v3456_v16, %s13111_s1  ;;  %s13196_s28 = smov 24  }
 0xfae   : > { %3952 = vrot.lane.b32.xlu0 %v3456_v16, %s13095_s23  ;;  %3789 = vrot.lane.b32.xlu1 %v12457_v14, %s13107_s2  ;;  %s13194_s23 = smov 40  }
 0xfb2   : > { %3954 = vrot.lane.b32.xlu1 %v12457_v14, %s13105_s16 }
0x1018   : > { %v3625_v17 = vpop.permute.xlu0 %3624  ;;  %v3459_v18 = vpop.permute.xlu1 %3458 }
0x1019   : > { %9873 = vmatpush3.xpose.msk.msra.mxu0 %vm2370_vm4, %v3459_v18  ;;  %9883 = vmatpush3.xpose.msk.msra.mxu1 %vm2370_vm4, %v3625_v17  ;;  %v9329_v17 = vld [vmem:[%s13191_s5 + $0x20] sm:$0xff] }
0x101a   : > { %9892 = vmatprep.subr.mxu1 %v11669_v0  ;;  %9877 = vmatprep.subr.mxu0 %v11669_v0 }
0x101c   : > { %v3623_v19 = vpop.permute.xlu1 %3622  ;;  %9875 = vmatmul.mubr.msk.f32.vlgmr.msra.gmra.mxu0 %vm2370_vm4, %v3456_v16  ;;  %v3788_v21 = vpop.permute.xlu0 %3787  ;;  %v9330_v16 = vld [vmem:[%s13191_s5 + $0x28] sm:$0xff]  ;;  %s13205_s5 = smov 120  }
0x101d   : > { %9885 = vmatmul.mubr.msk.f32.vlgmr.msra.gmra.mxu1 %vm2370_vm4, %v3623_v19  ;;  %9879 = vmatprep.mubr.msk.f32.mxu0 %vm11670_vm0, %v11669_v0 }
0x101e   : > { %9894 = vmatprep.mubr.msk.f32.mxu1 %vm11670_vm0, %v11669_v0 }
0x1020   : > { %v3790_v20 = vpop.permute.xlu1 %3789  ;;  %v3953_v23 = vpop.permute.xlu0 %3952 }
0x1021   : > { %9893 = vmatpush3.xpose.msk.msra.mxu1 %vm2370_vm4, %v3790_v20 }
0x1022   : > { %9902 = vmatprep.subr.mxu1 %v11669_v0 }
0x1024   : > { %9895 = vmatmul.mubr.msk.f32.vlgmr.msra.gmra.mxu1 %vm2370_vm4, %v3788_v21  ;;  %v3955_v22 = vpop.permute.xlu1 %3954 }
0x1025   : > { %9903 = vmatpush3.xpose.msk.msra.mxu1 %vm2370_vm4, %v3955_v22  ;;  %9904 = vmatprep.mubr.msk.f32.mxu1 %vm11670_vm0, %v11669_v0 }
0x1026   : > { %9912 = vmatprep.subr.mxu1 %v11669_v0 }
0x1028   : > { %9905 = vmatmul.mubr.msk.f32.vlgmr.msra.gmra.mxu1 %vm2370_vm4, %v3953_v23 }
0x1029   : > { %9920 = vmatprep.mubr.msk.f32.mxu1 %vm11670_vm0, %v11669_v0  ;;  %9913 = vmatpush3.msra.mxu1 %v9332_v9 }
0x102a   : > { %9914 = vmatprep.subr.mxu1 %v11669_v0 }
0x102b   : > { %9915 = vmatpush3.msra.mxu1 %v9331_v15 }
0x102c   : > { %9916 = vmatprep.subr.mxu1 %v11669_v0 }
0x102d   : > { %9917 = vmatpush3.msra.mxu1 %v9330_v16 }
0x102e   : > { %9918 = vmatprep.subr.mxu1 %v11669_v0 }
0x102f   : > { %9919 = vmatpush3.msra.mxu1 %v9329_v17 }
0x1030   : > { %9934 = vmatprep.subr.mxu1 %v11669_v0 }
0x10dc   : > { %v3531_v56 = vpop.f32.mrf.mxu0 }
0x10dd   : > { %v3696_v24 = vpop.f32.mrf.mxu1  ;;  %v3535_v25 = vsel %vm2370_vm4, %v3531_v56, -inf }
0x10de   : > { %3536 = vmax.xlane.f32.xlu1 %v3535_v25  ;;  %v9876_v26 = vpop.f32.mrf.mxu0  ;;  %v3700_v27 = vsel %vm2370_vm4, %v3696_v24, -inf }
0x10df   : > { %3701 = vmax.xlane.f32.xlu0 %v3700_v27  ;;  %v9886_v28 = vpop.f32.mrf.mxu1  ;;  %v9347_v27 = vld [vmem:[#allocation30 + $0x1] ss:$0 sm:$0xff] }
0x10e4   : > { %v3861_v29 = vpop.f32.mrf.mxu1 }
0x10e5   : > { %v3865_v30 = vsel %vm2370_vm4, %v3861_v29, -inf }
0x10e6   : > { %3866 = vmax.xlane.f32.xlu0 %v3865_v30  ;;  %v9896_v31 = vpop.f32.mrf.mxu1 }
0x10e8   : > { %v4026_v32 = vpop.f32.mrf.mxu1 }
0x10e9   : > { %v4030_v33 = vsel %vm2370_vm4, %v4026_v32, -inf }
0x10ea   : > { %v9906_v34 = vpop.f32.mrf.mxu1  ;;  %4031 = vmax.xlane.f32.xlu1 %v4030_v33 }
0x10fb   : > { %3711 = vrot.lane.b32.xlu1 %v12457_v14, %s13093_s10  ;;  %s13193_s10 = smov 48  }
0x1167   : > { %v3537_v35 = vpop.xlane.xlu1 %3536 }
0x1168   : > { %v3538_v36 = vsub.f32 %v3531_v56, %v3537_v35  ;;  %v3702_v37 = vpop.xlane.xlu0 %3701 }
0x1169   : > { %v3703_v38 = vsub.f32 %v3696_v24, %v3702_v37 }
0x116a   : > { %v3539_v39 = vmul.f32 1.442695, %v3538_v36 }
0x116b   : > { %v3704_v40 = vmul.f32 1.442695, %v3703_v38  ;;  %v4247_v38 = vld [vmem:[#allocation36 + $0x38] sm:$0xff] }
0x116c   : > { %10630 = vpow2.f32 %v3539_v39  ;;  %v4246_v39 = vld [vmem:[#allocation36 + $0x30] sm:$0xff] }
0x116d   : > { %10632 = vpow2.f32 %v3704_v40  ;;  %v4245_v40 = vld [vmem:[#allocation36 + $0x28] sm:$0xff] }
0x116f   : > { %v3867_v50 = vpop.xlane.xlu0 %3866 }
0x1170   : > { %v3868_v51 = vsub.f32 %v3861_v29, %v3867_v50  ;;  %v4489_v50 = vld [vmem:[#allocation25 + $0x18] sm:$0xff] }
0x1172   : > { %v3869_v52 = vmul.f32 1.442695, %v3868_v51  ;;  %v4488_v51 = vld [vmem:[#allocation25 + $0x10] sm:$0xff] }
0x1173   : > { %v4032_v41 = vpop.xlane.xlu1 %4031 }
0x1174   : > { %v4033_v42 = vsub.f32 %v4026_v32, %v4032_v41 }
0x1176   : > { %v4034_v43 = vmul.f32 1.442695, %v4033_v42 }
0x1177   : > { %v3712_v55 = vpop.permute.xlu1 %3711 }
0x1178   : > { %10634 = vpow2.f32 %v4034_v43 }
0x1179   : > { %v10631_v44 = vpop.eup %10630  ;;  %10636 = vpow2.f32 %v3869_v52  ;;  %v4487_v52 = vld [vmem:[#allocation25 + $0x8] sm:$0xff] }
0x117a   : > { %v10633_v45 = vpop.eup %10632  ;;  %v3541_v46 = vsel %vm2370_vm4, %v10631_v44, 0.0 }
0x117b   : > { %3542 = vadd.xlane.f32.xlu0 %v3541_v46  ;;  %v3706_v47 = vsel %vm2370_vm4, %v10633_v45, 0.0 }
0x117c   : > { %3707 = vadd.xlane.f32.xlu1 %v3706_v47  ;;  %v9350_v47 = vld [vmem:[#allocation37 + $0x1] ss:$0 sm:$0xff] }
0x1185   : > { %v10635_v48 = vpop.eup %10634 }
0x1186   : > { %v4036_v49 = vsel %vm2370_vm4, %v10635_v48, 0.0  ;;  %v10637_v53 = vpop.eup %10636 }
0x1187   : > { %4037 = vadd.xlane.f32.xlu1 %v4036_v49  ;;  %v3871_v54 = vsel %vm2370_vm4, %v10637_v53, 0.0 }
0x1191   : > { %3546 = vrot.lane.b32.xlu0 %v12457_v14, %s13097_s3  ;;  %s13195_s3 = smov 8  }
0x1198   : > { %3876 = vrot.lane.b32.xlu1 %v12457_v14, %s13193_s10 }
0x11b0   : > { %3872 = vadd.xlane.f32.xlu0 %v3871_v54  ;;  %v12556_v54 = vld [vmem:[%s13197_s6] sm:$0xff]  ;;  %s13206_s6 = smov 96  }
0x11c6   : > { %4041 = vrot.lane.b32.xlu0 %v12457_v14, %s13194_s23 }
0x1204   : > { %v3543_v57 = vpop.xlane.xlu0 %3542 }
0x1205   : > { %10638 = vrcp.f32 %v3543_v57  ;;  %v3708_v58 = vpop.xlane.xlu1 %3707  ;;  %v9359_v57 = vld [vmem:[%s13192_s15 + $0x70] sm:$0xff] }
0x1206   : > { %10640 = vrcp.f32 %v3708_v58  ;;  %v9358_v58 = vld [vmem:[%s13192_s15 + $0x68] sm:$0xff] }
0x1208   : > { %v3547_v59 = vpop.permute.xlu0 %3546 }
0x1209   : > { %9878 = vmatpush3.msra.mxu0 %v3547_v59  ;;  %v9357_v59 = vld [vmem:[%s13192_s15 + $0x60] sm:$0xff] }
0x120a   : > { %9887 = vmatprep.subr.mxu0 %v11669_v0 }
0x1210   : > { %v4038_v61 = vpop.xlane.xlu1 %4037 }
0x1212   : > { %v10639_v60 = vpop.eup %10638 }
0x1213   : > { %v3545_v62 = vmul.f32 %v10639_v60, %v10631_v44  ;;  %v10641_v63 = vpop.eup %10640  ;;  %v9356_v60 = vld [vmem:[%s13192_s15 + $0x58] sm:$0xff] }
0x1214   : > { %v3710_v1 = vmul.f32 %v10641_v63, %v10633_v45  ;;  %v3877_v2 = vpop.permute.xlu1 %3876  ;;  %v9349_v45 = vld [vmem:[#allocation39 + $0x1] ss:$0 sm:$0xff]  ;;  %v9353_v63 = vld [vmem:[%s13192_s15 + $0x40] sm:$0xff] }
0x1215   : > { %9880 = vmatmul.mubr.msk.f32.vlgmr.msra.gmra.mxu0 %vm2370_vm4, %v3545_v62  ;;  %v9354_v62 = vld [vmem:[%s13192_s15 + $0x48] sm:$0xff] }
0x1216   : > { %9888 = vmatpush3.msra.mxu0 %v3712_v55  ;;  %9889 = vmatprep.mubr.msk.f32.mxu0 %vm11670_vm0, %v11669_v0  ;;  %v9360_v55 = vld [vmem:[%s13192_s15 + $0x78] sm:$0xff] }
0x1217   : > { %9897 = vmatprep.subr.mxu0 %v11669_v0 }
0x1219   : > { %9890 = vmatmul.mubr.msk.f32.vlgmr.msra.gmra.mxu0 %vm2370_vm4, %v3710_v1  ;;  %v9351_v1 = vld [vmem:[#allocation33 + $0x1] ss:$0 sm:$0xff] }
0x121a   : > { %9898 = vmatpush3.msra.mxu0 %v3877_v2  ;;  %9899 = vmatprep.mubr.msk.f32.mxu0 %vm11670_vm0, %v11669_v0 }
0x121b   : > { %9907 = vmatprep.subr.mxu0 %v11669_v0 }
0x1239   : > { %v3873_v3 = vpop.xlane.xlu0 %3872 }
0x123a   : > { %10642 = vrcp.f32 %v3873_v3 }
0x123b   : > { %10644 = vrcp.f32 %v4038_v61  ;;  %v9355_v61 = vld [vmem:[%s13192_s15 + $0x50] sm:$0xff]  ;;  %s13210_s15 = sld [smem:[#allocation73_spill]] }
0x123d   : > { %v4042_v7 = vpop.permute.xlu0 %4041 }
0x1247   : > { %v10643_v4 = vpop.eup %10642 }
0x1248   : > { %v3875_v5 = vmul.f32 %v10643_v4, %v10637_v53  ;;  %v10645_v6 = vpop.eup %10644  ;;  %v4486_v53 = vld [vmem:[#allocation25] sm:$0xff] }
0x1249   : > { %v4040_v8 = vmul.f32 %v10645_v6, %v10635_v48  ;;  %v9367_v6 = vld [vmem:[#allocation22] ss:$0 sm:$0xff] }
0x124a   : > { %9900 = vmatmul.mubr.msk.f32.vlgmr.msra.gmra.mxu0 %vm2370_vm4, %v3875_v5 }
0x124b   : > { %9908 = vmatpush3.msra.mxu0 %v4042_v7  ;;  %9909 = vmatprep.mubr.msk.f32.mxu0 %vm11670_vm0, %v11669_v0 }
0x124c   : > { %9923 = vmatprep.subr.mxu0 %v11669_v0 }
0x124e   : > { %9910 = vmatmul.mubr.msk.f32.vlgmr.msra.gmra.mxu0 %vm2370_vm4, %v4040_v8 }
0x124f   : > { %9931 = vmatprep.mubr.msk.f32.mxu0 %vm11670_vm0, %v11669_v0  ;;  %9924 = vmatpush3.msra.mxu0 %v4247_v38 }
0x1250   : > { %9925 = vmatprep.subr.mxu0 %v11669_v0 }
0x1251   : > { %9926 = vmatpush3.msra.mxu0 %v4246_v39 }
0x1252   : > { %9927 = vmatprep.subr.mxu0 %v11669_v0 }
0x1253   : > { %9928 = vmatpush3.msra.mxu0 %v4245_v40 }
0x1254   : > { %9929 = vmatprep.subr.mxu0 %v11669_v0 }
0x12d5   : > { %v3618_v10 = vpop.f32.mrf.mxu0 }
0x12d7   : > { %v9881_v12 = vpop.f32.mrf.mxu0 }
0x12d9   : > { %v3783_v13 = vpop.f32.mrf.mxu0 }
0x12da   : > { %4118 = vrot.lane.b32.xlu1 %v3783_v13, %s13195_s3 }
0x12db   : > { %v9891_v14 = vpop.f32.mrf.mxu0 }
0x130a   : > { %v3948_v18 = vpop.f32.mrf.mxu0 }
0x130b   : > { %4122 = vrot.lane.b32.xlu0 %v3948_v18, %s13101_s26  ;;  %s13198_s26 = smov 112  }
0x130c   : > { %v9901_v19 = vpop.f32.mrf.mxu0 }
0x130e   : > { %v4113_v20 = vpop.f32.mrf.mxu0 }
0x130f   : > { %4126 = vrot.lane.b32.xlu1 %v4113_v20, %s13196_s28 }
0x1310   : > { %v9911_v21 = vpop.f32.mrf.mxu0 }
0x134c   : > { %v4119_v22 = vpop.permute.xlu1 %4118 }
0x134d   : > { %v4129_v56 = vsel %vm2370_vm4, %v3618_v10, %v4119_v22 }
0x137d   : > { %v4123_v23 = vpop.permute.xlu0 %4122 }
0x137e   : > { %v4130_v24 = vsel %vm3041_vm5, %v4129_v56, %v4123_v23 }
0x1381   : > { %v4127_v25 = vpop.permute.xlu1 %4126 }
0x1382   : > { %v4131_v26 = vsel %vm3043_vm6, %v4130_v24, %v4127_v25 }
0x1383   : > { %9921 = vmatmul.mubr.msk.f32.vlgmr.msra.gmra.mxu1 %vm2014_vm3, %v4131_v26 }
0x1384   : > { %9950 = vmatprep.mubr.msk.f32.mxu1 %vm11670_vm0, %v11669_v0  ;;  %9935 = vmatpush3.msra.mxu1 %v9360_v55 }
0x1385   : > { %9936 = vmatprep.subr.mxu1 %v11669_v0 }
0x1386   : > { %9937 = vmatpush3.msra.mxu1 %v9359_v57 }
0x1387   : > { %9938 = vmatprep.subr.mxu1 %v11669_v0 }
0x1388   : > { %9939 = vmatpush3.msra.mxu1 %v9358_v58 }
0x1389   : > { %9940 = vmatprep.subr.mxu1 %v11669_v0 }
0x138a   : > { %9941 = vmatpush3.msra.mxu1 %v9357_v59 }
0x138b   : > { %9942 = vmatprep.subr.mxu1 %v11669_v0 }
0x138c   : > { %9943 = vmatpush3.msra.mxu1 %v9356_v60 }
0x138d   : > { %9944 = vmatprep.subr.mxu1 %v11669_v0 }
0x138e   : > { %9945 = vmatpush3.msra.mxu1 %v9355_v61 }
0x138f   : > { %9946 = vmatprep.subr.mxu1 %v11669_v0 }
0x1390   : > { %9947 = vmatpush3.msra.mxu1 %v9354_v62 }
0x1391   : > { %9948 = vmatprep.subr.mxu1 %v11669_v0 }
0x1392   : > { %9949 = vmatpush3.msra.mxu1 %v9353_v63 }
0x1393   : > { %9974 = vmatprep.subr.mxu1 %v11669_v0 }
0x1443   : > { %v4207_v28 = vpop.f32.mrf.mxu1 }
0x1444   : > { %v4208_v29 = vadd.f32 %v9347_v27, %v4207_v28 }
0x1445   : > { %v9922_v30 = vpop.f32.mrf.mxu1 }
0x1446   : > { %v4211_v31 = vadd.f32 %v4208_v29, %v12451_v11  ;;  %v4244_v11 = vld [vmem:[#allocation36 + $0x20] sm:$0xff] }
0x1447   : > { %9930 = vmatpush3.msra.mxu0 %v4244_v11 }
0x1448   : > { %v4216_v32 = vsel %vm2014_vm3, %v4211_v31, 0.0  ;;  %9953 = vmatprep.subr.mxu0 %v11669_v0 }
0x1449   : > { %4217 = vadd.xlane.f32.xlu0 %v4216_v32 }
0x14d2   : > { %v4218_v33 = vpop.xlane.xlu0 %4217 }
0x14d3   : > { %v4219_v34 = vmul.f32 0.03125, %v4218_v33 }
0x14d5   : > { %v4220_v35 = vsub.f32 %v4211_v31, %v4219_v34 }
0x14d7   : > { %v4221_v36 = vmul.f32 %v4220_v35, %v4220_v35 }
0x14d9   : > { %v4222_v37 = vsel %vm2014_vm3, %v4221_v36, 0.0 }
0x14da   : > { %4223 = vadd.xlane.f32.xlu1 %v4222_v37 }
0x1563   : > { %v4224_v41 = vpop.xlane.xlu1 %4223 }
0x1564   : > { %v4225_v42 = vmul.f32 0.03125, %v4224_v41 }
0x1566   : > { %v4226_v43 = vadd.f32 1e-05, %v4225_v42 }
0x1568   : > { %10646 = vrsqrt.f32 %v4226_v43 }
0x1575   : > { %v10647_v44 = vpop.eup %10646 }
0x1576   : > { %v4228_v46 = vmul.f32 %v10647_v44, %v4220_v35 }
0x1578   : > { %v4235_v48 = vmul.f32 %v9349_v45, %v4228_v46 }
0x157a   : > { %v12547_v49 = vadd.f32 %v9350_v47, %v4235_v48 }
0x157c   : > { %9932 = vmatmul.mubr.msk.f32.vlgmr.msra.gmra.mxu0 %vm2014_vm3, %v12547_v49 }
0x157d   : > { %9954 = vmatpush3.msra.mxu0 %v4489_v50  ;;  %9961 = vmatprep.mubr.msk.f32.mxu0 %vm11670_vm0, %v11669_v0 }
0x157e   : > { %9955 = vmatprep.subr.mxu0 %v11669_v0 }
0x157f   : > { %9956 = vmatpush3.msra.mxu0 %v4488_v51 }
0x1580   : > { %9957 = vmatprep.subr.mxu0 %v11669_v0 }
0x1581   : > { %9958 = vmatpush3.msra.mxu0 %v4487_v52 }
0x1582   : > { %9959 = vmatprep.subr.mxu0 %v11669_v0 }
0x1583   : > { %9960 = vmatpush3.msra.mxu0 %v4486_v53 }
0x1584   : > { %9962 = vmatmul.mubr.msk.f32.vlgmr.msra.gmra.mxu0 %vm2014_vm3, %v12556_v54  ;;  %9964 = vmatprep.subr.mxu0 %v11669_v0 }
0x1585   : > { %9966 = vmatprep.mubr.msk.f32.mxu0 %vm11670_vm0, %v11669_v0 }
0x163c   : > { %v4325_v2 = vpop.f32.mrf.mxu0 }
0x163d   : > { %v4326_v3 = vadd.f32 %v9351_v1, %v4325_v2 }
0x163e   : > { %v9933_v4 = vpop.f32.mrf.mxu0 }
0x163f   : > { %v4330_v5 = vmul.f32 0.70710677, %v4326_v3  ;;  %v4329_v13 = vmul.f32 0.5, %v4326_v3 }
0x1641   : > { %10648 = verf.f32 %v4330_v5 }
0x1644   : > { %v4571_v7 = vpop.f32.mrf.mxu0 }
0x1645   : > { %v12580_v8 = vadd.f32 %v9367_v6, %v4571_v7 }
0x1646   : > { %v9963_v9 = vpop.f32.mrf.mxu0 }
0x1647   : > { %4743 = vrot.lane.b32.xlu1 %v12580_v8, %s13103_s11  ;;  %4577 = vrot.lane.b32.xlu0 %v12580_v8, %s13109_s18  ;;  %v4575_v10 = vmul.f32 0.35355338, %v12580_v8  ;;  %s13199_s11 = smov 104   ;;  %s13202_s18 = smov 16  }
0x164b   : > { %4908 = vrot.lane.b32.xlu1 %v12580_v8, %s13107_s2  ;;  %4741 = vrot.lane.b32.xlu0 %v4575_v10, %s13111_s1  ;;  %s13201_s2 = smov 64   ;;  %s13203_s1 = sld [smem:[#allocation72_spill]] }
0x164e   : > { %v10649_v12 = vpop.eup %10648 }
0x164f   : > { %v4332_v14 = vadd.f32 1.0, %v10649_v12  ;;  %5073 = vrot.lane.b32.xlu1 %v12580_v8, %s13105_s16  ;;  %4906 = vrot.lane.b32.xlu0 %v4575_v10, %s13198_s26  ;;  %s13200_s16 = smov 56   ;;  %v4494_v12 = vld [vmem:[#allocation24 + $0x18] sm:$0xff] }
0x1651   : > { %v4333_v15 = vmul.f32 %v4332_v14, %v4329_v13 }
0x1653   : > { %5071 = vrot.lane.b32.xlu0 %v4575_v10, %s13199_s11  ;;  %9951 = vmatmul.mubr.msk.f32.vlgmr.msra.gmra.mxu1 %vm3259_vm7, %v4333_v15 }
0x1654   : > { %9976 = vmatprep.mubr.msk.f32.mxu1 %vm11670_vm0, %v11669_v0 }
0x16b9   : > { %v4744_v16 = vpop.permute.xlu1 %4743  ;;  %v4578_v17 = vpop.permute.xlu0 %4577 }
0x16ba   : > { %9965 = vmatpush3.xpose.msk.msra.mxu0 %vm2370_vm4, %v4578_v17  ;;  %9975 = vmatpush3.xpose.msk.msra.mxu1 %vm2370_vm4, %v4744_v16  ;;  %v4493_v17 = vld [vmem:[#allocation24 + $0x10] sm:$0xff] }
0x16bb   : > { %9984 = vmatprep.subr.mxu1 %v11669_v0  ;;  %9969 = vmatprep.subr.mxu0 %v11669_v0 }
0x16bd   : > { %v4909_v18 = vpop.permute.xlu1 %4908  ;;  %v4742_v19 = vpop.permute.xlu0 %4741  ;;  %9967 = vmatmul.mubr.msk.f32.vlgmr.msra.gmra.mxu0 %vm2370_vm4, %v4575_v10 }
0x16be   : > { %9977 = vmatmul.mubr.msk.f32.vlgmr.msra.gmra.mxu1 %vm2370_vm4, %v4742_v19  ;;  %9971 = vmatprep.mubr.msk.f32.mxu0 %vm11670_vm0, %v11669_v0  ;;  %v4491_v19 = vld [vmem:[#allocation24] sm:$0xff] }
0x16bf   : > { %9985 = vmatpush3.xpose.msk.msra.mxu1 %vm2370_vm4, %v4909_v18  ;;  %9986 = vmatprep.mubr.msk.f32.mxu1 %vm11670_vm0, %v11669_v0  ;;  %v4492_v18 = vld [vmem:[#allocation24 + $0x8] sm:$0xff] }
0x16c0   : > { %9994 = vmatprep.subr.mxu1 %v11669_v0 }
0x16c1   : > { %v5074_v20 = vpop.permute.xlu1 %5073  ;;  %v4907_v21 = vpop.permute.xlu0 %4906 }
0x16c2   : > { %9987 = vmatmul.mubr.msk.f32.vlgmr.msra.gmra.mxu1 %vm2370_vm4, %v4907_v21 }
0x16c3   : > { %9995 = vmatpush3.xpose.msk.msra.mxu1 %vm2370_vm4, %v5074_v20  ;;  %9996 = vmatprep.mubr.msk.f32.mxu1 %vm11670_vm0, %v11669_v0 }
0x16c4   : > { %10004 = vmatprep.subr.mxu1 %v11669_v0 }
0x16c5   : > { %v5072_v22 = vpop.permute.xlu0 %5071 }
0x16c6   : > { %9997 = vmatmul.mubr.msk.f32.vlgmr.msra.gmra.mxu1 %vm2370_vm4, %v5072_v22 }
0x16c7   : > { %10012 = vmatprep.mubr.msk.f32.mxu1 %vm11670_vm0, %v11669_v0  ;;  %10005 = vmatpush3.msra.mxu1 %v4494_v12 }
0x16c8   : > { %10006 = vmatprep.subr.mxu1 %v11669_v0 }
0x16c9   : > { %10007 = vmatpush3.msra.mxu1 %v4493_v17  ;;  %v9365_v17 = vld [vmem:[#allocation46] ss:$0 sm:$0xff] }
0x16ca   : > { %10008 = vmatprep.subr.mxu1 %v11669_v0 }
0x16cb   : > { %10009 = vmatpush3.msra.mxu1 %v4492_v18 }
0x16cc   : > { %10010 = vmatprep.subr.mxu1 %v11669_v0 }
0x16cd   : > { %10011 = vmatpush3.msra.mxu1 %v4491_v19  ;;  %v9366_v19 = vld [vmem:[#allocation45] ss:$0 sm:$0xff] }
0x16ce   : > { %10026 = vmatprep.subr.mxu1 %v11669_v0 }
0x1713   : > { %v12617_v23 = vpop.f32.mrf.mxu1 }
0x1715   : > { %v9952_v56 = vpop.f32.mrf.mxu1 }
0x177d   : > { %v4650_v24 = vpop.f32.mrf.mxu0 }
0x177e   : > { %v4815_v25 = vpop.f32.mrf.mxu1  ;;  %v4654_v26 = vsel %vm2370_vm4, %v4650_v24, -inf }
0x177f   : > { %4655 = vmax.xlane.f32.xlu1 %v4654_v26  ;;  %v9968_v27 = vpop.f32.mrf.mxu0  ;;  %v4819_v28 = vsel %vm2370_vm4, %v4815_v25, -inf }
0x1780   : > { %4820 = vmax.xlane.f32.xlu0 %v4819_v28  ;;  %v9978_v29 = vpop.f32.mrf.mxu1 }
0x1782   : > { %v4980_v30 = vpop.f32.mrf.mxu1 }
0x1783   : > { %v4984_v31 = vsel %vm2370_vm4, %v4980_v30, -inf }
0x1784   : > { %4985 = vmax.xlane.f32.xlu0 %v4984_v31  ;;  %v9988_v32 = vpop.f32.mrf.mxu1 }
0x1786   : > { %v5145_v33 = vpop.f32.mrf.mxu1 }
0x1787   : > { %v5149_v34 = vsel %vm2370_vm4, %v5145_v33, -inf }
0x1788   : > { %v9998_v35 = vpop.f32.mrf.mxu1  ;;  %5150 = vmax.xlane.f32.xlu1 %v5149_v34 }
0x1799   : > { %4830 = vrot.lane.b32.xlu1 %v12580_v8, %s13200_s16 }
0x1808   : > { %v4656_v36 = vpop.xlane.xlu1 %4655 }
0x1809   : > { %v4657_v37 = vsub.f32 %v4650_v24, %v4656_v36  ;;  %v4821_v38 = vpop.xlane.xlu0 %4820  ;;  %v9361_v24 = vld [vmem:[#allocation34 + $0x1] ss:$0 sm:$0xff] }
0x180a   : > { %v4822_v39 = vsub.f32 %v4815_v25, %v4821_v38  ;;  %v4421_v25 = vadd.f32 %v9361_v24, %v12617_v23 }
0x180b   : > { %v4658_v40 = vmul.f32 1.442695, %v4657_v37 }
0x180c   : > { %v4823_v11 = vmul.f32 1.442695, %v4822_v39  ;;  %v4424_v26 = vadd.f32 %v4421_v25, %v12547_v49  ;;  %v9384_v25 = vld [vmem:[#allocation12] ss:$0 sm:$0xff] }
0x180d   : > { %10650 = vpow2.f32 %v4658_v40  ;;  %v4986_v51 = vpop.xlane.xlu0 %4985 }
0x180e   : > { %10652 = vpow2.f32 %v4823_v11  ;;  %v4987_v52 = vsub.f32 %v4980_v30, %v4986_v51  ;;  %v4429_v27 = vsel %vm2014_vm3, %v4424_v26, 0.0 }
0x1810   : > { %v4988_v53 = vmul.f32 1.442695, %v4987_v52 }
0x1811   : > { %v5151_v41 = vpop.xlane.xlu1 %5150 }
0x1812   : > { %v5152_v42 = vsub.f32 %v5145_v33, %v5151_v41 }
0x1814   : > { %v5153_v43 = vmul.f32 1.442695, %v5152_v42  ;;  %v9381_v42 = vld [vmem:[#allocation21] ss:$0 sm:$0xff] }
0x1815   : > { %v4831_v58 = vpop.permute.xlu1 %4830 }
0x1816   : > { %10654 = vpow2.f32 %v5153_v43  ;;  %v9363_v43 = vld [vmem:[#allocation42 + $0x1] ss:$0 sm:$0xff] }
0x1817   : > { %10656 = vpow2.f32 %v4988_v53 }
0x181a   : > { %v10651_v44 = vpop.eup %10650 }
0x181b   : > { %v10653_v45 = vpop.eup %10652  ;;  %v4660_v46 = vsel %vm2370_vm4, %v10651_v44, 0.0 }
0x181c   : > { %4661 = vadd.xlane.f32.xlu0 %v4660_v46  ;;  %v4825_v47 = vsel %vm2370_vm4, %v10653_v45, 0.0 }
0x181d   : > { %4826 = vadd.xlane.f32.xlu1 %v4825_v47 }
0x1823   : > { %v10655_v48 = vpop.eup %10654 }
0x1824   : > { %v5155_v50 = vsel %vm2370_vm4, %v10655_v48, 0.0  ;;  %v10657_v55 = vpop.eup %10656 }
0x1825   : > { %5156 = vadd.xlane.f32.xlu1 %v5155_v50  ;;  %v4990_v57 = vsel %vm2370_vm4, %v10657_v55, 0.0 }
0x1832   : > { %4665 = vrot.lane.b32.xlu0 %v12580_v8, %s13201_s2 }
0x1836   : > { %4995 = vrot.lane.b32.xlu1 %v12580_v8, %s13193_s10 }
0x1851   : > { %4991 = vadd.xlane.f32.xlu0 %v4990_v57 }
0x1867   : > { %5160 = vrot.lane.b32.xlu0 %v12580_v8, %s13194_s23 }
0x18a5   : > { %v4662_v59 = vpop.xlane.xlu0 %4661 }
0x18a6   : > { %10658 = vrcp.f32 %v4662_v59  ;;  %v4827_v60 = vpop.xlane.xlu1 %4826 }
0x18a7   : > { %10660 = vrcp.f32 %v4827_v60 }
0x18a9   : > { %v4666_v61 = vpop.permute.xlu0 %4665 }
0x18aa   : > { %9970 = vmatpush3.msra.mxu0 %v4666_v61 }
0x18ab   : > { %9979 = vmatprep.subr.mxu0 %v11669_v0 }
0x18ae   : > { %v5157_v63 = vpop.xlane.xlu1 %5156 }
0x18b2   : > { %v4996_v4 = vpop.permute.xlu1 %4995 }
0x18b3   : > { %v10659_v62 = vpop.eup %10658 }
0x18b4   : > { %v4664_v1 = vmul.f32 %v10659_v62, %v10651_v44  ;;  %v10661_v2 = vpop.eup %10660 }
0x18b5   : > { %v4829_v3 = vmul.f32 %v10661_v2, %v10653_v45  ;;  %v9364_v45 = vld [vmem:[#allocation40 + $0x1] ss:$0 sm:$0xff]  ;;  %v5362_v2 = vld [vmem:[%s13203_s1 + $0x10] sm:$0xff] }
0x18b6   : > { %9972 = vmatmul.mubr.msk.f32.vlgmr.msra.gmra.mxu0 %vm2370_vm4, %v4664_v1  ;;  %v5363_v1 = vld [vmem:[%s13203_s1 + $0x18] sm:$0xff] }
0x18b7   : > { %9980 = vmatpush3.msra.mxu0 %v4831_v58  ;;  %9981 = vmatprep.mubr.msk.f32.mxu0 %vm11670_vm0, %v11669_v0 }
0x18b8   : > { %9989 = vmatprep.subr.mxu0 %v11669_v0 }
0x18ba   : > { %9982 = vmatmul.mubr.msk.f32.vlgmr.msra.gmra.mxu0 %vm2370_vm4, %v4829_v3  ;;  %v5361_v3 = vld [vmem:[%s13203_s1 + $0x8] sm:$0xff] }
0x18bb   : > { %9990 = vmatpush3.msra.mxu0 %v4996_v4  ;;  %9991 = vmatprep.mubr.msk.f32.mxu0 %vm11670_vm0, %v11669_v0  ;;  %v5447_v4 = vld [vmem:[%s13204_s4 + $0x18] sm:$0xff] }
0x18bc   : > { %9999 = vmatprep.subr.mxu0 %v11669_v0 }
0x18da   : > { %v4992_v5 = vpop.xlane.xlu0 %4991 }
0x18db   : > { %10662 = vrcp.f32 %v4992_v5  ;;  %v5360_v5 = vld [vmem:[%s13203_s1] sm:$0xff] }
0x18dc   : > { %10664 = vrcp.f32 %v5157_v63 }
0x18de   : > { %v5161_v9 = vpop.permute.xlu0 %5160 }
0x18e8   : > { %v10663_v6 = vpop.eup %10662 }
0x18e9   : > { %v4994_v7 = vmul.f32 %v10663_v6, %v10657_v55  ;;  %v10665_v8 = vpop.eup %10664  ;;  %v5446_v6 = vld [vmem:[%s13204_s4 + $0x10] sm:$0xff] }
0x18ea   : > { %v5159_v10 = vmul.f32 %v10665_v8, %v10655_v48  ;;  %v5444_v8 = vld [vmem:[%s13204_s4] sm:$0xff] }
0x18eb   : > { %9992 = vmatmul.mubr.msk.f32.vlgmr.msra.gmra.mxu0 %vm2370_vm4, %v4994_v7  ;;  %v5445_v7 = vld [vmem:[%s13204_s4 + $0x8] sm:$0xff] }
0x18ec   : > { %10000 = vmatpush3.msra.mxu0 %v5161_v9  ;;  %10001 = vmatprep.mubr.msk.f32.mxu0 %vm11670_vm0, %v11669_v0 }
0x18ed   : > { %10015 = vmatprep.subr.mxu0 %v11669_v0 }
0x18ef   : > { %10002 = vmatmul.mubr.msk.f32.vlgmr.msra.gmra.mxu0 %vm2370_vm4, %v5159_v10 }
0x18f0   : > { %10023 = vmatprep.mubr.msk.f32.mxu0 %vm11670_vm0, %v11669_v0  ;;  %10016 = vmatpush3.msra.mxu0 %v5363_v1 }
0x18f1   : > { %10017 = vmatprep.subr.mxu0 %v11669_v0 }
0x18f2   : > { %10018 = vmatpush3.msra.mxu0 %v5362_v2 }
0x18f3   : > { %10019 = vmatprep.subr.mxu0 %v11669_v0 }
0x18f4   : > { %10020 = vmatpush3.msra.mxu0 %v5361_v3 }
0x18f5   : > { %10021 = vmatprep.subr.mxu0 %v11669_v0 }
0x18f6   : > { %10022 = vmatpush3.msra.mxu0 %v5360_v5 }
0x18f7   : > { %10037 = vmatprep.subr.mxu0 %v11669_v0 }
0x1976   : > { %v4737_v13 = vpop.f32.mrf.mxu0 }
0x1978   : > { %v9973_v14 = vpop.f32.mrf.mxu0 }
0x197a   : > { %v4902_v15 = vpop.f32.mrf.mxu0 }
0x197b   : > { %5237 = vrot.lane.b32.xlu1 %v4902_v15, %s13195_s3 }
0x197c   : > { %v9983_v16 = vpop.f32.mrf.mxu0 }
0x19ab   : > { %v5067_v20 = vpop.f32.mrf.mxu0 }
0x19ac   : > { %5241 = vrot.lane.b32.xlu0 %v5067_v20, %s13202_s18 }
0x19ad   : > { %v9993_v21 = vpop.f32.mrf.mxu0 }
0x19af   : > { %v5232_v22 = vpop.f32.mrf.mxu0 }
0x19b0   : > { %5245 = vrot.lane.b32.xlu1 %v5232_v22, %s13196_s28  ;;  %v9383_v22 = vld [vmem:[#allocation13] ss:$0 sm:$0xff] }
0x19b1   : > { %v10003_v56 = vpop.f32.mrf.mxu0 }
0x19cb   : > { %4430 = vadd.xlane.f32.xlu0 %v4429_v27 }
0x19ed   : > { %v5238_v28 = vpop.permute.xlu1 %5237 }
0x19ee   : > { %v5248_v30 = vsel %vm2370_vm4, %v4737_v13, %v5238_v28  ;;  %v9385_v28 = vld [vmem:[#allocation2] ss:$0 sm:$0xff] }
0x1a1e   : > { %v5242_v29 = vpop.permute.xlu0 %5241 }
0x1a1f   : > { %v5249_v31 = vsel %vm3041_vm5, %v5248_v30, %v5242_v29 }
0x1a22   : > { %v5246_v32 = vpop.permute.xlu1 %5245 }
0x1a23   : > { %v5250_v33 = vsel %vm3043_vm6, %v5249_v31, %v5246_v32  ;;  %v9387_v32 = vld [vmem:[#allocation6] ss:$0 sm:$0xff] }
0x1a24   : > { %10013 = vmatmul.mubr.msk.f32.vlgmr.msra.gmra.mxu1 %vm2014_vm3, %v5250_v33 }
0x1a25   : > { %10034 = vmatprep.mubr.msk.f32.mxu1 %vm11670_vm0, %v11669_v0  ;;  %10027 = vmatpush3.msra.mxu1 %v5447_v4 }
0x1a26   : > { %10028 = vmatprep.subr.mxu1 %v11669_v0 }
0x1a27   : > { %10029 = vmatpush3.msra.mxu1 %v5446_v6 }
0x1a28   : > { %10030 = vmatprep.subr.mxu1 %v11669_v0 }
0x1a29   : > { %10031 = vmatpush3.msra.mxu1 %v5445_v7 }
0x1a2a   : > { %10032 = vmatprep.subr.mxu1 %v11669_v0 }
0x1a2b   : > { %10033 = vmatpush3.msra.mxu1 %v5444_v8 }
0x1a2c   : > { %10047 = vmatprep.subr.mxu1 %v11669_v0 }
0x1a54   : > { %v4431_v23 = vpop.xlane.xlu0 %4430 }
0x1a55   : > { %v4432_v34 = vmul.f32 0.03125, %v4431_v23 }
0x1a57   : > { %v4433_v49 = vsub.f32 %v4424_v26, %v4432_v34 }
0x1a59   : > { %v4434_v35 = vmul.f32 %v4433_v49, %v4433_v49 }
0x1a5b   : > { %v4435_v36 = vsel %vm2014_vm3, %v4434_v35, 0.0 }
0x1a5c   : > { %4436 = vadd.xlane.f32.xlu1 %v4435_v36 }
0x1ae4   : > { %v5326_v37 = vpop.f32.mrf.mxu1 }
0x1ae5   : > { %v4437_v38 = vpop.xlane.xlu1 %4436  ;;  %v5327_v46 = vadd.f32 %v9381_v42, %v5326_v37 }
0x1ae6   : > { %v4438_v39 = vmul.f32 0.03125, %v4437_v38  ;;  %v10014_v40 = vpop.f32.mrf.mxu1 }
0x1ae7   : > { %v5330_v51 = vadd.f32 %v5327_v46, %v12556_v54 }
0x1ae8   : > { %v4439_v11 = vadd.f32 1e-05, %v4438_v39 }
0x1ae9   : > { %v5333_v52 = vsel %vm2014_vm3, %v5330_v51, 0.0 }
0x1aea   : > { %10666 = vrsqrt.f32 %v4439_v11 }
0x1af7   : > { %v10667_v41 = vpop.eup %10666 }
0x1af8   : > { %v4441_v44 = vmul.f32 %v10667_v41, %v4433_v49 }
0x1afa   : > { %v4448_v47 = vmul.f32 %v9363_v43, %v4441_v44 }
0x1afc   : > { %v4455_v48 = vadd.f32 %v9364_v45, %v4448_v47 }
0x1afe   : > { %v4458_v50 = vsel %vm2014_vm3, %v4455_v48, 0.0 }
0x1aff   : > { %4459 = vadd.xlane.f32.xlu0 %v4458_v50 }
0x1b03   : > { %5334 = vadd.xlane.f32.xlu0 %v5333_v52 }
0x1b88   : > { %v4460_v53 = vpop.xlane.xlu0 %4459 }
0x1b89   : > { %v4461_v55 = vmul.f32 0.03125, %v4460_v53 }
0x1b8b   : > { %v4462_v57 = vsub.f32 %v4455_v48, %v4461_v55 }
0x1b8c   : > { %v5335_v58 = vpop.xlane.xlu0 %5334 }
0x1b8d   : > { %v5336_v59 = vmul.f32 0.03125, %v5335_v58  ;;  %v4463_v60 = vmul.f32 %v4462_v57, %v4462_v57 }
0x1b8f   : > { %v5337_v61 = vsub.f32 %v5330_v51, %v5336_v59  ;;  %v4464_v62 = vsel %vm2014_vm3, %v4463_v60, 0.0 }
0x1b90   : > { %4465 = vadd.xlane.f32.xlu1 %v4464_v62 }
0x1b91   : > { %v5338_v54 = vmul.f32 %v5337_v61, %v5337_v61 }
0x1b93   : > { %v5339_v63 = vsel %vm2014_vm3, %v5338_v54, 0.0 }
0x1b94   : > { %5340 = vadd.xlane.f32.xlu0 %v5339_v63 }
0x1c19   : > { %v4466_v9 = vpop.xlane.xlu1 %4465 }
0x1c1a   : > { %v4467_v10 = vmul.f32 0.03125, %v4466_v9 }
0x1c1c   : > { %v4468_v12 = vadd.f32 1e-05, %v4467_v10 }
0x1c1d   : > { %v5341_v13 = vpop.xlane.xlu0 %5340 }
0x1c1e   : > { %10668 = vrsqrt.f32 %v4468_v12  ;;  %v5342_v14 = vmul.f32 0.03125, %v5341_v13 }
0x1c20   : > { %v5343_v15 = vadd.f32 1e-05, %v5342_v14 }
0x1c22   : > { %10670 = vrsqrt.f32 %v5343_v15 }
0x1c2b   : > { %v10669_v16 = vpop.eup %10668 }
0x1c2c   : > { %v4470_v18 = vmul.f32 %v10669_v16, %v4462_v57 }
0x1c2e   : > { %v4477_v20 = vmul.f32 %v9365_v17, %v4470_v18 }
0x1c2f   : > { %v10671_v21 = vpop.eup %10670 }
0x1c30   : > { %v5345_v56 = vmul.f32 %v10671_v21, %v5337_v61  ;;  %v12689_v24 = vadd.f32 %v9366_v19, %v4477_v20 }
0x1c32   : > { %10024 = vmatmul.mubr.msk.f32.vlgmr.msra.gmra.mxu0 %vm2014_vm3, %v12689_v24  ;;  %v5352_v26 = vmul.f32 %v9383_v22, %v5345_v56 }
0x1c33   : > { %10039 = vmatprep.mubr.msk.f32.mxu0 %vm11670_vm0, %v11669_v0 }
0x1c34   : > { %v12695_v27 = vadd.f32 %v9384_v25, %v5352_v26 }
0x1c36   : > { %10035 = vmatmul.mubr.msk.f32.vlgmr.msra.gmra.mxu1 %vm2014_vm3, %v12695_v27 }
0x1c37   : > { %10049 = vmatprep.mubr.msk.f32.mxu1 %vm11670_vm0, %v11669_v0 }
0x1cf2   : > { %v5440_v29 = vpop.f32.mrf.mxu0 }
0x1cf3   : > { %v12701_v30 = vadd.f32 %v9385_v28, %v5440_v29 }
0x1cf4   : > { %v10025_v31 = vpop.f32.mrf.mxu0 }
0x1cf5   : > { %5699 = vrot.lane.b32.xlu1 %v12701_v30, %s13205_s5  ;;  %10038 = vmatpush3.xpose.msk.msra.mxu0 %vm2370_vm4, %v12701_v30 }
0x1cf6   : > { %v5529_v33 = vpop.f32.mrf.mxu1  ;;  %10042 = vmatprep.subr.mxu0 %v11669_v0 }
0x1cf7   : > { %v5530_v23 = vadd.f32 %v9387_v32, %v5529_v33  ;;  %v5452_v32 = vld [vmem:[%s13210_s15 + $0x18] sm:$0xff]  ;;  %v5451_v33 = vld [vmem:[%s13210_s15 + $0x10] sm:$0xff] }
0x1cf8   : > { %v10036_v34 = vpop.f32.mrf.mxu1 }
0x1cf9   : > { %v5533_v49 = vmul.f32 0.35355338, %v5530_v23  ;;  %5864 = vrot.lane.b32.xlu1 %v12701_v30, %s13198_s26  ;;  %v5450_v23 = vld [vmem:[%s13210_s15 + $0x8] sm:$0xff]  ;;  %v5449_v34 = vld [vmem:[%s13210_s15] sm:$0xff] }
0x1cfb   : > { %5697 = vrot.lane.b32.xlu0 %v5533_v49, %s13205_s5  ;;  %10040 = vmatmul.mubr.msk.f32.vlgmr.msra.gmra.mxu0 %vm2370_vm4, %v5533_v49 }
0x1cfc   : > { %10044 = vmatprep.mubr.msk.f32.mxu0 %vm11670_vm0, %v11669_v0 }
0x1cfd   : > { %5862 = vrot.lane.b32.xlu1 %v5533_v49, %s13198_s26 }
0x1cff   : > { %6029 = vrot.lane.b32.xlu0 %v12701_v30, %s13199_s11 }
0x1d01   : > { %6027 = vrot.lane.b32.xlu1 %v5533_v49, %s13199_s11 }
0x1d67   : > { %v5700_v35 = vpop.permute.xlu1 %5699 }
0x1d68   : > { %10048 = vmatpush3.xpose.msk.msra.mxu1 %vm2370_vm4, %v5700_v35 }
0x1d69   : > { %10057 = vmatprep.subr.mxu1 %v11669_v0 }
0x1d6b   : > { %v5865_v36 = vpop.permute.xlu1 %5864 }
0x1d6d   : > { %v5698_v37 = vpop.permute.xlu0 %5697 }
0x1d6e   : > { %10050 = vmatmul.mubr.msk.f32.vlgmr.msra.gmra.mxu1 %vm2370_vm4, %v5698_v37 }
0x1d6f   : > { %10058 = vmatpush3.xpose.msk.msra.mxu1 %vm2370_vm4, %v5865_v36  ;;  %v5863_v38 = vpop.permute.xlu1 %5862  ;;  %10059 = vmatprep.mubr.msk.f32.mxu1 %vm11670_vm0, %v11669_v0 }
0x1d70   : > { %10067 = vmatprep.subr.mxu1 %v11669_v0 }
0x1d71   : > { %v6030_v39 = vpop.permute.xlu0 %6029 }
0x1d72   : > { %10060 = vmatmul.mubr.msk.f32.vlgmr.msra.gmra.mxu1 %vm2370_vm4, %v5863_v38 }
0x1d73   : > { %10068 = vmatpush3.xpose.msk.msra.mxu1 %vm2370_vm4, %v6030_v39  ;;  %10069 = vmatprep.mubr.msk.f32.mxu1 %vm11670_vm0, %v11669_v0  ;;  %v6028_v40 = vpop.permute.xlu1 %6027 }
0x1d74   : > { %10077 = vmatprep.subr.mxu1 %v11669_v0 }
0x1d76   : > { %10070 = vmatmul.mubr.msk.f32.vlgmr.msra.gmra.mxu1 %vm2370_vm4, %v6028_v40 }
0x1d77   : > { %10085 = vmatprep.mubr.msk.f32.mxu1 %vm11670_vm0, %v11669_v0  ;;  %10078 = vmatpush3.msra.mxu1 %v5452_v32 }
0x1d78   : > { %10079 = vmatprep.subr.mxu1 %v11669_v0 }
0x1d79   : > { %10080 = vmatpush3.msra.mxu1 %v5451_v33 }
0x1d7a   : > { %10081 = vmatprep.subr.mxu1 %v11669_v0 }
0x1d7b   : > { %10082 = vmatpush3.msra.mxu1 %v5450_v23 }
0x1d7c   : > { %10083 = vmatprep.subr.mxu1 %v11669_v0 }
0x1d7d   : > { %10084 = vmatpush3.msra.mxu1 %v5449_v34 }
0x1d7e   : > { %10099 = vmatprep.subr.mxu1 %v11669_v0 }
0x1dbb   : > { %v5606_v11 = vpop.f32.mrf.mxu0 }
0x1dbc   : > { %v5610_v41 = vsel %vm2370_vm4, %v5606_v11, -inf }
0x1dbd   : > { %5611 = vmax.xlane.f32.xlu0 %v5610_v41  ;;  %v10041_v42 = vpop.f32.mrf.mxu0 }
0x1e2e   : > { %v5771_v43 = vpop.f32.mrf.mxu1 }
0x1e2f   : > { %v5775_v44 = vsel %vm2370_vm4, %v5771_v43, -inf }
0x1e30   : > { %5776 = vmax.xlane.f32.xlu1 %v5775_v44  ;;  %v10051_v45 = vpop.f32.mrf.mxu1 }
0x1e31   : > { %v9401_v45 = vld [vmem:[#allocation4] ss:$0 sm:$0xff] }
0x1e32   : > { %v5936_v46 = vpop.f32.mrf.mxu1 }
0x1e33   : > { %v5940_v47 = vsel %vm2370_vm4, %v5936_v46, -inf }
0x1e34   : > { %v10061_v48 = vpop.f32.mrf.mxu1  ;;  %5941 = vmax.xlane.f32.xlu0 %v5940_v47 }
0x1e36   : > { %v6101_v50 = vpop.f32.mrf.mxu1 }
0x1e37   : > { %v6105_v51 = vsel %vm2370_vm4, %v6101_v50, -inf }
0x1e38   : > { %v10071_v52 = vpop.f32.mrf.mxu1  ;;  %6106 = vmax.xlane.f32.xlu0 %v6105_v51 }
0x1e41   : > { %5621 = vrot.lane.b32.xlu1 %v12701_v30, %s13206_s6 }
0x1e46   : > { %v5612_v53 = vpop.xlane.xlu0 %5611 }
0x1e47   : > { %v5613_v55 = vsub.f32 %v5606_v11, %v5612_v53 }
0x1e49   : > { %v5614_v57 = vmul.f32 1.442695, %v5613_v55 }
0x1e4b   : > { %10672 = vpow2.f32 %v5614_v57 }
0x1e58   : > { %v10673_v58 = vpop.eup %10672 }
0x1e59   : > { %v5616_v59 = vsel %vm2370_vm4, %v10673_v58, 0.0 }
0x1e65   : > { %5617 = vadd.xlane.f32.xlu1 %v5616_v59  ;;  %v6319_v59 = vld [vmem:[#allocation10 + $0x18] sm:$0xff] }
0x1eb9   : > { %v5777_v60 = vpop.xlane.xlu1 %5776 }
0x1eba   : > { %v5778_v61 = vsub.f32 %v5771_v43, %v5777_v60  ;;  %v6318_v60 = vld [vmem:[#allocation10 + $0x10] sm:$0xff] }
0x1ebc   : > { %v5779_v62 = vmul.f32 1.442695, %v5778_v61  ;;  %v6317_v61 = vld [vmem:[#allocation10 + $0x8] sm:$0xff] }
0x1ebd   : > { %v5622_v54 = vpop.permute.xlu1 %5621  ;;  %v5942_v63 = vpop.xlane.xlu0 %5941 }
0x1ebe   : > { %10674 = vpow2.f32 %v5779_v62  ;;  %v5943_v1 = vsub.f32 %v5936_v46, %v5942_v63  ;;  %10043 = vmatpush3.msra.mxu0 %v5622_v54 }
0x1ebf   : > { %10052 = vmatprep.subr.mxu0 %v11669_v0 }
0x1ec0   : > { %v5944_v2 = vmul.f32 1.442695, %v5943_v1 }
0x1ec1   : > { %v6107_v3 = vpop.xlane.xlu0 %6106 }
0x1ec2   : > { %10676 = vpow2.f32 %v5944_v2  ;;  %v6108_v4 = vsub.f32 %v6101_v50, %v6107_v3  ;;  %v9403_v2 = vld [vmem:[#allocation16] ss:$0 sm:$0xff] }
0x1ec4   : > { %v6109_v5 = vmul.f32 1.442695, %v6108_v4  ;;  %v9404_v4 = vld [vmem:[#allocation15] ss:$0 sm:$0xff] }
0x1ec6   : > { %10678 = vpow2.f32 %v6109_v5 }
0x1ecb   : > { %v10675_v6 = vpop.eup %10674 }
0x1ecc   : > { %v5781_v7 = vsel %vm2370_vm4, %v10675_v6, 0.0 }
0x1ecd   : > { %5782 = vadd.xlane.f32.xlu0 %v5781_v7  ;;  %v6412_v7 = vld [vmem:[%s13211_s17 + $0x38] sm:$0xff] }
0x1ecf   : > { %v10677_v8 = vpop.eup %10676 }
0x1ed0   : > { %v5946_v9 = vsel %vm2370_vm4, %v10677_v8, 0.0 }
0x1ed1   : > { %5947 = vadd.xlane.f32.xlu1 %v5946_v9  ;;  %v6410_v9 = vld [vmem:[%s13211_s17 + $0x28] sm:$0xff] }
0x1ed3   : > { %v10679_v10 = vpop.eup %10678 }
0x1ed4   : > { %v6111_v12 = vsel %vm2370_vm4, %v10679_v10, 0.0 }
0x1ed5   : > { %6112 = vadd.xlane.f32.xlu0 %v6111_v12  ;;  %v6408_v12 = vld [vmem:[%s13211_s17 + $0x18] sm:$0xff] }
0x1ee2   : > { %5951 = vrot.lane.b32.xlu1 %v12701_v30, %s13207_s12 }
0x1ee6   : > { %6116 = vrot.lane.b32.xlu1 %v12701_v30, %s13208_s13 }
0x1eeb   : > { %5786 = vrot.lane.b32.xlu0 %v12701_v30, %s13209_s14 }
0x1eee   : > { %v5618_v13 = vpop.xlane.xlu1 %5617 }
0x1eef   : > { %10680 = vrcp.f32 %v5618_v13  ;;  %v6407_v13 = vld [vmem:[%s13211_s17 + $0x10] sm:$0xff] }
0x1efc   : > { %v10681_v14 = vpop.eup %10680 }
0x1efd   : > { %v5620_v15 = vmul.f32 %v10681_v14, %v10673_v58  ;;  %v6406_v14 = vld [vmem:[%s13211_s17 + $0x8] sm:$0xff] }
0x1eff   : > { %10045 = vmatmul.mubr.msk.f32.vlgmr.msra.gmra.mxu0 %vm2370_vm4, %v5620_v15  ;;  %v6405_v15 = vld [vmem:[%s13211_s17] sm:$0xff] }
0x1f00   : > { %10054 = vmatprep.mubr.msk.f32.mxu0 %vm11670_vm0, %v11669_v0 }
0x1f56   : > { %v5783_v16 = vpop.xlane.xlu0 %5782 }
0x1f57   : > { %10682 = vrcp.f32 %v5783_v16  ;;  %v9405_v16 = vld [vmem:[#allocation7] ss:$0 sm:$0xff] }
0x1f5a   : > { %v5948_v17 = vpop.xlane.xlu1 %5947 }
0x1f5b   : > { %10684 = vrcp.f32 %v5948_v17 }
0x1f5e   : > { %v6113_v18 = vpop.xlane.xlu0 %6112  ;;  %v5952_v21 = vpop.permute.xlu1 %5951 }
0x1f5f   : > { %10686 = vrcp.f32 %v6113_v18 }
0x1f62   : > { %v5787_v19 = vpop.permute.xlu0 %5786  ;;  %v6117_v26 = vpop.permute.xlu1 %6116 }
0x1f63   : > { %10053 = vmatpush3.msra.mxu0 %v5787_v19 }
0x1f64   : > { %v10683_v20 = vpop.eup %10682  ;;  %10062 = vmatprep.subr.mxu0 %v11669_v0 }
0x1f65   : > { %v5785_v22 = vmul.f32 %v10683_v20, %v10675_v6 }
0x1f67   : > { %10055 = vmatmul.mubr.msk.f32.vlgmr.msra.gmra.mxu0 %vm2370_vm4, %v5785_v22 }
0x1f68   : > { %v10685_v56 = vpop.eup %10684  ;;  %10063 = vmatpush3.msra.mxu0 %v5952_v21  ;;  %10064 = vmatprep.mubr.msk.f32.mxu0 %vm11670_vm0, %v11669_v0 }
0x1f69   : > { %10072 = vmatprep.subr.mxu0 %v11669_v0  ;;  %v5950_v25 = vmul.f32 %v10685_v56, %v10677_v8  ;;  %v6411_v8 = vld [vmem:[%s13211_s17 + $0x30] sm:$0xff] }
0x1f6b   : > { %10065 = vmatmul.mubr.msk.f32.vlgmr.msra.gmra.mxu0 %vm2370_vm4, %v5950_v25 }
0x1f6c   : > { %v10687_v28 = vpop.eup %10686  ;;  %10073 = vmatpush3.msra.mxu0 %v6117_v26  ;;  %10074 = vmatprep.mubr.msk.f32.mxu0 %vm11670_vm0, %v11669_v0  ;;  %v9407_v26 = vld [vmem:[#allocation9] ss:$0 sm:$0xff] }
0x1f6d   : > { %v6115_v29 = vmul.f32 %v10687_v28, %v10679_v10  ;;  %10088 = vmatprep.subr.mxu0 %v11669_v0  ;;  %v6409_v10 = vld [vmem:[%s13211_s17 + $0x20] sm:$0xff] }
0x1f6f   : > { %10075 = vmatmul.mubr.msk.f32.vlgmr.msra.gmra.mxu0 %vm2370_vm4, %v6115_v29 }
0x1f70   : > { %10096 = vmatprep.mubr.msk.f32.mxu0 %vm11670_vm0, %v11669_v0  ;;  %10089 = vmatpush3.msra.mxu0 %v6319_v59 }
0x1f71   : > { %10090 = vmatprep.subr.mxu0 %v11669_v0 }
0x1f72   : > { %10091 = vmatpush3.msra.mxu0 %v6318_v60 }
0x1f73   : > { %10092 = vmatprep.subr.mxu0 %v11669_v0 }
0x1f74   : > { %10093 = vmatpush3.msra.mxu0 %v6317_v61 }
0x1f75   : > { %10094 = vmatprep.subr.mxu0 %v11669_v0 }
0x1fbf   : > { %v5693_v30 = vpop.f32.mrf.mxu0 }
0x1fc1   : > { %v10046_v31 = vpop.f32.mrf.mxu0 }
0x2027   : > { %v5858_v49 = vpop.f32.mrf.mxu0 }
0x2028   : > { %6193 = vrot.lane.b32.xlu0 %v5858_v49, %s13195_s3 }
0x2029   : > { %v10056_v35 = vpop.f32.mrf.mxu0 }
0x202b   : > { %v6023_v36 = vpop.f32.mrf.mxu0 }
0x202c   : > { %6197 = vrot.lane.b32.xlu1 %v6023_v36, %s13202_s18  ;;  %v6527_v36 = vld [vmem:[#allocation25 + $0x38] sm:$0xff] }
0x202d   : > { %v10066_v37 = vpop.f32.mrf.mxu0 }
0x202e   : > { %v6526_v37 = vld [vmem:[#allocation25 + $0x30] sm:$0xff] }
0x202f   : > { %v6188_v38 = vpop.f32.mrf.mxu0 }
0x2030   : > { %6201 = vrot.lane.b32.xlu0 %v6188_v38, %s13196_s28  ;;  %v6525_v38 = vld [vmem:[#allocation25 + $0x28] sm:$0xff] }
0x2031   : > { %v10076_v39 = vpop.f32.mrf.mxu0 }
0x2032   : > { %v6524_v39 = vld [vmem:[#allocation25 + $0x20] sm:$0xff] }
0x209a   : > { %v6194_v40 = vpop.permute.xlu0 %6193 }
0x209b   : > { %v6204_v41 = vsel %vm2370_vm4, %v5693_v30, %v6194_v40 }
0x209e   : > { %v6198_v11 = vpop.permute.xlu1 %6197 }
0x209f   : > { %v6205_v42 = vsel %vm3041_vm5, %v6204_v41, %v6198_v11 }
0x20a2   : > { %v6202_v43 = vpop.permute.xlu0 %6201 }
0x20a3   : > { %v6206_v44 = vsel %vm3043_vm6, %v6205_v42, %v6202_v43  ;;  %v9409_v43 = vld [vmem:[#allocation19] ss:$0 sm:$0xff] }
0x20a4   : > { %10086 = vmatmul.mubr.msk.f32.vlgmr.msra.gmra.mxu1 %vm2014_vm3, %v6206_v44 }
0x20a5   : > { %10115 = vmatprep.mubr.msk.f32.mxu1 %vm11670_vm0, %v11669_v0  ;;  %10100 = vmatpush3.msra.mxu1 %v6412_v7 }
0x20a6   : > { %10101 = vmatprep.subr.mxu1 %v11669_v0 }
0x20a7   : > { %10102 = vmatpush3.msra.mxu1 %v6411_v8 }
0x20a8   : > { %10103 = vmatprep.subr.mxu1 %v11669_v0 }
0x20a9   : > { %10104 = vmatpush3.msra.mxu1 %v6410_v9 }
0x20aa   : > { %10105 = vmatprep.subr.mxu1 %v11669_v0 }
0x20ab   : > { %10106 = vmatpush3.msra.mxu1 %v6409_v10 }
0x20ac   : > { %10107 = vmatprep.subr.mxu1 %v11669_v0 }
0x20ad   : > { %10108 = vmatpush3.msra.mxu1 %v6408_v12 }
0x20ae   : > { %10109 = vmatprep.subr.mxu1 %v11669_v0 }
0x20af   : > { %10110 = vmatpush3.msra.mxu1 %v6407_v13 }
0x20b0   : > { %10111 = vmatprep.subr.mxu1 %v11669_v0 }
0x20b1   : > { %10112 = vmatpush3.msra.mxu1 %v6406_v14 }
0x20b2   : > { %10113 = vmatprep.subr.mxu1 %v11669_v0 }
0x20b3   : > { %10114 = vmatpush3.msra.mxu1 %v6405_v15 }
0x20b4   : > { %10139 = vmatprep.subr.mxu1 %v11669_v0 }
0x2164   : > { %v6282_v46 = vpop.f32.mrf.mxu1 }
0x2165   : > { %v6283_v47 = vadd.f32 %v9401_v45, %v6282_v46  ;;  %v9410_v45 = vld [vmem:[#allocation18] ss:$0 sm:$0xff] }
0x2166   : > { %v10087_v48 = vpop.f32.mrf.mxu1 }
0x2167   : > { %v6286_v50 = vadd.f32 %v6283_v47, %v12695_v27  ;;  %v6316_v27 = vld [vmem:[#allocation10] sm:$0xff]  ;;  %v9411_v48 = vld [vmem:[#allocation22 + $0x1] ss:$0 sm:$0xff] }
0x2168   : > { %10095 = vmatpush3.msra.mxu0 %v6316_v27 }
0x2169   : > { %v6289_v51 = vsel %vm2014_vm3, %v6286_v50, 0.0  ;;  %10118 = vmatprep.subr.mxu0 %v11669_v0 }
0x216a   : > { %6290 = vadd.xlane.f32.xlu1 %v6289_v51 }
0x21f3   : > { %v6291_v52 = vpop.xlane.xlu1 %6290 }
0x21f4   : > { %v6292_v53 = vmul.f32 0.03125, %v6291_v52 }
0x21f6   : > { %v6293_v55 = vsub.f32 %v6286_v50, %v6292_v53 }
0x21f8   : > { %v6294_v57 = vmul.f32 %v6293_v55, %v6293_v55 }
0x21fa   : > { %v6295_v58 = vsel %vm2014_vm3, %v6294_v57, 0.0 }
0x21fb   : > { %6296 = vadd.xlane.f32.xlu0 %v6295_v58 }
0x2284   : > { %v6297_v62 = vpop.xlane.xlu0 %6296 }
0x2285   : > { %v6298_v54 = vmul.f32 0.03125, %v6297_v62 }
0x2287   : > { %v6299_v63 = vadd.f32 1e-05, %v6298_v54 }
0x2289   : > { %10688 = vrsqrt.f32 %v6299_v63 }
0x2296   : > { %v10689_v1 = vpop.eup %10688 }
0x2297   : > { %v6301_v3 = vmul.f32 %v10689_v1, %v6293_v55 }
0x2299   : > { %v6308_v5 = vmul.f32 %v9403_v2, %v6301_v3 }
0x229b   : > { %v6315_v6 = vadd.f32 %v9404_v4, %v6308_v5 }
0x229d   : > { %10097 = vmatmul.mubr.msk.f32.vlgmr.msra.gmra.mxu0 %vm2014_vm3, %v6315_v6 }
0x229e   : > { %10126 = vmatprep.mubr.msk.f32.mxu0 %vm11670_vm0, %v11669_v0  ;;  %10119 = vmatpush3.msra.mxu0 %v6527_v36 }
0x229f   : > { %10120 = vmatprep.subr.mxu0 %v11669_v0 }
0x22a0   : > { %10121 = vmatpush3.msra.mxu0 %v6526_v37 }
0x22a1   : > { %10122 = vmatprep.subr.mxu0 %v11669_v0 }
0x22a2   : > { %10123 = vmatpush3.msra.mxu0 %v6525_v38 }
0x22a3   : > { %10124 = vmatprep.subr.mxu0 %v11669_v0 }
0x22a4   : > { %10125 = vmatpush3.msra.mxu0 %v6524_v39 }
0x22a5   : > { %10129 = vmatprep.subr.mxu0 %v11669_v0 }
0x235d   : > { %v6396_v17 = vpop.f32.mrf.mxu0 }
0x235e   : > { %v6397_v18 = vadd.f32 %v9405_v16, %v6396_v17 }
0x235f   : > { %v10098_v19 = vpop.f32.mrf.mxu0 }
0x2360   : > { %v6401_v20 = vmul.f32 0.70710677, %v6397_v18  ;;  %v6400_v22 = vmul.f32 0.5, %v6397_v18 }
0x2362   : > { %10690 = verf.f32 %v6401_v20 }
0x236f   : > { %v10691_v21 = vpop.eup %10690 }
0x2370   : > { %v6403_v56 = vadd.f32 1.0, %v10691_v21 }
0x2372   : > { %v6404_v25 = vmul.f32 %v6403_v56, %v6400_v22 }
0x2374   : > { %10116 = vmatmul.mubr.msk.f32.vlgmr.msra.gmra.mxu1 %vm3259_vm7, %v6404_v25 }
0x2375   : > { %10141 = vmatprep.mubr.msk.f32.mxu1 %vm11670_vm0, %v11669_v0 }
0x2434   : > { %v6489_v28 = vpop.f32.mrf.mxu1 }
0x2435   : > { %v6490_v29 = vadd.f32 %v9407_v26, %v6489_v28 }
0x2436   : > { %v10117_v30 = vpop.f32.mrf.mxu1 }
0x2437   : > { %v6493_v31 = vadd.f32 %v6490_v29, %v6315_v6 }
0x2439   : > { %v6496_v32 = vsel %vm2014_vm3, %v6493_v31, 0.0 }
0x243a   : > { %6497 = vadd.xlane.f32.xlu0 %v6496_v32 }
0x24c3   : > { %v6498_v33 = vpop.xlane.xlu0 %6497 }
0x24c4   : > { %v6499_v23 = vmul.f32 0.03125, %v6498_v33 }
0x24c6   : > { %v6500_v34 = vsub.f32 %v6493_v31, %v6499_v23 }
0x24c8   : > { %v6501_v49 = vmul.f32 %v6500_v34, %v6500_v34 }
0x24ca   : > { %v6502_v35 = vsel %vm2014_vm3, %v6501_v49, 0.0 }
0x24cb   : > { %6503 = vadd.xlane.f32.xlu1 %v6502_v35 }
0x2554   : > { %v6504_v40 = vpop.xlane.xlu1 %6503 }
0x2555   : > { %v6505_v11 = vmul.f32 0.03125, %v6504_v40 }
0x2557   : > { %v6506_v41 = vadd.f32 1e-05, %v6505_v11 }
0x2559   : > { %10692 = vrsqrt.f32 %v6506_v41 }
0x2566   : > { %v10693_v42 = vpop.eup %10692 }
0x2567   : > { %v6508_v44 = vmul.f32 %v10693_v42, %v6500_v34 }
0x2569   : > { %v6515_v46 = vmul.f32 %v9409_v43, %v6508_v44 }
0x256b   : > { %v12817_v47 = vadd.f32 %v9410_v45, %v6515_v46  ;;  %v9432_v46 = vld [vmem:[%s13203_s1 + $0x38] sm:$0xff] }
0x256d   : > { %10127 = vmatmul.mubr.msk.f32.vlgmr.msra.gmra.mxu0 %vm2014_vm3, %v12817_v47 }
0x256e   : > { %10131 = vmatprep.mubr.msk.f32.mxu0 %vm11670_vm0, %v11669_v0 }
0x262d   : > { %v6612_v50 = vpop.f32.mrf.mxu0 }
0x262e   : > { %v12823_v51 = vadd.f32 %v9411_v48, %v6612_v50  ;;  %v9431_v48 = vld [vmem:[%s13203_s1 + $0x30] sm:$0xff]  ;;  %v9430_v50 = vld [vmem:[%s13203_s1 + $0x28] sm:$0xff] }
0x262f   : > { %v10128_v52 = vpop.f32.mrf.mxu0 }
0x2630   : > { %6784 = vrot.lane.b32.xlu1 %v12823_v51, %s13209_s14  ;;  %6618 = vrot.lane.b32.xlu0 %v12823_v51, %s13206_s6  ;;  %v6616_v53 = vmul.f32 0.35355338, %v12823_v51  ;;  %v6534_v52 = vld [vmem:[#allocation24 + $0x38] sm:$0xff] }
0x2634   : > { %6949 = vrot.lane.b32.xlu0 %v12823_v51, %s13207_s12  ;;  %6782 = vrot.lane.b32.xlu1 %v6616_v53, %s13205_s5 }
0x2638   : > { %7114 = vrot.lane.b32.xlu0 %v12823_v51, %s13208_s13  ;;  %6947 = vrot.lane.b32.xlu1 %v6616_v53, %s13198_s26 }
0x263c   : > { %7112 = vrot.lane.b32.xlu1 %v6616_v53, %s13199_s11 }
0x26a2   : > { %v6785_v55 = vpop.permute.xlu1 %6784  ;;  %v6619_v57 = vpop.permute.xlu0 %6618 }
0x26a3   : > { %10130 = vmatpush3.xpose.msk.msra.mxu0 %vm2370_vm4, %v6619_v57  ;;  %10140 = vmatpush3.xpose.msk.msra.mxu1 %vm2370_vm4, %v6785_v55  ;;  %v6532_v55 = vld [vmem:[#allocation24 + $0x28] sm:$0xff] }
0x26a4   : > { %10149 = vmatprep.subr.mxu1 %v11669_v0  ;;  %10134 = vmatprep.subr.mxu0 %v11669_v0 }
0x26a6   : > { %v6950_v58 = vpop.permute.xlu0 %6949  ;;  %v6783_v59 = vpop.permute.xlu1 %6782  ;;  %10132 = vmatmul.mubr.msk.f32.vlgmr.msra.gmra.mxu0 %vm2370_vm4, %v6616_v53  ;;  %v6533_v53 = vld [vmem:[#allocation24 + $0x30] sm:$0xff] }
0x26a7   : > { %10142 = vmatmul.mubr.msk.f32.vlgmr.msra.gmra.mxu1 %vm2370_vm4, %v6783_v59  ;;  %10136 = vmatprep.mubr.msk.f32.mxu0 %vm11670_vm0, %v11669_v0 }
0x26a8   : > { %10150 = vmatpush3.xpose.msk.msra.mxu1 %vm2370_vm4, %v6950_v58  ;;  %10151 = vmatprep.mubr.msk.f32.mxu1 %vm11670_vm0, %v11669_v0  ;;  %v6531_v58 = vld [vmem:[#allocation24 + $0x20] sm:$0xff] }
0x26a9   : > { %10159 = vmatprep.subr.mxu1 %v11669_v0 }
0x26aa   : > { %v7115_v60 = vpop.permute.xlu0 %7114  ;;  %v6948_v61 = vpop.permute.xlu1 %6947 }
0x26ab   : > { %10152 = vmatmul.mubr.msk.f32.vlgmr.msra.gmra.mxu1 %vm2370_vm4, %v6948_v61 }
0x26ac   : > { %10160 = vmatpush3.xpose.msk.msra.mxu1 %vm2370_vm4, %v7115_v60  ;;  %10161 = vmatprep.mubr.msk.f32.mxu1 %vm11670_vm0, %v11669_v0 }
0x26ad   : > { %10169 = vmatprep.subr.mxu1 %v11669_v0 }
0x26ae   : > { %v7113_v27 = vpop.permute.xlu1 %7112 }
0x26af   : > { %10162 = vmatmul.mubr.msk.f32.vlgmr.msra.gmra.mxu1 %vm2370_vm4, %v7113_v27 }
0x26b0   : > { %10177 = vmatprep.mubr.msk.f32.mxu1 %vm11670_vm0, %v11669_v0  ;;  %10170 = vmatpush3.msra.mxu1 %v6534_v52 }
0x26b1   : > { %10171 = vmatprep.subr.mxu1 %v11669_v0 }
0x26b2   : > { %10172 = vmatpush3.msra.mxu1 %v6533_v53 }
0x26b3   : > { %10173 = vmatprep.subr.mxu1 %v11669_v0 }
0x26b4   : > { %10174 = vmatpush3.msra.mxu1 %v6532_v55 }
0x26b5   : > { %10175 = vmatprep.subr.mxu1 %v11669_v0 }
0x26b6   : > { %10176 = vmatpush3.msra.mxu1 %v6531_v58 }
0x26b7   : > { %10191 = vmatprep.subr.mxu1 %v11669_v0 }
0x2766   : > { %v6691_v62 = vpop.f32.mrf.mxu0 }
0x2767   : > { %v6856_v54 = vpop.f32.mrf.mxu1  ;;  %v6695_v63 = vsel %vm2370_vm4, %v6691_v62, -inf }
0x2768   : > { %6696 = vmax.xlane.f32.xlu0 %v6695_v63  ;;  %v10133_v1 = vpop.f32.mrf.mxu0  ;;  %v6860_v2 = vsel %vm2370_vm4, %v6856_v54, -inf  ;;  %v9433_v63 = vld [vmem:[#allocation2 + $0x1] ss:$0 sm:$0xff] }
0x2769   : > { %6861 = vmax.xlane.f32.xlu1 %v6860_v2  ;;  %v10143_v3 = vpop.f32.mrf.mxu1 }
0x276b   : > { %v7021_v4 = vpop.f32.mrf.mxu1 }
0x276c   : > { %v7025_v5 = vsel %vm2370_vm4, %v7021_v4, -inf }
0x276d   : > { %v10153_v6 = vpop.f32.mrf.mxu1  ;;  %7026 = vmax.xlane.f32.xlu0 %v7025_v5 }
0x276f   : > { %v7186_v7 = vpop.f32.mrf.mxu1 }
0x2770   : > { %v7190_v8 = vsel %vm2370_vm4, %v7186_v7, -inf }
0x2771   : > { %v10163_v9 = vpop.f32.mrf.mxu1  ;;  %7191 = vmax.xlane.f32.xlu0 %v7190_v8 }
0x277a   : > { %6706 = vrot.lane.b32.xlu1 %v12823_v51, %s13201_s2 }
0x27f1   : > { %v6697_v10 = vpop.xlane.xlu0 %6696 }
0x27f2   : > { %v6698_v12 = vsub.f32 %v6691_v62, %v6697_v10  ;;  %v6862_v13 = vpop.xlane.xlu1 %6861  ;;  %v9425_v10 = vld [vmem:[#allocation21 + $0x1] ss:$0 sm:$0xff] }
0x27f3   : > { %v6863_v14 = vsub.f32 %v6856_v54, %v6862_v13 }
0x27f4   : > { %v6699_v15 = vmul.f32 1.442695, %v6698_v12 }
0x27f5   : > { %v6864_v16 = vmul.f32 1.442695, %v6863_v14 }
0x27f6   : > { %10694 = vpow2.f32 %v6699_v15  ;;  %v6707_v17 = vpop.permute.xlu1 %6706  ;;  %v7027_v18 = vpop.xlane.xlu0 %7026 }
0x27f7   : > { %10696 = vpow2.f32 %v6864_v16  ;;  %v7028_v19 = vsub.f32 %v7021_v4, %v7027_v18  ;;  %10135 = vmatpush3.msra.mxu0 %v6707_v17 }
0x27f8   : > { %10144 = vmatprep.subr.mxu0 %v11669_v0 }
0x27f9   : > { %v7029_v20 = vmul.f32 1.442695, %v7028_v19 }
0x27fa   : > { %v7192_v21 = vpop.xlane.xlu0 %7191 }
0x27fb   : > { %10698 = vpow2.f32 %v7029_v20  ;;  %v7193_v22 = vsub.f32 %v7186_v7, %v7192_v21 }
0x27fd   : > { %v7194_v56 = vmul.f32 1.442695, %v7193_v22  ;;  %v9438_v22 = vld [vmem:[%s13204_s4 + $0x38] sm:$0xff] }
0x27ff   : > { %10700 = vpow2.f32 %v7194_v56  ;;  %v9437_v56 = vld [vmem:[%s13204_s4 + $0x30] sm:$0xff] }
0x2803   : > { %v10695_v25 = vpop.eup %10694 }
0x2804   : > { %v10697_v26 = vpop.eup %10696  ;;  %v6701_v28 = vsel %vm2370_vm4, %v10695_v25, 0.0 }
0x2805   : > { %6702 = vadd.xlane.f32.xlu1 %v6701_v28  ;;  %v6866_v29 = vsel %vm2370_vm4, %v10697_v26, 0.0 }
0x2806   : > { %6867 = vadd.xlane.f32.xlu0 %v6866_v29 }
0x2808   : > { %v10699_v30 = vpop.eup %10698 }
0x2809   : > { %v7031_v31 = vsel %vm2370_vm4, %v10699_v30, 0.0 }
0x280a   : > { %7032 = vadd.xlane.f32.xlu1 %v7031_v31  ;;  %v9427_v31 = vld [vmem:[#allocation13 + $0x1] ss:$0 sm:$0xff] }
0x280c   : > { %v10701_v32 = vpop.eup %10700 }
0x280d   : > { %v7196_v33 = vsel %vm2370_vm4, %v10701_v32, 0.0 }
0x280e   : > { %7197 = vadd.xlane.f32.xlu0 %v7196_v33  ;;  %v9428_v33 = vld [vmem:[#allocation12 + $0x1] ss:$0 sm:$0xff] }
0x281b   : > { %7036 = vrot.lane.b32.xlu1 %v12823_v51, %s13193_s10 }
0x281f   : > { %7201 = vrot.lane.b32.xlu1 %v12823_v51, %s13194_s23 }
0x2824   : > { %6871 = vrot.lane.b32.xlu0 %v12823_v51, %s13200_s16  ;;  %v9429_v51 = vld [vmem:[%s13203_s1 + $0x20] sm:$0xff] }
0x288e   : > { %v6703_v23 = vpop.xlane.xlu1 %6702 }
0x288f   : > { %10702 = vrcp.f32 %v6703_v23  ;;  %v6868_v34 = vpop.xlane.xlu0 %6867 }
0x2890   : > { %10704 = vrcp.f32 %v6868_v34 }
0x2893   : > { %v7033_v49 = vpop.xlane.xlu1 %7032 }
0x2894   : > { %10706 = vrcp.f32 %v7033_v49 }
0x2897   : > { %v7198_v35 = vpop.xlane.xlu0 %7197  ;;  %v7037_v40 = vpop.permute.xlu1 %7036 }
0x2898   : > { %10708 = vrcp.f32 %v7198_v35  ;;  %v9443_v35 = vld [vmem:[#allocation6 + $0x1] ss:$0 sm:$0xff] }
0x289b   : > { %v6872_v39 = vpop.permute.xlu0 %6871  ;;  %v7202_v44 = vpop.permute.xlu1 %7201 }
0x289c   : > { %v10703_v36 = vpop.eup %10702 }
0x289d   : > { %v6705_v37 = vmul.f32 %v10703_v36, %v10695_v25  ;;  %v10705_v38 = vpop.eup %10704  ;;  %v9435_v25 = vld [vmem:[%s13204_s4 + $0x20] sm:$0xff] }
0x289e   : > { %v6870_v11 = vmul.f32 %v10705_v38, %v10697_v26 }
0x289f   : > { %10137 = vmatmul.mubr.msk.f32.vlgmr.msra.gmra.mxu0 %vm2370_vm4, %v6705_v37 }
0x28a0   : > { %10145 = vmatpush3.msra.mxu0 %v6872_v39  ;;  %10146 = vmatprep.mubr.msk.f32.mxu0 %vm11670_vm0, %v11669_v0 }
0x28a1   : > { %10154 = vmatprep.subr.mxu0 %v11669_v0  ;;  %v10707_v41 = vpop.eup %10706 }
0x28a2   : > { %v7035_v42 = vmul.f32 %v10707_v41, %v10699_v30 }
0x28a3   : > { %10147 = vmatmul.mubr.msk.f32.vlgmr.msra.gmra.mxu0 %vm2370_vm4, %v6870_v11 }
0x28a4   : > { %10155 = vmatpush3.msra.mxu0 %v7037_v40  ;;  %10156 = vmatprep.mubr.msk.f32.mxu0 %vm11670_vm0, %v11669_v0 }
0x28a5   : > { %10164 = vmatprep.subr.mxu0 %v11669_v0  ;;  %v10709_v43 = vpop.eup %10708 }
0x28a6   : > { %v7200_v45 = vmul.f32 %v10709_v43, %v10701_v32 }
0x28a7   : > { %10157 = vmatmul.mubr.msk.f32.vlgmr.msra.gmra.mxu0 %vm2370_vm4, %v7035_v42 }
0x28a8   : > { %10165 = vmatpush3.msra.mxu0 %v7202_v44  ;;  %10166 = vmatprep.mubr.msk.f32.mxu0 %vm11670_vm0, %v11669_v0 }
0x28a9   : > { %10180 = vmatprep.subr.mxu0 %v11669_v0 }
0x28ab   : > { %10167 = vmatmul.mubr.msk.f32.vlgmr.msra.gmra.mxu0 %vm2370_vm4, %v7200_v45 }
0x28ac   : > { %10181 = vmatpush3.msra.mxu0 %v9432_v46  ;;  %10188 = vmatprep.mubr.msk.f32.mxu0 %vm11670_vm0, %v11669_v0 }
0x28ad   : > { %10182 = vmatprep.subr.mxu0 %v11669_v0 }
0x28ae   : > { %10183 = vmatpush3.msra.mxu0 %v9431_v48 }
0x28af   : > { %10184 = vmatprep.subr.mxu0 %v11669_v0 }
0x28b0   : > { %10185 = vmatpush3.msra.mxu0 %v9430_v50 }
0x28b1   : > { %10186 = vmatprep.subr.mxu0 %v11669_v0 }
0x28b2   : > { %10187 = vmatpush3.msra.mxu0 %v9429_v51 }
0x28b3   : > { %10189 = vmatmul.mubr.msk.f32.vlgmr.msra.gmra.mxu0 %vm2014_vm3, %v12689_v24  ;;  %10202 = vmatprep.subr.mxu0 %v11669_v0 }
0x28b4   : > { %10204 = vmatprep.mubr.msk.f32.mxu0 %vm11670_vm0, %v11669_v0 }
0x295f   : > { %v6778_v57 = vpop.f32.mrf.mxu0 }
0x2961   : > { %v10138_v24 = vpop.f32.mrf.mxu0 }
0x2963   : > { %v6943_v59 = vpop.f32.mrf.mxu0 }
0x2964   : > { %7278 = vrot.lane.b32.xlu0 %v6943_v59, %s13195_s3 }
0x2965   : > { %v10148_v60 = vpop.f32.mrf.mxu0 }
0x2967   : > { %v7108_v61 = vpop.f32.mrf.mxu0 }
0x2968   : > { %7282 = vrot.lane.b32.xlu1 %v7108_v61, %s13202_s18 }
0x2969   : > { %v10158_v27 = vpop.f32.mrf.mxu0 }
0x296b   : > { %v7273_v62 = vpop.f32.mrf.mxu0 }
0x296c   : > { %7286 = vrot.lane.b32.xlu0 %v7273_v62, %s13196_s28 }
0x296d   : > { %v10168_v54 = vpop.f32.mrf.mxu0 }
0x2973   : > { %v7482_v1 = vpop.f32.mrf.mxu0 }
0x2974   : > { %v12908_v2 = vadd.f32 %v9433_v63, %v7482_v1 }
0x2975   : > { %v10190_v3 = vpop.f32.mrf.mxu0 }
0x2976   : > { %10203 = vmatpush3.xpose.msk.msra.mxu0 %vm2370_vm4, %v12908_v2 }
0x2977   : > { %10207 = vmatprep.subr.mxu0 %v11669_v0 }
0x29d6   : > { %v7279_v4 = vpop.permute.xlu0 %7278 }
0x29d7   : > { %v7289_v6 = vsel %vm2370_vm4, %v6778_v57, %v7279_v4 }
0x29da   : > { %v7283_v5 = vpop.permute.xlu1 %7282 }
0x29db   : > { %v7290_v7 = vsel %vm3041_vm5, %v7289_v6, %v7283_v5 }
0x29de   : > { %v7287_v8 = vpop.permute.xlu0 %7286 }
0x29df   : > { %v7291_v9 = vsel %vm3043_vm6, %v7290_v7, %v7287_v8 }
0x29e0   : > { %10178 = vmatmul.mubr.msk.f32.vlgmr.msra.gmra.mxu1 %vm2014_vm3, %v7291_v9 }
0x29e1   : > { %10199 = vmatprep.mubr.msk.f32.mxu1 %vm11670_vm0, %v11669_v0  ;;  %10192 = vmatpush3.msra.mxu1 %v9438_v22 }
0x29e2   : > { %10193 = vmatprep.subr.mxu1 %v11669_v0 }
0x29e3   : > { %10194 = vmatpush3.msra.mxu1 %v9437_v56 }
0x29e4   : > { %10195 = vmatprep.subr.mxu1 %v11669_v0 }
0x2aa0   : > { %v7367_v12 = vpop.f32.mrf.mxu1 }
0x2aa1   : > { %v7368_v13 = vadd.f32 %v9425_v10, %v7367_v12 }
0x2aa2   : > { %v10179_v14 = vpop.f32.mrf.mxu1 }
0x2aa3   : > { %v7371_v15 = vadd.f32 %v7368_v13, %v12817_v47  ;;  %v9436_v47 = vld [vmem:[%s13204_s4 + $0x28] sm:$0xff] }
0x2aa4   : > { %10196 = vmatpush3.msra.mxu1 %v9436_v47 }
0x2aa5   : > { %v7376_v16 = vsel %vm2014_vm3, %v7371_v15, 0.0  ;;  %10197 = vmatprep.subr.mxu1 %v11669_v0 }
0x2aa6   : > { %7377 = vadd.xlane.f32.xlu1 %v7376_v16  ;;  %10198 = vmatpush3.msra.mxu1 %v9435_v25 }
0x2aa7   : > { %10212 = vmatprep.subr.mxu1 %v11669_v0 }
0x2b2f   : > { %v7378_v17 = vpop.xlane.xlu1 %7377 }
0x2b30   : > { %v7379_v18 = vmul.f32 0.03125, %v7378_v17 }
0x2b32   : > { %v7380_v19 = vsub.f32 %v7371_v15, %v7379_v18 }
0x2b34   : > { %v7381_v20 = vmul.f32 %v7380_v19, %v7380_v19 }
0x2b36   : > { %v7382_v21 = vsel %vm2014_vm3, %v7381_v20, 0.0 }
0x2b37   : > { %7383 = vadd.xlane.f32.xlu0 %v7382_v21 }
0x2b4d   : > { %7745 = vrot.lane.b32.xlu0 %v12908_v2, %s13205_s5 }
0x2bc0   : > { %v7384_v26 = vpop.xlane.xlu0 %7383 }
0x2bc1   : > { %v7385_v28 = vmul.f32 0.03125, %v7384_v26 }
0x2bc3   : > { %v7386_v29 = vadd.f32 1e-05, %v7385_v28 }
0x2bc4   : > { %v7746_v49 = vpop.permute.xlu0 %7745 }
0x2bc5   : > { %10710 = vrsqrt.f32 %v7386_v29 }
0x2bd2   : > { %v10711_v30 = vpop.eup %10710 }
0x2bd3   : > { %v7388_v32 = vmul.f32 %v10711_v30, %v7380_v19 }
0x2bd5   : > { %v7395_v23 = vmul.f32 %v9427_v31, %v7388_v32 }
0x2bd7   : > { %v12932_v34 = vadd.f32 %v9428_v33, %v7395_v23  ;;  %v9442_v23 = vld [vmem:[%s13210_s15 + $0x38] sm:$0xff] }
0x2bd9   : > { %10200 = vmatmul.mubr.msk.f32.vlgmr.msra.gmra.mxu1 %vm2014_vm3, %v12932_v34 }
0x2bda   : > { %10213 = vmatpush3.xpose.msk.msra.mxu1 %vm2370_vm4, %v7746_v49  ;;  %10214 = vmatprep.mubr.msk.f32.mxu1 %vm11670_vm0, %v11669_v0  ;;  %v9441_v49 = vld [vmem:[%s13210_s15 + $0x30] sm:$0xff] }
0x2bdb   : > { %10222 = vmatprep.subr.mxu1 %v11669_v0 }
0x2c99   : > { %v7575_v36 = vpop.f32.mrf.mxu1 }
0x2c9a   : > { %v7576_v37 = vadd.f32 %v9443_v35, %v7575_v36  ;;  %v9440_v35 = vld [vmem:[%s13210_s15 + $0x28] sm:$0xff]  ;;  %v9439_v36 = vld [vmem:[%s13210_s15 + $0x20] sm:$0xff] }
0x2c9b   : > { %v10201_v38 = vpop.f32.mrf.mxu1 }
0x2c9c   : > { %v7579_v39 = vmul.f32 0.35355338, %v7576_v37 }
0x2c9e   : > { %7743 = vrot.lane.b32.xlu1 %v7579_v39, %s13205_s5  ;;  %7908 = vrot.lane.b32.xlu0 %v7579_v39, %s13198_s26 }
0x2c9f   : > { %10205 = vmatmul.mubr.msk.f32.vlgmr.msra.gmra.mxu0 %vm2370_vm4, %v7579_v39 }
0x2ca0   : > { %10209 = vmatprep.mubr.msk.f32.mxu0 %vm11670_vm0, %v11669_v0 }
0x2ca2   : > { %7910 = vrot.lane.b32.xlu1 %v12908_v2, %s13198_s26  ;;  %8073 = vrot.lane.b32.xlu0 %v7579_v39, %s13199_s11 }
0x2ca6   : > { %8075 = vrot.lane.b32.xlu1 %v12908_v2, %s13199_s11 }
0x2d10   : > { %v7744_v40 = vpop.permute.xlu1 %7743  ;;  %v7909_v41 = vpop.permute.xlu0 %7908 }
0x2d11   : > { %10215 = vmatmul.mubr.msk.f32.vlgmr.msra.gmra.mxu1 %vm2370_vm4, %v7744_v40 }
0x2d12   : > { %10224 = vmatprep.mubr.msk.f32.mxu1 %vm11670_vm0, %v11669_v0 }
0x2d14   : > { %v7911_v11 = vpop.permute.xlu1 %7910  ;;  %v8074_v43 = vpop.permute.xlu0 %8073 }
0x2d15   : > { %10223 = vmatpush3.xpose.msk.msra.mxu1 %vm2370_vm4, %v7911_v11 }
0x2d16   : > { %10232 = vmatprep.subr.mxu1 %v11669_v0 }
0x2d18   : > { %v8076_v42 = vpop.permute.xlu1 %8075  ;;  %10225 = vmatmul.mubr.msk.f32.vlgmr.msra.gmra.mxu1 %vm2370_vm4, %v7909_v41 }
0x2d19   : > { %10233 = vmatpush3.xpose.msk.msra.mxu1 %vm2370_vm4, %v8076_v42  ;;  %10234 = vmatprep.mubr.msk.f32.mxu1 %vm11670_vm0, %v11669_v0 }
0x2d1a   : > { %10242 = vmatprep.subr.mxu1 %v11669_v0 }
0x2d1c   : > { %10235 = vmatmul.mubr.msk.f32.vlgmr.msra.gmra.mxu1 %vm2370_vm4, %v8074_v43 }
0x2d1d   : > { %10250 = vmatprep.mubr.msk.f32.mxu1 %vm11670_vm0, %v11669_v0  ;;  %10243 = vmatpush3.msra.mxu1 %v9442_v23 }
0x2d1e   : > { %10244 = vmatprep.subr.mxu1 %v11669_v0 }
0x2d1f   : > { %10245 = vmatpush3.msra.mxu1 %v9441_v49 }
0x2d20   : > { %10246 = vmatprep.subr.mxu1 %v11669_v0 }
0x2d21   : > { %10247 = vmatpush3.msra.mxu1 %v9440_v35 }
0x2d22   : > { %10248 = vmatprep.subr.mxu1 %v11669_v0 }
0x2d23   : > { %10249 = vmatpush3.msra.mxu1 %v9439_v36 }
0x2d24   : > { %10264 = vmatprep.subr.mxu1 %v11669_v0 }
0x2d5f   : > { %v7652_v44 = vpop.f32.mrf.mxu0 }
0x2d60   : > { %v7656_v45 = vsel %vm2370_vm4, %v7652_v44, -inf }
0x2d61   : > { %7657 = vmax.xlane.f32.xlu1 %v7656_v45  ;;  %v10206_v46 = vpop.f32.mrf.mxu0 }
0x2dd1   : > { %v7817_v48 = vpop.f32.mrf.mxu1 }
0x2dd2   : > { %v7821_v50 = vsel %vm2370_vm4, %v7817_v48, -inf }
0x2dd3   : > { %7822 = vmax.xlane.f32.xlu0 %v7821_v50  ;;  %v10216_v51 = vpop.f32.mrf.mxu1  ;;  %v9457_v50 = vld [vmem:[#allocation4 + $0x1] ss:$0 sm:$0xff] }
0x2dd8   : > { %v7982_v52 = vpop.f32.mrf.mxu1 }
0x2dd9   : > { %v7986_v53 = vsel %vm2370_vm4, %v7982_v52, -inf }
0x2dda   : > { %7987 = vmax.xlane.f32.xlu0 %v7986_v53  ;;  %v10226_v55 = vpop.f32.mrf.mxu1 }
0x2ddc   : > { %v8147_v57 = vpop.f32.mrf.mxu1 }
0x2ddd   : > { %v8151_v58 = vsel %vm2370_vm4, %v8147_v57, -inf }
0x2dde   : > { %v10236_v24 = vpop.f32.mrf.mxu1  ;;  %8152 = vmax.xlane.f32.xlu1 %v8151_v58 }
0x2dea   : > { %v7658_v59 = vpop.xlane.xlu1 %7657 }
0x2deb   : > { %v7659_v60 = vsub.f32 %v7652_v44, %v7658_v59 }
0x2ded   : > { %v7660_v61 = vmul.f32 1.442695, %v7659_v60 }
0x2def   : > { %10712 = vpow2.f32 %v7660_v61  ;;  %7832 = vrot.lane.b32.xlu1 %v12908_v2, %s13209_s14  ;;  %s13213_s14 = sld [smem:[#allocation105_spill]] }
0x2dfc   : > { %v10713_v27 = vpop.eup %10712 }
0x2dfd   : > { %v7662_v62 = vsel %vm2370_vm4, %v10713_v27, 0.0 }
0x2dfe   : > { %7663 = vadd.xlane.f32.xlu0 %v7662_v62  ;;  %v8367_v62 = vld [vmem:[#allocation10 + $0x30] sm:$0xff] }
0x2e14   : > { %7667 = vrot.lane.b32.xlu0 %v12908_v2, %s13206_s6  ;;  %s13214_s6 = sld [smem:[#allocation100_spill]] }
0x2e5c   : > { %v7823_v54 = vpop.xlane.xlu0 %7822 }
0x2e5d   : > { %v7824_v63 = vsub.f32 %v7817_v48, %v7823_v54  ;;  %v8366_v54 = vld [vmem:[#allocation10 + $0x28] sm:$0xff] }
0x2e5f   : > { %v7825_v1 = vmul.f32 1.442695, %v7824_v63 }
0x2e61   : > { %10714 = vpow2.f32 %v7825_v1 }
0x2e63   : > { %v7988_v3 = vpop.xlane.xlu0 %7987 }
0x2e64   : > { %v7989_v4 = vsub.f32 %v7982_v52, %v7988_v3 }
0x2e66   : > { %v7990_v5 = vmul.f32 1.442695, %v7989_v4 }
0x2e67   : > { %v8153_v6 = vpop.xlane.xlu1 %8152 }
0x2e68   : > { %10716 = vpow2.f32 %v7990_v5  ;;  %v8154_v7 = vsub.f32 %v8147_v57, %v8153_v6  ;;  %v9459_v5 = vld [vmem:[#allocation16 + $0x1] ss:$0 sm:$0xff] }
0x2e6a   : > { %v8155_v8 = vmul.f32 1.442695, %v8154_v7  ;;  %v9460_v7 = vld [vmem:[#allocation15 + $0x1] ss:$0 sm:$0xff] }
0x2e6b   : > { %v7833_v20 = vpop.permute.xlu1 %7832 }
0x2e6c   : > { %10718 = vpow2.f32 %v8155_v8 }
0x2e6e   : > { %v10715_v9 = vpop.eup %10714 }
0x2e6f   : > { %v7827_v10 = vsel %vm2370_vm4, %v10715_v9, 0.0 }
0x2e70   : > { %7828 = vadd.xlane.f32.xlu1 %v7827_v10  ;;  %v9470_v10 = vld [vmem:[%s13211_s17 + $0x78] sm:$0xff] }
0x2e75   : > { %v10717_v12 = vpop.eup %10716 }
0x2e76   : > { %v7992_v13 = vsel %vm2370_vm4, %v10717_v12, 0.0 }
0x2e77   : > { %7993 = vadd.xlane.f32.xlu0 %v7992_v13  ;;  %v9468_v13 = vld [vmem:[%s13211_s17 + $0x68] sm:$0xff] }
0x2e79   : > { %v10719_v14 = vpop.eup %10718 }
0x2e7a   : > { %v8157_v15 = vsel %vm2370_vm4, %v10719_v14, 0.0 }
0x2e7b   : > { %8158 = vadd.xlane.f32.xlu1 %v8157_v15  ;;  %v9466_v15 = vld [vmem:[%s13211_s17 + $0x58] sm:$0xff] }
0x2e87   : > { %v7664_v16 = vpop.xlane.xlu0 %7663 }
0x2e88   : > { %10720 = vrcp.f32 %v7664_v16  ;;  %v9465_v16 = vld [vmem:[%s13211_s17 + $0x50] sm:$0xff] }
0x2e8b   : > { %v7668_v17 = vpop.permute.xlu0 %7667 }
0x2e8c   : > { %10208 = vmatpush3.msra.mxu0 %v7668_v17  ;;  %7997 = vrot.lane.b32.xlu1 %v12908_v2, %s13207_s12  ;;  %v9464_v17 = vld [vmem:[%s13211_s17 + $0x48] sm:$0xff]  ;;  %s13215_s12 = sshll.u32 %s13217_s0, 3 }
0x2e8d   : > { %8162 = vrot.lane.b32.xlu0 %v12908_v2, %s13208_s13  ;;  %10217 = vmatprep.subr.mxu0 %v11669_v0  ;;  %s13212_s13 = sld [smem:[#allocation98_spill]]  ;;  %s1910_s5 = scalar_lea.vmem %s11938_s8, %s13215_s12 }
0x2e95   : > { %v10721_v18 = vpop.eup %10720 }
0x2e96   : > { %v7666_v19 = vmul.f32 %v10721_v18, %v10713_v27  ;;  %v8368_v27 = vld [vmem:[#allocation10 + $0x38] sm:$0xff] }
0x2e97   : > { %v9463_v18 = vld [vmem:[%s13211_s17 + $0x40] sm:$0xff] }
0x2e98   : > { %10210 = vmatmul.mubr.msk.f32.vlgmr.msra.gmra.mxu0 %vm2370_vm4, %v7666_v19  ;;  %v9461_v19 = vld [vmem:[#allocation7 + $0x1] ss:$0 sm:$0xff] }
0x2e99   : > { %10218 = vmatpush3.msra.mxu0 %v7833_v20  ;;  %10219 = vmatprep.mubr.msk.f32.mxu0 %vm11670_vm0, %v11669_v0 }
0x2e9a   : > { %10227 = vmatprep.subr.mxu0 %v11669_v0 }
0x2ef9   : > { %v7829_v21 = vpop.xlane.xlu1 %7828 }
0x2efa   : > { %10722 = vrcp.f32 %v7829_v21 }
0x2f00   : > { %v7994_v22 = vpop.xlane.xlu0 %7993 }
0x2f01   : > { %10724 = vrcp.f32 %v7994_v22 }
0x2f04   : > { %v8159_v56 = vpop.xlane.xlu1 %8158  ;;  %v8163_v29 = vpop.permute.xlu0 %8162 }
0x2f05   : > { %10726 = vrcp.f32 %v8159_v56 }
0x2f07   : > { %v10723_v2 = vpop.eup %10722 }
0x2f08   : > { %v7998_v47 = vpop.permute.xlu1 %7997  ;;  %v7831_v25 = vmul.f32 %v10723_v2, %v10715_v9 }
0x2f0a   : > { %10220 = vmatmul.mubr.msk.f32.vlgmr.msra.gmra.mxu0 %vm2370_vm4, %v7831_v25 }
0x2f0b   : > { %10228 = vmatpush3.msra.mxu0 %v7998_v47  ;;  %10229 = vmatprep.mubr.msk.f32.mxu0 %vm11670_vm0, %v11669_v0 }
0x2f0c   : > { %10237 = vmatprep.subr.mxu0 %v11669_v0 }
0x2f0e   : > { %v10725_v26 = vpop.eup %10724 }
0x2f0f   : > { %v7996_v28 = vmul.f32 %v10725_v26, %v10717_v12  ;;  %v9469_v12 = vld [vmem:[%s13211_s17 + $0x70] sm:$0xff] }
0x2f11   : > { %10230 = vmatmul.mubr.msk.f32.vlgmr.msra.gmra.mxu0 %vm2370_vm4, %v7996_v28  ;;  %v9471_v28 = vld [vmem:[#allocation9 + $0x1] ss:$0 sm:$0xff] }
0x2f12   : > { %v10727_v30 = vpop.eup %10726  ;;  %10238 = vmatpush3.msra.mxu0 %v8163_v29  ;;  %10239 = vmatprep.mubr.msk.f32.mxu0 %vm11670_vm0, %v11669_v0 }
0x2f13   : > { %v8161_v31 = vmul.f32 %v10727_v30, %v10719_v14  ;;  %10253 = vmatprep.subr.mxu0 %v11669_v0  ;;  %v9467_v14 = vld [vmem:[%s13211_s17 + $0x60] sm:$0xff] }
0x2f15   : > { %10240 = vmatmul.mubr.msk.f32.vlgmr.msra.gmra.mxu0 %vm2370_vm4, %v8161_v31 }
0x2f16   : > { %10261 = vmatprep.mubr.msk.f32.mxu0 %vm11670_vm0, %v11669_v0  ;;  %10254 = vmatpush3.msra.mxu0 %v8368_v27 }
0x2f17   : > { %10255 = vmatprep.subr.mxu0 %v11669_v0 }
0x2f18   : > { %10256 = vmatpush3.msra.mxu0 %v8367_v62 }
0x2f19   : > { %10257 = vmatprep.subr.mxu0 %v11669_v0 }
0x2f1a   : > { %10258 = vmatpush3.msra.mxu0 %v8366_v54 }
0x2f1b   : > { %10259 = vmatprep.subr.mxu0 %v11669_v0 }
0x2f58   : > { %v7739_v32 = vpop.f32.mrf.mxu0 }
0x2f5a   : > { %v10211_v33 = vpop.f32.mrf.mxu0 }
0x2fca   : > { %v7904_v37 = vpop.f32.mrf.mxu0 }
0x2fcb   : > { %8239 = vrot.lane.b32.xlu1 %v7904_v37, %s13195_s3 }
0x2fcc   : > { %v10221_v38 = vpop.f32.mrf.mxu0 }
0x2fd1   : > { %v8069_v39 = vpop.f32.mrf.mxu0 }
0x2fd2   : > { %8243 = vrot.lane.b32.xlu0 %v8069_v39, %s13202_s18 }
0x2fd3   : > { %v10231_v40 = vpop.f32.mrf.mxu0 }
0x2fd5   : > { %v8234_v11 = vpop.f32.mrf.mxu0 }
0x2fd6   : > { %8247 = vrot.lane.b32.xlu1 %v8234_v11, %s13196_s28 }
0x2fd7   : > { %v10241_v41 = vpop.f32.mrf.mxu0 }
0x2fd8   : > { %v9473_v41 = vld [vmem:[#allocation19 + $0x1] ss:$0 sm:$0xff] }
0x303d   : > { %v8240_v42 = vpop.permute.xlu1 %8239 }
0x303e   : > { %v8250_v44 = vsel %vm2370_vm4, %v7739_v32, %v8240_v42 }
0x3044   : > { %v8244_v43 = vpop.permute.xlu0 %8243 }
0x3045   : > { %v8251_v45 = vsel %vm3041_vm5, %v8250_v44, %v8244_v43  ;;  %v9474_v43 = vld [vmem:[#allocation18 + $0x1] ss:$0 sm:$0xff] }
0x3048   : > { %v8248_v46 = vpop.permute.xlu1 %8247 }
0x3049   : > { %v8252_v48 = vsel %vm3043_vm6, %v8251_v45, %v8248_v46 }
0x304a   : > { %10251 = vmatmul.mubr.msk.f32.vlgmr.msra.gmra.mxu1 %vm2014_vm3, %v8252_v48 }
0x304b   : > { %10280 = vmatprep.mubr.msk.f32.mxu1 %vm11670_vm0, %v11669_v0  ;;  %10265 = vmatpush3.msra.mxu1 %v9470_v10 }
0x304c   : > { %10266 = vmatprep.subr.mxu1 %v11669_v0 }
0x304d   : > { %10267 = vmatpush3.msra.mxu1 %v9469_v12 }
0x304e   : > { %10268 = vmatprep.subr.mxu1 %v11669_v0 }
0x304f   : > { %10269 = vmatpush3.msra.mxu1 %v9468_v13 }
0x3050   : > { %10270 = vmatprep.subr.mxu1 %v11669_v0 }
0x3051   : > { %10271 = vmatpush3.msra.mxu1 %v9467_v14  ;;  %v9477_v14 = vld [vmem:[%s11923_s9] ss:$0 sm:$0xff] }
0x3052   : > { %10272 = vmatprep.subr.mxu1 %v11669_v0 }
0x3053   : > { %10273 = vmatpush3.msra.mxu1 %v9466_v15 }
0x3054   : > { %10274 = vmatprep.subr.mxu1 %v11669_v0 }
0x3055   : > { %10275 = vmatpush3.msra.mxu1 %v9465_v16  ;;  %v9478_v16 = vld [vmem:[%s13213_s14] ss:$0 sm:$0xff] }
0x3056   : > { %10276 = vmatprep.subr.mxu1 %v11669_v0 }
0x3057   : > { %10277 = vmatpush3.msra.mxu1 %v9464_v17 }
0x3058   : > { %10278 = vmatprep.subr.mxu1 %v11669_v0 }
0x3059   : > { %10279 = vmatpush3.msra.mxu1 %v9463_v18 }
0x310a   : > { %v8328_v51 = vpop.f32.mrf.mxu1 }
0x310b   : > { %v8329_v52 = vadd.f32 %v9457_v50, %v8328_v51 }
0x310c   : > { %v10252_v53 = vpop.f32.mrf.mxu1 }
0x310d   : > { %v8332_v55 = vadd.f32 %v8329_v52, %v12932_v34  ;;  %v8365_v34 = vld [vmem:[#allocation10 + $0x20] sm:$0xff] }
0x310e   : > { %10260 = vmatpush3.msra.mxu0 %v8365_v34 }
0x310f   : > { %v8337_v57 = vsel %vm2014_vm3, %v8332_v55, 0.0  ;;  %10283 = vmatprep.subr.mxu0 %v11669_v0 }
0x3110   : > { %8338 = vadd.xlane.f32.xlu0 %v8337_v57 }
0x3199   : > { %v8339_v58 = vpop.xlane.xlu0 %8338 }
0x319a   : > { %v8340_v24 = vmul.f32 0.03125, %v8339_v58 }
0x319c   : > { %v8341_v59 = vsub.f32 %v8332_v55, %v8340_v24 }
0x319e   : > { %v8342_v60 = vmul.f32 %v8341_v59, %v8341_v59 }
0x31a0   : > { %v8343_v61 = vsel %vm2014_vm3, %v8342_v60, 0.0 }
0x31a1   : > { %8344 = vadd.xlane.f32.xlu1 %v8343_v61  ;;  %v9476_v61 = vld [vmem:[#allocation27] ss:$0 sm:$0xff] }
0x322a   : > { %v8345_v63 = vpop.xlane.xlu1 %8344 }
0x322b   : > { %v8346_v1 = vmul.f32 0.03125, %v8345_v63 }
0x322d   : > { %v8347_v3 = vadd.f32 1e-05, %v8346_v1 }
0x322f   : > { %10728 = vrsqrt.f32 %v8347_v3 }
0x323c   : > { %v10729_v4 = vpop.eup %10728 }
0x323d   : > { %v8349_v6 = vmul.f32 %v10729_v4, %v8341_v59  ;;  %v9475_v59 = vld [vmem:[#allocation28] ss:$0 sm:$0xff] }
0x323f   : > { %v8356_v8 = vmul.f32 %v9459_v5, %v8349_v6  ;;  %v8638_v5 = vld [vmem:[%s13212_s13 + $0x18] sm:$0xff]  ;;  %v8637_v6 = vld [vmem:[%s13212_s13 + $0x10] sm:$0xff] }
0x3241   : > { %v8363_v9 = vadd.f32 %v9460_v7, %v8356_v8  ;;  %v8636_v7 = vld [vmem:[%s13212_s13 + $0x8] sm:$0xff]  ;;  %v8635_v8 = vld [vmem:[%s13212_s13] sm:$0xff] }
0x3243   : > { %10262 = vmatmul.mubr.msk.f32.vlgmr.msra.gmra.mxu0 %vm2014_vm3, %v8363_v9 }
0x3244   : > { %10291 = vmatprep.mubr.msk.f32.mxu0 %vm11670_vm0, %v11669_v0  ;;  %10284 = vmatpush3.msra.mxu0 %v8638_v5 }
0x3245   : > { %10285 = vmatprep.subr.mxu0 %v11669_v0 }
0x3246   : > { %10286 = vmatpush3.msra.mxu0 %v8637_v6 }
0x3247   : > { %10287 = vmatprep.subr.mxu0 %v11669_v0 }
0x3248   : > { %10288 = vmatpush3.msra.mxu0 %v8636_v7 }
0x3249   : > { %10289 = vmatprep.subr.mxu0 %v11669_v0 }
0x324a   : > { %10290 = vmatpush3.msra.mxu0 %v8635_v8 }
0x324b   : > { %10294 = vmatprep.subr.mxu0 %v11669_v0 }
0x3303   : > { %v8446_v20 = vpop.f32.mrf.mxu0 }
0x3304   : > { %v8447_v21 = vadd.f32 %v9461_v19, %v8446_v20  ;;  %v8724_v19 = vld [vmem:[%s13214_s6] sm:$0xff]  ;;  %v9479_v20 = vld [vmem:[#allocation48] ss:$0 sm:$0xff] }
0x3305   : > { %v10263_v22 = vpop.f32.mrf.mxu0 }
0x3306   : > { %v8451_v56 = vmul.f32 0.70710677, %v8447_v21  ;;  %v8450_v47 = vmul.f32 0.5, %v8447_v21 }
0x3308   : > { %10730 = verf.f32 %v8451_v56 }
0x3315   : > { %v10731_v2 = vpop.eup %10730 }
0x3316   : > { %v8453_v25 = vadd.f32 1.0, %v10731_v2 }
0x3318   : > { %v8454_v26 = vmul.f32 %v8453_v25, %v8450_v47 }
0x331a   : > { %10281 = vmatmul.mubr.msk.f32.vlgmr.msra.gmra.mxu1 %vm3259_vm7, %v8454_v26 }
0x33da   : > { %v8541_v29 = vpop.f32.mrf.mxu1 }
0x33db   : > { %v8542_v30 = vadd.f32 %v9471_v28, %v8541_v29  ;;  %v9481_v29 = vld [vmem:[#allocation49] ss:$0 sm:$0xff] }
0x33dc   : > { %v10282_v31 = vpop.f32.mrf.mxu1 }
0x33dd   : > { %v8545_v32 = vadd.f32 %v8542_v30, %v8363_v9 }
0x33df   : > { %v8550_v33 = vsel %vm2014_vm3, %v8545_v32, 0.0 }
0x33e0   : > { %8551 = vadd.xlane.f32.xlu0 %v8550_v33 }
0x3469   : > { %v8552_v23 = vpop.xlane.xlu0 %8551 }
0x346a   : > { %v8553_v49 = vmul.f32 0.03125, %v8552_v23 }
0x346c   : > { %v8554_v35 = vsub.f32 %v8545_v32, %v8553_v49 }
0x346e   : > { %v8555_v36 = vmul.f32 %v8554_v35, %v8554_v35 }
0x3470   : > { %v8556_v37 = vsel %vm2014_vm3, %v8555_v36, 0.0 }
0x3471   : > { %8557 = vadd.xlane.f32.xlu0 %v8556_v37 }
0x34fa   : > { %v8558_v38 = vpop.xlane.xlu0 %8557 }
0x34fb   : > { %v8559_v39 = vmul.f32 0.03125, %v8558_v38 }
0x34fd   : > { %v8560_v40 = vadd.f32 1e-05, %v8559_v39 }
0x34ff   : > { %10732 = vrsqrt.f32 %v8560_v40 }
0x350c   : > { %v10733_v11 = vpop.eup %10732 }
0x350d   : > { %v8562_v42 = vmul.f32 %v10733_v11, %v8554_v35 }
0x350f   : > { %v8569_v44 = vmul.f32 %v9473_v41, %v8562_v42 }
0x3511   : > { %v8576_v45 = vadd.f32 %v9474_v43, %v8569_v44 }
0x3513   : > { %v8579_v46 = vsel %vm2014_vm3, %v8576_v45, 0.0 }
0x3514   : > { %8580 = vadd.xlane.f32.xlu1 %v8579_v46 }
0x359d   : > { %v8581_v48 = vpop.xlane.xlu1 %8580 }
0x359e   : > { %v8582_v50 = vmul.f32 0.03125, %v8581_v48 }
0x35a0   : > { %v8583_v51 = vsub.f32 %v8576_v45, %v8582_v50 }
0x35a2   : > { %v8584_v52 = vmul.f32 %v8583_v51, %v8583_v51 }
0x35a4   : > { %v8585_v53 = vsel %vm2014_vm3, %v8584_v52, 0.0 }
0x35a5   : > { %8586 = vadd.xlane.f32.xlu0 %v8585_v53 }
0x362e   : > { %v8587_v55 = vpop.xlane.xlu0 %8586 }
0x362f   : > { %v8588_v57 = vmul.f32 0.03125, %v8587_v55 }
0x3631   : > { %v8589_v58 = vadd.f32 1e-05, %v8588_v57 }
0x3633   : > { %10734 = vrsqrt.f32 %v8589_v58 }
0x3640   : > { %v10735_v24 = vpop.eup %10734 }
0x3641   : > { %v8591_v60 = vmul.f32 %v10735_v24, %v8583_v51 }
0x3643   : > { %v8598_v27 = vmul.f32 %v9475_v59, %v8591_v60 }
0x3645   : > { %v8605_v62 = vadd.f32 %v9476_v61, %v8598_v27 }
0x3647   : > { %v8608_v54 = vsel %vm2014_vm3, %v8605_v62, 0.0 }
0x3648   : > { %8609 = vadd.xlane.f32.xlu1 %v8608_v54 }
0x36d1   : > { %v8610_v34 = vpop.xlane.xlu1 %8609 }
0x36d2   : > { %v8611_v63 = vmul.f32 0.03125, %v8610_v34 }
0x36d4   : > { %v8612_v1 = vsub.f32 %v8605_v62, %v8611_v63 }
0x36d6   : > { %v8613_v3 = vmul.f32 %v8612_v1, %v8612_v1 }
0x36d8   : > { %v8614_v4 = vsel %vm2014_vm3, %v8613_v3, 0.0 }
0x36d9   : > { %8615 = vadd.xlane.f32.xlu0 %v8614_v4 }
0x3762   : > { %v8616_v9 = vpop.xlane.xlu0 %8615 }
0x3763   : > { %v8617_v10 = vmul.f32 0.03125, %v8616_v9 }
0x3765   : > { %v8618_v12 = vadd.f32 1e-05, %v8617_v10 }
0x3767   : > { %10736 = vrsqrt.f32 %v8618_v12 }
0x3774   : > { %v10737_v13 = vpop.eup %10736 }
0x3775   : > { %v8620_v15 = vmul.f32 %v10737_v13, %v8612_v1 }
0x3777   : > { %v8627_v17 = vmul.f32 %v9477_v14, %v8620_v15 }
0x3779   : > { %v8634_v18 = vadd.f32 %v9478_v16, %v8627_v17 }
0x377b   : > { %10292 = vmatmul.mubr.msk.f32.vlgmr.msra.gmra.mxu0 %vm2014_vm3, %v8634_v18 }
0x377c   : > { %10296 = vmatprep.mubr.msk.f32.mxu0 %vm11670_vm0, %v11669_v0  ;;  %10295 = vmatpush3.msra.mxu0 %v8724_v19 }
0x383b   : > { %v8715_v21 = vpop.f32.mrf.mxu0 }
0x383c   : > { %v8716_v22 = vadd.f32 %v9479_v20, %v8715_v21 }
0x383d   : > { %v10293_v56 = vpop.f32.mrf.mxu0 }
0x383e   : > { %v8720_v2 = vmul.f32 0.70710677, %v8716_v22  ;;  %v8719_v25 = vmul.f32 0.5, %v8716_v22 }
0x3840   : > { %10738 = verf.f32 %v8720_v2 }
0x384d   : > { %v10739_v47 = vpop.eup %10738 }
0x384e   : > { %v8722_v26 = vadd.f32 1.0, %v10739_v47 }
0x3850   : > { %v8723_v28 = vmul.f32 %v8722_v26, %v8719_v25 }
0x3852   : > { %10297 = vmatmul.mubr.msk.f32.vlgmr.msra.gmra.mxu0 %vm2370_vm4, %v8723_v28 }
0x3912   : > { %v8801_v30 = vpop.f32.mrf.mxu0 }
0x3913   : > { %v8802_v31 = vadd.f32 %v9481_v29, %v8801_v30 }
0x3914   : > { %v10298_v0 = vpop.f32.mrf.mxu0 }
0x3915   : > { %8805 = vst.msk [vmem:[%s1910_s5] sm:$0xff] %vm1920_vm2, %v8802_v31 }
0x3916 PF: > { %s126_s7 = sadd.s32 1, %s11582_s7  }
0x3917   : > { %p123_p3 = scmp.ge.s32.totalorder %s126_s7, 4  }
0x3919   :  { %125 = sbr.rel (!%p123_p3) target bundleno = 112 (0x70), region = 460 }
0x391e   :  { %8825 = vsyncpa [#allocation3], 1 }
0x391f   :  { %8827 = vsyncpa [#allocation3 + $0x1], 1 }
0x3920   :  { %8828 = vsyncpa [#allocation5], 1 }
0x3921   :  { %8829 = vsyncpa [#allocation8], 1 }
0x3922   :  { %8830 = vsyncpa [#allocation11], 1 }
0x3923   :  { %8831 = vsyncpa [#allocation14], 1 }
0x3924   :  { %8832 = vsyncpa [#allocation17], 1 }
0x3925   :  { %8833 = vsyncpa [#allocation20], 1 }
0x3926   :  { %8834 = vsyncpa [#allocation23], 1 }
0x3927   :  { %8835 = vsyncpa [#allocation26], 1 }
0x3928   :  { %8836 = vsyncpa [#allocation29], 1 }
0x3929   :  { %8837 = vsyncpa [#allocation32], 1 }
0x392a   :  { %8838 = vsyncpa [#allocation35], 1 }
0x392b   :  { %8839 = vsyncpa [#allocation38], 1 }
0x392c   :  { %8840 = vsyncpa [#allocation41], 1 }
0x392d   :  { %8841 = vsyncpa [#allocation44], 1 }
0x392e   :  { %8842 = vsyncpa [#allocation47], 1 }
0x392f   :  { %8843 = vsyncpa [#allocation50], 1 }

</bundles_post_ra>
